<compile_context>
chip_gen: v7x
topology: tpu7x:2x2x1
jax: 0.10.0
libtpu: 0.0.40
codegen_flags: <defaults>
</compile_context>

<pallas_src>
import numpy as np

import jax
import jax.numpy as jnp
from jax import lax
from jax.experimental import pallas as pl
from jax.experimental.pallas import tpu as pltpu

BN_EPS = 1e-5


# ---------------------------------------------------------------------------
# In-kernel helpers (traced inside the Pallas kernel bodies)
# ---------------------------------------------------------------------------
def _spatial_indices(H, W):
    """(h, w) index of each flattened spatial row; each of shape (H*W, 1)."""
    r = lax.broadcasted_iota(jnp.int32, (H * W, 1), 0)
    if (W & (W - 1)) == 0:            # power of two -> pure shift/and on VPU
        h = r >> (W.bit_length() - 1)
        w = r & (W - 1)
    else:
        h = r // W
        w = r % W
    return h, w


def _conv3x3_bias_relu(x2d, w_ref, b_ref, h_idx, w_idx, H, W):
    """'same' 3x3 conv on an (H*W, Cin) activation (rows = h*W+w, lanes = C).

    w_ref: (9, Cin, Cout) BN-folded weights, k = ky*3 + kx.
    b_ref: (1, Cout)      BN-folded bias.
    Nine shifted (sublane roll + boundary mask) MXU matmuls accumulated in
    f32, then bias + ReLU.  Everything stays in VMEM / vregs.
    """
    HW = H * W
    acc = None
    k = 0
    for dy in (-1, 0, 1):
        for dx in (-1, 0, 1):
            s = dy * W + dx
            if s == 0:
                xs = x2d
            else:
                xs = pltpu.roll(x2d, shift=(-s) % HW, axis=0)
                conds = []
                if dy < 0:
                    conds.append(h_idx >= -dy)
                if dy > 0:
                    conds.append(h_idx < H - dy)
                if dx < 0:
                    conds.append(w_idx >= -dx)
                if dx > 0:
                    conds.append(w_idx < W - dx)
                valid = conds[0]
                for c in conds[1:]:
                    valid = valid & c
                xs = jnp.where(valid, xs, 0.0)       # zero padding semantics
            part = jnp.dot(xs, w_ref[k], preferred_element_type=jnp.float32)
            acc = part if acc is None else acc + part
            k += 1
    return jnp.maximum(acc + b_ref[...], 0.0)


def _make_cnn_kernel(H, W, add_res1, add_res2):
    """Whole-CNN kernel: both DoubleConvolutionBlocks + ReLUs + AvgPools."""
    H2, W2 = H // 2, W // 2

    def kernel(x_ref, wa1_ref, ba1_ref, wb1_ref, bb1_ref, p1_ref,
               wa2_ref, ba2_ref, wb2_ref, bb2_ref, p2_ref, out_ref):
        # ---- block 1: DoubleConvolutionBlock on the full-resolution grid ---
        x = x_ref[0]                                        # (H*W, Cin)
        hi, wi = _spatial_indices(H, W)
        y = _conv3x3_bias_relu(x, wa1_ref, ba1_ref, hi, wi, H, W)
        y = _conv3x3_bias_relu(y, wb1_ref, bb1_ref, hi, wi, H, W)
        if add_res1:                                        # only if cin==cout
            y = y + x
        y = jnp.maximum(y, 0.0)                             # Sequential ReLU()
        y = jnp.dot(p1_ref[...], y,                         # AvgPool2d(2)
                    preferred_element_type=jnp.float32)     # (H2*W2, C)

        # ---- block 2: DoubleConvolutionBlock on the half-resolution grid ---
        hi2, wi2 = _spatial_indices(H2, W2)
        z = _conv3x3_bias_relu(y, wa2_ref, ba2_ref, hi2, wi2, H2, W2)
        z = _conv3x3_bias_relu(z, wb2_ref, bb2_ref, hi2, wi2, H2, W2)
        if add_res2:
            z = z + y
        z = jnp.maximum(z, 0.0)                             # Sequential ReLU()
        z = jnp.dot(p2_ref[...], z,                         # AvgPool2d(2)
                    preferred_element_type=jnp.float32)     # (H*W//16, Cout)
        out_ref[0] = z

    return kernel


def _mlp_head_kernel(x_ref, w1_ref, b1_ref, w2_ref, b2_ref, w3_ref, b3_ref,
                     w4_ref, b4_ref, out_ref):
    """Fused: Linear+ReLU, Linear+ReLU, Linear+ReLU, Linear (output head)."""
    h = jnp.maximum(
        jnp.dot(x_ref[...], w1_ref[...], preferred_element_type=jnp.float32)
        + b1_ref[...], 0.0)
    h = jnp.maximum(
        jnp.dot(h, w2_ref[...], preferred_element_type=jnp.float32)
        + b2_ref[...], 0.0)
    h = jnp.maximum(
        jnp.dot(h, w3_ref[...], preferred_element_type=jnp.float32)
        + b3_ref[...], 0.0)
    out_ref[...] = (
        jnp.dot(h, w4_ref[...], preferred_element_type=jnp.float32)
        + b4_ref[...])


# ---------------------------------------------------------------------------
# Wrapper glue (parameter folding / packing only — no per-activation work)
# ---------------------------------------------------------------------------
def _fold_bn(w, b, gamma, beta, mean, var):
    """Fold eval-mode BatchNorm into the conv weight/bias.

    w: (K, K, Cin, Cout) -> ((K*K, Cin, Cout), (1, Cout))."""
    K, _, c_in, c_out = w.shape
    scale = gamma * lax.rsqrt(var + BN_EPS)                 # (Cout,)
    w_f = (w * scale).reshape(K * K, c_in, c_out)
    b_f = ((b - mean) * scale + beta).reshape(1, c_out)
    return w_f, b_f


def _pool_matrix(H, W):
    """(H//2 * W//2, H*W) matrix implementing AvgPool2d(kernel_size=2)."""
    Ho, Wo = H // 2, W // 2
    P = np.zeros((Ho * Wo, H * W), np.float32)
    for h in range(Ho):
        for w in range(Wo):
            ro = h * Wo + w
            for dy in (0, 1):
                for dx in (0, 1):
                    P[ro, (2 * h + dy) * W + (2 * w + dx)] = 0.25
    return jnp.asarray(P)


def _replicated_spec(arr):
    """Full-array block, same block at every grid step (weights / constants)."""
    ndim = arr.ndim

    def index_map(*_):
        return (0,) * ndim

    return pl.BlockSpec(arr.shape, index_map)


def cnn_features(x_nchw, params):
    """One fused pallas_call for the whole CNN feature extractor.

    Returns (B, (H//4)*(W//4), 2*hidden) features with rows in (h, w)
    row-major order and channels last.
    """
    B, C, H, W = x_nchw.shape
    # NCHW -> (B, H*W, C): channels land in the TPU lane dimension.
    x = jnp.transpose(x_nchw, (0, 2, 3, 1)).reshape(B, H * W, C)
    x = x.astype(jnp.float32)

    wa1, ba1 = _fold_bn(*params['b1c1'])
    wb1, bb1 = _fold_bn(*params['b1c2'])
    wa2, ba2 = _fold_bn(*params['b2c1'])
    wb2, bb2 = _fold_bn(*params['b2c2'])

    c_out1 = wb1.shape[-1]
    c_out2 = wb2.shape[-1]
    add_res1 = (C == c_out1)        # DoubleConvolutionBlock.add_residual
    add_res2 = (c_out1 == c_out2)

    p1 = _pool_matrix(H, W)
    p2 = _pool_matrix(H // 2, W // 2)

    hw_out = (H // 4) * (W // 4)
    kernel = _make_cnn_kernel(H, W, add_res1, add_res2)

    consts = (wa1, ba1, wb1, bb1, p1, wa2, ba2, wb2, bb2, p2)
    return pl.pallas_call(
        kernel,
        out_shape=jax.ShapeDtypeStruct((B, hw_out, c_out2), jnp.float32),
        grid=(B,),
        in_specs=[pl.BlockSpec((1, H * W, C), lambda b: (b, 0, 0))]
                 + [_replicated_spec(a) for a in consts],
        out_specs=pl.BlockSpec((1, hw_out, c_out2), lambda b: (b, 0, 0)),
        compiler_params=pltpu.CompilerParams(
            dimension_semantics=("parallel",)),   # v7x: one image per core
    )(x, *consts)


def mlp_head(feats, mlp_params, hw_spatial, c_feat):
    """Fused MLP (3x Linear+ReLU) + classification output head (Linear)."""
    (w1, b1), (w2, b2), (w3, b3), (w4, b4) = mlp_params
    hidden = w1.shape[1]
    # Fold the torch Flatten (c, h, w) permutation into w1's rows so feats can
    # stay in (spatial-row-major, channels-last) order — no transpose needed.
    w1p = (w1.reshape(c_feat, hw_spatial, hidden)
             .transpose(1, 0, 2)
             .reshape(hw_spatial * c_feat, hidden))
    B = feats.shape[0]
    out_units = w4.shape[1]
    args = (feats, w1p, b1.reshape(1, -1), w2, b2.reshape(1, -1),
            w3, b3.reshape(1, -1), w4, b4.reshape(1, -1))
    return pl.pallas_call(
        _mlp_head_kernel,
        out_shape=jax.ShapeDtypeStruct((B, out_units), jnp.float32),
        grid=(1,),
        in_specs=[_replicated_spec(a) for a in args],
        out_specs=pl.BlockSpec((B, out_units), lambda i: (0, 0)),
    )(*args)


# ---------------------------------------------------------------------------
# Full model forward
# ---------------------------------------------------------------------------
def galaxy_cnn_mlp_forward(x_nchw, params):
    feats3d = cnn_features(x_nchw, params)      # (B, hw, 2*hidden)
    B, hw, c = feats3d.shape
    feats = feats3d.reshape(B, hw * c)          # trivial row-major collapse
    # Dropout(0.25): identity in eval mode.
    return mlp_head(feats, params['mlp'], hw, c)


# ---------------------------------------------------------------------------
# Deterministic parameter initialization (synthetic, nonzero BN stats so the
# folded-BN path is actually exercised)
# ---------------------------------------------------------------------------
def init_params(key, in_shape, hidden, k, mlp_hidden, out_units):
    C, H, W = in_shape
    ks = iter(jax.random.split(key, 40))

    def conv_bn(cin, cout):
        w = jax.random.normal(next(ks), (k, k, cin, cout), jnp.float32) \
            * (k * k * cin) ** -0.5
        b = jax.random.normal(next(ks), (cout,), jnp.float32) * 0.01
        gamma = 1.0 + 0.1 * jax.random.normal(next(ks), (cout,), jnp.float32)
        beta = 0.1 * jax.random.normal(next(ks), (cout,), jnp.float32)
        mean = 0.1 * jax.random.normal(next(ks), (cout,), jnp.float32)
        var = 1.0 + 0.1 * jax.random.uniform(next(ks), (cout,), jnp.float32)
        return (w, b, gamma, beta, mean, var)

    def linear(fin, fout):
        w = jax.random.normal(next(ks), (fin, fout), jnp.float32) * fin ** -0.5
        b = jax.random.normal(next(ks), (fout,), jnp.float32) * 0.01
        return (w, b)

    flat = (H // 4) * (W // 4) * (2 * hidden)
    return {
        'b1c1': conv_bn(C, hidden),           # block1 conv1: channels -> hidden
        'b1c2': conv_bn(hidden, hidden),      # block1 conv2: hidden   -> hidden
        'b2c1': conv_bn(hidden, hidden),      # block2 conv1: hidden   -> hidden
        'b2c2': conv_bn(hidden, 2 * hidden),  # block2 conv2: hidden   -> 2*hidden
        'mlp': (linear(flat, mlp_hidden),
                linear(mlp_hidden, 2 * mlp_hidden),
                linear(2 * mlp_hidden, out_units),
                linear(out_units, out_units)),   # classification output head
    }


if __name__ == "__main__":
    key = jax.random.PRNGKey(0)
    k_x, k_p = jax.random.split(key)

    B, C, H, W = 2, 4, 16, 16
    channel_count_hidden = 8
    convolution_kernel_size = 3
    mlp_hidden_unit_count = 32
    output_units = 8

    x = jax.random.normal(k_x, (B, C, H, W), jnp.float32)
    params = init_params(k_p, (C, H, W), channel_count_hidden,
                         convolution_kernel_size, mlp_hidden_unit_count,
                         output_units)

    fwd = jax.jit(galaxy_cnn_mlp_forward)
    out = jax.block_until_ready(fwd(x, params))
    assert out.shape == (B, output_units), out.shape
    assert bool(jnp.all(jnp.isfinite(out)))
    print("KERNEL_OK")
</pallas_src>

<mosaic_0001>
module attributes {stable_mosaic.version = 11 : i64} {
  func.func @_mlp_head_kernel(%arg0: i32, %arg1: memref<2x256xf32, #tpu.memory_space<vmem>>, %arg2: memref<256x32xf32, #tpu.memory_space<vmem>>, %arg3: memref<1x32xf32, #tpu.memory_space<vmem>>, %arg4: memref<32x64xf32, #tpu.memory_space<vmem>>, %arg5: memref<1x64xf32, #tpu.memory_space<vmem>>, %arg6: memref<64x8xf32, #tpu.memory_space<vmem>>, %arg7: memref<1x8xf32, #tpu.memory_space<vmem>>, %arg8: memref<8x8xf32, #tpu.memory_space<vmem>>, %arg9: memref<1x8xf32, #tpu.memory_space<vmem>>, %arg10: memref<2x8xf32, #tpu.memory_space<vmem>>) attributes {dimension_semantics = [#tpu.dimension_semantics<arbitrary>], iteration_bounds = array<i64: 1>, scalar_prefetch = 0 : i64, scratch_operands = 0 : i64, tpu.core_type = #tpu.core_type<tc>, window_params = [{pipeline_mode = #tpu.pipeline_mode<synchronous>, transform_indices = @transform_0, window_bounds = array<i64: 2, 256>}, {pipeline_mode = #tpu.pipeline_mode<synchronous>, transform_indices = @transform_1, window_bounds = array<i64: 256, 32>}, {pipeline_mode = #tpu.pipeline_mode<synchronous>, transform_indices = @transform_2, window_bounds = array<i64: 1, 32>}, {pipeline_mode = #tpu.pipeline_mode<synchronous>, transform_indices = @transform_3, window_bounds = array<i64: 32, 64>}, {pipeline_mode = #tpu.pipeline_mode<synchronous>, transform_indices = @transform_4, window_bounds = array<i64: 1, 64>}, {pipeline_mode = #tpu.pipeline_mode<synchronous>, transform_indices = @transform_5, window_bounds = array<i64: 64, 8>}, {pipeline_mode = #tpu.pipeline_mode<synchronous>, transform_indices = @transform_6, window_bounds = array<i64: 1, 8>}, {pipeline_mode = #tpu.pipeline_mode<synchronous>, transform_indices = @transform_7, window_bounds = array<i64: 8, 8>}, {pipeline_mode = #tpu.pipeline_mode<synchronous>, transform_indices = @transform_8, window_bounds = array<i64: 1, 8>}, {pipeline_mode = #tpu.pipeline_mode<synchronous>, transform_indices = @transform_9, window_bounds = array<i64: 2, 8>}]} {
    %c0 = arith.constant 0 : index
    %c0_0 = arith.constant 0 : index
    %0 = vector.load %arg1[%c0, %c0_0] : memref<2x256xf32, #tpu.memory_space<vmem>>, vector<2x256xf32>
    %c0_1 = arith.constant 0 : index
    %c0_2 = arith.constant 0 : index
    %1 = vector.load %arg2[%c0_1, %c0_2] : memref<256x32xf32, #tpu.memory_space<vmem>>, vector<256x32xf32>
    %cst = arith.constant dense<0.000000e+00> : vector<2x32xf32>
    %2 = tpu.matmul %0, %1, %cst {dimension_numbers = #tpu.dot_dimension_numbers<[1], [0], [0], [1], [0, 0, 1, 1], [], []>} : vector<2x256xf32>, vector<256x32xf32>, vector<2x32xf32> -> vector<2x32xf32>
    %c0_3 = arith.constant 0 : index
    %c0_4 = arith.constant 0 : index
    %3 = vector.load %arg3[%c0_3, %c0_4] : memref<1x32xf32, #tpu.memory_space<vmem>>, vector<1x32xf32>
    %4 = vector.broadcast %3 : vector<1x32xf32> to vector<2x32xf32>
    %5 = arith.addf %2, %4 : vector<2x32xf32>
    %cst_5 = arith.constant 0.000000e+00 : f32
    %6 = vector.broadcast %cst_5 : f32 to vector<2x32xf32>
    %7 = arith.maximumf %5, %6 : vector<2x32xf32>
    %c0_6 = arith.constant 0 : index
    %c0_7 = arith.constant 0 : index
    %8 = vector.load %arg4[%c0_6, %c0_7] : memref<32x64xf32, #tpu.memory_space<vmem>>, vector<32x64xf32>
    %cst_8 = arith.constant dense<0.000000e+00> : vector<2x64xf32>
    %9 = tpu.matmul %7, %8, %cst_8 {dimension_numbers = #tpu.dot_dimension_numbers<[1], [0], [0], [1], [0, 0, 1, 1], [], []>} : vector<2x32xf32>, vector<32x64xf32>, vector<2x64xf32> -> vector<2x64xf32>
    %c0_9 = arith.constant 0 : index
    %c0_10 = arith.constant 0 : index
    %10 = vector.load %arg5[%c0_9, %c0_10] : memref<1x64xf32, #tpu.memory_space<vmem>>, vector<1x64xf32>
    %11 = vector.broadcast %10 : vector<1x64xf32> to vector<2x64xf32>
    %12 = arith.addf %9, %11 : vector<2x64xf32>
    %cst_11 = arith.constant 0.000000e+00 : f32
    %13 = vector.broadcast %cst_11 : f32 to vector<2x64xf32>
    %14 = arith.maximumf %12, %13 : vector<2x64xf32>
    %c0_12 = arith.constant 0 : index
    %c0_13 = arith.constant 0 : index
    %15 = vector.load %arg6[%c0_12, %c0_13] : memref<64x8xf32, #tpu.memory_space<vmem>>, vector<64x8xf32>
    %cst_14 = arith.constant dense<0.000000e+00> : vector<2x8xf32>
    %16 = tpu.matmul %14, %15, %cst_14 {dimension_numbers = #tpu.dot_dimension_numbers<[1], [0], [0], [1], [0, 0, 1, 1], [], []>} : vector<2x64xf32>, vector<64x8xf32>, vector<2x8xf32> -> vector<2x8xf32>
    %c0_15 = arith.constant 0 : index
    %c0_16 = arith.constant 0 : index
    %17 = vector.load %arg7[%c0_15, %c0_16] : memref<1x8xf32, #tpu.memory_space<vmem>>, vector<1x8xf32>
    %18 = vector.broadcast %17 : vector<1x8xf32> to vector<2x8xf32>
    %19 = arith.addf %16, %18 : vector<2x8xf32>
    %cst_17 = arith.constant 0.000000e+00 : f32
    %20 = vector.broadcast %cst_17 : f32 to vector<2x8xf32>
    %21 = arith.maximumf %19, %20 : vector<2x8xf32>
    %c0_18 = arith.constant 0 : index
    %c0_19 = arith.constant 0 : index
    %22 = vector.load %arg8[%c0_18, %c0_19] : memref<8x8xf32, #tpu.memory_space<vmem>>, vector<8x8xf32>
    %cst_20 = arith.constant dense<0.000000e+00> : vector<2x8xf32>
    %23 = tpu.matmul %21, %22, %cst_20 {dimension_numbers = #tpu.dot_dimension_numbers<[1], [0], [0], [1], [0, 0, 1, 1], [], []>} : vector<2x8xf32>, vector<8x8xf32>, vector<2x8xf32> -> vector<2x8xf32>
    %c0_21 = arith.constant 0 : index
    %c0_22 = arith.constant 0 : index
    %24 = vector.load %arg9[%c0_21, %c0_22] : memref<1x8xf32, #tpu.memory_space<vmem>>, vector<1x8xf32>
    %25 = vector.broadcast %24 : vector<1x8xf32> to vector<2x8xf32>
    %26 = arith.addf %23, %25 : vector<2x8xf32>
    %c0_23 = arith.constant 0 : index
    %c0_24 = arith.constant 0 : index
    %27 = vector.load %arg10[%c0_23, %c0_24] : memref<2x8xf32, #tpu.memory_space<vmem>>, vector<2x8xf32>
    tpu.vector_store %arg10[%c0_23, %c0_24], %26 {strides = array<i32>} : memref<2x8xf32, #tpu.memory_space<vmem>>, vector<2x8xf32>,
    return
  }
  func.func @transform_0(%arg0: i32) -> (i32, i32) {
    %c0_i32 = arith.constant 0 : i32
    %c0_i32_0 = arith.constant 0 : i32
    %c0_i32_1 = arith.constant 0 : i32
    return %c0_i32, %c0_i32_0 : i32, i32
  }
  func.func @transform_1(%arg0: i32) -> (i32, i32) {
    %c0_i32 = arith.constant 0 : i32
    %c0_i32_0 = arith.constant 0 : i32
    %c0_i32_1 = arith.constant 0 : i32
    return %c0_i32, %c0_i32_0 : i32, i32
  }
  func.func @transform_2(%arg0: i32) -> (i32, i32) {
    %c0_i32 = arith.constant 0 : i32
    %c0_i32_0 = arith.constant 0 : i32
    %c0_i32_1 = arith.constant 0 : i32
    return %c0_i32, %c0_i32_0 : i32, i32
  }
  func.func @transform_3(%arg0: i32) -> (i32, i32) {
    %c0_i32 = arith.constant 0 : i32
    %c0_i32_0 = arith.constant 0 : i32
    %c0_i32_1 = arith.constant 0 : i32
    return %c0_i32, %c0_i32_0 : i32, i32
  }
  func.func @transform_4(%arg0: i32) -> (i32, i32) {
    %c0_i32 = arith.constant 0 : i32
    %c0_i32_0 = arith.constant 0 : i32
    %c0_i32_1 = arith.constant 0 : i32
    return %c0_i32, %c0_i32_0 : i32, i32
  }
  func.func @transform_5(%arg0: i32) -> (i32, i32) {
    %c0_i32 = arith.constant 0 : i32
    %c0_i32_0 = arith.constant 0 : i32
    %c0_i32_1 = arith.constant 0 : i32
    return %c0_i32, %c0_i32_0 : i32, i32
  }
  func.func @transform_6(%arg0: i32) -> (i32, i32) {
    %c0_i32 = arith.constant 0 : i32
    %c0_i32_0 = arith.constant 0 : i32
    %c0_i32_1 = arith.constant 0 : i32
    return %c0_i32, %c0_i32_0 : i32, i32
  }
  func.func @transform_7(%arg0: i32) -> (i32, i32) {
    %c0_i32 = arith.constant 0 : i32
    %c0_i32_0 = arith.constant 0 : i32
    %c0_i32_1 = arith.constant 0 : i32
    return %c0_i32, %c0_i32_0 : i32, i32
  }
  func.func @transform_8(%arg0: i32) -> (i32, i32) {
    %c0_i32 = arith.constant 0 : i32
    %c0_i32_0 = arith.constant 0 : i32
    %c0_i32_1 = arith.constant 0 : i32
    return %c0_i32, %c0_i32_0 : i32, i32
  }
  func.func @transform_9(%arg0: i32) -> (i32, i32) {
    %c0_i32 = arith.constant 0 : i32
    %c0_i32_0 = arith.constant 0 : i32
    %c0_i32_1 = arith.constant 0 : i32
    return %c0_i32, %c0_i32_0 : i32, i32
  }
}

module attributes {stable_mosaic.version = 11 : i64} {
  func.func @kernel(%arg0: i32, %arg1: memref<1x256x4xf32, #tpu.memory_space<vmem>>, %arg2: memref<9x4x8xf32, #tpu.memory_space<vmem>>, %arg3: memref<1x8xf32, #tpu.memory_space<vmem>>, %arg4: memref<9x8x8xf32, #tpu.memory_space<vmem>>, %arg5: memref<1x8xf32, #tpu.memory_space<vmem>>, %arg6: memref<64x256xf32, #tpu.memory_space<vmem>>, %arg7: memref<9x8x8xf32, #tpu.memory_space<vmem>>, %arg8: memref<1x8xf32, #tpu.memory_space<vmem>>, %arg9: memref<9x8x16xf32, #tpu.memory_space<vmem>>, %arg10: memref<1x16xf32, #tpu.memory_space<vmem>>, %arg11: memref<16x64xf32, #tpu.memory_space<vmem>>, %arg12: memref<1x16x16xf32, #tpu.memory_space<vmem>>) attributes {dimension_semantics = [#tpu.dimension_semantics<parallel>], iteration_bounds = array<i64: 2>, scalar_prefetch = 0 : i64, scratch_operands = 0 : i64, tpu.core_type = #tpu.core_type<tc>, window_params = [{transform_indices = @transform_0, window_bounds = array<i64: 1, 256, 4>}, {pipeline_mode = #tpu.pipeline_mode<synchronous>, transform_indices = @transform_1, window_bounds = array<i64: 9, 4, 8>}, {pipeline_mode = #tpu.pipeline_mode<synchronous>, transform_indices = @transform_2, window_bounds = array<i64: 1, 8>}, {pipeline_mode = #tpu.pipeline_mode<synchronous>, transform_indices = @transform_3, window_bounds = array<i64: 9, 8, 8>}, {pipeline_mode = #tpu.pipeline_mode<synchronous>, transform_indices = @transform_4, window_bounds = array<i64: 1, 8>}, {pipeline_mode = #tpu.pipeline_mode<synchronous>, transform_indices = @transform_5, window_bounds = array<i64: 64, 256>}, {pipeline_mode = #tpu.pipeline_mode<synchronous>, transform_indices = @transform_6, window_bounds = array<i64: 9, 8, 8>}, {pipeline_mode = #tpu.pipeline_mode<synchronous>, transform_indices = @transform_7, window_bounds = array<i64: 1, 8>}, {pipeline_mode = #tpu.pipeline_mode<synchronous>, transform_indices = @transform_8, window_bounds = array<i64: 9, 8, 16>}, {pipeline_mode = #tpu.pipeline_mode<synchronous>, transform_indices = @transform_9, window_bounds = array<i64: 1, 16>}, {pipeline_mode = #tpu.pipeline_mode<synchronous>, transform_indices = @transform_10, window_bounds = array<i64: 16, 64>}, {transform_indices = @transform_11, window_bounds = array<i64: 1, 16, 16>}]} {
    %c0 = arith.constant 0 : index
    %c0_0 = arith.constant 0 : index
    %c0_1 = arith.constant 0 : index
    %0 = vector.load %arg1[%c0, %c0_0, %c0_1] : memref<1x256x4xf32, #tpu.memory_space<vmem>>, vector<1x256x4xf32>
    %1 = vector.shape_cast %0 : vector<1x256x4xf32> to vector<256x4xf32>
    %2 = tpu.iota {dimensions = array<i32: 0>} : vector<256x1xi32>
    %c4_i32 = arith.constant 4 : i32
    %3 = vector.broadcast %c4_i32 : i32 to vector<256x1xi32>
    %4 = arith.shrsi %2, %3 : vector<256x1xi32>
    %c15_i32 = arith.constant 15 : i32
    %5 = vector.broadcast %c15_i32 : i32 to vector<256x1xi32>
    %6 = arith.andi %2, %5 : vector<256x1xi32>
    %c17_i32 = arith.constant 17 : i32
    %7 = tpu.dynamic_rotate %1 by %c17_i32 dim 0 : vector<256x4xf32>, i32 -> vector<256x4xf32>
    %c1_i32 = arith.constant 1 : i32
    %8 = vector.broadcast %c1_i32 : i32 to vector<256x1xi32>
    %9 = arith.cmpi sge, %4, %8 : vector<256x1xi32>
    %c1_i32_2 = arith.constant 1 : i32
    %10 = vector.broadcast %c1_i32_2 : i32 to vector<256x1xi32>
    %11 = arith.cmpi sge, %6, %10 : vector<256x1xi32>
    %12 = arith.andi %9, %11 : vector<256x1xi1>
    %cst = arith.constant 0.000000e+00 : f32
    %13 = vector.shape_cast %12 : vector<256x1xi1> to vector<256x1xi1>
    %14 = vector.broadcast %13 : vector<256x1xi1> to vector<256x4xi1>
    %15 = vector.broadcast %cst : f32 to vector<256x4xf32>
    %16 = arith.select %14, %7, %15 : vector<256x4xi1>, vector<256x4xf32>
    %c0_3 = arith.constant 0 : index
    %c0_4 = arith.constant 0 : index
    %c0_5 = arith.constant 0 : index
    %17 = vector.load %arg2[%c0_3, %c0_4, %c0_5] : memref<9x4x8xf32, #tpu.memory_space<vmem>>, vector<1x4x8xf32>
    %18 = vector.shape_cast %17 : vector<1x4x8xf32> to vector<4x8xf32>
    %cst_6 = arith.constant dense<0.000000e+00> : vector<256x8xf32>
    %19 = tpu.matmul %16, %18, %cst_6 {dimension_numbers = #tpu.dot_dimension_numbers<[1], [0], [0], [1], [0, 0, 1, 1], [], []>} : vector<256x4xf32>, vector<4x8xf32>, vector<256x8xf32> -> vector<256x8xf32>
    %c16_i32 = arith.constant 16 : i32
    %20 = tpu.dynamic_rotate %1 by %c16_i32 dim 0 : vector<256x4xf32>, i32 -> vector<256x4xf32>
    %c1_i32_7 = arith.constant 1 : i32
    %21 = vector.broadcast %c1_i32_7 : i32 to vector<256x1xi32>
    %22 = arith.cmpi sge, %4, %21 : vector<256x1xi32>
    %cst_8 = arith.constant 0.000000e+00 : f32
    %23 = vector.shape_cast %22 : vector<256x1xi1> to vector<256x1xi1>
    %24 = vector.broadcast %23 : vector<256x1xi1> to vector<256x4xi1>
    %25 = vector.broadcast %cst_8 : f32 to vector<256x4xf32>
    %26 = arith.select %24, %20, %25 : vector<256x4xi1>, vector<256x4xf32>
    %c1 = arith.constant 1 : index
    %c0_9 = arith.constant 0 : index
    %c0_10 = arith.constant 0 : index
    %27 = vector.load %arg2[%c1, %c0_9, %c0_10] : memref<9x4x8xf32, #tpu.memory_space<vmem>>, vector<1x4x8xf32>
    %28 = vector.shape_cast %27 : vector<1x4x8xf32> to vector<4x8xf32>
    %cst_11 = arith.constant dense<0.000000e+00> : vector<256x8xf32>
    %29 = tpu.matmul %26, %28, %cst_11 {dimension_numbers = #tpu.dot_dimension_numbers<[1], [0], [0], [1], [0, 0, 1, 1], [], []>} : vector<256x4xf32>, vector<4x8xf32>, vector<256x8xf32> -> vector<256x8xf32>
    %30 = arith.addf %19, %29 : vector<256x8xf32>
    %c15_i32_12 = arith.constant 15 : i32
    %31 = tpu.dynamic_rotate %1 by %c15_i32_12 dim 0 : vector<256x4xf32>, i32 -> vector<256x4xf32>
    %c1_i32_13 = arith.constant 1 : i32
    %32 = vector.broadcast %c1_i32_13 : i32 to vector<256x1xi32>
    %33 = arith.cmpi sge, %4, %32 : vector<256x1xi32>
    %c15_i32_14 = arith.constant 15 : i32
    %34 = vector.broadcast %c15_i32_14 : i32 to vector<256x1xi32>
    %35 = arith.cmpi slt, %6, %34 : vector<256x1xi32>
    %36 = arith.andi %33, %35 : vector<256x1xi1>
    %cst_15 = arith.constant 0.000000e+00 : f32
    %37 = vector.shape_cast %36 : vector<256x1xi1> to vector<256x1xi1>
    %38 = vector.broadcast %37 : vector<256x1xi1> to vector<256x4xi1>
    %39 = vector.broadcast %cst_15 : f32 to vector<256x4xf32>
    %40 = arith.select %38, %31, %39 : vector<256x4xi1>, vector<256x4xf32>
    %c2 = arith.constant 2 : index
    %c0_16 = arith.constant 0 : index
    %c0_17 = arith.constant 0 : index
    %41 = vector.load %arg2[%c2, %c0_16, %c0_17] : memref<9x4x8xf32, #tpu.memory_space<vmem>>, vector<1x4x8xf32>
    %42 = vector.shape_cast %41 : vector<1x4x8xf32> to vector<4x8xf32>
    %cst_18 = arith.constant dense<0.000000e+00> : vector<256x8xf32>
    %43 = tpu.matmul %40, %42, %cst_18 {dimension_numbers = #tpu.dot_dimension_numbers<[1], [0], [0], [1], [0, 0, 1, 1], [], []>} : vector<256x4xf32>, vector<4x8xf32>, vector<256x8xf32> -> vector<256x8xf32>
    %44 = arith.addf %30, %43 : vector<256x8xf32>
    %c1_i32_19 = arith.constant 1 : i32
    %45 = tpu.dynamic_rotate %1 by %c1_i32_19 dim 0 : vector<256x4xf32>, i32 -> vector<256x4xf32>
    %c1_i32_20 = arith.constant 1 : i32
    %46 = vector.broadcast %c1_i32_20 : i32 to vector<256x1xi32>
    %47 = arith.cmpi sge, %6, %46 : vector<256x1xi32>
    %cst_21 = arith.constant 0.000000e+00 : f32
    %48 = vector.shape_cast %47 : vector<256x1xi1> to vector<256x1xi1>
    %49 = vector.broadcast %48 : vector<256x1xi1> to vector<256x4xi1>
    %50 = vector.broadcast %cst_21 : f32 to vector<256x4xf32>
    %51 = arith.select %49, %45, %50 : vector<256x4xi1>, vector<256x4xf32>
    %c3 = arith.constant 3 : index
    %c0_22 = arith.constant 0 : index
    %c0_23 = arith.constant 0 : index
    %52 = vector.load %arg2[%c3, %c0_22, %c0_23] : memref<9x4x8xf32, #tpu.memory_space<vmem>>, vector<1x4x8xf32>
    %53 = vector.shape_cast %52 : vector<1x4x8xf32> to vector<4x8xf32>
    %cst_24 = arith.constant dense<0.000000e+00> : vector<256x8xf32>
    %54 = tpu.matmul %51, %53, %cst_24 {dimension_numbers = #tpu.dot_dimension_numbers<[1], [0], [0], [1], [0, 0, 1, 1], [], []>} : vector<256x4xf32>, vector<4x8xf32>, vector<256x8xf32> -> vector<256x8xf32>
    %55 = arith.addf %44, %54 : vector<256x8xf32>
    %c4 = arith.constant 4 : index
    %c0_25 = arith.constant 0 : index
    %c0_26 = arith.constant 0 : index
    %56 = vector.load %arg2[%c4, %c0_25, %c0_26] : memref<9x4x8xf32, #tpu.memory_space<vmem>>, vector<1x4x8xf32>
    %57 = vector.shape_cast %56 : vector<1x4x8xf32> to vector<4x8xf32>
    %cst_27 = arith.constant dense<0.000000e+00> : vector<256x8xf32>
    %58 = tpu.matmul %1, %57, %cst_27 {dimension_numbers = #tpu.dot_dimension_numbers<[1], [0], [0], [1], [0, 0, 1, 1], [], []>} : vector<256x4xf32>, vector<4x8xf32>, vector<256x8xf32> -> vector<256x8xf32>
    %59 = arith.addf %55, %58 : vector<256x8xf32>
    %c255_i32 = arith.constant 255 : i32
    %60 = tpu.dynamic_rotate %1 by %c255_i32 dim 0 : vector<256x4xf32>, i32 -> vector<256x4xf32>
    %c15_i32_28 = arith.constant 15 : i32
    %61 = vector.broadcast %c15_i32_28 : i32 to vector<256x1xi32>
    %62 = arith.cmpi slt, %6, %61 : vector<256x1xi32>
    %cst_29 = arith.constant 0.000000e+00 : f32
    %63 = vector.shape_cast %62 : vector<256x1xi1> to vector<256x1xi1>
    %64 = vector.broadcast %63 : vector<256x1xi1> to vector<256x4xi1>
    %65 = vector.broadcast %cst_29 : f32 to vector<256x4xf32>
    %66 = arith.select %64, %60, %65 : vector<256x4xi1>, vector<256x4xf32>
    %c5 = arith.constant 5 : index
    %c0_30 = arith.constant 0 : index
    %c0_31 = arith.constant 0 : index
    %67 = vector.load %arg2[%c5, %c0_30, %c0_31] : memref<9x4x8xf32, #tpu.memory_space<vmem>>, vector<1x4x8xf32>
    %68 = vector.shape_cast %67 : vector<1x4x8xf32> to vector<4x8xf32>
    %cst_32 = arith.constant dense<0.000000e+00> : vector<256x8xf32>
    %69 = tpu.matmul %66, %68, %cst_32 {dimension_numbers = #tpu.dot_dimension_numbers<[1], [0], [0], [1], [0, 0, 1, 1], [], []>} : vector<256x4xf32>, vector<4x8xf32>, vector<256x8xf32> -> vector<256x8xf32>
    %70 = arith.addf %59, %69 : vector<256x8xf32>
    %c241_i32 = arith.constant 241 : i32
    %71 = tpu.dynamic_rotate %1 by %c241_i32 dim 0 : vector<256x4xf32>, i32 -> vector<256x4xf32>
    %c15_i32_33 = arith.constant 15 : i32
    %72 = vector.broadcast %c15_i32_33 : i32 to vector<256x1xi32>
    %73 = arith.cmpi slt, %4, %72 : vector<256x1xi32>
    %c1_i32_34 = arith.constant 1 : i32
    %74 = vector.broadcast %c1_i32_34 : i32 to vector<256x1xi32>
    %75 = arith.cmpi sge, %6, %74 : vector<256x1xi32>
    %76 = arith.andi %73, %75 : vector<256x1xi1>
    %cst_35 = arith.constant 0.000000e+00 : f32
    %77 = vector.shape_cast %76 : vector<256x1xi1> to vector<256x1xi1>
    %78 = vector.broadcast %77 : vector<256x1xi1> to vector<256x4xi1>
    %79 = vector.broadcast %cst_35 : f32 to vector<256x4xf32>
    %80 = arith.select %78, %71, %79 : vector<256x4xi1>, vector<256x4xf32>
    %c6 = arith.constant 6 : index
    %c0_36 = arith.constant 0 : index
    %c0_37 = arith.constant 0 : index
    %81 = vector.load %arg2[%c6, %c0_36, %c0_37] : memref<9x4x8xf32, #tpu.memory_space<vmem>>, vector<1x4x8xf32>
    %82 = vector.shape_cast %81 : vector<1x4x8xf32> to vector<4x8xf32>
    %cst_38 = arith.constant dense<0.000000e+00> : vector<256x8xf32>
    %83 = tpu.matmul %80, %82, %cst_38 {dimension_numbers = #tpu.dot_dimension_numbers<[1], [0], [0], [1], [0, 0, 1, 1], [], []>} : vector<256x4xf32>, vector<4x8xf32>, vector<256x8xf32> -> vector<256x8xf32>
    %84 = arith.addf %70, %83 : vector<256x8xf32>
    %c240_i32 = arith.constant 240 : i32
    %85 = tpu.dynamic_rotate %1 by %c240_i32 dim 0 : vector<256x4xf32>, i32 -> vector<256x4xf32>
    %c15_i32_39 = arith.constant 15 : i32
    %86 = vector.broadcast %c15_i32_39 : i32 to vector<256x1xi32>
    %87 = arith.cmpi slt, %4, %86 : vector<256x1xi32>
    %cst_40 = arith.constant 0.000000e+00 : f32
    %88 = vector.shape_cast %87 : vector<256x1xi1> to vector<256x1xi1>
    %89 = vector.broadcast %88 : vector<256x1xi1> to vector<256x4xi1>
    %90 = vector.broadcast %cst_40 : f32 to vector<256x4xf32>
    %91 = arith.select %89, %85, %90 : vector<256x4xi1>, vector<256x4xf32>
    %c7 = arith.constant 7 : index
    %c0_41 = arith.constant 0 : index
    %c0_42 = arith.constant 0 : index
    %92 = vector.load %arg2[%c7, %c0_41, %c0_42] : memref<9x4x8xf32, #tpu.memory_space<vmem>>, vector<1x4x8xf32>
    %93 = vector.shape_cast %92 : vector<1x4x8xf32> to vector<4x8xf32>
    %cst_43 = arith.constant dense<0.000000e+00> : vector<256x8xf32>
    %94 = tpu.matmul %91, %93, %cst_43 {dimension_numbers = #tpu.dot_dimension_numbers<[1], [0], [0], [1], [0, 0, 1, 1], [], []>} : vector<256x4xf32>, vector<4x8xf32>, vector<256x8xf32> -> vector<256x8xf32>
    %95 = arith.addf %84, %94 : vector<256x8xf32>
    %c239_i32 = arith.constant 239 : i32
    %96 = tpu.dynamic_rotate %1 by %c239_i32 dim 0 : vector<256x4xf32>, i32 -> vector<256x4xf32>
    %c15_i32_44 = arith.constant 15 : i32
    %97 = vector.broadcast %c15_i32_44 : i32 to vector<256x1xi32>
    %98 = arith.cmpi slt, %4, %97 : vector<256x1xi32>
    %c15_i32_45 = arith.constant 15 : i32
    %99 = vector.broadcast %c15_i32_45 : i32 to vector<256x1xi32>
    %100 = arith.cmpi slt, %6, %99 : vector<256x1xi32>
    %101 = arith.andi %98, %100 : vector<256x1xi1>
    %cst_46 = arith.constant 0.000000e+00 : f32
    %102 = vector.shape_cast %101 : vector<256x1xi1> to vector<256x1xi1>
    %103 = vector.broadcast %102 : vector<256x1xi1> to vector<256x4xi1>
    %104 = vector.broadcast %cst_46 : f32 to vector<256x4xf32>
    %105 = arith.select %103, %96, %104 : vector<256x4xi1>, vector<256x4xf32>
    %c8 = arith.constant 8 : index
    %c0_47 = arith.constant 0 : index
    %c0_48 = arith.constant 0 : index
    %106 = vector.load %arg2[%c8, %c0_47, %c0_48] : memref<9x4x8xf32, #tpu.memory_space<vmem>>, vector<1x4x8xf32>
    %107 = vector.shape_cast %106 : vector<1x4x8xf32> to vector<4x8xf32>
    %cst_49 = arith.constant dense<0.000000e+00> : vector<256x8xf32>
    %108 = tpu.matmul %105, %107, %cst_49 {dimension_numbers = #tpu.dot_dimension_numbers<[1], [0], [0], [1], [0, 0, 1, 1], [], []>} : vector<256x4xf32>, vector<4x8xf32>, vector<256x8xf32> -> vector<256x8xf32>
    %109 = arith.addf %95, %108 : vector<256x8xf32>
    %c0_50 = arith.constant 0 : index
    %c0_51 = arith.constant 0 : index
    %110 = vector.load %arg3[%c0_50, %c0_51] : memref<1x8xf32, #tpu.memory_space<vmem>>, vector<1x8xf32>
    %111 = vector.broadcast %110 : vector<1x8xf32> to vector<256x8xf32>
    %112 = arith.addf %109, %111 : vector<256x8xf32>
    %cst_52 = arith.constant 0.000000e+00 : f32
    %113 = vector.broadcast %cst_52 : f32 to vector<256x8xf32>
    %114 = arith.maximumf %112, %113 : vector<256x8xf32>
    %c17_i32_53 = arith.constant 17 : i32
    %115 = tpu.dynamic_rotate %114 by %c17_i32_53 dim 0 : vector<256x8xf32>, i32 -> vector<256x8xf32>
    %c1_i32_54 = arith.constant 1 : i32
    %116 = vector.broadcast %c1_i32_54 : i32 to vector<256x1xi32>
    %117 = arith.cmpi sge, %4, %116 : vector<256x1xi32>
    %c1_i32_55 = arith.constant 1 : i32
    %118 = vector.broadcast %c1_i32_55 : i32 to vector<256x1xi32>
    %119 = arith.cmpi sge, %6, %118 : vector<256x1xi32>
    %120 = arith.andi %117, %119 : vector<256x1xi1>
    %cst_56 = arith.constant 0.000000e+00 : f32
    %121 = vector.shape_cast %120 : vector<256x1xi1> to vector<256x1xi1>
    %122 = vector.broadcast %121 : vector<256x1xi1> to vector<256x8xi1>
    %123 = vector.broadcast %cst_56 : f32 to vector<256x8xf32>
    %124 = arith.select %122, %115, %123 : vector<256x8xi1>, vector<256x8xf32>
    %c0_57 = arith.constant 0 : index
    %c0_58 = arith.constant 0 : index
    %c0_59 = arith.constant 0 : index
    %125 = vector.load %arg4[%c0_57, %c0_58, %c0_59] : memref<9x8x8xf32, #tpu.memory_space<vmem>>, vector<1x8x8xf32>
    %126 = vector.shape_cast %125 : vector<1x8x8xf32> to vector<8x8xf32>
    %cst_60 = arith.constant dense<0.000000e+00> : vector<256x8xf32>
    %127 = tpu.matmul %124, %126, %cst_60 {dimension_numbers = #tpu.dot_dimension_numbers<[1], [0], [0], [1], [0, 0, 1, 1], [], []>} : vector<256x8xf32>, vector<8x8xf32>, vector<256x8xf32> -> vector<256x8xf32>
    %c16_i32_61 = arith.constant 16 : i32
    %128 = tpu.dynamic_rotate %114 by %c16_i32_61 dim 0 : vector<256x8xf32>, i32 -> vector<256x8xf32>
    %c1_i32_62 = arith.constant 1 : i32
    %129 = vector.broadcast %c1_i32_62 : i32 to vector<256x1xi32>
    %130 = arith.cmpi sge, %4, %129 : vector<256x1xi32>
    %cst_63 = arith.constant 0.000000e+00 : f32
    %131 = vector.shape_cast %130 : vector<256x1xi1> to vector<256x1xi1>
    %132 = vector.broadcast %131 : vector<256x1xi1> to vector<256x8xi1>
    %133 = vector.broadcast %cst_63 : f32 to vector<256x8xf32>
    %134 = arith.select %132, %128, %133 : vector<256x8xi1>, vector<256x8xf32>
    %c1_64 = arith.constant 1 : index
    %c0_65 = arith.constant 0 : index
    %c0_66 = arith.constant 0 : index
    %135 = vector.load %arg4[%c1_64, %c0_65, %c0_66] : memref<9x8x8xf32, #tpu.memory_space<vmem>>, vector<1x8x8xf32>
    %136 = vector.shape_cast %135 : vector<1x8x8xf32> to vector<8x8xf32>
    %cst_67 = arith.constant dense<0.000000e+00> : vector<256x8xf32>
    %137 = tpu.matmul %134, %136, %cst_67 {dimension_numbers = #tpu.dot_dimension_numbers<[1], [0], [0], [1], [0, 0, 1, 1], [], []>} : vector<256x8xf32>, vector<8x8xf32>, vector<256x8xf32> -> vector<256x8xf32>
    %138 = arith.addf %127, %137 : vector<256x8xf32>
    %c15_i32_68 = arith.constant 15 : i32
    %139 = tpu.dynamic_rotate %114 by %c15_i32_68 dim 0 : vector<256x8xf32>, i32 -> vector<256x8xf32>
    %c1_i32_69 = arith.constant 1 : i32
    %140 = vector.broadcast %c1_i32_69 : i32 to vector<256x1xi32>
    %141 = arith.cmpi sge, %4, %140 : vector<256x1xi32>
    %c15_i32_70 = arith.constant 15 : i32
    %142 = vector.broadcast %c15_i32_70 : i32 to vector<256x1xi32>
    %143 = arith.cmpi slt, %6, %142 : vector<256x1xi32>
    %144 = arith.andi %141, %143 : vector<256x1xi1>
    %cst_71 = arith.constant 0.000000e+00 : f32
    %145 = vector.shape_cast %144 : vector<256x1xi1> to vector<256x1xi1>
    %146 = vector.broadcast %145 : vector<256x1xi1> to vector<256x8xi1>
    %147 = vector.broadcast %cst_71 : f32 to vector<256x8xf32>
    %148 = arith.select %146, %139, %147 : vector<256x8xi1>, vector<256x8xf32>
    %c2_72 = arith.constant 2 : index
    %c0_73 = arith.constant 0 : index
    %c0_74 = arith.constant 0 : index
    %149 = vector.load %arg4[%c2_72, %c0_73, %c0_74] : memref<9x8x8xf32, #tpu.memory_space<vmem>>, vector<1x8x8xf32>
    %150 = vector.shape_cast %149 : vector<1x8x8xf32> to vector<8x8xf32>
    %cst_75 = arith.constant dense<0.000000e+00> : vector<256x8xf32>
    %151 = tpu.matmul %148, %150, %cst_75 {dimension_numbers = #tpu.dot_dimension_numbers<[1], [0], [0], [1], [0, 0, 1, 1], [], []>} : vector<256x8xf32>, vector<8x8xf32>, vector<256x8xf32> -> vector<256x8xf32>
    %152 = arith.addf %138, %151 : vector<256x8xf32>
    %c1_i32_76 = arith.constant 1 : i32
    %153 = tpu.dynamic_rotate %114 by %c1_i32_76 dim 0 : vector<256x8xf32>, i32 -> vector<256x8xf32>
    %c1_i32_77 = arith.constant 1 : i32
    %154 = vector.broadcast %c1_i32_77 : i32 to vector<256x1xi32>
    %155 = arith.cmpi sge, %6, %154 : vector<256x1xi32>
    %cst_78 = arith.constant 0.000000e+00 : f32
    %156 = vector.shape_cast %155 : vector<256x1xi1> to vector<256x1xi1>
    %157 = vector.broadcast %156 : vector<256x1xi1> to vector<256x8xi1>
    %158 = vector.broadcast %cst_78 : f32 to vector<256x8xf32>
    %159 = arith.select %157, %153, %158 : vector<256x8xi1>, vector<256x8xf32>
    %c3_79 = arith.constant 3 : index
    %c0_80 = arith.constant 0 : index
    %c0_81 = arith.constant 0 : index
    %160 = vector.load %arg4[%c3_79, %c0_80, %c0_81] : memref<9x8x8xf32, #tpu.memory_space<vmem>>, vector<1x8x8xf32>
    %161 = vector.shape_cast %160 : vector<1x8x8xf32> to vector<8x8xf32>
    %cst_82 = arith.constant dense<0.000000e+00> : vector<256x8xf32>
    %162 = tpu.matmul %159, %161, %cst_82 {dimension_numbers = #tpu.dot_dimension_numbers<[1], [0], [0], [1], [0, 0, 1, 1], [], []>} : vector<256x8xf32>, vector<8x8xf32>, vector<256x8xf32> -> vector<256x8xf32>
    %163 = arith.addf %152, %162 : vector<256x8xf32>
    %c4_83 = arith.constant 4 : index
    %c0_84 = arith.constant 0 : index
    %c0_85 = arith.constant 0 : index
    %164 = vector.load %arg4[%c4_83, %c0_84, %c0_85] : memref<9x8x8xf32, #tpu.memory_space<vmem>>, vector<1x8x8xf32>
    %165 = vector.shape_cast %164 : vector<1x8x8xf32> to vector<8x8xf32>
    %cst_86 = arith.constant dense<0.000000e+00> : vector<256x8xf32>
    %166 = tpu.matmul %114, %165, %cst_86 {dimension_numbers = #tpu.dot_dimension_numbers<[1], [0], [0], [1], [0, 0, 1, 1], [], []>} : vector<256x8xf32>, vector<8x8xf32>, vector<256x8xf32> -> vector<256x8xf32>
    %167 = arith.addf %163, %166 : vector<256x8xf32>
    %c255_i32_87 = arith.constant 255 : i32
    %168 = tpu.dynamic_rotate %114 by %c255_i32_87 dim 0 : vector<256x8xf32>, i32 -> vector<256x8xf32>
    %c15_i32_88 = arith.constant 15 : i32
    %169 = vector.broadcast %c15_i32_88 : i32 to vector<256x1xi32>
    %170 = arith.cmpi slt, %6, %169 : vector<256x1xi32>
    %cst_89 = arith.constant 0.000000e+00 : f32
    %171 = vector.shape_cast %170 : vector<256x1xi1> to vector<256x1xi1>
    %172 = vector.broadcast %171 : vector<256x1xi1> to vector<256x8xi1>
    %173 = vector.broadcast %cst_89 : f32 to vector<256x8xf32>
    %174 = arith.select %172, %168, %173 : vector<256x8xi1>, vector<256x8xf32>
    %c5_90 = arith.constant 5 : index
    %c0_91 = arith.constant 0 : index
    %c0_92 = arith.constant 0 : index
    %175 = vector.load %arg4[%c5_90, %c0_91, %c0_92] : memref<9x8x8xf32, #tpu.memory_space<vmem>>, vector<1x8x8xf32>
    %176 = vector.shape_cast %175 : vector<1x8x8xf32> to vector<8x8xf32>
    %cst_93 = arith.constant dense<0.000000e+00> : vector<256x8xf32>
    %177 = tpu.matmul %174, %176, %cst_93 {dimension_numbers = #tpu.dot_dimension_numbers<[1], [0], [0], [1], [0, 0, 1, 1], [], []>} : vector<256x8xf32>, vector<8x8xf32>, vector<256x8xf32> -> vector<256x8xf32>
    %178 = arith.addf %167, %177 : vector<256x8xf32>
    %c241_i32_94 = arith.constant 241 : i32
    %179 = tpu.dynamic_rotate %114 by %c241_i32_94 dim 0 : vector<256x8xf32>, i32 -> vector<256x8xf32>
    %c15_i32_95 = arith.constant 15 : i32
    %180 = vector.broadcast %c15_i32_95 : i32 to vector<256x1xi32>
    %181 = arith.cmpi slt, %4, %180 : vector<256x1xi32>
    %c1_i32_96 = arith.constant 1 : i32
    %182 = vector.broadcast %c1_i32_96 : i32 to vector<256x1xi32>
    %183 = arith.cmpi sge, %6, %182 : vector<256x1xi32>
    %184 = arith.andi %181, %183 : vector<256x1xi1>
    %cst_97 = arith.constant 0.000000e+00 : f32
    %185 = vector.shape_cast %184 : vector<256x1xi1> to vector<256x1xi1>
    %186 = vector.broadcast %185 : vector<256x1xi1> to vector<256x8xi1>
    %187 = vector.broadcast %cst_97 : f32 to vector<256x8xf32>
    %188 = arith.select %186, %179, %187 : vector<256x8xi1>, vector<256x8xf32>
    %c6_98 = arith.constant 6 : index
    %c0_99 = arith.constant 0 : index
    %c0_100 = arith.constant 0 : index
    %189 = vector.load %arg4[%c6_98, %c0_99, %c0_100] : memref<9x8x8xf32, #tpu.memory_space<vmem>>, vector<1x8x8xf32>
    %190 = vector.shape_cast %189 : vector<1x8x8xf32> to vector<8x8xf32>
    %cst_101 = arith.constant dense<0.000000e+00> : vector<256x8xf32>
    %191 = tpu.matmul %188, %190, %cst_101 {dimension_numbers = #tpu.dot_dimension_numbers<[1], [0], [0], [1], [0, 0, 1, 1], [], []>} : vector<256x8xf32>, vector<8x8xf32>, vector<256x8xf32> -> vector<256x8xf32>
    %192 = arith.addf %178, %191 : vector<256x8xf32>
    %c240_i32_102 = arith.constant 240 : i32
    %193 = tpu.dynamic_rotate %114 by %c240_i32_102 dim 0 : vector<256x8xf32>, i32 -> vector<256x8xf32>
    %c15_i32_103 = arith.constant 15 : i32
    %194 = vector.broadcast %c15_i32_103 : i32 to vector<256x1xi32>
    %195 = arith.cmpi slt, %4, %194 : vector<256x1xi32>
    %cst_104 = arith.constant 0.000000e+00 : f32
    %196 = vector.shape_cast %195 : vector<256x1xi1> to vector<256x1xi1>
    %197 = vector.broadcast %196 : vector<256x1xi1> to vector<256x8xi1>
    %198 = vector.broadcast %cst_104 : f32 to vector<256x8xf32>
    %199 = arith.select %197, %193, %198 : vector<256x8xi1>, vector<256x8xf32>
    %c7_105 = arith.constant 7 : index
    %c0_106 = arith.constant 0 : index
    %c0_107 = arith.constant 0 : index
    %200 = vector.load %arg4[%c7_105, %c0_106, %c0_107] : memref<9x8x8xf32, #tpu.memory_space<vmem>>, vector<1x8x8xf32>
    %201 = vector.shape_cast %200 : vector<1x8x8xf32> to vector<8x8xf32>
    %cst_108 = arith.constant dense<0.000000e+00> : vector<256x8xf32>
    %202 = tpu.matmul %199, %201, %cst_108 {dimension_numbers = #tpu.dot_dimension_numbers<[1], [0], [0], [1], [0, 0, 1, 1], [], []>} : vector<256x8xf32>, vector<8x8xf32>, vector<256x8xf32> -> vector<256x8xf32>
    %203 = arith.addf %192, %202 : vector<256x8xf32>
    %c239_i32_109 = arith.constant 239 : i32
    %204 = tpu.dynamic_rotate %114 by %c239_i32_109 dim 0 : vector<256x8xf32>, i32 -> vector<256x8xf32>
    %c15_i32_110 = arith.constant 15 : i32
    %205 = vector.broadcast %c15_i32_110 : i32 to vector<256x1xi32>
    %206 = arith.cmpi slt, %4, %205 : vector<256x1xi32>
    %c15_i32_111 = arith.constant 15 : i32
    %207 = vector.broadcast %c15_i32_111 : i32 to vector<256x1xi32>
    %208 = arith.cmpi slt, %6, %207 : vector<256x1xi32>
    %209 = arith.andi %206, %208 : vector<256x1xi1>
    %cst_112 = arith.constant 0.000000e+00 : f32
    %210 = vector.shape_cast %209 : vector<256x1xi1> to vector<256x1xi1>
    %211 = vector.broadcast %210 : vector<256x1xi1> to vector<256x8xi1>
    %212 = vector.broadcast %cst_112 : f32 to vector<256x8xf32>
    %213 = arith.select %211, %204, %212 : vector<256x8xi1>, vector<256x8xf32>
    %c8_113 = arith.constant 8 : index
    %c0_114 = arith.constant 0 : index
    %c0_115 = arith.constant 0 : index
    %214 = vector.load %arg4[%c8_113, %c0_114, %c0_115] : memref<9x8x8xf32, #tpu.memory_space<vmem>>, vector<1x8x8xf32>
    %215 = vector.shape_cast %214 : vector<1x8x8xf32> to vector<8x8xf32>
    %cst_116 = arith.constant dense<0.000000e+00> : vector<256x8xf32>
    %216 = tpu.matmul %213, %215, %cst_116 {dimension_numbers = #tpu.dot_dimension_numbers<[1], [0], [0], [1], [0, 0, 1, 1], [], []>} : vector<256x8xf32>, vector<8x8xf32>, vector<256x8xf32> -> vector<256x8xf32>
    %217 = arith.addf %203, %216 : vector<256x8xf32>
    %c0_117 = arith.constant 0 : index
    %c0_118 = arith.constant 0 : index
    %218 = vector.load %arg5[%c0_117, %c0_118] : memref<1x8xf32, #tpu.memory_space<vmem>>, vector<1x8xf32>
    %219 = vector.broadcast %218 : vector<1x8xf32> to vector<256x8xf32>
    %220 = arith.addf %217, %219 : vector<256x8xf32>
    %cst_119 = arith.constant 0.000000e+00 : f32
    %221 = vector.broadcast %cst_119 : f32 to vector<256x8xf32>
    %222 = arith.maximumf %220, %221 : vector<256x8xf32>
    %cst_120 = arith.constant 0.000000e+00 : f32
    %223 = vector.broadcast %cst_120 : f32 to vector<256x8xf32>
    %224 = arith.maximumf %222, %223 : vector<256x8xf32>
    %c0_121 = arith.constant 0 : index
    %c0_122 = arith.constant 0 : index
    %225 = vector.load %arg6[%c0_121, %c0_122] : memref<64x256xf32, #tpu.memory_space<vmem>>, vector<64x256xf32>
    %cst_123 = arith.constant dense<0.000000e+00> : vector<64x8xf32>
    %226 = tpu.matmul %225, %224, %cst_123 {dimension_numbers = #tpu.dot_dimension_numbers<[1], [0], [0], [1], [0, 0, 1, 1], [], []>} : vector<64x256xf32>, vector<256x8xf32>, vector<64x8xf32> -> vector<64x8xf32>
    %227 = tpu.iota {dimensions = array<i32: 0>} : vector<64x1xi32>
    %c3_i32 = arith.constant 3 : i32
    %228 = vector.broadcast %c3_i32 : i32 to vector<64x1xi32>
    %229 = arith.shrsi %227, %228 : vector<64x1xi32>
    %c7_i32 = arith.constant 7 : i32
    %230 = vector.broadcast %c7_i32 : i32 to vector<64x1xi32>
    %231 = arith.andi %227, %230 : vector<64x1xi32>
    %c9_i32 = arith.constant 9 : i32
    %232 = tpu.dynamic_rotate %226 by %c9_i32 dim 0 : vector<64x8xf32>, i32 -> vector<64x8xf32>
    %c1_i32_124 = arith.constant 1 : i32
    %233 = vector.broadcast %c1_i32_124 : i32 to vector<64x1xi32>
    %234 = arith.cmpi sge, %229, %233 : vector<64x1xi32>
    %c1_i32_125 = arith.constant 1 : i32
    %235 = vector.broadcast %c1_i32_125 : i32 to vector<64x1xi32>
    %236 = arith.cmpi sge, %231, %235 : vector<64x1xi32>
    %237 = arith.andi %234, %236 : vector<64x1xi1>
    %cst_126 = arith.constant 0.000000e+00 : f32
    %238 = vector.shape_cast %237 : vector<64x1xi1> to vector<64x1xi1>
    %239 = vector.broadcast %238 : vector<64x1xi1> to vector<64x8xi1>
    %240 = vector.broadcast %cst_126 : f32 to vector<64x8xf32>
    %241 = arith.select %239, %232, %240 : vector<64x8xi1>, vector<64x8xf32>
    %c0_127 = arith.constant 0 : index
    %c0_128 = arith.constant 0 : index
    %c0_129 = arith.constant 0 : index
    %242 = vector.load %arg7[%c0_127, %c0_128, %c0_129] : memref<9x8x8xf32, #tpu.memory_space<vmem>>, vector<1x8x8xf32>
    %243 = vector.shape_cast %242 : vector<1x8x8xf32> to vector<8x8xf32>
    %cst_130 = arith.constant dense<0.000000e+00> : vector<64x8xf32>
    %244 = tpu.matmul %241, %243, %cst_130 {dimension_numbers = #tpu.dot_dimension_numbers<[1], [0], [0], [1], [0, 0, 1, 1], [], []>} : vector<64x8xf32>, vector<8x8xf32>, vector<64x8xf32> -> vector<64x8xf32>
    %c8_i32 = arith.constant 8 : i32
    %245 = tpu.dynamic_rotate %226 by %c8_i32 dim 0 : vector<64x8xf32>, i32 -> vector<64x8xf32>
    %c1_i32_131 = arith.constant 1 : i32
    %246 = vector.broadcast %c1_i32_131 : i32 to vector<64x1xi32>
    %247 = arith.cmpi sge, %229, %246 : vector<64x1xi32>
    %cst_132 = arith.constant 0.000000e+00 : f32
    %248 = vector.shape_cast %247 : vector<64x1xi1> to vector<64x1xi1>
    %249 = vector.broadcast %248 : vector<64x1xi1> to vector<64x8xi1>
    %250 = vector.broadcast %cst_132 : f32 to vector<64x8xf32>
    %251 = arith.select %249, %245, %250 : vector<64x8xi1>, vector<64x8xf32>
    %c1_133 = arith.constant 1 : index
    %c0_134 = arith.constant 0 : index
    %c0_135 = arith.constant 0 : index
    %252 = vector.load %arg7[%c1_133, %c0_134, %c0_135] : memref<9x8x8xf32, #tpu.memory_space<vmem>>, vector<1x8x8xf32>
    %253 = vector.shape_cast %252 : vector<1x8x8xf32> to vector<8x8xf32>
    %cst_136 = arith.constant dense<0.000000e+00> : vector<64x8xf32>
    %254 = tpu.matmul %251, %253, %cst_136 {dimension_numbers = #tpu.dot_dimension_numbers<[1], [0], [0], [1], [0, 0, 1, 1], [], []>} : vector<64x8xf32>, vector<8x8xf32>, vector<64x8xf32> -> vector<64x8xf32>
    %255 = arith.addf %244, %254 : vector<64x8xf32>
    %c7_i32_137 = arith.constant 7 : i32
    %256 = tpu.dynamic_rotate %226 by %c7_i32_137 dim 0 : vector<64x8xf32>, i32 -> vector<64x8xf32>
    %c1_i32_138 = arith.constant 1 : i32
    %257 = vector.broadcast %c1_i32_138 : i32 to vector<64x1xi32>
    %258 = arith.cmpi sge, %229, %257 : vector<64x1xi32>
    %c7_i32_139 = arith.constant 7 : i32
    %259 = vector.broadcast %c7_i32_139 : i32 to vector<64x1xi32>
    %260 = arith.cmpi slt, %231, %259 : vector<64x1xi32>
    %261 = arith.andi %258, %260 : vector<64x1xi1>
    %cst_140 = arith.constant 0.000000e+00 : f32
    %262 = vector.shape_cast %261 : vector<64x1xi1> to vector<64x1xi1>
    %263 = vector.broadcast %262 : vector<64x1xi1> to vector<64x8xi1>
    %264 = vector.broadcast %cst_140 : f32 to vector<64x8xf32>
    %265 = arith.select %263, %256, %264 : vector<64x8xi1>, vector<64x8xf32>
    %c2_141 = arith.constant 2 : index
    %c0_142 = arith.constant 0 : index
    %c0_143 = arith.constant 0 : index
    %266 = vector.load %arg7[%c2_141, %c0_142, %c0_143] : memref<9x8x8xf32, #tpu.memory_space<vmem>>, vector<1x8x8xf32>
    %267 = vector.shape_cast %266 : vector<1x8x8xf32> to vector<8x8xf32>
    %cst_144 = arith.constant dense<0.000000e+00> : vector<64x8xf32>
    %268 = tpu.matmul %265, %267, %cst_144 {dimension_numbers = #tpu.dot_dimension_numbers<[1], [0], [0], [1], [0, 0, 1, 1], [], []>} : vector<64x8xf32>, vector<8x8xf32>, vector<64x8xf32> -> vector<64x8xf32>
    %269 = arith.addf %255, %268 : vector<64x8xf32>
    %c1_i32_145 = arith.constant 1 : i32
    %270 = tpu.dynamic_rotate %226 by %c1_i32_145 dim 0 : vector<64x8xf32>, i32 -> vector<64x8xf32>
    %c1_i32_146 = arith.constant 1 : i32
    %271 = vector.broadcast %c1_i32_146 : i32 to vector<64x1xi32>
    %272 = arith.cmpi sge, %231, %271 : vector<64x1xi32>
    %cst_147 = arith.constant 0.000000e+00 : f32
    %273 = vector.shape_cast %272 : vector<64x1xi1> to vector<64x1xi1>
    %274 = vector.broadcast %273 : vector<64x1xi1> to vector<64x8xi1>
    %275 = vector.broadcast %cst_147 : f32 to vector<64x8xf32>
    %276 = arith.select %274, %270, %275 : vector<64x8xi1>, vector<64x8xf32>
    %c3_148 = arith.constant 3 : index
    %c0_149 = arith.constant 0 : index
    %c0_150 = arith.constant 0 : index
    %277 = vector.load %arg7[%c3_148, %c0_149, %c0_150] : memref<9x8x8xf32, #tpu.memory_space<vmem>>, vector<1x8x8xf32>
    %278 = vector.shape_cast %277 : vector<1x8x8xf32> to vector<8x8xf32>
    %cst_151 = arith.constant dense<0.000000e+00> : vector<64x8xf32>
    %279 = tpu.matmul %276, %278, %cst_151 {dimension_numbers = #tpu.dot_dimension_numbers<[1], [0], [0], [1], [0, 0, 1, 1], [], []>} : vector<64x8xf32>, vector<8x8xf32>, vector<64x8xf32> -> vector<64x8xf32>
    %280 = arith.addf %269, %279 : vector<64x8xf32>
    %c4_152 = arith.constant 4 : index
    %c0_153 = arith.constant 0 : index
    %c0_154 = arith.constant 0 : index
    %281 = vector.load %arg7[%c4_152, %c0_153, %c0_154] : memref<9x8x8xf32, #tpu.memory_space<vmem>>, vector<1x8x8xf32>
    %282 = vector.shape_cast %281 : vector<1x8x8xf32> to vector<8x8xf32>
    %cst_155 = arith.constant dense<0.000000e+00> : vector<64x8xf32>
    %283 = tpu.matmul %226, %282, %cst_155 {dimension_numbers = #tpu.dot_dimension_numbers<[1], [0], [0], [1], [0, 0, 1, 1], [], []>} : vector<64x8xf32>, vector<8x8xf32>, vector<64x8xf32> -> vector<64x8xf32>
    %284 = arith.addf %280, %283 : vector<64x8xf32>
    %c63_i32 = arith.constant 63 : i32
    %285 = tpu.dynamic_rotate %226 by %c63_i32 dim 0 : vector<64x8xf32>, i32 -> vector<64x8xf32>
    %c7_i32_156 = arith.constant 7 : i32
    %286 = vector.broadcast %c7_i32_156 : i32 to vector<64x1xi32>
    %287 = arith.cmpi slt, %231, %286 : vector<64x1xi32>
    %cst_157 = arith.constant 0.000000e+00 : f32
    %288 = vector.shape_cast %287 : vector<64x1xi1> to vector<64x1xi1>
    %289 = vector.broadcast %288 : vector<64x1xi1> to vector<64x8xi1>
    %290 = vector.broadcast %cst_157 : f32 to vector<64x8xf32>
    %291 = arith.select %289, %285, %290 : vector<64x8xi1>, vector<64x8xf32>
    %c5_158 = arith.constant 5 : index
    %c0_159 = arith.constant 0 : index
    %c0_160 = arith.constant 0 : index
    %292 = vector.load %arg7[%c5_158, %c0_159, %c0_160] : memref<9x8x8xf32, #tpu.memory_space<vmem>>, vector<1x8x8xf32>
    %293 = vector.shape_cast %292 : vector<1x8x8xf32> to vector<8x8xf32>
    %cst_161 = arith.constant dense<0.000000e+00> : vector<64x8xf32>
    %294 = tpu.matmul %291, %293, %cst_161 {dimension_numbers = #tpu.dot_dimension_numbers<[1], [0], [0], [1], [0, 0, 1, 1], [], []>} : vector<64x8xf32>, vector<8x8xf32>, vector<64x8xf32> -> vector<64x8xf32>
    %295 = arith.addf %284, %294 : vector<64x8xf32>
    %c57_i32 = arith.constant 57 : i32
    %296 = tpu.dynamic_rotate %226 by %c57_i32 dim 0 : vector<64x8xf32>, i32 -> vector<64x8xf32>
    %c7_i32_162 = arith.constant 7 : i32
    %297 = vector.broadcast %c7_i32_162 : i32 to vector<64x1xi32>
    %298 = arith.cmpi slt, %229, %297 : vector<64x1xi32>
    %c1_i32_163 = arith.constant 1 : i32
    %299 = vector.broadcast %c1_i32_163 : i32 to vector<64x1xi32>
    %300 = arith.cmpi sge, %231, %299 : vector<64x1xi32>
    %301 = arith.andi %298, %300 : vector<64x1xi1>
    %cst_164 = arith.constant 0.000000e+00 : f32
    %302 = vector.shape_cast %301 : vector<64x1xi1> to vector<64x1xi1>
    %303 = vector.broadcast %302 : vector<64x1xi1> to vector<64x8xi1>
    %304 = vector.broadcast %cst_164 : f32 to vector<64x8xf32>
    %305 = arith.select %303, %296, %304 : vector<64x8xi1>, vector<64x8xf32>
    %c6_165 = arith.constant 6 : index
    %c0_166 = arith.constant 0 : index
    %c0_167 = arith.constant 0 : index
    %306 = vector.load %arg7[%c6_165, %c0_166, %c0_167] : memref<9x8x8xf32, #tpu.memory_space<vmem>>, vector<1x8x8xf32>
    %307 = vector.shape_cast %306 : vector<1x8x8xf32> to vector<8x8xf32>
    %cst_168 = arith.constant dense<0.000000e+00> : vector<64x8xf32>
    %308 = tpu.matmul %305, %307, %cst_168 {dimension_numbers = #tpu.dot_dimension_numbers<[1], [0], [0], [1], [0, 0, 1, 1], [], []>} : vector<64x8xf32>, vector<8x8xf32>, vector<64x8xf32> -> vector<64x8xf32>
    %309 = arith.addf %295, %308 : vector<64x8xf32>
    %c56_i32 = arith.constant 56 : i32
    %310 = tpu.dynamic_rotate %226 by %c56_i32 dim 0 : vector<64x8xf32>, i32 -> vector<64x8xf32>
    %c7_i32_169 = arith.constant 7 : i32
    %311 = vector.broadcast %c7_i32_169 : i32 to vector<64x1xi32>
    %312 = arith.cmpi slt, %229, %311 : vector<64x1xi32>
    %cst_170 = arith.constant 0.000000e+00 : f32
    %313 = vector.shape_cast %312 : vector<64x1xi1> to vector<64x1xi1>
    %314 = vector.broadcast %313 : vector<64x1xi1> to vector<64x8xi1>
    %315 = vector.broadcast %cst_170 : f32 to vector<64x8xf32>
    %316 = arith.select %314, %310, %315 : vector<64x8xi1>, vector<64x8xf32>
    %c7_171 = arith.constant 7 : index
    %c0_172 = arith.constant 0 : index
    %c0_173 = arith.constant 0 : index
    %317 = vector.load %arg7[%c7_171, %c0_172, %c0_173] : memref<9x8x8xf32, #tpu.memory_space<vmem>>, vector<1x8x8xf32>
    %318 = vector.shape_cast %317 : vector<1x8x8xf32> to vector<8x8xf32>
    %cst_174 = arith.constant dense<0.000000e+00> : vector<64x8xf32>
    %319 = tpu.matmul %316, %318, %cst_174 {dimension_numbers = #tpu.dot_dimension_numbers<[1], [0], [0], [1], [0, 0, 1, 1], [], []>} : vector<64x8xf32>, vector<8x8xf32>, vector<64x8xf32> -> vector<64x8xf32>
    %320 = arith.addf %309, %319 : vector<64x8xf32>
    %c55_i32 = arith.constant 55 : i32
    %321 = tpu.dynamic_rotate %226 by %c55_i32 dim 0 : vector<64x8xf32>, i32 -> vector<64x8xf32>
    %c7_i32_175 = arith.constant 7 : i32
    %322 = vector.broadcast %c7_i32_175 : i32 to vector<64x1xi32>
    %323 = arith.cmpi slt, %229, %322 : vector<64x1xi32>
    %c7_i32_176 = arith.constant 7 : i32
    %324 = vector.broadcast %c7_i32_176 : i32 to vector<64x1xi32>
    %325 = arith.cmpi slt, %231, %324 : vector<64x1xi32>
    %326 = arith.andi %323, %325 : vector<64x1xi1>
    %cst_177 = arith.constant 0.000000e+00 : f32
    %327 = vector.shape_cast %326 : vector<64x1xi1> to vector<64x1xi1>
    %328 = vector.broadcast %327 : vector<64x1xi1> to vector<64x8xi1>
    %329 = vector.broadcast %cst_177 : f32 to vector<64x8xf32>
    %330 = arith.select %328, %321, %329 : vector<64x8xi1>, vector<64x8xf32>
    %c8_178 = arith.constant 8 : index
    %c0_179 = arith.constant 0 : index
    %c0_180 = arith.constant 0 : index
    %331 = vector.load %arg7[%c8_178, %c0_179, %c0_180] : memref<9x8x8xf32, #tpu.memory_space<vmem>>, vector<1x8x8xf32>
    %332 = vector.shape_cast %331 : vector<1x8x8xf32> to vector<8x8xf32>
    %cst_181 = arith.constant dense<0.000000e+00> : vector<64x8xf32>
    %333 = tpu.matmul %330, %332, %cst_181 {dimension_numbers = #tpu.dot_dimension_numbers<[1], [0], [0], [1], [0, 0, 1, 1], [], []>} : vector<64x8xf32>, vector<8x8xf32>, vector<64x8xf32> -> vector<64x8xf32>
    %334 = arith.addf %320, %333 : vector<64x8xf32>
    %c0_182 = arith.constant 0 : index
    %c0_183 = arith.constant 0 : index
    %335 = vector.load %arg8[%c0_182, %c0_183] : memref<1x8xf32, #tpu.memory_space<vmem>>, vector<1x8xf32>
    %336 = vector.broadcast %335 : vector<1x8xf32> to vector<64x8xf32>
    %337 = arith.addf %334, %336 : vector<64x8xf32>
    %cst_184 = arith.constant 0.000000e+00 : f32
    %338 = vector.broadcast %cst_184 : f32 to vector<64x8xf32>
    %339 = arith.maximumf %337, %338 : vector<64x8xf32>
    %c9_i32_185 = arith.constant 9 : i32
    %340 = tpu.dynamic_rotate %339 by %c9_i32_185 dim 0 : vector<64x8xf32>, i32 -> vector<64x8xf32>
    %c1_i32_186 = arith.constant 1 : i32
    %341 = vector.broadcast %c1_i32_186 : i32 to vector<64x1xi32>
    %342 = arith.cmpi sge, %229, %341 : vector<64x1xi32>
    %c1_i32_187 = arith.constant 1 : i32
    %343 = vector.broadcast %c1_i32_187 : i32 to vector<64x1xi32>
    %344 = arith.cmpi sge, %231, %343 : vector<64x1xi32>
    %345 = arith.andi %342, %344 : vector<64x1xi1>
    %cst_188 = arith.constant 0.000000e+00 : f32
    %346 = vector.shape_cast %345 : vector<64x1xi1> to vector<64x1xi1>
    %347 = vector.broadcast %346 : vector<64x1xi1> to vector<64x8xi1>
    %348 = vector.broadcast %cst_188 : f32 to vector<64x8xf32>
    %349 = arith.select %347, %340, %348 : vector<64x8xi1>, vector<64x8xf32>
    %c0_189 = arith.constant 0 : index
    %c0_190 = arith.constant 0 : index
    %c0_191 = arith.constant 0 : index
    %350 = vector.load %arg9[%c0_189, %c0_190, %c0_191] : memref<9x8x16xf32, #tpu.memory_space<vmem>>, vector<1x8x16xf32>
    %351 = vector.shape_cast %350 : vector<1x8x16xf32> to vector<8x16xf32>
    %cst_192 = arith.constant dense<0.000000e+00> : vector<64x16xf32>
    %352 = tpu.matmul %349, %351, %cst_192 {dimension_numbers = #tpu.dot_dimension_numbers<[1], [0], [0], [1], [0, 0, 1, 1], [], []>} : vector<64x8xf32>, vector<8x16xf32>, vector<64x16xf32> -> vector<64x16xf32>
    %c8_i32_193 = arith.constant 8 : i32
    %353 = tpu.dynamic_rotate %339 by %c8_i32_193 dim 0 : vector<64x8xf32>, i32 -> vector<64x8xf32>
    %c1_i32_194 = arith.constant 1 : i32
    %354 = vector.broadcast %c1_i32_194 : i32 to vector<64x1xi32>
    %355 = arith.cmpi sge, %229, %354 : vector<64x1xi32>
    %cst_195 = arith.constant 0.000000e+00 : f32
    %356 = vector.shape_cast %355 : vector<64x1xi1> to vector<64x1xi1>
    %357 = vector.broadcast %356 : vector<64x1xi1> to vector<64x8xi1>
    %358 = vector.broadcast %cst_195 : f32 to vector<64x8xf32>
    %359 = arith.select %357, %353, %358 : vector<64x8xi1>, vector<64x8xf32>
    %c1_196 = arith.constant 1 : index
    %c0_197 = arith.constant 0 : index
    %c0_198 = arith.constant 0 : index
    %360 = vector.load %arg9[%c1_196, %c0_197, %c0_198] : memref<9x8x16xf32, #tpu.memory_space<vmem>>, vector<1x8x16xf32>
    %361 = vector.shape_cast %360 : vector<1x8x16xf32> to vector<8x16xf32>
    %cst_199 = arith.constant dense<0.000000e+00> : vector<64x16xf32>
    %362 = tpu.matmul %359, %361, %cst_199 {dimension_numbers = #tpu.dot_dimension_numbers<[1], [0], [0], [1], [0, 0, 1, 1], [], []>} : vector<64x8xf32>, vector<8x16xf32>, vector<64x16xf32> -> vector<64x16xf32>
    %363 = arith.addf %352, %362 : vector<64x16xf32>
    %c7_i32_200 = arith.constant 7 : i32
    %364 = tpu.dynamic_rotate %339 by %c7_i32_200 dim 0 : vector<64x8xf32>, i32 -> vector<64x8xf32>
    %c1_i32_201 = arith.constant 1 : i32
    %365 = vector.broadcast %c1_i32_201 : i32 to vector<64x1xi32>
    %366 = arith.cmpi sge, %229, %365 : vector<64x1xi32>
    %c7_i32_202 = arith.constant 7 : i32
    %367 = vector.broadcast %c7_i32_202 : i32 to vector<64x1xi32>
    %368 = arith.cmpi slt, %231, %367 : vector<64x1xi32>
    %369 = arith.andi %366, %368 : vector<64x1xi1>
    %cst_203 = arith.constant 0.000000e+00 : f32
    %370 = vector.shape_cast %369 : vector<64x1xi1> to vector<64x1xi1>
    %371 = vector.broadcast %370 : vector<64x1xi1> to vector<64x8xi1>
    %372 = vector.broadcast %cst_203 : f32 to vector<64x8xf32>
    %373 = arith.select %371, %364, %372 : vector<64x8xi1>, vector<64x8xf32>
    %c2_204 = arith.constant 2 : index
    %c0_205 = arith.constant 0 : index
    %c0_206 = arith.constant 0 : index
    %374 = vector.load %arg9[%c2_204, %c0_205, %c0_206] : memref<9x8x16xf32, #tpu.memory_space<vmem>>, vector<1x8x16xf32>
    %375 = vector.shape_cast %374 : vector<1x8x16xf32> to vector<8x16xf32>
    %cst_207 = arith.constant dense<0.000000e+00> : vector<64x16xf32>
    %376 = tpu.matmul %373, %375, %cst_207 {dimension_numbers = #tpu.dot_dimension_numbers<[1], [0], [0], [1], [0, 0, 1, 1], [], []>} : vector<64x8xf32>, vector<8x16xf32>, vector<64x16xf32> -> vector<64x16xf32>
    %377 = arith.addf %363, %376 : vector<64x16xf32>
    %c1_i32_208 = arith.constant 1 : i32
    %378 = tpu.dynamic_rotate %339 by %c1_i32_208 dim 0 : vector<64x8xf32>, i32 -> vector<64x8xf32>
    %c1_i32_209 = arith.constant 1 : i32
    %379 = vector.broadcast %c1_i32_209 : i32 to vector<64x1xi32>
    %380 = arith.cmpi sge, %231, %379 : vector<64x1xi32>
    %cst_210 = arith.constant 0.000000e+00 : f32
    %381 = vector.shape_cast %380 : vector<64x1xi1> to vector<64x1xi1>
    %382 = vector.broadcast %381 : vector<64x1xi1> to vector<64x8xi1>
    %383 = vector.broadcast %cst_210 : f32 to vector<64x8xf32>
    %384 = arith.select %382, %378, %383 : vector<64x8xi1>, vector<64x8xf32>
    %c3_211 = arith.constant 3 : index
    %c0_212 = arith.constant 0 : index
    %c0_213 = arith.constant 0 : index
    %385 = vector.load %arg9[%c3_211, %c0_212, %c0_213] : memref<9x8x16xf32, #tpu.memory_space<vmem>>, vector<1x8x16xf32>
    %386 = vector.shape_cast %385 : vector<1x8x16xf32> to vector<8x16xf32>
    %cst_214 = arith.constant dense<0.000000e+00> : vector<64x16xf32>
    %387 = tpu.matmul %384, %386, %cst_214 {dimension_numbers = #tpu.dot_dimension_numbers<[1], [0], [0], [1], [0, 0, 1, 1], [], []>} : vector<64x8xf32>, vector<8x16xf32>, vector<64x16xf32> -> vector<64x16xf32>
    %388 = arith.addf %377, %387 : vector<64x16xf32>
    %c4_215 = arith.constant 4 : index
    %c0_216 = arith.constant 0 : index
    %c0_217 = arith.constant 0 : index
    %389 = vector.load %arg9[%c4_215, %c0_216, %c0_217] : memref<9x8x16xf32, #tpu.memory_space<vmem>>, vector<1x8x16xf32>
    %390 = vector.shape_cast %389 : vector<1x8x16xf32> to vector<8x16xf32>
    %cst_218 = arith.constant dense<0.000000e+00> : vector<64x16xf32>
    %391 = tpu.matmul %339, %390, %cst_218 {dimension_numbers = #tpu.dot_dimension_numbers<[1], [0], [0], [1], [0, 0, 1, 1], [], []>} : vector<64x8xf32>, vector<8x16xf32>, vector<64x16xf32> -> vector<64x16xf32>
    %392 = arith.addf %388, %391 : vector<64x16xf32>
    %c63_i32_219 = arith.constant 63 : i32
    %393 = tpu.dynamic_rotate %339 by %c63_i32_219 dim 0 : vector<64x8xf32>, i32 -> vector<64x8xf32>
    %c7_i32_220 = arith.constant 7 : i32
    %394 = vector.broadcast %c7_i32_220 : i32 to vector<64x1xi32>
    %395 = arith.cmpi slt, %231, %394 : vector<64x1xi32>
    %cst_221 = arith.constant 0.000000e+00 : f32
    %396 = vector.shape_cast %395 : vector<64x1xi1> to vector<64x1xi1>
    %397 = vector.broadcast %396 : vector<64x1xi1> to vector<64x8xi1>
    %398 = vector.broadcast %cst_221 : f32 to vector<64x8xf32>
    %399 = arith.select %397, %393, %398 : vector<64x8xi1>, vector<64x8xf32>
    %c5_222 = arith.constant 5 : index
    %c0_223 = arith.constant 0 : index
    %c0_224 = arith.constant 0 : index
    %400 = vector.load %arg9[%c5_222, %c0_223, %c0_224] : memref<9x8x16xf32, #tpu.memory_space<vmem>>, vector<1x8x16xf32>
    %401 = vector.shape_cast %400 : vector<1x8x16xf32> to vector<8x16xf32>
    %cst_225 = arith.constant dense<0.000000e+00> : vector<64x16xf32>
    %402 = tpu.matmul %399, %401, %cst_225 {dimension_numbers = #tpu.dot_dimension_numbers<[1], [0], [0], [1], [0, 0, 1, 1], [], []>} : vector<64x8xf32>, vector<8x16xf32>, vector<64x16xf32> -> vector<64x16xf32>
    %403 = arith.addf %392, %402 : vector<64x16xf32>
    %c57_i32_226 = arith.constant 57 : i32
    %404 = tpu.dynamic_rotate %339 by %c57_i32_226 dim 0 : vector<64x8xf32>, i32 -> vector<64x8xf32>
    %c7_i32_227 = arith.constant 7 : i32
    %405 = vector.broadcast %c7_i32_227 : i32 to vector<64x1xi32>
    %406 = arith.cmpi slt, %229, %405 : vector<64x1xi32>
    %c1_i32_228 = arith.constant 1 : i32
    %407 = vector.broadcast %c1_i32_228 : i32 to vector<64x1xi32>
    %408 = arith.cmpi sge, %231, %407 : vector<64x1xi32>
    %409 = arith.andi %406, %408 : vector<64x1xi1>
    %cst_229 = arith.constant 0.000000e+00 : f32
    %410 = vector.shape_cast %409 : vector<64x1xi1> to vector<64x1xi1>
    %411 = vector.broadcast %410 : vector<64x1xi1> to vector<64x8xi1>
    %412 = vector.broadcast %cst_229 : f32 to vector<64x8xf32>
    %413 = arith.select %411, %404, %412 : vector<64x8xi1>, vector<64x8xf32>
    %c6_230 = arith.constant 6 : index
    %c0_231 = arith.constant 0 : index
    %c0_232 = arith.constant 0 : index
    %414 = vector.load %arg9[%c6_230, %c0_231, %c0_232] : memref<9x8x16xf32, #tpu.memory_space<vmem>>, vector<1x8x16xf32>
    %415 = vector.shape_cast %414 : vector<1x8x16xf32> to vector<8x16xf32>
    %cst_233 = arith.constant dense<0.000000e+00> : vector<64x16xf32>
    %416 = tpu.matmul %413, %415, %cst_233 {dimension_numbers = #tpu.dot_dimension_numbers<[1], [0], [0], [1], [0, 0, 1, 1], [], []>} : vector<64x8xf32>, vector<8x16xf32>, vector<64x16xf32> -> vector<64x16xf32>
    %417 = arith.addf %403, %416 : vector<64x16xf32>
    %c56_i32_234 = arith.constant 56 : i32
    %418 = tpu.dynamic_rotate %339 by %c56_i32_234 dim 0 : vector<64x8xf32>, i32 -> vector<64x8xf32>
    %c7_i32_235 = arith.constant 7 : i32
    %419 = vector.broadcast %c7_i32_235 : i32 to vector<64x1xi32>
    %420 = arith.cmpi slt, %229, %419 : vector<64x1xi32>
    %cst_236 = arith.constant 0.000000e+00 : f32
    %421 = vector.shape_cast %420 : vector<64x1xi1> to vector<64x1xi1>
    %422 = vector.broadcast %421 : vector<64x1xi1> to vector<64x8xi1>
    %423 = vector.broadcast %cst_236 : f32 to vector<64x8xf32>
    %424 = arith.select %422, %418, %423 : vector<64x8xi1>, vector<64x8xf32>
    %c7_237 = arith.constant 7 : index
    %c0_238 = arith.constant 0 : index
    %c0_239 = arith.constant 0 : index
    %425 = vector.load %arg9[%c7_237, %c0_238, %c0_239] : memref<9x8x16xf32, #tpu.memory_space<vmem>>, vector<1x8x16xf32>
    %426 = vector.shape_cast %425 : vector<1x8x16xf32> to vector<8x16xf32>
    %cst_240 = arith.constant dense<0.000000e+00> : vector<64x16xf32>
    %427 = tpu.matmul %424, %426, %cst_240 {dimension_numbers = #tpu.dot_dimension_numbers<[1], [0], [0], [1], [0, 0, 1, 1], [], []>} : vector<64x8xf32>, vector<8x16xf32>, vector<64x16xf32> -> vector<64x16xf32>
    %428 = arith.addf %417, %427 : vector<64x16xf32>
    %c55_i32_241 = arith.constant 55 : i32
    %429 = tpu.dynamic_rotate %339 by %c55_i32_241 dim 0 : vector<64x8xf32>, i32 -> vector<64x8xf32>
    %c7_i32_242 = arith.constant 7 : i32
    %430 = vector.broadcast %c7_i32_242 : i32 to vector<64x1xi32>
    %431 = arith.cmpi slt, %229, %430 : vector<64x1xi32>
    %c7_i32_243 = arith.constant 7 : i32
    %432 = vector.broadcast %c7_i32_243 : i32 to vector<64x1xi32>
    %433 = arith.cmpi slt, %231, %432 : vector<64x1xi32>
    %434 = arith.andi %431, %433 : vector<64x1xi1>
    %cst_244 = arith.constant 0.000000e+00 : f32
    %435 = vector.shape_cast %434 : vector<64x1xi1> to vector<64x1xi1>
    %436 = vector.broadcast %435 : vector<64x1xi1> to vector<64x8xi1>
    %437 = vector.broadcast %cst_244 : f32 to vector<64x8xf32>
    %438 = arith.select %436, %429, %437 : vector<64x8xi1>, vector<64x8xf32>
    %c8_245 = arith.constant 8 : index
    %c0_246 = arith.constant 0 : index
    %c0_247 = arith.constant 0 : index
    %439 = vector.load %arg9[%c8_245, %c0_246, %c0_247] : memref<9x8x16xf32, #tpu.memory_space<vmem>>, vector<1x8x16xf32>
    %440 = vector.shape_cast %439 : vector<1x8x16xf32> to vector<8x16xf32>
    %cst_248 = arith.constant dense<0.000000e+00> : vector<64x16xf32>
    %441 = tpu.matmul %438, %440, %cst_248 {dimension_numbers = #tpu.dot_dimension_numbers<[1], [0], [0], [1], [0, 0, 1, 1], [], []>} : vector<64x8xf32>, vector<8x16xf32>, vector<64x16xf32> -> vector<64x16xf32>
    %442 = arith.addf %428, %441 : vector<64x16xf32>
    %c0_249 = arith.constant 0 : index
    %c0_250 = arith.constant 0 : index
    %443 = vector.load %arg10[%c0_249, %c0_250] : memref<1x16xf32, #tpu.memory_space<vmem>>, vector<1x16xf32>
    %444 = vector.broadcast %443 : vector<1x16xf32> to vector<64x16xf32>
    %445 = arith.addf %442, %444 : vector<64x16xf32>
    %cst_251 = arith.constant 0.000000e+00 : f32
    %446 = vector.broadcast %cst_251 : f32 to vector<64x16xf32>
    %447 = arith.maximumf %445, %446 : vector<64x16xf32>
    %cst_252 = arith.constant 0.000000e+00 : f32
    %448 = vector.broadcast %cst_252 : f32 to vector<64x16xf32>
    %449 = arith.maximumf %447, %448 : vector<64x16xf32>
    %c0_253 = arith.constant 0 : index
    %c0_254 = arith.constant 0 : index
    %450 = vector.load %arg11[%c0_253, %c0_254] : memref<16x64xf32, #tpu.memory_space<vmem>>, vector<16x64xf32>
    %cst_255 = arith.constant dense<0.000000e+00> : vector<16x16xf32>
    %451 = tpu.matmul %450, %449, %cst_255 {dimension_numbers = #tpu.dot_dimension_numbers<[1], [0], [0], [1], [0, 0, 1, 1], [], []>} : vector<16x64xf32>, vector<64x16xf32>, vector<16x16xf32> -> vector<16x16xf32>
    %c0_256 = arith.constant 0 : index
    %c0_257 = arith.constant 0 : index
    %c0_258 = arith.constant 0 : index
    %452 = vector.load %arg12[%c0_256, %c0_257, %c0_258] : memref<1x16x16xf32, #tpu.memory_space<vmem>>, vector<1x16x16xf32>
    %453 = vector.shape_cast %452 : vector<1x16x16xf32> to vector<16x16xf32>
    %454 = vector.shape_cast %451 : vector<16x16xf32> to vector<1x16x16xf32>
    tpu.vector_store %arg12[%c0_256, %c0_257, %c0_258], %454 {strides = array<i32>} : memref<1x16x16xf32, #tpu.memory_space<vmem>>, vector<1x16x16xf32>,
    return
  }
  func.func @transform_0(%arg0: i32) -> (i32, i32, i32) {
    %c0_i32 = arith.constant 0 : i32
    %c0_i32_0 = arith.constant 0 : i32
    %c0_i32_1 = arith.constant 0 : i32
    return %arg0, %c0_i32, %c0_i32_0 : i32, i32, i32
  }
  func.func @transform_1(%arg0: i32) -> (i32, i32, i32) {
    %c0_i32 = arith.constant 0 : i32
    %c0_i32_0 = arith.constant 0 : i32
    %c0_i32_1 = arith.constant 0 : i32
    %c0_i32_2 = arith.constant 0 : i32
    return %c0_i32, %c0_i32_0, %c0_i32_1 : i32, i32, i32
  }
  func.func @transform_2(%arg0: i32) -> (i32, i32) {
    %c0_i32 = arith.constant 0 : i32
    %c0_i32_0 = arith.constant 0 : i32
    %c0_i32_1 = arith.constant 0 : i32
    return %c0_i32, %c0_i32_0 : i32, i32
  }
  func.func @transform_3(%arg0: i32) -> (i32, i32, i32) {
    %c0_i32 = arith.constant 0 : i32
    %c0_i32_0 = arith.constant 0 : i32
    %c0_i32_1 = arith.constant 0 : i32
    %c0_i32_2 = arith.constant 0 : i32
    return %c0_i32, %c0_i32_0, %c0_i32_1 : i32, i32, i32
  }
  func.func @transform_4(%arg0: i32) -> (i32, i32) {
    %c0_i32 = arith.constant 0 : i32
    %c0_i32_0 = arith.constant 0 : i32
    %c0_i32_1 = arith.constant 0 : i32
    return %c0_i32, %c0_i32_0 : i32, i32
  }
  func.func @transform_5(%arg0: i32) -> (i32, i32) {
    %c0_i32 = arith.constant 0 : i32
    %c0_i32_0 = arith.constant 0 : i32
    %c0_i32_1 = arith.constant 0 : i32
    return %c0_i32, %c0_i32_0 : i32, i32
  }
  func.func @transform_6(%arg0: i32) -> (i32, i32, i32) {
    %c0_i32 = arith.constant 0 : i32
    %c0_i32_0 = arith.constant 0 : i32
    %c0_i32_1 = arith.constant 0 : i32
    %c0_i32_2 = arith.constant 0 : i32
    return %c0_i32, %c0_i32_0, %c0_i32_1 : i32, i32, i32
  }
  func.func @transform_7(%arg0: i32) -> (i32, i32) {
    %c0_i32 = arith.constant 0 : i32
    %c0_i32_0 = arith.constant 0 : i32
    %c0_i32_1 = arith.constant 0 : i32
    return %c0_i32, %c0_i32_0 : i32, i32
  }
  func.func @transform_8(%arg0: i32) -> (i32, i32, i32) {
    %c0_i32 = arith.constant 0 : i32
    %c0_i32_0 = arith.constant 0 : i32
    %c0_i32_1 = arith.constant 0 : i32
    %c0_i32_2 = arith.constant 0 : i32
    return %c0_i32, %c0_i32_0, %c0_i32_1 : i32, i32, i32
  }
  func.func @transform_9(%arg0: i32) -> (i32, i32) {
    %c0_i32 = arith.constant 0 : i32
    %c0_i32_0 = arith.constant 0 : i32
    %c0_i32_1 = arith.constant 0 : i32
    return %c0_i32, %c0_i32_0 : i32, i32
  }
  func.func @transform_10(%arg0: i32) -> (i32, i32) {
    %c0_i32 = arith.constant 0 : i32
    %c0_i32_0 = arith.constant 0 : i32
    %c0_i32_1 = arith.constant 0 : i32
    return %c0_i32, %c0_i32_0 : i32, i32
  }
  func.func @transform_11(%arg0: i32) -> (i32, i32, i32) {
    %c0_i32 = arith.constant 0 : i32
    %c0_i32_0 = arith.constant 0 : i32
    %c0_i32_1 = arith.constant 0 : i32
    return %arg0, %c0_i32, %c0_i32_0 : i32, i32, i32
  }
}

</mosaic_0001>

<bundles_post_ra>
// kernel: galaxy_cnn_mlp_forward.3
= control target key start
LH: loop header
LB: loop body
LE: loop exit
PB: predicated region body
PF: predicated region fallthrough
CT: control target
= control target key end

     0   :  { %s820_s0 = inlined_call_operand.vmem [shape: f32[2,256], index: 0, kind: input, shape index: {}]   ;;  %s821_s1 = inlined_call_operand.vmem [shape: f32[256,32], index: 1, kind: input, shape index: {}]   ;;  %s822_s2 = inlined_call_operand.vmem [shape: f32[1,32], index: 2, kind: input, shape index: {}]   ;;  %s823_s3 = inlined_call_operand.vmem [shape: f32[32,64], index: 3, kind: input, shape index: {}]   ;;  %s824_s4 = inlined_call_operand.vmem [shape: f32[1,64], index: 4, kind: input, shape index: {}]   ;;  %s825_s5 = inlined_call_operand.vmem [shape: f32[64,8], index: 5, kind: input, shape index: {}]   ;;  %s826_s6 = inlined_call_operand.vmem [shape: f32[1,8], index: 6, kind: input, shape index: {}]   ;;  %s827_s7 = inlined_call_operand.vmem [shape: f32[8,8], index: 7, kind: input, shape index: {}]   ;;  %s828_s8 = inlined_call_operand.vmem [shape: f32[1,8], index: 8, kind: input, shape index: {}]   ;;  %s829_s9 = inlined_call_operand.hbm [shape: f32[2,8], index: 9, kind: output, shape index: {}]  }
   0x1   :  { %v50_v0 = vld [vmem:[%s821_s1 + $0x80] sm:$0xff]  ;;  %v51_v1 = vld [vmem:[%s821_s1 + $0x88] sm:$0xff]  ;;  %v52_v5 = vld [vmem:[%s821_s1 + $0x90] sm:$0xff] }
   0x2   :  { %v34_v2 = vld [vmem:[%s821_s1] sm:$0xff]  ;;  %v523_v3 = vpack.c.bf16 %v51_v1, %v50_v0  ;;  %v35_v4 = vld [vmem:[%s821_s1 + $0x8] sm:$0xff]  ;;  %v53_v6 = vld [vmem:[%s821_s1 + $0x98] sm:$0xff] }
   0x3   :  { %v525_v7 = vpack.c.bf16 %v35_v4, %v34_v2  ;;  %v527_v8 = vpack.c.bf16 %v53_v6, %v52_v5  ;;  %v36_v9 = vld [vmem:[%s821_s1 + $0x10] sm:$0xff]  ;;  %v37_v10 = vld [vmem:[%s821_s1 + $0x18] sm:$0xff]  ;;  %v54_v11 = vld [vmem:[%s821_s1 + $0xa0] sm:$0xff] }
   0x4   :  { %524 = vmatprep.subr.bf16.mxu0 %v523_v3  ;;  %v55_v12 = vld [vmem:[%s821_s1 + $0xa8] sm:$0xff]  ;;  %v529_v13 = vpack.c.bf16 %v37_v10, %v36_v9  ;;  %v38_v15 = vld [vmem:[%s821_s1 + $0x20] sm:$0xff]  ;;  %v56_v17 = vld [vmem:[%s821_s1 + $0xb0] sm:$0xff] }
   0x5   :  { %526 = vmatpush3.bf16.msra.mxu0 %v525_v7  ;;  %v531_v14 = vpack.c.bf16 %v55_v12, %v54_v11  ;;  %v39_v16 = vld [vmem:[%s821_s1 + $0x28] sm:$0xff]  ;;  %v57_v18 = vld [vmem:[%s821_s1 + $0xb8] sm:$0xff]  ;;  %v40_v21 = vld [vmem:[%s821_s1 + $0x30] sm:$0xff] }
   0x6   :  { %528 = vmatprep.subr.bf16.mxu0 %v527_v8  ;;  %v533_v19 = vpack.c.bf16 %v39_v16, %v38_v15  ;;  %v535_v20 = vpack.c.bf16 %v57_v18, %v56_v17  ;;  %v41_v22 = vld [vmem:[%s821_s1 + $0x38] sm:$0xff]  ;;  %v58_v23 = vld [vmem:[%s821_s1 + $0xc0] sm:$0xff]  ;;  %v59_v24 = vld [vmem:[%s821_s1 + $0xc8] sm:$0xff] }
   0x7   :  { %v430_v25 = vld.sshfl [vmem:[%s820_s0] sm:$0x33 pattern:$0x76325410] }
   0x8   :  { %v81_v26 = vcombine.high %v430_v25, %v430_v25 }
   0x9   :  { %530 = vmatpush3.bf16.msra.mxu0 %v529_v13 }
   0xa   :  { %532 = vmatprep.subr.bf16.mxu0 %v531_v14 }
   0xb   :  { %14 = vsyncpa [#allocation3], 0  ;;  %v537_v27 = vpack.c.bf16 %v41_v22, %v40_v21  ;;  %v539_v28 = vpack.c.bf16 %v59_v24, %v58_v23  ;;  %v42_v29 = vld [vmem:[%s821_s1 + $0x40] sm:$0xff]  ;;  %v43_v30 = vld [vmem:[%s821_s1 + $0x48] sm:$0xff]  ;;  %148 = vmatprep.mubr.f32.mxu0 %v81_v26  ;;  %v601_v53 = vmov 0.0|0.0   ;;  %vm602_vm0 = vmmov 0  }
   0xc   :  { %v60_v31 = vld [vmem:[%s821_s1 + $0xd0] sm:$0xff]  ;;  %v61_v32 = vld [vmem:[%s821_s1 + $0xd8] sm:$0xff]  ;;  %v541_v33 = vpack.c.bf16 %v43_v30, %v42_v29  ;;  %v62_v37 = vld [vmem:[%s821_s1 + $0xe0] sm:$0xff]  ;;  %555 = vmatprep.subr.bf16.mxu1 %v601_v53  ;;  %v603_v57 = vmov 0.0   ;;  %vm166_vm1 = vcmask 261120   ;;  %vm256_vm2 = vcmask 523264  }
   0xd   :  { %534 = vmatpush3.bf16.msra.mxu0 %v533_v19  ;;  %v543_v34 = vpack.c.bf16 %v61_v32, %v60_v31  ;;  %v44_v35 = vld [vmem:[%s821_s1 + $0x50] sm:$0xff]  ;;  %v45_v36 = vld [vmem:[%s821_s1 + $0x58] sm:$0xff]  ;;  %v63_v38 = vld [vmem:[%s821_s1 + $0xe8] sm:$0xff]  ;;  %496 = vmatprep.mubr.msk.f32.mxu1 %vm602_vm0, %v603_v57  ;;  %vm339_vm3 = vcmask 64512   ;;  %s604_s16 = smov [#allocation2]   ;;  %vm413_vm4 = vcmask 58368  }
   0xe   :  { %536 = vmatprep.subr.bf16.mxu0 %v535_v20  ;;  %v545_v39 = vpack.c.bf16 %v45_v36, %v44_v35  ;;  %v547_v40 = vpack.c.bf16 %v63_v38, %v62_v37  ;;  %v46_v41 = vld [vmem:[%s821_s1 + $0x60] sm:$0xff]  ;;  %v47_v42 = vld [vmem:[%s821_s1 + $0x68] sm:$0xff]  ;;  %v64_v43 = vld [vmem:[%s821_s1 + $0xf0] sm:$0xff]  ;;  %s421_s17 = sshll.u32 %s604_s16, 4  ;;  %s422_s17 = int_to_ptr.vmem [resolvable:$true] %s421_s17 }
   0xf   :  { %v65_v44 = vld [vmem:[%s821_s1 + $0xf8] sm:$0xff]  ;;  %v549_v45 = vpack.c.bf16 %v47_v42, %v46_v41  ;;  %v48_v47 = vld [vmem:[%s821_s1 + $0x70] sm:$0xff]  ;;  %v155_v50 = vld [vmem:[%s823_s3] sm:$0xff]  ;;  %p582_p1 = scmp.lt.s32.totalorder %s422_s17, %s422_s17 }
  0x10   :  { %v551_v46 = vpack.c.bf16 %v65_v44, %v64_v43  ;;  %v49_v48 = vld [vmem:[%s821_s1 + $0x78] sm:$0xff]  ;;  %v156_v51 = vld [vmem:[%s823_s3 + $0x8] sm:$0xff]  ;;  %v157_v54 = vld [vmem:[%s823_s3 + $0x10] sm:$0xff] }
  0x11   :  { %538 = vmatpush3.bf16.msra.mxu0 %v537_v27  ;;  %v553_v49 = vpack.c.bf16 %v49_v48, %v48_v47  ;;  %v556_v52 = vpack.c.bf16 %v156_v51, %v155_v50  ;;  %v158_v55 = vld [vmem:[%s823_s3 + $0x18] sm:$0xff]  ;;  %v429_v59 = vld [vmem:[%s822_s2] ss:$0 sm:$0xff]  ;;  %v242_v63 = vld [vmem:[%s825_s5 + $0x8] sm:$0xff] }
  0x12   :  { %540 = vmatprep.subr.bf16.mxu0 %v539_v28  ;;  %v559_v56 = vpack.c.bf16 %v158_v55, %v157_v54  ;;  %v241_v62 = vld [vmem:[%s825_s5] sm:$0xff]  ;;  %v243_v3 = vld [vmem:[%s825_s5 + $0x10] sm:$0xff]  ;;  %v244_v4 = vld [vmem:[%s825_s5 + $0x18] sm:$0xff] }
  0x13   :  { %557 = vmatpush3.bf16.msra.mxu1 %v556_v52  ;;  %v562_v1 = vpack.c.bf16 %v242_v63, %v241_v62  ;;  %v565_v5 = vpack.c.bf16 %v244_v4, %v243_v3  ;;  %v245_v6 = vld [vmem:[%s825_s5 + $0x20] sm:$0xff]  ;;  %v246_v7 = vld [vmem:[%s825_s5 + $0x28] sm:$0xff]  ;;  %v247_v9 = vld [vmem:[%s825_s5 + $0x30] sm:$0xff] }
  0x14   :  { %558 = vmatprep.subr.bf16.mxu1 %v601_v53  ;;  %v568_v8 = vpack.c.bf16 %v246_v7, %v245_v6  ;;  %v248_v10 = vld [vmem:[%s825_s5 + $0x38] sm:$0xff]  ;;  %v431_v12 = vld [vmem:[%s824_s4] ss:$0 sm:$0xff] }
  0x15   :  { %542 = vmatpush3.bf16.msra.mxu0 %v541_v33  ;;  %v571_v11 = vpack.c.bf16 %v248_v10, %v247_v9  ;;  %v331_v17 = vld [vmem:[%s827_s7] sm:$0xff]  ;;  %s577_s7 = scalar_lea.vmem %s422_s17, 32 }
  0x16   :  { %544 = vmatprep.subr.bf16.mxu0 %v543_v34  ;;  %v433_v18 = vld [vmem:[%s826_s6] ss:$0 sm:$0xff]  ;;  %p578_p0 = scmp.ne.s32.totalorder %s422_s17, %s577_s7  ;;  %p583_p2 = scmp.lt.s32.totalorder %s577_s7, %s577_s7 }
  0x17   :  { %560 = vmatpush3.bf16.msra.mxu1 %v559_v56  ;;  %v435_v23 = vld [vmem:[%s828_s8] ss:$0 sm:$0xff] }
  0x18   :  { %561 = vmatprep.subr.bf16.mxu1 %v601_v53  ;;  %p584_p3 = por %p583_p2, %p582_p1 }
  0x19   :  { %546 = vmatpush3.bf16.msra.mxu0 %v545_v39 }
  0x1a   :  { %548 = vmatprep.subr.bf16.mxu0 %v547_v40  ;;  %p585_p4 = pnand %p584_p3, %p578_p0 }
  0x1d   :  { %550 = vmatpush3.bf16.msra.mxu0 %v549_v45 }
  0x1e   :  { %552 = vmatprep.subr.bf16.mxu0 %v551_v46 }
  0x21   :  { %554 = vmatpush3.bf16.msra.mxu0 %v553_v49 }
  0x24   :  { %149 = vmatmul.mubr.f32.vlgmr.msra.gmra.mrb[0].mxu0 %v430_v25 }
  0xf7   :  { %v469_v58 = vpop.f32.mrb[0].mxu0 }
  0xf8   :  { %v470_v60 = vpop.f32.mrb[1].mxu0 }
  0xf9   :  { %v471_v61 = vadd.f32 %v470_v60, %v469_v58 }
  0xfb   :  { %v151_v0 = vadd.f32 %v471_v61, %v429_v59 }
  0xfd   :  { %v154_v2 = vmax.f32 %v151_v0, 0.0 }
  0xff   :  { %497 = vmatmul.mubr.msk.f32.vlgmr.msra.gmra.mrb[0].mxu1 %vm166_vm1, %v154_v2 }
 0x100   :  { %563 = vmatpush3.bf16.msra.mxu1 %v562_v1  ;;  %515 = vmatprep.mubr.msk.f32.mxu1 %vm602_vm0, %v603_v57 }
 0x101   :  { %564 = vmatprep.subr.bf16.mxu1 %v601_v53 }
 0x104   :  { %566 = vmatpush3.bf16.msra.mxu1 %v565_v5 }
 0x105   :  { %567 = vmatprep.subr.bf16.mxu1 %v601_v53 }
 0x108   :  { %569 = vmatpush3.bf16.msra.mxu1 %v568_v8 }
 0x109   :  { %570 = vmatprep.subr.bf16.mxu1 %v601_v53 }
 0x10c   :  { %572 = vmatpush3.bf16.msra.mxu1 %v571_v11 }
 0x10d   :  { %518 = vmatprep.subr.mxu1 %v603_v57 }
 0x1d2   :  { %v236_v13 = vpop.f32.mrb[0].mxu1 }
 0x1d3   :  { %v237_v14 = vadd.f32 %v431_v12, %v236_v13  ;;  %v498_v15 = vpop.f32.mrb[1].mxu1 }
 0x1d5   :  { %v240_v16 = vmax.f32 %v237_v14, 0.0 }
 0x1d7   :  { %516 = vmatmul.mubr.msk.f32.vlgmr.msra.gmra.mrb[2].mxu1 %vm256_vm2, %v240_v16 }
 0x1d8   :  { %520 = vmatprep.mubr.msk.f32.mxu1 %vm602_vm0, %v603_v57  ;;  %519 = vmatpush3.msra.mxu1 %v331_v17 }
 0x2aa   :  { %v326_v19 = vpop.f32.mrb[2].mxu1 }
 0x2ab   :  { %v327_v20 = vadd.f32 %v433_v18, %v326_v19  ;;  %v517_v21 = vpop.f32.mrb[3].mxu1 }
 0x2ad   :  { %v330_v22 = vmax.f32 %v327_v20, 0.0 }
 0x2af   :  { %521 = vmatmul.mubr.msk.f32.vlgmr.msra.gmra.mrb[4].mxu1 %vm339_vm3, %v330_v22 }
 0x382   :  { %v409_v24 = vpop.f32.mrb[4].mxu1 }
 0x383   :  { %v410_v25 = vadd.f32 %v435_v23, %v409_v24  ;;  %v522_v26 = vpop.f32.mrb[5].mxu1 }
 0x385   :  { %414 = vst.msk [vmem:[#allocation2] sm:$0x3] %vm413_vm4, %v410_v25 }
 0x386   :  { %588 = shalt.err (!%p585_p4)
}
 0x387   :  { %s589_s19 = scalar_lea.hbm %s829_s9, 32 }
 0x388   :  { %p590_p5 = scmp.ne.s32.totalorder %s829_s9, %s589_s19  ;;  %p593_p6 = scmp.lt.u32.totalorder %s589_s19, %s829_s9 }
 0x38a   :  { %p595_p7 = pnand %p593_p6, %p590_p5 }
 0x38c   :  { %598 = shalt.err (!%p595_p7)
}
 0x38d   :  { %424 = dma.vmem_to_hbm [thread:$0]  %s422_s17, 32, %s829_s9, [#allocation3]  }
 0x38e   :  { %599 = dma.done.wait [#allocation3], 32  }
 0x38f   :  { %600 = vsyncadd [#allocation3], 4294967264 }
 0x390   :  { %428 = vsyncpa [#allocation3], 1 }

// kernel: galaxy_cnn_mlp_forward.2
= control target key start
LH: loop header
LB: loop body
LE: loop exit
PB: predicated region body
PF: predicated region fallthrough
CT: control target
= control target key end

     0   :  { %s15274_s17 = smov 0   ;;  %s21226_s0 = inlined_call_operand.vmem [shape: f32[2,256,4], index: 0, kind: input, shape index: {}]   ;;  %s21227_s1 = inlined_call_operand.vmem [shape: f32[9,4,8], index: 1, kind: input, shape index: {}]   ;;  %s21228_s2 = inlined_call_operand.vmem [shape: f32[1,8], index: 2, kind: input, shape index: {}]   ;;  %s21229_s3 = inlined_call_operand.vmem [shape: f32[9,8,8], index: 3, kind: input, shape index: {}]   ;;  %s21230_s4 = inlined_call_operand.vmem [shape: f32[1,8], index: 4, kind: input, shape index: {}]   ;;  %s21231_s5 = inlined_call_operand.vmem [shape: f32[64,256], index: 5, kind: input, shape index: {}]   ;;  %s21232_s6 = inlined_call_operand.vmem [shape: f32[9,8,8], index: 6, kind: input, shape index: {}]   ;;  %s21233_s7 = inlined_call_operand.vmem [shape: f32[1,8], index: 7, kind: input, shape index: {}]   ;;  %s21234_s8 = inlined_call_operand.vmem [shape: f32[9,8,16], index: 8, kind: input, shape index: {}]   ;;  %s21235_s9 = inlined_call_operand.vmem [shape: f32[1,16], index: 9, kind: input, shape index: {}]   ;;  %s21236_s10 = inlined_call_operand.vmem [shape: f32[16,64], index: 10, kind: input, shape index: {}]   ;;  %s21237_s11 = inlined_call_operand.vmem [shape: f32[2,16,16], index: 11, kind: output, shape index: {}]  }
   0x1 LB: > { %s11703_s18 = sadd.s32 4294967295, %s15212_s17   ;;  %p11707_p0 = scmp.ge.s32.totalorder %s15212_s17, 1  ;;  %s15212_s17 = sphi %s15274_s17, %s21_s17  }
   0x2   : > { %p337_p1 = scmp.lt.s32.totalorder %s15212_s17, 3 }
   0x4   : > { %p338_p2 = pnand %p11707_p0, %p337_p1 }
   0x6   : > { %341 = sbr.rel (%p338_p2) target bundleno = 2791 (0xae7), region = 64 }
   0xd   : > { %v11712_v0 = vld [vmem:[%s21227_s1 + $0x4] sm:$0xf]  ;;  %vm21240_vm0 = vcmask 1043456   ;;  %p377_p3 = scmp.lt.s32.totalorder %s11703_s18, 1  ;;  %v419_v1 = vlaneseq  ;;  %v773_v2 = vld [vmem:[%s21227_s1] sm:$0xf] }
   0xe   : > { %13305 = vmatprep.subr.msk.mxu0 %vm21240_vm0, %v11712_v0  ;;  %14524 = vmatprep.subr.msk.mxu1 %vm21240_vm0, %v11712_v0  ;;  %vm21251_vm1 = vcmask 31744   ;;  %v22262_v12 = vmov 0  ;;  %v15347_v20 = vld [vmem:[%s21227_s1 + $0x8] sm:$0xf]  ;;  %v22266_v21 = vmov 0  ;;  %v22269_v22 = vmov 0 }
   0xf   : > { %13306 = vmatpush3.msk.msra.mxu0 %vm21240_vm0, %v11712_v0  ;;  %s24419_s18 = smov (!%p377_p3, %s11703_s18), 1  ;;  %v15293_v3 = vshrl.u32 %v419_v1, 7  ;;  %14525 = vmatpush3.msk.msra.mxu1 %vm21240_vm0, %v11712_v0  ;;  %v22273_v28 = vmov 0  ;;  %v22276_v30 = vmov 0  ;;  %v22280_v36 = vmov 0 }
  0x10   : > { %13355 = vmatprep.subr.msk.mxu0 %vm21240_vm0, %v773_v2  ;;  %s12481_s23 = sshll.u32 %s24419_s18, 8  ;;  %v22284_v40 = vmov 0  ;;  %v22288_v46 = vmov 0  ;;  %v22292_v50 = vmov 0  ;;  %v22296_v56 = vmov 0  ;;  %s12482_s20 = sshll.u32 %s24419_s18, 4 }
  0x11   : > { %22254 = vst [vmem:[#allocation2_spill] sm:$0xff] %v15293_v3  ;;  %v21264_v4 = vshra.s32 %v15293_v3, 4  ;;  %v15300_v5 = vadd.s32 8, %v15293_v3  ;;  %v15303_v6 = vadd.s32 16, %v15293_v3  ;;  %v15306_v7 = vadd.s32 24, %v15293_v3  ;;  %s15311_s26 = scalar_lea.vmem %s21226_s0, %s12481_s23  ;;  %s386_s23 = scalar_lea.vmem %s21237_s11, %s12482_s20 }
  0x12   : > { %v15314_v8 = vadd.s32 32, %v15293_v3  ;;  %v15317_v9 = vadd.s32 40, %v15293_v3  ;;  %v15320_v10 = vadd.s32 48, %v15293_v3  ;;  %v15323_v11 = vld [vmem:[%s15311_s26 + $0xf0] sm:$0xff]  ;;  %v15332_v13 = vld [vmem:[%s15311_s26 + $0xf8] sm:$0xff]  ;;  %v15336_v15 = vld [vmem:[%s15311_s26] sm:$0xff] }
  0x13   : > { %22255 = vst [vmem:[#allocation3_spill] sm:$0xff] %v15300_v5  ;;  %22256 = vst [vmem:[#allocation4_spill] sm:$0xff] %v15303_v6  ;;  %vm15327_vm2 = vcmp.ge.s32.totalorder %v21264_v4, 1  ;;  %v21259_v14 = vshra.s32 %v15300_v5, 4  ;;  %v21261_v16 = vshra.s32 %v15303_v6, 4  ;;  %v21252_v18 = vshra.s32 %v15306_v7, 4 }
  0x14   : > { %22257 = vst [vmem:[#allocation5_spill] sm:$0xff] %v15306_v7  ;;  %22258 = vst [vmem:[#allocation6_spill] sm:$0xff] %v15314_v8  ;;  %v22263_v12 = vsel %vm15327_vm2, 4294967295, %v22262_v12  ;;  %v838_v17 = vsel %vm15327_vm2, %v15323_v11, 0.0  ;;  %v21253_v19 = vshra.s32 %v15314_v8, 4  ;;  %v15363_v23 = vld [vmem:[%s15311_s26 + $0x8] sm:$0xff] }
  0x15   : > { %22259 = vst [vmem:[#allocation7_spill] sm:$0xff] %v15317_v9  ;;  %22260 = vst [vmem:[#allocation8_spill] sm:$0xff] %v15320_v10  ;;  %13307 = vmatprep.mubr.msk.f32.mxu0 %vm21251_vm1, %v838_v17  ;;  %vm15352_vm3 = vcmp.ge.s32.totalorder %v21259_v14, 1  ;;  %vm15358_vm4 = vcmp.ge.s32.totalorder %v21261_v16, 1  ;;  %v21249_v24 = vshra.s32 %v15317_v9, 4  ;;  %v15367_v25 = vadd.s32 56, %v15293_v3 }
  0x16   : > { %22261 = vst [vmem:[#allocation9_spill] sm:$0xff] %v15323_v11  ;;  %22264 = vst [vmem:[#allocation10_spill] sm:$0xff] %v22263_v12  ;;  %v22267_v21 = vsel %vm15352_vm3, 4294967295, %v22266_v21  ;;  %v22270_v22 = vsel %vm15358_vm4, 4294967295, %v22269_v22  ;;  %v839_v26 = vsel %vm15352_vm3, %v15332_v13, 0.0  ;;  %v840_v27 = vsel %vm15358_vm4, %v15336_v15, 0.0 }
  0x17   : > { %22265 = vst [vmem:[#allocation11_spill] sm:$0xff] %v15336_v15  ;;  %22268 = vst [vmem:[#allocation12_spill] sm:$0xff] %v22267_v21  ;;  %vm15377_vm5 = vcmp.ge.s32.totalorder %v21252_v18, 1  ;;  %v15382_v29 = vld [vmem:[%s15311_s26 + $0x10] sm:$0xff]  ;;  %vm15386_vm6 = vcmp.ge.s32.totalorder %v21253_v19, 1  ;;  %13308 = vmatmul.mubr.msk.f32.vlgmr.msra.gmra.mrb[0].mxu0 %vm21251_vm1, %v839_v26  ;;  %v21250_v31 = vshra.s32 %v15320_v10, 4 }
  0x18   : > { %22271 = vst [vmem:[#allocation13_spill] sm:$0xff] %v22270_v22  ;;  %22272 = vst [vmem:[#allocation14_spill] sm:$0xff] %v15367_v25  ;;  %v22274_v28 = vsel %vm15377_vm5, 4294967295, %v22273_v28  ;;  %v22277_v30 = vsel %vm15386_vm6, 4294967295, %v22276_v30  ;;  %13310 = vmatprep.mubr.msk.f32.mxu0 %vm21251_vm1, %v840_v27  ;;  %v841_v32 = vsel %vm15377_vm5, %v15363_v23, 0.0  ;;  %v15397_v33 = vadd.s32 64, %v15293_v3  ;;  %13356 = vmatpush3.msk.msra.mxu0 %vm21240_vm0, %v773_v2 }
  0x19   : > { %22275 = vst [vmem:[#allocation15_spill] sm:$0xff] %v22274_v28  ;;  %22278 = vst [vmem:[#allocation16_spill] sm:$0xff] %v22277_v30  ;;  %v842_v34 = vsel %vm15386_vm6, %v15382_v29, 0.0  ;;  %v15404_v35 = vld [vmem:[%s15311_s26 + $0x18] sm:$0xff]  ;;  %vm15408_vm7 = vcmp.ge.s32.totalorder %v21249_v24, 1  ;;  %v21244_v37 = vshra.s32 %v15367_v25, 4  ;;  %13405 = vmatprep.subr.msk.mxu0 %vm21240_vm0, %v15347_v20 }
  0x1a   : > { %22279 = vst [vmem:[#allocation17_spill] sm:$0xff] %v15397_v33  ;;  %v22281_v36 = vsel %vm15408_vm7, 4294967295, %v22280_v36  ;;  %v15414_v38 = vadd.s32 72, %v15293_v3  ;;  %v15419_v39 = vld [vmem:[%s15311_s26 + $0x20] sm:$0xff]  ;;  %vm15423_vm8 = vcmp.ge.s32.totalorder %v21250_v31, 1  ;;  %v21246_v41 = vshra.s32 %v15397_v33, 4 }
  0x1b   : > { %22282 = vst [vmem:[#allocation18_spill] sm:$0xff] %v22281_v36  ;;  %v22285_v40 = vsel %vm15423_vm8, 4294967295, %v22284_v40  ;;  %v15429_v42 = vadd.s32 80, %v15293_v3  ;;  %13311 = vmatmul.mubr.msk.f32.gmra.mrb[2].mxu0 %vm21251_vm1, %v841_v32  ;;  %v843_v43 = vsel %vm15408_vm7, %v15404_v35, 0.0  ;;  %v844_v44 = vsel %vm15423_vm8, %v15419_v39, 0.0  ;;  %v15440_v45 = vld [vmem:[%s15311_s26 + $0x28] sm:$0xff] }
  0x1c   : > { %22283 = vst [vmem:[#allocation19_spill] sm:$0xff] %v15414_v38  ;;  %22286 = vst [vmem:[#allocation20_spill] sm:$0xff] %v22285_v40  ;;  %13313 = vmatprep.mubr.msk.f32.mxu0 %vm21251_vm1, %v842_v34  ;;  %vm15444_vm9 = vcmp.ge.s32.totalorder %v21244_v37, 1  ;;  %v21241_v47 = vshra.s32 %v15414_v38, 4  ;;  %v15450_v48 = vadd.s32 88, %v15293_v3  ;;  %v15453_v49 = vld [vmem:[%s15311_s26 + $0x30] sm:$0xff] }
  0x1d   : > { %22287 = vst [vmem:[#allocation21_spill] sm:$0xff] %v15429_v42  ;;  %v22289_v46 = vsel %vm15444_vm9, 4294967295, %v22288_v46  ;;  %vm15457_vm10 = vcmp.ge.s32.totalorder %v21246_v41, 1  ;;  %v21242_v51 = vshra.s32 %v15429_v42, 4  ;;  %v15463_v52 = vadd.s32 96, %v15293_v3  ;;  %v15474_v55 = vld [vmem:[%s15311_s26 + $0x38] sm:$0xff] }
  0x1e   : > { %22290 = vst [vmem:[#allocation22_spill] sm:$0xff] %v22289_v46  ;;  %22291 = vst [vmem:[#allocation23_spill] sm:$0xff] %v15450_v48  ;;  %v22293_v50 = vsel %vm15457_vm10, 4294967295, %v22292_v50  ;;  %v845_v53 = vsel %vm15444_vm9, %v15440_v45, 0.0  ;;  %v846_v54 = vsel %vm15457_vm10, %v15453_v49, 0.0  ;;  %vm15478_vm11 = vcmp.ge.s32.totalorder %v21241_v47, 1 }
  0x1f   : > { %22294 = vst [vmem:[#allocation24_spill] sm:$0xff] %v22293_v50  ;;  %22295 = vst [vmem:[#allocation25_spill] sm:$0xff] %v15463_v52  ;;  %13314 = vmatmul.mubr.msk.f32.gmra.mrb[4].mxu0 %vm21251_vm1, %v843_v43  ;;  %v22297_v56 = vsel %vm15478_vm11, 4294967295, %v22296_v56  ;;  %v21238_v57 = vshra.s32 %v15450_v48, 4  ;;  %v15484_v58 = vadd.s32 104, %v15293_v3  ;;  %v15487_v59 = vld [vmem:[%s15311_s26 + $0x40] sm:$0xff] }
  0x20   : > { %13316 = vmatprep.mubr.msk.f32.mxu0 %vm21251_vm1, %v844_v44  ;;  %22298 = vst [vmem:[#allocation26_spill] sm:$0xff] %v22297_v56  ;;  %vm15491_vm12 = vcmp.ge.s32.totalorder %v21242_v51, 1  ;;  %v22300_v60 = vmov 0  ;;  %v21239_v61 = vshra.s32 %v15463_v52, 4  ;;  %v15497_v62 = vadd.s32 112, %v15293_v3  ;;  %v15508_v1 = vld [vmem:[%s15311_s26 + $0x48] sm:$0xff] }
  0x21   : > { %22299 = vst [vmem:[#allocation27_spill] sm:$0xff] %v15484_v58  ;;  %v22301_v60 = vsel %vm15491_vm12, 4294967295, %v22300_v60  ;;  %v847_v63 = vsel %vm15478_vm11, %v15474_v55, 0.0  ;;  %v848_v0 = vsel %vm15491_vm12, %v15487_v59, 0.0  ;;  %vm15512_vm13 = vcmp.ge.s32.totalorder %v21238_v57, 1  ;;  %v15521_v27 = vld [vmem:[%s15311_s26 + $0x50] sm:$0xff] }
  0x22   : > { %22302 = vst [vmem:[#allocation28_spill] sm:$0xff] %v22301_v60  ;;  %22303 = vst [vmem:[#allocation29_spill] sm:$0xff] %v15497_v62  ;;  %v22304_v2 = vmov 0  ;;  %v21243_v17 = vshra.s32 %v15484_v58, 4  ;;  %v15518_v26 = vadd.s32 120, %v15293_v3  ;;  %vm15525_vm14 = vcmp.ge.s32.totalorder %v21239_v61, 1 }
  0x23   : > { %13317 = vmatmul.mubr.msk.f32.gmra.mrb[6].mxu0 %vm21251_vm1, %v845_v53  ;;  %v22305_v2 = vsel %vm15512_vm13, 4294967295, %v22304_v2  ;;  %v22308_v32 = vmov 0  ;;  %v21245_v34 = vshra.s32 %v15497_v62, 4  ;;  %v15531_v43 = vadd.s32 128, %v15293_v3  ;;  %v15555_v61 = vld [vmem:[%s15311_s26 + $0x60] sm:$0xff]  ;;  %v15576_v41 = vld [vmem:[%s15311_s26 + $0x68] sm:$0xff] }
  0x24   : > { %13319 = vmatprep.mubr.msk.f32.mxu0 %vm21251_vm1, %v846_v54  ;;  %22306 = vst [vmem:[#allocation30_spill] sm:$0xff] %v22305_v2  ;;  %22307 = vst [vmem:[#allocation31_spill] sm:$0xff] %v15518_v26  ;;  %v22309_v32 = vsel %vm15525_vm14, 4294967295, %v22308_v32  ;;  %v849_v44 = vsel %vm15512_vm13, %v15508_v1, 0.0  ;;  %v850_v53 = vsel %vm15525_vm14, %v15521_v27, 0.0  ;;  %v15542_v54 = vld [vmem:[%s15311_s26 + $0x58] sm:$0xff] }
  0x25   : > { %22310 = vst [vmem:[#allocation32_spill] sm:$0xff] %v22309_v32  ;;  %22311 = vst [vmem:[#allocation33_spill] sm:$0xff] %v15531_v43  ;;  %vm15546_vm15 = vcmp.ge.s32.totalorder %v21243_v17, 1  ;;  %v22312_v57 = vmov 0  ;;  %vm15559_vm0 = vcmp.ge.s32.totalorder %v21245_v34, 1  ;;  %v22316_v47 = vmov 0 }
  0x26   : > { %v22313_v57 = vsel %vm15546_vm15, 4294967295, %v22312_v57  ;;  %v22317_v47 = vsel %vm15559_vm0, 4294967295, %v22316_v47  ;;  %v21260_v51 = vshra.s32 %v15531_v43, 4  ;;  %v15565_v17 = vadd.s32 144, %v15293_v3  ;;  %v15589_v31 = vld [vmem:[%s15311_s26 + $0x70] sm:$0xff]  ;;  %v15610_v16 = vld [vmem:[%s15311_s26 + $0x78] sm:$0xff] }
  0x27   : > { %13320 = vmatmul.mubr.msk.f32.gmra.mrb[8].mxu0 %vm21251_vm1, %v847_v63  ;;  %22314 = vst [vmem:[#allocation34_spill] sm:$0xff] %v22313_v57  ;;  %v21254_v63 = vshra.s32 %v15518_v26, 4  ;;  %22318 = vst [vmem:[#allocation36_spill] sm:$0xff] %v22317_v47  ;;  %v851_v37 = vsel %vm15546_vm15, %v15542_v54, 0.0  ;;  %v852_v34 = vsel %vm15559_vm0, %v15555_v61, 0.0  ;;  %v22320_v24 = vmov 0 }
  0x28   : > { %13322 = vmatprep.mubr.msk.f32.mxu0 %vm21251_vm1, %v848_v0  ;;  %v15552_v0 = vadd.s32 136, %v15293_v3  ;;  %22319 = vst [vmem:[#allocation37_spill] sm:$0xff] %v15565_v17  ;;  %v22324_v18 = vmov 0  ;;  %vm22328_vm15 = vcmask 31744   ;;  %v22330_v4 = vmov 0  ;;  %v15623_v19 = vld [vmem:[%s15311_s26 + $0x80] sm:$0xff] }
  0x29   : > { %vm15580_vm13 = vcmp.ge.s32.totalorder %v21254_v63, 1  ;;  %v15599_v63 = vadd.s32 160, %v15293_v3  ;;  %vm22329_vm0 = vmmov %vm22328_vm15  ;;  %v22334_v26 = vshra.s32 %v15565_v17, 4  ;;  %v22335_v58 = vmov 0  ;;  %v15644_v48 = vld [vmem:[%s15311_s26 + $0x88] sm:$0xff]  ;;  %v15657_v25 = vld [vmem:[%s15311_s26 + $0x90] sm:$0xff] }
  0x2a   : > { %22315 = vst [vmem:[#allocation35_spill] sm:$0xff] %v15552_v0  ;;  %v22321_v24 = vsel %vm15580_vm13, 4294967295, %v22320_v24  ;;  %v853_v14 = vsel %vm15580_vm13, %v15576_v41, 0.0  ;;  %vm22339_vm13 = vmmov %vm22328_vm15  ;;  %v22342_v38 = vmov 0  ;;  %v22348_v7 = vmov 0  ;;  %v15678_v5 = vld [vmem:[%s15311_s26 + $0x98] sm:$0xff] }
  0x2b   : > { %13323 = vmatmul.mubr.msk.f32.gmra.mrb[10].mxu0 %vm21251_vm1, %v849_v44  ;;  %22322 = vst [vmem:[#allocation38_spill] sm:$0xff] %v22321_v24  ;;  %v21271_v44 = vshra.s32 %v15552_v0, 4  ;;  %22327 = vst [vmem:[#allocation41_spill] sm:$0xff] %v15599_v63  ;;  %v22347_v9 = vshra.s32 %v15599_v63, 4  ;;  %v22599_v12 = vld [vmem:[#allocation7_spill] sm:$0xff]  ;;  %v1527_v22 = vrot.slane %v15440_v45, 1 }
  0x2c   : > { %13325 = vmatprep.mubr.msk.f32.mxu0 %vm21251_vm1, %v850_v53  ;;  %v15586_v53 = vadd.s32 152, %v15293_v3  ;;  %vm15593_vm1 = vcmp.ge.s32.totalorder %v21260_v51, 1  ;;  %22340 = vst [vmem:[#allocation46_spill] sm:$0xff] %v15644_v48  ;;  %22346 = vst [vmem:[#allocation49_spill] sm:$0xff] %v15657_v25  ;;  %v22606_v21 = vld [vmem:[#allocation14_spill] sm:$0xff]  ;;  %v1531_v40 = vrot.slane %v15508_v1, 1 }
  0x2d   : > { %v22325_v18 = vsel %vm15593_vm1, 4294967295, %v22324_v18  ;;  %v854_v51 = vsel %vm15593_vm1, %v15589_v31, 0.0  ;;  %vm15614_vm14 = vcmp.ge.s32.totalorder %v21271_v44, 1  ;;  %v15633_v44 = vadd.s32 176, %v15293_v3  ;;  %22353 = vst [vmem:[#allocation52_spill] sm:$0xff] %v15678_v5  ;;  %v22624_v36 = vld [vmem:[#allocation23_spill] sm:$0xff] }
  0x2e   : > { %22323 = vst [vmem:[#allocation39_spill] sm:$0xff] %v15586_v53  ;;  %22326 = vst [vmem:[#allocation40_spill] sm:$0xff] %v22325_v18  ;;  %v22331_v4 = vsel %vm15614_vm14, 4294967295, %v22330_v4  ;;  %v22341_v0 = vshra.s32 %v15586_v53, 4 }
  0x2f   : > { %13326 = vmatmul.mubr.msk.f32.gmra.mrb[12].mxu0 %vm22328_vm15, %v851_v37  ;;  %22332 = vst [vmem:[#allocation42_spill] sm:$0xff] %v22331_v4  ;;  %22338 = vst [vmem:[#allocation45_spill] sm:$0xff] %v15633_v44  ;;  %v855_v37 = vsel %vm15614_vm14, %v15610_v16, 0.0  ;;  %v22355_v4 = vmov 0 }
  0x30   : > { %13328 = vmatprep.mubr.msk.f32.mxu0 %vm22329_vm0, %v852_v34  ;;  %v15620_v34 = vadd.s32 168, %v15293_v3  ;;  %vm15627_vm0 = vcmp.ge.s32.totalorder %v22334_v26, 1  ;;  %vm15648_vm1 = vcmp.ge.s32.totalorder %v22341_v0, 1  ;;  %v15667_v0 = vadd.s32 192, %v15293_v3  ;;  %vm22352_vm14 = vmmov %vm22328_vm15 }
  0x31   : > { %v22336_v58 = vsel %vm15627_vm0, 4294967295, %v22335_v58  ;;  %v856_v26 = vsel %vm15627_vm0, %v15623_v19, 0.0  ;;  %v22343_v38 = vsel %vm15648_vm1, 4294967295, %v22342_v38 }
  0x32   : > { %22333 = vst [vmem:[#allocation43_spill] sm:$0xff] %v15620_v34  ;;  %22337 = vst [vmem:[#allocation44_spill] sm:$0xff] %v22336_v58  ;;  %v22354_v53 = vshra.s32 %v15620_v34, 4  ;;  %v22360_v58 = vshra.s32 %v15633_v44, 4  ;;  %v15713_v44 = vld [vmem:[%s15311_s26 + $0xa8] sm:$0xff] }
  0x33   : > { %13329 = vmatmul.mubr.msk.f32.gmra.mrb[14].mxu0 %vm22328_vm15, %v853_v14  ;;  %22344 = vst [vmem:[#allocation47_spill] sm:$0xff] %v22343_v38  ;;  %22351 = vst [vmem:[#allocation51_spill] sm:$0xff] %v15667_v0  ;;  %v857_v14 = vsel %vm15648_vm1, %v15644_v48, 0.0  ;;  %v15691_v38 = vld [vmem:[%s15311_s26 + $0xa0] sm:$0xff]  ;;  %v486_v48 = vand.u32 15, %v15303_v6  ;;  %v547_v6 = vrot.slane %v15332_v13, 7 }
  0x34   : > { %13331 = vmatprep.mubr.msk.f32.mxu0 %vm22339_vm13, %v854_v51  ;;  %v15654_v51 = vadd.s32 184, %v15293_v3  ;;  %vm15661_vm13 = vcmp.ge.s32.totalorder %v22347_v9, 1  ;;  %vm15682_vm0 = vcmp.ge.s32.totalorder %v22354_v53, 1  ;;  %22359 = vst [vmem:[#allocation55_spill] sm:$0xff] %v15691_v38  ;;  %v15702_v53 = vld [vmem:[%s15311_s26 + $0xe8] sm:$0xff]  ;;  %vm22364_vm1 = vmmov %vm22328_vm15 }
  0x35   : > { %v22349_v7 = vsel %vm15661_vm13, 4294967295, %v22348_v7  ;;  %v858_v9 = vsel %vm15661_vm13, %v15657_v25, 0.0  ;;  %v22356_v4 = vsel %vm15682_vm0, 4294967295, %v22355_v4  ;;  %v484_v25 = vand.u32 15, %v15293_v3  ;;  %22365 = vst [vmem:[#allocation57_spill] sm:$0xff] %v15713_v44 }
  0x36   : > { %22345 = vst [vmem:[#allocation48_spill] sm:$0xff] %v15654_v51  ;;  %22350 = vst [vmem:[#allocation50_spill] sm:$0xff] %v22349_v7  ;;  %v22361_v7 = vmov 0  ;;  %v22366_v34 = vshra.s32 %v15654_v51, 4  ;;  %v15748_v51 = vld [vmem:[%s15311_s26 + $0xb8] sm:$0xff] }
  0x37   : > { %13332 = vmatmul.mubr.msk.f32.gmra.mrb[16].mxu0 %vm22328_vm15, %v855_v37  ;;  %22357 = vst [vmem:[#allocation53_spill] sm:$0xff] %v22356_v4  ;;  %v859_v37 = vsel %vm15682_vm0, %v15678_v5, 0.0  ;;  %v22371_v4 = vshra.s32 %v15667_v0, 4  ;;  %v22372_v5 = vmov 0  ;;  %vm22375_vm0 = vcmask 31744   ;;  %22380 = vst [vmem:[#allocation62_spill] sm:$0xff] %v15748_v51 }
  0x38   : > { %13334 = vmatprep.mubr.msk.f32.mxu0 %vm22352_vm14, %v856_v26  ;;  %v15688_v26 = vadd.s32 200, %v15293_v3  ;;  %vm15695_vm14 = vcmp.ge.s32.totalorder %v22360_v58, 1  ;;  %vm15735_vm13 = vcmp.ge.s32.totalorder %v484_v25, 1  ;;  %vm22379_vm11 = vmmov %vm22375_vm0  ;;  %v22382_v25 = vmov 0 }
  0x39   : > { %v22362_v7 = vsel %vm15695_vm14, 4294967295, %v22361_v7  ;;  %v860_v58 = vsel %vm15695_vm14, %v15691_v38, 0.0  ;;  %v546_v38 = vrot.slane %v15323_v11, 7  ;;  %vm21359_vm14 = vcmp.lt.s32.totalorder %v15293_v3, 1 }
  0x3a   : > { %22358 = vst [vmem:[#allocation54_spill] sm:$0xff] %v15688_v26  ;;  %22363 = vst [vmem:[#allocation56_spill] sm:$0xff] %v22362_v7 }
  0x3b   : > { %13335 = vmatmul.mubr.msk.f32.gmra.mrb[18].mxu0 %vm22328_vm15, %v857_v14  ;;  %vm15717_vm15 = vcmp.ge.s32.totalorder %v22366_v34, 1  ;;  %v22367_v14 = vmov 0  ;;  %v22376_v34 = vmov 0 }
  0x3c   : > { %13337 = vmatprep.mubr.msk.f32.mxu0 %vm22364_vm1, %v858_v9  ;;  %v22368_v14 = vsel %vm15717_vm15, 4294967295, %v22367_v14  ;;  %v15723_v9 = vld [vmem:[%s15311_s26 + $0xb0] sm:$0xff]  ;;  %vm15727_vm1 = vcmp.ge.s32.totalorder %v22371_v4, 1  ;;  %v22377_v34 = vsel %vm15735_vm13, 4294967295, %v22376_v34  ;;  %v861_v4 = vsel %vm15717_vm15, %v15713_v44, 0.0 }
  0x3d   : > { %22369 = vst [vmem:[#allocation58_spill] sm:$0xff] %v22368_v14  ;;  %22370 = vst [vmem:[#allocation59_spill] sm:$0xff] %v15723_v9  ;;  %v22373_v5 = vsel %vm15727_vm1, 4294967295, %v22372_v5  ;;  %v862_v7 = vsel %vm15727_vm1, %v15723_v9, 0.0  ;;  %v516_v14 = vrot.slane %v15336_v15, 7  ;;  %vm22387_vm15 = vcmask 31744  }
  0x3e   : > { %22374 = vst [vmem:[#allocation60_spill] sm:$0xff] %v22373_v5  ;;  %22378 = vst [vmem:[#allocation61_spill] sm:$0xff] %v22377_v34  ;;  %vm15769_vm1 = vcmp.ge.s32.totalorder %v486_v48, 1  ;;  %v15786_v48 = vsel %vm21359_vm14, %v546_v38, %v547_v6 }
  0x3f   : > { %13338 = vmatmul.mubr.msk.f32.gmra.mrb[20].mxu0 %vm22375_vm0, %v859_v37  ;;  %v22381_v37 = vshra.s32 %v15688_v26, 4  ;;  %v488_v26 = vand.u32 15, %v15314_v8  ;;  %vm22391_vm12 = vmmov %vm22387_vm15  ;;  %22392 = vst [vmem:[#allocation66_spill] sm:$0xff] %v15786_v48  ;;  %v518_v8 = vrot.slane %v15382_v29, 7 }
  0x40   : > { %13340 = vmatprep.mubr.msk.f32.mxu0 %vm22379_vm11, %v860_v58  ;;  %v22385_v58 = vrot.slane %v15702_v53, 7  ;;  %vm21347_vm11 = vmand %vm15327_vm2, %vm15735_vm13 }
  0x41   : > { %vm15752_vm0 = vcmp.ge.s32.totalorder %v22381_v37, 1  ;;  %v22388_v37 = vmov 0  ;;  %vm22397_vm13 = vmmov %vm22387_vm15 }
  0x42   : > { %v22383_v25 = vsel %vm15752_vm0, 4294967295, %v22382_v25  ;;  %v15761_v11 = vsel %vm21359_vm14, %v22385_v58, %v546_v38  ;;  %v22389_v37 = vsel %vm15769_vm1, 4294967295, %v22388_v37  ;;  %v863_v58 = vsel %vm15752_vm0, %v15748_v51, 0.0 }
  0x43   : > { %22384 = vst [vmem:[#allocation63_spill] sm:$0xff] %v22383_v25  ;;  %22386 = vst [vmem:[#allocation64_spill] sm:$0xff] %v15761_v11  ;;  %13341 = vmatmul.mubr.msk.f32.gmra.mrb[22].mxu0 %vm22387_vm15, %v861_v4  ;;  %v741_v15 = vsel %vm21347_vm11, %v15761_v11, 0.0  ;;  %v517_v4 = vrot.slane %v15363_v23, 7  ;;  %vm15799_vm11 = vcmp.ge.s32.totalorder %v488_v26, 1  ;;  %v22394_v11 = vmov 0 }
  0x44   : > { %22390 = vst [vmem:[#allocation65_spill] sm:$0xff] %v22389_v37  ;;  %13343 = vmatprep.mubr.msk.f32.mxu0 %vm22391_vm12, %v862_v7  ;;  %v15791_v7 = vsel %vm21359_vm14, %v547_v6, %v516_v14  ;;  %vm21358_vm12 = vmand %vm15358_vm4, %vm15769_vm1  ;;  %v22395_v11 = vsel %vm15799_vm11, 4294967295, %v22394_v11  ;;  %v490_v38 = vand.u32 15, %v15320_v10  ;;  %v742_v6 = vsel %vm15352_vm3, %v15786_v48, 0.0  ;;  %v15831_v48 = vld [vmem:[%s21227_s1 + $0xc] sm:$0xf] }
  0x45   : > { %22393 = vst [vmem:[#allocation67_spill] sm:$0xff] %v15791_v7  ;;  %22396 = vst [vmem:[#allocation68_spill] sm:$0xff] %v22395_v11  ;;  %v743_v34 = vsel %vm21358_vm12, %v15791_v7, 0.0  ;;  %v15816_v26 = vsel %vm21359_vm14, %v516_v14, %v517_v4  ;;  %v520_v10 = vrot.slane %v15419_v39, 7  ;;  %v22401_v14 = vmov 0 }
  0x46   : > { %22398 = vst [vmem:[#allocation69_spill] sm:$0xff] %v15816_v26  ;;  %vm15834_vm12 = vcmp.ge.s32.totalorder %v490_v38, 1  ;;  %v744_v37 = vsel %vm15377_vm5, %v15816_v26, 0.0  ;;  %vm22407_vm1 = vcmp.lt.s32.totalorder %v15293_v3, 1  ;;  %v494_v11 = vand.u32 15, %v15429_v42 }
  0x47   : > { %13344 = vmatmul.mubr.msk.f32.gmra.mrb[24].mxu0 %vm22387_vm15, %v863_v58  ;;  %v519_v58 = vrot.slane %v15404_v35, 7  ;;  %vm22400_vm15 = vmmov %vm22397_vm13  ;;  %v22402_v14 = vsel %vm15834_vm12, 4294967295, %v22401_v14  ;;  %v524_v42 = vrot.slane %v15487_v59, 7 }
  0x48   : > { %13357 = vmatprep.mubr.msk.f32.mxu0 %vm22397_vm13, %v741_v15  ;;  %v15821_v15 = vsel %vm21359_vm14, %v517_v4, %v518_v8  ;;  %22403 = vst [vmem:[#allocation71_spill] sm:$0xff] %v22402_v14  ;;  %v492_v4 = vand.u32 15, %v15397_v33  ;;  %vm22404_vm14 = vmmov %vm22397_vm13  ;;  %vm22405_vm13 = vcmask 1043456   ;;  %v22421_v14 = vmov 0 }
  0x49   : > { %22399 = vst [vmem:[#allocation70_spill] sm:$0xff] %v15821_v15  ;;  %vm22410_vm5 = vmmov %vm22407_vm1 }
  0x4a   : > { %v15860_v33 = vsel %vm22410_vm5, %v519_v58, %v520_v10 }
  0x4b   : > { %13358 = vmatmul.mubr.msk.f32.vlgmr.msra.gmra.mrb[0].mxu0 %vm22400_vm15, %v742_v6  ;;  %vm22406_vm15 = vmand %vm15386_vm6, %vm15799_vm11  ;;  %v15853_v6 = vsel %vm22407_vm1, %v518_v8, %v519_v58  ;;  %22411 = vst [vmem:[#allocation73_spill] sm:$0xff] %v15860_v33  ;;  %vm15868_vm1 = vcmp.ge.s32.totalorder %v492_v4, 1  ;;  %v22413_v8 = vmov 0  ;;  %v523_v4 = vrot.slane %v15474_v55, 7 }
  0x4c   : > { %13360 = vmatprep.mubr.msk.f32.mxu0 %vm22404_vm14, %v743_v34  ;;  %13406 = vmatpush3.msk.msra.mxu0 %vm22405_vm13, %v15347_v20  ;;  %v745_v38 = vsel %vm22406_vm15, %v15821_v15, 0.0  ;;  %22408 = vst [vmem:[#allocation72_spill] sm:$0xff] %v15853_v6  ;;  %v521_v34 = vrot.slane %v15440_v45, 7  ;;  %vm22409_vm14 = vmmov %vm22405_vm13  ;;  %v522_v20 = vrot.slane %v15453_v49, 7  ;;  %vm22412_vm15 = vcmask 31744  }
  0x4d   : > { %13455 = vmatprep.subr.msk.mxu0 %vm22409_vm14, %v15831_v48  ;;  %vm21374_vm13 = vmand %vm15423_vm8, %vm15834_vm12  ;;  %v22414_v8 = vsel %vm15868_vm1, 4294967295, %v22413_v8  ;;  %v746_v58 = vsel %vm15408_vm7, %v15853_v6, 0.0  ;;  %vm22420_vm11 = vcmask 31744  }
  0x4e   : > { %22415 = vst [vmem:[#allocation74_spill] sm:$0xff] %v22414_v8  ;;  %vm22416_vm14 = vmmov %vm22412_vm15  ;;  %v747_v26 = vsel %vm21374_vm13, %v15860_v33, 0.0  ;;  %vm15898_vm13 = vcmp.ge.s32.totalorder %v494_v11, 1  ;;  %v22431_v8 = vmov 0 }
  0x4f   : > { %13361 = vmatmul.mubr.msk.f32.gmra.mrb[2].mxu0 %vm22412_vm15, %v744_v37  ;;  %v15885_v37 = vsel %vm22410_vm5, %v520_v10, %v521_v34  ;;  %vm22418_vm15 = vmmov %vm22410_vm5  ;;  %v22422_v14 = vsel %vm15898_vm13, 4294967295, %v22421_v14  ;;  %v496_v10 = vand.u32 15, %v15463_v52  ;;  %v526_v52 = vrot.slane %v15521_v27, 7 }
  0x50   : > { %13363 = vmatprep.mubr.msk.f32.mxu0 %vm22416_vm14, %v745_v38  ;;  %22417 = vst [vmem:[#allocation75_spill] sm:$0xff] %v15885_v37  ;;  %v15890_v38 = vsel %vm22418_vm15, %v521_v34, %v522_v20  ;;  %vm21384_vm14 = vmand %vm15457_vm10, %vm15868_vm1  ;;  %v748_v34 = vsel %vm15444_vm9, %v15885_v37, 0.0  ;;  %vm22430_vm9 = vcmask 31744   ;;  %vm22441_vm10 = vcmask 31744  }
  0x51   : > { %22419 = vst [vmem:[#allocation76_spill] sm:$0xff] %v15890_v38  ;;  %22423 = vst [vmem:[#allocation77_spill] sm:$0xff] %v22422_v14  ;;  %v749_v6 = vsel %vm21384_vm14, %v15890_v38, 0.0  ;;  %vm15928_vm14 = vcmp.ge.s32.totalorder %v496_v10, 1  ;;  %v22442_v14 = vmov 0 }
  0x52   : > { %vm22424_vm5 = vmmov %vm22420_vm11  ;;  %v22432_v8 = vsel %vm15928_vm14, 4294967295, %v22431_v8 }
  0x53   : > { %13364 = vmatmul.mubr.msk.f32.gmra.mrb[4].mxu0 %vm22420_vm11, %v746_v58  ;;  %vm22425_vm11 = vmmov %vm22418_vm15  ;;  %v525_v58 = vrot.slane %v15508_v1, 7  ;;  %22433 = vst [vmem:[#allocation80_spill] sm:$0xff] %v22432_v8  ;;  %v22453_v8 = vmov 0 }
  0x54   : > { %13366 = vmatprep.mubr.msk.f32.mxu0 %vm22424_vm5, %v747_v26  ;;  %v15915_v11 = vsel %vm22425_vm11, %v522_v20, %v523_v4  ;;  %vm22427_vm15 = vmmov %vm22425_vm11  ;;  %vm22429_vm5 = vnez %v22301_v60  ;;  %v498_v20 = vand.u32 15, %v15497_v62  ;;  %v528_v62 = vrot.slane %v15555_v61, 7 }
  0x55   : > { %22426 = vst [vmem:[#allocation78_spill] sm:$0xff] %v15915_v11  ;;  %v15920_v26 = vsel %vm22427_vm15, %v523_v4, %v524_v42  ;;  %vm21394_vm12 = vmand %vm22429_vm5, %vm15898_vm13  ;;  %vm22435_vm15 = vnez %v22297_v56  ;;  %vm22452_vm5 = vcmask 31744  }
  0x56   : > { %22428 = vst [vmem:[#allocation79_spill] sm:$0xff] %v15920_v26  ;;  %vm22434_vm11 = vmmov %vm22430_vm9  ;;  %v750_v4 = vsel %vm22435_vm15, %v15915_v11, 0.0  ;;  %v751_v37 = vsel %vm21394_vm12, %v15920_v26, 0.0  ;;  %vm15958_vm12 = vcmp.ge.s32.totalorder %v498_v20, 1 }
  0x57   : > { %13367 = vmatmul.mubr.msk.f32.gmra.mrb[6].mxu0 %vm22430_vm9, %v748_v34  ;;  %vm22436_vm9 = vcmp.lt.s32.totalorder %v15293_v3, 1  ;;  %v527_v34 = vrot.slane %v15542_v54, 7  ;;  %v22443_v14 = vsel %vm15958_vm12, 4294967295, %v22442_v14 }
  0x58   : > { %13369 = vmatprep.mubr.msk.f32.mxu0 %vm22434_vm11, %v749_v6  ;;  %v15945_v10 = vsel %vm22436_vm9, %v524_v42, %v525_v58  ;;  %vm22438_vm1 = vmmov %vm22436_vm9  ;;  %vm22440_vm11 = vnez %v22309_v32  ;;  %22444 = vst [vmem:[#allocation83_spill] sm:$0xff] %v22443_v14  ;;  %v500_v42 = vand.u32 15, %v15531_v43  ;;  %v530_v43 = vrot.slane %v15589_v31, 7 }
  0x59   : > { %22437 = vst [vmem:[#allocation81_spill] sm:$0xff] %v15945_v10  ;;  %v15950_v6 = vsel %vm22438_vm1, %v525_v58, %v526_v52  ;;  %vm21403_vm15 = vmand %vm22440_vm11, %vm15928_vm14  ;;  %vm22446_vm1 = vnez %v22305_v2  ;;  %vm22463_vm11 = vcmask 31744   ;;  %v22464_v14 = vmov 0 }
  0x5a   : > { %22439 = vst [vmem:[#allocation82_spill] sm:$0xff] %v15950_v6  ;;  %vm22445_vm9 = vmmov %vm22441_vm10  ;;  %v752_v58 = vsel %vm22446_vm1, %v15945_v10, 0.0  ;;  %v753_v11 = vsel %vm21403_vm15, %v15950_v6, 0.0  ;;  %vm15988_vm15 = vcmp.ge.s32.totalorder %v500_v42, 1 }
  0x5b   : > { %13370 = vmatmul.mubr.msk.f32.gmra.mrb[8].mxu0 %vm22441_vm10, %v750_v4  ;;  %vm22447_vm10 = vcmp.lt.s32.totalorder %v15293_v3, 1  ;;  %v529_v4 = vrot.slane %v15576_v41, 7  ;;  %v22454_v8 = vsel %vm15988_vm15, 4294967295, %v22453_v8 }
  0x5c   : > { %13372 = vmatprep.mubr.msk.f32.mxu0 %vm22445_vm9, %v751_v37  ;;  %v15975_v20 = vsel %vm22447_vm10, %v526_v52, %v527_v34  ;;  %vm22449_vm13 = vmmov %vm22447_vm10  ;;  %vm22451_vm9 = vnez %v22317_v47  ;;  %22455 = vst [vmem:[#allocation86_spill] sm:$0xff] %v22454_v8  ;;  %v502_v52 = vand.u32 15, %v15565_v17  ;;  %v532_v17 = vrot.slane %v15623_v19, 7 }
  0x5d   : > { %22448 = vst [vmem:[#allocation84_spill] sm:$0xff] %v15975_v20  ;;  %v15980_v37 = vsel %vm22449_vm13, %v527_v34, %v528_v62  ;;  %vm21412_vm1 = vmand %vm22451_vm9, %vm15958_vm12  ;;  %vm22457_vm13 = vnez %v22313_v57  ;;  %vm22477_vm9 = vcmask 31744   ;;  %v22478_v8 = vmov 0 }
  0x5e   : > { %22450 = vst [vmem:[#allocation85_spill] sm:$0xff] %v15980_v37  ;;  %vm22456_vm10 = vmmov %vm22452_vm5  ;;  %v754_v34 = vsel %vm22457_vm13, %v15975_v20, 0.0  ;;  %v755_v10 = vsel %vm21412_vm1, %v15980_v37, 0.0  ;;  %vm16018_vm1 = vcmp.ge.s32.totalorder %v502_v52, 1 }
  0x5f   : > { %13373 = vmatmul.mubr.msk.f32.gmra.mrb[10].mxu0 %vm22452_vm5, %v752_v58  ;;  %vm22458_vm5 = vcmp.lt.s32.totalorder %v15293_v3, 1  ;;  %v531_v58 = vrot.slane %v15610_v16, 7  ;;  %v22465_v14 = vsel %vm16018_vm1, 4294967295, %v22464_v14 }
  0x60   : > { %13375 = vmatprep.mubr.msk.f32.mxu0 %vm22456_vm10, %v753_v11  ;;  %v16005_v42 = vsel %vm22458_vm5, %v528_v62, %v529_v4  ;;  %vm22460_vm14 = vmmov %vm22458_vm5  ;;  %vm22462_vm10 = vnez %v22325_v18  ;;  %22466 = vst [vmem:[#allocation89_spill] sm:$0xff] %v22465_v14  ;;  %v504_v62 = vand.u32 15, %v15599_v63  ;;  %v22474_v63 = vld [vmem:[#allocation44_spill] sm:$0xff]  ;;  %v16078_v14 = vadd.s32 208, %v15293_v3 }
  0x61   : > { %22459 = vst [vmem:[#allocation87_spill] sm:$0xff] %v16005_v42  ;;  %v16010_v11 = vsel %vm22460_vm14, %v529_v4, %v530_v43  ;;  %vm21427_vm13 = vmand %vm22462_vm10, %vm15988_vm15  ;;  %vm22468_vm14 = vnez %v22321_v24 }
  0x62   : > { %22461 = vst [vmem:[#allocation88_spill] sm:$0xff] %v16010_v11  ;;  %vm22467_vm5 = vmmov %vm22463_vm11  ;;  %v756_v4 = vsel %vm22468_vm14, %v16005_v42, 0.0  ;;  %v757_v20 = vsel %vm21427_vm13, %v16010_v11, 0.0  ;;  %v22476_v42 = vld [vmem:[#allocation49_spill] sm:$0xff]  ;;  %vm16048_vm13 = vcmp.ge.s32.totalorder %v504_v62, 1 }
  0x63   : > { %13376 = vmatmul.mubr.msk.f32.gmra.mrb[12].mxu0 %vm22463_vm11, %v754_v34  ;;  %vm22469_vm11 = vcmp.lt.s32.totalorder %v15293_v3, 1  ;;  %v22471_v34 = vld [vmem:[#allocation46_spill] sm:$0xff]  ;;  %v534_v6 = vrot.slane %v22476_v42, 7  ;;  %v22479_v8 = vsel %vm16048_vm13, 4294967295, %v22478_v8  ;;  %22493 = vst [vmem:[#allocation92_spill] sm:$0xff] %v16078_v14 }
  0x64   : > { %13378 = vmatprep.mubr.msk.f32.mxu0 %vm22467_vm5, %v755_v10  ;;  %v16035_v52 = vsel %vm22469_vm11, %v530_v43, %v531_v58  ;;  %v533_v37 = vrot.slane %v22471_v34, 7  ;;  %vm22472_vm12 = vmmov %vm22469_vm11  ;;  %vm22475_vm5 = vnez %v22474_v63  ;;  %22480 = vst [vmem:[#allocation49_spill] sm:$0xff] %v22479_v8  ;;  %v22481_v43 = vld [vmem:[#allocation45_spill] sm:$0xff]  ;;  %v538_v8 = vrot.slane %v15723_v9, 7 }
  0x65   : > { %22470 = vst [vmem:[#allocation90_spill] sm:$0xff] %v16035_v52  ;;  %v16040_v10 = vsel %vm22472_vm12, %v531_v58, %v532_v17  ;;  %vm21446_vm14 = vmand %vm22475_vm5, %vm16018_vm1  ;;  %v506_v11 = vand.u32 15, %v22481_v43  ;;  %v22483_v58 = vld [vmem:[#allocation42_spill] sm:$0xff]  ;;  %v22514_v9 = vld [vmem:[#allocation53_spill] sm:$0xff]  ;;  %v22545_v63 = vmov 0 }
  0x66   : > { %22473 = vst [vmem:[#allocation46_spill] sm:$0xff] %v16040_v10  ;;  %vm22482_vm11 = vmmov %vm22477_vm9  ;;  %vm22484_vm12 = vnez %v22483_v58  ;;  %v759_v38 = vsel %vm21446_vm14, %v16040_v10, 0.0  ;;  %v22490_v43 = vld [vmem:[#allocation50_spill] sm:$0xff]  ;;  %vm22494_vm14 = vcmask 31744   ;;  %v22499_v10 = vld [vmem:[#allocation47_spill] sm:$0xff]  ;;  %vm22515_vm5 = vnez %v22514_v9 }
  0x67   : > { %13379 = vmatmul.mubr.msk.f32.gmra.mrb[14].mxu0 %vm22477_vm9, %v756_v4  ;;  %v758_v26 = vsel %vm22484_vm12, %v16035_v52, 0.0  ;;  %vm22485_vm9 = vcmp.lt.s32.totalorder %v15293_v3, 1  ;;  %v22487_v4 = vld [vmem:[#allocation52_spill] sm:$0xff]  ;;  %v22492_v52 = vld [vmem:[#allocation55_spill] sm:$0xff]  ;;  %vm22500_vm1 = vnez %v22499_v10 }
  0x68   : > { %13381 = vmatprep.mubr.msk.f32.mxu0 %vm22482_vm11, %v757_v20  ;;  %v16065_v62 = vsel %vm22485_vm9, %v532_v17, %v533_v37  ;;  %v535_v33 = vrot.slane %v22487_v4, 7  ;;  %vm22488_vm15 = vmmov %vm22485_vm9  ;;  %vm22491_vm11 = vnez %v22490_v43  ;;  %v536_v15 = vrot.slane %v22492_v52, 7  ;;  %v16139_v10 = vld [vmem:[%s15311_s26 + $0xc8] sm:$0xff] }
  0x69   : > { %22486 = vst [vmem:[#allocation91_spill] sm:$0xff] %v16065_v62  ;;  %v16070_v20 = vsel %vm22488_vm15, %v533_v37, %v534_v6  ;;  %vm21459_vm12 = vmand %vm22491_vm11, %vm16048_vm13  ;;  %vm16081_vm9 = vcmp.ge.s32.totalorder %v506_v11, 1  ;;  %v22495_v17 = vmov 0  ;;  %v508_v37 = vand.u32 15, %v15667_v0  ;;  %v22505_v0 = vld [vmem:[#allocation56_spill] sm:$0xff] }
  0x6a   : > { %22489 = vst [vmem:[#allocation52_spill] sm:$0xff] %v16070_v20  ;;  %v22496_v17 = vsel %vm16081_vm9, 4294967295, %v22495_v17  ;;  %vm22498_vm15 = vmmov %vm22494_vm14  ;;  %v760_v7 = vsel %vm22500_vm1, %v16065_v62, 0.0  ;;  %v761_v52 = vsel %vm21459_vm12, %v16070_v20, 0.0  ;;  %v537_v11 = vrot.slane %v15713_v44, 7  ;;  %v16117_v20 = vld [vmem:[%s15311_s26 + $0xc0] sm:$0xff] }
  0x6b   : > { %13382 = vmatmul.mubr.msk.f32.gmra.mrb[16].mxu0 %vm22494_vm14, %v758_v26  ;;  %22497 = vst [vmem:[#allocation93_spill] sm:$0xff] %v22496_v17  ;;  %vm22501_vm14 = vcmp.lt.s32.totalorder %v15293_v3, 1  ;;  %vm22506_vm1 = vnez %v22505_v0  ;;  %vm22507_vm12 = vcmask 31744   ;;  %22511 = vst [vmem:[#allocation97_spill] sm:$0xff] %v16117_v20  ;;  %v16121_v43 = vadd.s32 224, %v15293_v3 }
  0x6c   : > { %13384 = vmatprep.mubr.msk.f32.mxu0 %vm22498_vm15, %v759_v38  ;;  %v16098_v26 = vsel %vm22501_vm14, %v534_v6, %v535_v33  ;;  %vm22503_vm15 = vmmov %vm22501_vm14  ;;  %vm16112_vm14 = vcmp.ge.s32.totalorder %v508_v37, 1  ;;  %v22508_v6 = vmov 0  ;;  %vm22517_vm13 = vcmp.lt.s32.totalorder %v15293_v3, 1  ;;  %22519 = vst [vmem:[#allocation100_spill] sm:$0xff] %v16139_v10 }
  0x6d   : > { %22502 = vst [vmem:[#allocation94_spill] sm:$0xff] %v16098_v26  ;;  %v16103_v38 = vsel %vm22503_vm15, %v535_v33, %v536_v15  ;;  %v22509_v6 = vsel %vm16112_vm14, 4294967295, %v22508_v6  ;;  %v510_v33 = vand.u32 15, %v16078_v14  ;;  %22512 = vst [vmem:[#allocation98_spill] sm:$0xff] %v16121_v43  ;;  %v762_v62 = vsel %vm22515_vm5, %v16098_v26, 0.0 }
  0x6e   : > { %22504 = vst [vmem:[#allocation95_spill] sm:$0xff] %v16103_v38  ;;  %22510 = vst [vmem:[#allocation96_spill] sm:$0xff] %v22509_v6  ;;  %v16135_v37 = vsel %vm22517_vm13, %v536_v15, %v537_v11  ;;  %v539_v44 = vrot.slane %v15748_v51, 7  ;;  %v540_v15 = vrot.slane %v16117_v20, 7  ;;  %v22524_v17 = vshra.s32 %v16078_v14, 4 }
  0x6f   : > { %13385 = vmatmul.mubr.msk.f32.gmra.mrb[18].mxu0 %vm22507_vm12, %v760_v7  ;;  %vm22513_vm15 = vmmov %vm22507_vm12  ;;  %22518 = vst [vmem:[#allocation99_spill] sm:$0xff] %v16135_v37  ;;  %vm16160_vm5 = vcmp.ge.s32.totalorder %v510_v33, 1  ;;  %v22529_v0 = vmov 0  ;;  %v512_v9 = vand.u32 15, %v16121_v43  ;;  %v16170_v20 = vadd.s32 240, %v15293_v3 }
  0x70   : > { %13387 = vmatprep.mubr.msk.f32.mxu0 %vm22513_vm15, %v761_v52  ;;  %vm22516_vm12 = vmand %vm22506_vm1, %vm16081_vm9  ;;  %v16142_v52 = vadd.s32 216, %v15293_v3  ;;  %vm22523_vm9 = vnez %v22373_v5  ;;  %vm22528_vm1 = vcmask 31744   ;;  %v22530_v0 = vsel %vm16160_vm5, 4294967295, %v22529_v0 }
  0x71   : > { %v763_v7 = vsel %vm22516_vm12, %v16103_v38, 0.0  ;;  %vm22521_vm15 = vmmov %vm22517_vm13  ;;  %vm16155_vm13 = vcmp.ge.s32.totalorder %v22524_v17, 1  ;;  %v22525_v38 = vmov 0  ;;  %22531 = vst [vmem:[#allocation104_spill] sm:$0xff] %v22530_v0  ;;  %v22534_v17 = vld [vmem:[#allocation58_spill] sm:$0xff]  ;;  %v541_v33 = vrot.slane %v16139_v10, 7 }
  0x72   : > { %22520 = vst [vmem:[#allocation101_spill] sm:$0xff] %v16142_v52  ;;  %v16146_v26 = vsel %vm22521_vm15, %v537_v11, %v538_v8  ;;  %v22526_v38 = vsel %vm16155_vm13, 4294967295, %v22525_v38  ;;  %v16165_v11 = vld [vmem:[%s15311_s26 + $0xd0] sm:$0xff]  ;;  %22532 = vst [vmem:[#allocation105_spill] sm:$0xff] %v16170_v20  ;;  %vm22535_vm12 = vnez %v22534_v17  ;;  %vm22537_vm11 = vcmp.lt.s32.totalorder %v15293_v3, 1 }
  0x73   : > { %22522 = vst [vmem:[#allocation102_spill] sm:$0xff] %v16146_v26  ;;  %22527 = vst [vmem:[#allocation103_spill] sm:$0xff] %v22526_v38  ;;  %13388 = vmatmul.mubr.msk.f32.gmra.mrb[20].mxu0 %vm22528_vm1, %v762_v62  ;;  %v764_v62 = vsel %vm22535_vm12, %v16135_v37, 0.0  ;;  %v16185_v14 = vsel %vm22537_vm11, %v538_v8, %v539_v44  ;;  %v16192_v17 = vadd.s32 232, %v15293_v3  ;;  %v542_v6 = vrot.slane %v16165_v11, 7 }
  0x74   : > { %vm22533_vm15 = vmmov %vm22528_vm1  ;;  %22538 = vst [vmem:[#allocation106_spill] sm:$0xff] %v16185_v14  ;;  %v22544_v8 = vshra.s32 %v16121_v43, 4  ;;  %v514_v10 = vand.u32 15, %v16170_v20  ;;  %v22554_v43 = vshra.s32 %v16142_v52, 4  ;;  %v1541_v18 = vrot.slane %v22487_v4, 1 }
  0x75   : > { %13390 = vmatprep.mubr.msk.f32.mxu0 %vm22533_vm15, %v763_v7  ;;  %vm22536_vm1 = vmand %vm22523_vm9, %vm16112_vm14  ;;  %v16189_v7 = vld [vmem:[%s15311_s26 + $0xd8] sm:$0xff]  ;;  %22540 = vst [vmem:[#allocation108_spill] sm:$0xff] %v16192_v17  ;;  %vm16210_vm9 = vcmp.ge.s32.totalorder %v512_v9, 1 }
  0x76   : > { %v765_v51 = vsel %vm22536_vm1, %v16146_v26, 0.0  ;;  %22539 = vst [vmem:[#allocation107_spill] sm:$0xff] %v16189_v7  ;;  %vm22541_vm15 = vmmov %vm22537_vm11  ;;  %vm22543_vm11 = vcmask 31744   ;;  %vm16206_vm14 = vcmp.ge.s32.totalorder %v22544_v8, 1  ;;  %v22548_v26 = vmov 0 }
  0x77   : > { %v16196_v37 = vsel %vm22541_vm15, %v539_v44, %v540_v15  ;;  %vm21504_vm1 = vmand %vm16155_vm13, %vm16160_vm5  ;;  %13391 = vmatmul.mubr.msk.f32.gmra.mrb[22].mxu0 %vm22543_vm11, %v764_v62  ;;  %v22546_v63 = vsel %vm16206_vm14, 4294967295, %v22545_v63  ;;  %v22549_v26 = vsel %vm16210_vm9, 4294967295, %v22548_v26  ;;  %v16215_v44 = vld [vmem:[%s15311_s26 + $0xe0] sm:$0xff]  ;;  %v766_v62 = vsel %vm15752_vm0, %v16185_v14, 0.0 }
  0x78   : > { %22542 = vst [vmem:[#allocation109_spill] sm:$0xff] %v16196_v37  ;;  %22547 = vst [vmem:[#allocation110_spill] sm:$0xff] %v22546_v63  ;;  %v543_v9 = vrot.slane %v16189_v7, 7  ;;  %v767_v5 = vsel %vm21504_vm1, %v16196_v37, 0.0  ;;  %v544_v0 = vrot.slane %v16215_v44, 7  ;;  %vm22560_vm5 = vcmask 31744  }
  0x79   : > { %22550 = vst [vmem:[#allocation111_spill] sm:$0xff] %v22549_v26  ;;  %vm22551_vm15 = vmmov %vm22543_vm11  ;;  %vm22552_vm11 = vcmp.lt.s32.totalorder %v15293_v3, 1  ;;  %v22562_v14 = vmov 0  ;;  %vm16260_vm0 = vcmp.ge.s32.totalorder %v514_v10, 1  ;;  %v22565_v37 = vmov 0  ;;  %v22577_v26 = vld [vmem:[#allocation9_spill] sm:$0xff] }
  0x7a   : > { %13393 = vmatprep.mubr.msk.f32.mxu0 %vm22551_vm15, %v765_v51  ;;  %v16225_v8 = vsel %vm22552_vm11, %v540_v15, %v541_v33  ;;  %vm16236_vm15 = vcmp.ge.s32.totalorder %v22554_v43, 1  ;;  %v22555_v51 = vmov 0  ;;  %v16242_v15 = vadd.s32 248, %v15293_v3  ;;  %vm21518_vm1 = vmand %vm16206_vm14, %vm16210_vm9  ;;  %v22578_v63 = vld [vmem:[#allocation3_spill] sm:$0xff] }
  0x7b   : > { %22553 = vst [vmem:[#allocation112_spill] sm:$0xff] %v16225_v8  ;;  %v22556_v51 = vsel %vm16236_vm15, 4294967295, %v22555_v51  ;;  %v16246_v7 = vsel %vm22552_vm11, %v541_v33, %v542_v6  ;;  %13394 = vmatmul.mubr.msk.f32.gmra.mrb[24].mxu0 %vm22560_vm5, %v766_v62  ;;  %v22561_v43 = vshra.s32 %v16170_v20, 4  ;;  %v22566_v37 = vsel %vm16260_vm0, 4294967295, %v22565_v37  ;;  %vm22568_vm11 = vmmov %vm22560_vm5 }
  0x7c   : > { %22557 = vst [vmem:[#allocation113_spill] sm:$0xff] %v22556_v51  ;;  %22558 = vst [vmem:[#allocation114_spill] sm:$0xff] %v16242_v15  ;;  %13396 = vmatprep.mubr.msk.f32.mxu0 %vm22568_vm11, %v767_v5  ;;  %v768_v33 = vsel %vm16236_vm15, %v16225_v8, 0.0  ;;  %v769_v62 = vsel %vm21518_vm1, %v16246_v7, 0.0  ;;  %vm22569_vm5 = vcmp.lt.s32.totalorder %v15293_v3, 1  ;;  %v22571_v10 = vshra.s32 %v16192_v17, 4 }
  0x7d   : > { %22559 = vst [vmem:[#allocation115_spill] sm:$0xff] %v16246_v7  ;;  %vm16256_vm13 = vcmp.ge.s32.totalorder %v22561_v43, 1  ;;  %22567 = vst [vmem:[#allocation117_spill] sm:$0xff] %v22566_v37  ;;  %v16276_v43 = vsel %vm22569_vm5, %v542_v6, %v543_v9  ;;  %v22572_v20 = vmov 0  ;;  %v21542_v5 = vshra.s32 %v16242_v15, 4 }
  0x7e   : > { %v22563_v14 = vsel %vm16256_vm13, 4294967295, %v22562_v14  ;;  %22570 = vst [vmem:[#allocation118_spill] sm:$0xff] %v16276_v43  ;;  %vm16280_vm12 = vcmp.ge.s32.totalorder %v22571_v10, 1  ;;  %vm22575_vm11 = vmmov %vm22569_vm5  ;;  %v1553_v7 = vrot.slane %v15332_v13, 1  ;;  %v485_v10 = vand.u32 15, %v22578_v63  ;;  %v22585_v63 = vld [vmem:[#allocation11_spill] sm:$0xff] }
  0x7f   : > { %22564 = vst [vmem:[#allocation116_spill] sm:$0xff] %v22563_v14  ;;  %v22573_v20 = vsel %vm16280_vm12, 4294967295, %v22572_v20  ;;  %v16287_v8 = vsel %vm22575_vm11, %v543_v9, %v544_v0  ;;  %vm21539_vm1 = vmand %vm16256_vm13, %vm16260_vm0  ;;  %vm22579_vm5 = vcmask 31744   ;;  %vm21554_vm9 = vcmp.lt.s32.totalorder %v15293_v3, 7 }
  0x80   : > { %22574 = vst [vmem:[#allocation119_spill] sm:$0xff] %v22573_v20  ;;  %22576 = vst [vmem:[#allocation120_spill] sm:$0xff] %v16287_v8  ;;  %13397 = vmatmul.mubr.msk.f32.gmra.mrb[26].mxu0 %vm22579_vm5, %v768_v33  ;;  %v770_v9 = vsel %vm16280_vm12, %v16276_v43, 0.0  ;;  %v771_v6 = vsel %vm21539_vm1, %v16287_v8, 0.0  ;;  %v22581_v13 = vrot.slane %v15702_v53, 7  ;;  %v1522_v43 = vrot.slane %v22585_v63, 1 }
  0x81   : > { %vm22580_vm14 = vmmov %vm22579_vm5  ;;  %v22586_v14 = vrot.slane %v22577_v26, 1  ;;  %vm16327_vm5 = vcmp.lt.s32.totalorder %v485_v10, 15  ;;  %v22588_v8 = vmov 0 }
  0x82   : > { %13399 = vmatprep.mubr.msk.f32.mxu0 %vm22580_vm14, %v769_v62  ;;  %v16312_v33 = vsel %vm22575_vm11, %v544_v0, %v22581_v13  ;;  %vm16316_vm14 = vcmp.ge.s32.totalorder %v21542_v5, 1  ;;  %v22582_v62 = vmov 0  ;;  %v22589_v8 = vsel %vm16327_vm5, 4294967295, %v22588_v8  ;;  %v22591_v13 = vld [vmem:[#allocation5_spill] sm:$0xff]  ;;  %vm21547_vm0 = vmand %vm15352_vm3, %vm16327_vm5 }
  0x83   : > { %v22583_v62 = vsel %vm16316_vm14, 4294967295, %v22582_v62  ;;  %v16325_v37 = vsel %vm21554_vm9, %v22586_v14, %v1553_v7  ;;  %22590 = vst [vmem:[#allocation121_spill] sm:$0xff] %v22589_v8  ;;  %v1523_v0 = vrot.slane %v15363_v23, 1  ;;  %v487_v20 = vand.u32 15, %v22591_v13  ;;  %v22696_v13 = vld [vmem:[#allocation48_spill] sm:$0xff] }
  0x84   : > { %22584 = vst [vmem:[#allocation9_spill] sm:$0xff] %v22583_v62  ;;  %22587 = vst [vmem:[#allocation11_spill] sm:$0xff] %v16325_v37  ;;  %vm22592_vm11 = vcmask 31744   ;;  %v772_v63 = vsel %vm16316_vm14, %v16312_v33, 0.0  ;;  %v1715_v14 = vsel %vm15327_vm2, %v16325_v37, 0.0  ;;  %v16343_v10 = vsel %vm21554_vm9, %v1553_v7, %v1522_v43  ;;  %v22778_v62 = vld [vmem:[#allocation69_spill] sm:$0xff] }
  0x85   : > { %13400 = vmatmul.mubr.msk.f32.gmra.mrb[28].mxu0 %vm22592_vm11, %v770_v9  ;;  %vm22593_vm1 = vmmov %vm22592_vm11  ;;  %22594 = vst [vmem:[#allocation122_spill] sm:$0xff] %v16343_v10  ;;  %v1524_v23 = vrot.slane %v15382_v29, 1  ;;  %v22596_v9 = vmov 0  ;;  %v1525_v5 = vrot.slane %v15404_v35, 1  ;;  %v489_v7 = vand.u32 15, %v22599_v12 }
  0x86   : > { %13402 = vmatprep.mubr.msk.f32.mxu0 %vm22593_vm1, %v771_v6  ;;  %v16352_v6 = vsel %vm21554_vm9, %v1522_v43, %v1523_v0  ;;  %vm16354_vm1 = vcmp.lt.s32.totalorder %v487_v20, 15  ;;  %vm22600_vm2 = vmmov %vm22592_vm11  ;;  %v1716_v29 = vsel %vm21547_vm0, %v16343_v10, 0.0  ;;  %v1526_v43 = vrot.slane %v15419_v39, 1  ;;  %v16393_v12 = vld [vmem:[%s21227_s1 + $0x10] sm:$0xf] }
  0x87   : > { %22595 = vst [vmem:[#allocation123_spill] sm:$0xff] %v16352_v6  ;;  %v22597_v9 = vsel %vm16354_vm1, 4294967295, %v22596_v9  ;;  %v1717_v20 = vsel %vm15358_vm4, %v16352_v6, 0.0  ;;  %v16373_v35 = vsel %vm21554_vm9, %v1523_v0, %v1524_v23  ;;  %vm16384_vm0 = vcmp.lt.s32.totalorder %v489_v7, 15  ;;  %vm22607_vm4 = vmmov %vm22600_vm2 }
  0x88   : > { %22598 = vst [vmem:[#allocation124_spill] sm:$0xff] %v22597_v9  ;;  %22601 = vst [vmem:[#allocation125_spill] sm:$0xff] %v16373_v35  ;;  %v491_v0 = vand.u32 15, %v22606_v21  ;;  %vm22609_vm3 = vcmask 1043456   ;;  %vm22610_vm5 = vcmp.lt.s32.totalorder %v15293_v3, 7  ;;  %v1528_v7 = vrot.slane %v15453_v49, 1 }
  0x89   : > { %13403 = vmatmul.mubr.msk.f32.gmra.mrb[30].mxu0 %vm22592_vm11, %v772_v63  ;;  %vm22602_vm11 = vnez %v22274_v28  ;;  %v16382_v63 = vsel %vm21554_vm9, %v1524_v23, %v1525_v5  ;;  %v16410_v23 = vsel %vm22610_vm5, %v1525_v5, %v1526_v43  ;;  %v1529_v5 = vrot.slane %v15474_v55, 1 }
  0x8a   : > { %13407 = vmatprep.mubr.msk.f32.mxu0 %vm22600_vm2, %v1715_v14  ;;  %v22603_v14 = vmov 0  ;;  %vm22608_vm9 = vmand %vm22602_vm11, %vm16354_vm1  ;;  %v1719_v45 = vsel %vm15386_vm6, %v16382_v63, 0.0 }
  0x8b   : > { %v22604_v14 = vsel %vm16384_vm0, 4294967295, %v22603_v14  ;;  %v1718_v39 = vsel %vm22608_vm9, %v16373_v35, 0.0  ;;  %vm22611_vm9 = vmmov %vm22609_vm3 }
  0x8c   : > { %22605 = vst [vmem:[#allocation126_spill] sm:$0xff] %v22604_v14 }
  0x8d   : > { %13408 = vmatmul.mubr.msk.f32.vlgmr.msra.gmra.mrb[0].mxu0 %vm22600_vm2, %v1716_v29  ;;  %vm16423_vm2 = vcmp.lt.s32.totalorder %v491_v0, 15  ;;  %v22613_v29 = vmov 0  ;;  %v1530_v0 = vrot.slane %v15487_v59, 1 }
  0x8e   : > { %13410 = vmatprep.mubr.msk.f32.mxu0 %vm22607_vm4, %v1717_v20  ;;  %13456 = vmatpush3.msk.msra.mxu0 %vm22609_vm3, %v15831_v48  ;;  %vm22612_vm3 = vmmov %vm22610_vm5  ;;  %v22614_v29 = vsel %vm16423_vm2, 4294967295, %v22613_v29  ;;  %v22616_v20 = vld [vmem:[#allocation19_spill] sm:$0xff] }
  0x8f   : > { %13505 = vmatprep.subr.msk.mxu0 %vm22611_vm9, %v16393_v12  ;;  %v16421_v48 = vsel %vm22612_vm3, %v1526_v43, %v1527_v22  ;;  %22615 = vst [vmem:[#allocation127_spill] sm:$0xff] %v22614_v29  ;;  %v493_v30 = vand.u32 15, %v22616_v20  ;;  %vm22617_vm5 = vmmov %vm22607_vm4  ;;  %v16442_v55 = vsel %vm22612_vm3, %v1527_v22, %v1528_v7  ;;  %v495_v22 = vand.u32 15, %v22624_v36 }
  0x90   : > { %vm22618_vm9 = vmand %vm15408_vm7, %vm16384_vm0  ;;  %v1721_v43 = vsel %vm15423_vm8, %v16421_v48, 0.0  ;;  %vm22628_vm7 = vcmp.lt.s32.totalorder %v15293_v3, 7  ;;  %v22692_v20 = vmov 0 }
  0x91   : > { %13411 = vmatmul.mubr.msk.f32.gmra.mrb[2].mxu0 %vm22617_vm5, %v1718_v39  ;;  %v1720_v49 = vsel %vm22618_vm9, %v16410_v23, 0.0  ;;  %vm22619_vm5 = vnez %v22289_v46  ;;  %vm22620_vm6 = vmmov %vm22612_vm3  ;;  %vm16453_vm9 = vcmp.lt.s32.totalorder %v493_v30, 15  ;;  %vm22625_vm3 = vcmask 31744   ;;  %v22634_v46 = vld [vmem:[#allocation27_spill] sm:$0xff] }
  0x92   : > { %13413 = vmatprep.mubr.msk.f32.mxu0 %vm22607_vm4, %v1719_v45  ;;  %vm21572_vm4 = vmand %vm22619_vm5, %vm16423_vm2  ;;  %v16451_v39 = vsel %vm22620_vm6, %v1528_v7, %v1529_v5  ;;  %v22621_v45 = vmov 0  ;;  %vm22627_vm6 = vnez %v22293_v50  ;;  %v16472_v1 = vsel %vm22628_vm7, %v1529_v5, %v1530_v0 }
  0x93   : > { %v22622_v45 = vsel %vm16453_vm9, 4294967295, %v22621_v45  ;;  %vm22626_vm8 = vmmov %vm22625_vm3  ;;  %v1722_v59 = vsel %vm21572_vm4, %v16442_v55, 0.0  ;;  %v1723_v30 = vsel %vm22627_vm6, %v16451_v39, 0.0  ;;  %v1532_v7 = vrot.slane %v15521_v27, 1 }
  0x94   : > { %22623 = vst [vmem:[#allocation128_spill] sm:$0xff] %v22622_v45  ;;  %vm22630_vm11 = vmmov %vm22628_vm7  ;;  %vm16483_vm4 = vcmp.lt.s32.totalorder %v495_v22, 15  ;;  %v1533_v50 = vrot.slane %v15542_v54, 1  ;;  %v497_v5 = vand.u32 15, %v22634_v46  ;;  %vm22635_vm7 = vcmask 31744  }
  0x95   : > { %13414 = vmatmul.mubr.msk.f32.gmra.mrb[4].mxu0 %vm22625_vm3, %v1720_v49  ;;  %vm22629_vm3 = vnez %v22297_v56  ;;  %v16481_v49 = vsel %vm22630_vm11, %v1530_v0, %v1531_v40  ;;  %vm22636_vm6 = vmmov %vm22635_vm7  ;;  %vm22637_vm11 = vnez %v22301_v60  ;;  %vm22638_vm5 = vcmp.lt.s32.totalorder %v15293_v3, 7  ;;  %v22646_v56 = vld [vmem:[#allocation31_spill] sm:$0xff] }
  0x96   : > { %13416 = vmatprep.mubr.msk.f32.mxu0 %vm22626_vm8, %v1721_v43  ;;  %vm21580_vm8 = vmand %vm22629_vm3, %vm16453_vm9  ;;  %v22631_v43 = vmov 0  ;;  %v1725_v0 = vsel %vm22637_vm11, %v16481_v49, 0.0  ;;  %v16502_v54 = vsel %vm22638_vm5, %v1531_v40, %v1532_v7  ;;  %v1534_v22 = vrot.slane %v15555_v61, 1 }
  0x97   : > { %v22632_v43 = vsel %vm16483_vm4, 4294967295, %v22631_v43  ;;  %v1724_v27 = vsel %vm21580_vm8, %v16472_v1, 0.0  ;;  %22639 = vst [vmem:[#allocation130_spill] sm:$0xff] %v16502_v54  ;;  %vm22641_vm2 = vmmov %vm22638_vm5  ;;  %vm16513_vm8 = vcmp.lt.s32.totalorder %v497_v5, 15  ;;  %v1535_v60 = vrot.slane %v15576_v41, 1 }
  0x98   : > { %22633 = vst [vmem:[#allocation129_spill] sm:$0xff] %v22632_v43  ;;  %v499_v40 = vand.u32 15, %v22646_v56  ;;  %vm22647_vm5 = vcmask 31744   ;;  %vm22650_vm3 = vcmp.lt.s32.totalorder %v15293_v3, 7  ;;  %v1536_v5 = vrot.slane %v15589_v31, 1 }
  0x99   : > { %13417 = vmatmul.mubr.msk.f32.gmra.mrb[6].mxu0 %vm22635_vm7, %v1722_v59  ;;  %vm22640_vm7 = vnez %v22305_v2  ;;  %v16511_v59 = vsel %vm22641_vm2, %v1532_v7, %v1533_v50  ;;  %vm22648_vm11 = vmmov %vm22647_vm5  ;;  %vm22649_vm2 = vnez %v22309_v32  ;;  %v16532_v41 = vsel %vm22650_vm3, %v1533_v50, %v1534_v22  ;;  %v22658_v2 = vld [vmem:[#allocation35_spill] sm:$0xff] }
  0x9a   : > { %13419 = vmatprep.mubr.msk.f32.mxu0 %vm22636_vm6, %v1723_v30  ;;  %vm21588_vm6 = vmand %vm22640_vm7, %vm16483_vm4  ;;  %22642 = vst [vmem:[#allocation131_spill] sm:$0xff] %v16511_v59  ;;  %v22643_v30 = vmov 0  ;;  %v1727_v7 = vsel %vm22649_vm2, %v16511_v59, 0.0  ;;  %v1537_v32 = vrot.slane %v15610_v16, 1  ;;  %v501_v50 = vand.u32 15, %v22658_v2  ;;  %v22670_v2 = vld [vmem:[#allocation39_spill] sm:$0xff] }
  0x9b   : > { %v22644_v30 = vsel %vm16513_vm8, 4294967295, %v22643_v30  ;;  %v1726_v61 = vsel %vm21588_vm6, %v16502_v54, 0.0  ;;  %22651 = vst [vmem:[#allocation133_spill] sm:$0xff] %v16532_v41  ;;  %vm22653_vm9 = vmmov %vm22650_vm3  ;;  %vm16543_vm6 = vcmp.lt.s32.totalorder %v499_v40, 15  ;;  %vm22659_vm3 = vcmask 31744  }
  0x9c   : > { %22645 = vst [vmem:[#allocation132_spill] sm:$0xff] %v22644_v30  ;;  %vm22660_vm2 = vmmov %vm22659_vm3  ;;  %vm22662_vm7 = vcmp.lt.s32.totalorder %v15293_v3, 7  ;;  %v23076_v30 = vmov 0 }
  0x9d   : > { %13420 = vmatmul.mubr.msk.f32.gmra.mrb[8].mxu0 %vm22647_vm5, %v1724_v27  ;;  %vm22652_vm5 = vnez %v22313_v57  ;;  %v16541_v27 = vsel %vm22653_vm9, %v1534_v22, %v1535_v60  ;;  %vm22661_vm9 = vnez %v22317_v47  ;;  %v16562_v28 = vsel %vm22662_vm7, %v1535_v60, %v1536_v5  ;;  %vm22665_vm4 = vmmov %vm22662_vm7 }
  0x9e   : > { %13422 = vmatprep.mubr.msk.f32.mxu0 %vm22648_vm11, %v1725_v0  ;;  %vm21598_vm11 = vmand %vm22652_vm5, %vm16513_vm8  ;;  %22654 = vst [vmem:[#allocation134_spill] sm:$0xff] %v16541_v27  ;;  %v22655_v0 = vmov 0  ;;  %v1729_v40 = vsel %vm22661_vm9, %v16541_v27, 0.0  ;;  %v22667_v57 = vmov 0  ;;  %v1539_v47 = vrot.slane %v22471_v34, 1 }
  0x9f   : > { %v22656_v0 = vsel %vm16543_vm6, 4294967295, %v22655_v0  ;;  %v1728_v22 = vsel %vm21598_vm11, %v16532_v41, 0.0  ;;  %22663 = vst [vmem:[#allocation136_spill] sm:$0xff] %v16562_v28  ;;  %vm16573_vm11 = vcmp.lt.s32.totalorder %v501_v50, 15  ;;  %v503_v60 = vand.u32 15, %v22670_v2  ;;  %vm22675_vm5 = vmmov %vm22665_vm4  ;;  %v22680_v2 = vld [vmem:[#allocation43_spill] sm:$0xff] }
  0xa0   : > { %22657 = vst [vmem:[#allocation135_spill] sm:$0xff] %v22656_v0  ;;  %v22668_v57 = vsel %vm16573_vm11, 4294967295, %v22667_v57  ;;  %vm22671_vm7 = vcmask 31744  }
  0xa1   : > { %13423 = vmatmul.mubr.msk.f32.gmra.mrb[10].mxu0 %vm22659_vm3, %v1726_v61  ;;  %vm22664_vm3 = vnez %v22321_v24  ;;  %v1538_v61 = vrot.slane %v15623_v19, 1  ;;  %22669 = vst [vmem:[#allocation138_spill] sm:$0xff] %v22668_v57  ;;  %vm22672_vm9 = vmmov %vm22671_vm7  ;;  %v22677_v24 = vmov 0  ;;  %v22712_v57 = vld [vmem:[#allocation54_spill] sm:$0xff] }
  0xa2   : > { %13425 = vmatprep.mubr.msk.f32.mxu0 %vm22660_vm2, %v1727_v7  ;;  %vm21604_vm2 = vmand %vm22664_vm3, %vm16543_vm6  ;;  %v16571_v7 = vsel %vm22665_vm4, %v1536_v5, %v1537_v32  ;;  %vm22685_vm3 = vcmp.lt.s32.totalorder %v15293_v3, 7 }
  0xa3   : > { %22666 = vst [vmem:[#allocation137_spill] sm:$0xff] %v16571_v7  ;;  %v1730_v5 = vsel %vm21604_vm2, %v16562_v28, 0.0  ;;  %v1731_v50 = vsel %vm22462_vm10, %v16571_v7, 0.0  ;;  %v16592_v56 = vsel %vm22665_vm4, %v1537_v32, %v1538_v61  ;;  %vm16603_vm2 = vcmp.lt.s32.totalorder %v503_v60, 15  ;;  %v22683_v60 = vld [vmem:[#allocation44_spill] sm:$0xff]  ;;  %vm22690_vm6 = vmmov %vm22685_vm3 }
  0xa4   : > { %22673 = vst [vmem:[#allocation139_spill] sm:$0xff] %v16592_v56  ;;  %v22678_v24 = vsel %vm16603_vm2, 4294967295, %v22677_v24  ;;  %v505_v32 = vand.u32 15, %v22680_v2  ;;  %vm22681_vm4 = vcmask 31744  }
  0xa5   : > { %13426 = vmatmul.mubr.msk.f32.gmra.mrb[12].mxu0 %vm22671_vm7, %v1728_v22  ;;  %vm22674_vm7 = vnez %v22483_v58  ;;  %v1540_v22 = vrot.slane %v22476_v42, 1  ;;  %22679 = vst [vmem:[#allocation141_spill] sm:$0xff] %v22678_v24  ;;  %vm22682_vm10 = vmmov %vm22681_vm4  ;;  %v22708_v24 = vmov 0 }
  0xa6   : > { %13428 = vmatprep.mubr.msk.f32.mxu0 %vm22672_vm9, %v1729_v40  ;;  %vm21614_vm9 = vmand %vm22674_vm7, %vm16573_vm11  ;;  %v16601_v40 = vsel %vm22675_vm5, %v1538_v61, %v1539_v47  ;;  %vm22684_vm5 = vnez %v22683_v60  ;;  %v22695_v60 = vld [vmem:[#allocation57_spill] sm:$0xff]  ;;  %vm22701_vm7 = vcmp.lt.s32.totalorder %v15293_v3, 7 }
  0xa7   : > { %22676 = vst [vmem:[#allocation140_spill] sm:$0xff] %v16601_v40  ;;  %v1732_v61 = vsel %vm21614_vm9, %v16592_v56, 0.0  ;;  %v1733_v46 = vsel %vm22684_vm5, %v16601_v40, 0.0  ;;  %v16622_v36 = vsel %vm22685_vm3, %v1539_v47, %v1540_v22  ;;  %v16631_v58 = vsel %vm22690_vm6, %v1540_v22, %v1541_v18  ;;  %vm22706_vm11 = vmmov %vm22701_vm7 }
  0xa8   : > { %22686 = vst [vmem:[#allocation142_spill] sm:$0xff] %v16622_v36  ;;  %vm16633_vm9 = vcmp.lt.s32.totalorder %v505_v32, 15  ;;  %v1543_v21 = vrot.slane %v22695_v60, 1  ;;  %v507_v47 = vand.u32 15, %v22696_v13  ;;  %vm22697_vm3 = vcmask 31744   ;;  %v22699_v32 = vld [vmem:[#allocation50_spill] sm:$0xff] }
  0xa9   : > { %13429 = vmatmul.mubr.msk.f32.gmra.mrb[14].mxu0 %vm22681_vm4, %v1730_v5  ;;  %v22687_v5 = vld [vmem:[#allocation47_spill] sm:$0xff]  ;;  %v22693_v20 = vsel %vm16633_vm9, 4294967295, %v22692_v20  ;;  %vm22698_vm5 = vmmov %vm22697_vm3  ;;  %vm22700_vm6 = vnez %v22699_v32  ;;  %v22711_v32 = vld [vmem:[#allocation62_spill] sm:$0xff] }
  0xaa   : > { %13431 = vmatprep.mubr.msk.f32.mxu0 %vm22682_vm10, %v1731_v50  ;;  %vm22688_vm4 = vnez %v22687_v5  ;;  %v22689_v50 = vld [vmem:[#allocation55_spill] sm:$0xff]  ;;  %22694 = vst [vmem:[#allocation143_spill] sm:$0xff] %v22693_v20  ;;  %v1735_v10 = vsel %vm22700_vm6, %v16631_v58, 0.0  ;;  %v22724_v20 = vmov 0 }
  0xab   : > { %vm21623_vm10 = vmand %vm22688_vm4, %vm16603_vm2  ;;  %v1542_v2 = vrot.slane %v22689_v50, 1  ;;  %22691 = vst [vmem:[#allocation55_spill] sm:$0xff] %v16631_v58  ;;  %v1545_v58 = vrot.slane %v22711_v32, 1  ;;  %vm22717_vm4 = vcmp.lt.s32.totalorder %v15293_v3, 7 }
  0xac   : > { %v1734_v22 = vsel %vm21623_vm10, %v16622_v36, 0.0  ;;  %vm16663_vm10 = vcmp.lt.s32.totalorder %v507_v47, 15  ;;  %v22715_v47 = vld [vmem:[#allocation56_spill] sm:$0xff]  ;;  %vm22722_vm2 = vmmov %vm22717_vm4 }
  0xad   : > { %13432 = vmatmul.mubr.msk.f32.gmra.mrb[16].mxu0 %vm22697_vm3, %v1732_v61  ;;  %v16652_v37 = vsel %vm22701_vm7, %v1541_v18, %v1542_v2  ;;  %v22703_v61 = vld [vmem:[#allocation53_spill] sm:$0xff]  ;;  %v16661_v5 = vsel %vm22706_vm11, %v1542_v2, %v1543_v21  ;;  %v22709_v24 = vsel %vm16663_vm10, 4294967295, %v22708_v24  ;;  %v509_v18 = vand.u32 15, %v22712_v57 }
  0xae   : > { %13434 = vmatprep.mubr.msk.f32.mxu0 %vm22698_vm5, %v1733_v46  ;;  %22702 = vst [vmem:[#allocation57_spill] sm:$0xff] %v16652_v37  ;;  %vm22704_vm3 = vnez %v22703_v61  ;;  %v22705_v46 = vld [vmem:[#allocation59_spill] sm:$0xff]  ;;  %22710 = vst [vmem:[#allocation144_spill] sm:$0xff] %v22709_v24  ;;  %vm22713_vm7 = vcmask 31744   ;;  %vm22716_vm11 = vnez %v22715_v47  ;;  %v22727_v47 = vld [vmem:[#allocation100_spill] sm:$0xff] }
  0xaf   : > { %vm21638_vm5 = vmand %vm22704_vm3, %vm16633_vm9  ;;  %v1544_v13 = vrot.slane %v22705_v46, 1  ;;  %22707 = vst [vmem:[#allocation59_spill] sm:$0xff] %v16661_v5  ;;  %v1737_v36 = vsel %vm22716_vm11, %v16661_v5, 0.0  ;;  %v1547_v5 = vrot.slane %v22727_v47, 1  ;;  %vm22732_vm3 = vcmp.lt.s32.totalorder %v15293_v3, 7 }
  0xb0   : > { %vm22714_vm6 = vmmov %vm22713_vm7  ;;  %v1736_v2 = vsel %vm21638_vm5, %v16652_v37, 0.0  ;;  %vm16693_vm5 = vcmp.lt.s32.totalorder %v509_v18, 15  ;;  %v22730_v18 = vld [vmem:[#allocation60_spill] sm:$0xff] }
  0xb1   : > { %13435 = vmatmul.mubr.msk.f32.gmra.mrb[18].mxu0 %vm22713_vm7, %v1734_v22  ;;  %v16682_v40 = vsel %vm22717_vm4, %v1543_v21, %v1544_v13  ;;  %v22719_v22 = vld [vmem:[#allocation58_spill] sm:$0xff]  ;;  %v16691_v61 = vsel %vm22722_vm2, %v1544_v13, %v1545_v58  ;;  %v22725_v20 = vsel %vm16693_vm5, 4294967295, %v22724_v20  ;;  %v511_v21 = vand.u32 15, %v16142_v52  ;;  %vm22735_vm9 = vmmov %vm22732_vm3 }
  0xb2   : > { %13437 = vmatprep.mubr.msk.f32.mxu0 %vm22714_vm6, %v1735_v10  ;;  %22718 = vst [vmem:[#allocation62_spill] sm:$0xff] %v16682_v40  ;;  %vm22720_vm7 = vnez %v22719_v22  ;;  %v22721_v10 = vld [vmem:[#allocation97_spill] sm:$0xff]  ;;  %22726 = vst [vmem:[#allocation145_spill] sm:$0xff] %v22725_v20  ;;  %vm22728_vm4 = vcmask 31744   ;;  %vm22731_vm2 = vnez %v22730_v18  ;;  %v22737_v22 = vmov 0  ;;  %v22740_v18 = vld [vmem:[#allocation107_spill] sm:$0xff] }
  0xb3   : > { %vm21650_vm6 = vmand %vm22720_vm7, %vm16663_vm10  ;;  %v1546_v57 = vrot.slane %v22721_v10, 1  ;;  %22723 = vst [vmem:[#allocation97_spill] sm:$0xff] %v16691_v61  ;;  %v1739_v37 = vsel %vm22731_vm2, %v16691_v61, 0.0  ;;  %v1549_v52 = vrot.slane %v22740_v18, 1  ;;  %vm22744_vm7 = vcmp.lt.s32.totalorder %v15293_v3, 7 }
  0xb4   : > { %vm22729_vm11 = vmmov %vm22728_vm4  ;;  %v1738_v13 = vsel %vm21650_vm6, %v16682_v40, 0.0  ;;  %vm16723_vm6 = vcmp.lt.s32.totalorder %v511_v21, 15 }
  0xb5   : > { %13438 = vmatmul.mubr.msk.f32.gmra.mrb[20].mxu0 %vm22728_vm4, %v1736_v2  ;;  %v16712_v0 = vsel %vm22732_vm3, %v1545_v58, %v1546_v57  ;;  %vm22734_vm4 = vnez %v22383_v25  ;;  %v16721_v2 = vsel %vm22735_vm9, %v1546_v57, %v1547_v5  ;;  %v22738_v22 = vsel %vm16723_vm6, 4294967295, %v22737_v22 }
  0xb6   : > { %13440 = vmatprep.mubr.msk.f32.mxu0 %vm22729_vm11, %v1737_v36  ;;  %22733 = vst [vmem:[#allocation100_spill] sm:$0xff] %v16712_v0  ;;  %vm21656_vm11 = vmand %vm22734_vm4, %vm16693_vm5  ;;  %v1548_v36 = vrot.slane %v16165_v11, 1  ;;  %v513_v58 = vand.u32 15, %v16192_v17  ;;  %vm22741_vm3 = vcmask 31744   ;;  %vm22743_vm9 = vnez %v22526_v38 }
  0xb7   : > { %22736 = vst [vmem:[#allocation146_spill] sm:$0xff] %v16721_v2  ;;  %22739 = vst [vmem:[#allocation147_spill] sm:$0xff] %v22738_v22  ;;  %v1740_v57 = vsel %vm21656_vm11, %v16712_v0, 0.0  ;;  %v1741_v21 = vsel %vm22743_vm9, %v16721_v2, 0.0  ;;  %v22748_v25 = vmov 0  ;;  %v1551_v17 = vrot.slane %v15702_v53, 1 }
  0xb8   : > { %vm22742_vm2 = vmmov %vm22741_vm3  ;;  %v16742_v24 = vsel %vm22744_vm7, %v1547_v5, %v1548_v36  ;;  %vm16753_vm11 = vcmp.lt.s32.totalorder %v513_v58, 15  ;;  %v515_v5 = vand.u32 15, %v16242_v15  ;;  %v22753_v58 = vld [vmem:[#allocation110_spill] sm:$0xff]  ;;  %vm22755_vm9 = vcmp.lt.s32.totalorder %v15293_v3, 7  ;;  %v22963_v22 = vld [vmem:[#allocation11_spill] sm:$0xff] }
  0xb9   : > { %13441 = vmatmul.mubr.msk.f32.gmra.mrb[22].mxu0 %vm22741_vm3, %v1738_v13  ;;  %22745 = vst [vmem:[#allocation107_spill] sm:$0xff] %v16742_v24  ;;  %vm22746_vm3 = vmmov %vm22744_vm7  ;;  %v22749_v25 = vsel %vm16753_vm11, 4294967295, %v22748_v25  ;;  %vm22751_vm7 = vcmask 31744   ;;  %v22760_v15 = vmov 0 }
  0xba   : > { %13443 = vmatprep.mubr.msk.f32.mxu0 %vm22742_vm2, %v1739_v37  ;;  %vm21668_vm2 = vmand %vm16236_vm15, %vm16723_vm6  ;;  %v1550_v37 = vrot.slane %v16215_v44, 1  ;;  %v16751_v13 = vsel %vm22746_vm3, %v1548_v36, %v1549_v52  ;;  %22750 = vst [vmem:[#allocation149_spill] sm:$0xff] %v22749_v25  ;;  %vm22754_vm3 = vnez %v22753_v58  ;;  %vm16782_vm5 = vcmp.lt.s32.totalorder %v515_v5, 15  ;;  %v22776_v58 = vld [vmem:[#allocation65_spill] sm:$0xff] }
  0xbb   : > { %22747 = vst [vmem:[#allocation148_spill] sm:$0xff] %v16751_v13  ;;  %vm22752_vm4 = vmmov %vm22751_vm7  ;;  %v1742_v36 = vsel %vm21668_vm2, %v16742_v24, 0.0  ;;  %v1743_v38 = vsel %vm22754_vm3, %v16751_v13, 0.0  ;;  %v22761_v15 = vsel %vm16782_vm5, 4294967295, %v22760_v15  ;;  %vm22763_vm2 = vcmask 31744  }
  0xbc   : > { %v16772_v20 = vsel %vm22755_vm9, %v1549_v52, %v1550_v37  ;;  %22762 = vst [vmem:[#allocation152_spill] sm:$0xff] %v22761_v15  ;;  %vm22764_vm3 = vmmov %vm22763_vm2  ;;  %v22766_v5 = vrot.slane %v22577_v26, 1  ;;  %v22792_v15 = vld [vmem:[#allocation75_spill] sm:$0xff] }
  0xbd   : > { %13444 = vmatmul.mubr.msk.f32.gmra.mrb[24].mxu0 %vm22751_vm7, %v1740_v57  ;;  %22756 = vst [vmem:[#allocation150_spill] sm:$0xff] %v16772_v20  ;;  %vm22758_vm7 = vmmov %vm22755_vm9  ;;  %v22786_v57 = vld [vmem:[#allocation72_spill] sm:$0xff] }
  0xbe   : > { %13446 = vmatprep.mubr.msk.f32.mxu0 %vm22752_vm4, %v1741_v21  ;;  %vm21671_vm4 = vmand %vm16280_vm12, %vm16753_vm11  ;;  %v16780_v21 = vsel %vm22758_vm7, %v1550_v37, %v1551_v17 }
  0xbf   : > { %22759 = vst [vmem:[#allocation151_spill] sm:$0xff] %v16780_v21  ;;  %v1744_v52 = vsel %vm21671_vm4, %v16772_v20, 0.0  ;;  %v1745_v37 = vsel %vm16256_vm13, %v16780_v21, 0.0  ;;  %vm22767_vm9 = vmmov %vm22758_vm7 }
  0xc0   : > { %v16801_v51 = vsel %vm22767_vm9, %v1551_v17, %v22766_v5  ;;  %vm22769_vm7 = vmmov %vm22764_vm3  ;;  %v22775_v5 = vld [vmem:[#allocation70_spill] sm:$0xff] }
  0xc1   : > { %13447 = vmatmul.mubr.msk.f32.gmra.mrb[26].mxu0 %vm22763_vm2, %v1742_v36  ;;  %22768 = vst [vmem:[#allocation153_spill] sm:$0xff] %v16801_v51  ;;  %vm21676_vm2 = vmand %vm16316_vm14, %vm16782_vm5  ;;  %v22771_v36 = vld [vmem:[#allocation61_spill] sm:$0xff]  ;;  %vm22781_vm14 = vcmask 1043456  }
  0xc2   : > { %13449 = vmatprep.mubr.msk.f32.mxu0 %vm22764_vm3, %v1743_v38  ;;  %v1746_v26 = vsel %vm21676_vm2, %v16801_v51, 0.0  ;;  %v22770_v38 = vld [vmem:[#allocation67_spill] sm:$0xff]  ;;  %vm22772_vm9 = vnez %v22771_v36  ;;  %vm22773_vm4 = vmmov %vm22764_vm3 }
  0xc3   : > { %v2169_v17 = vsel %vm22772_vm9, %v22770_v38, 0.0  ;;  %vm22774_vm13 = vmmov %vm22764_vm3  ;;  %v22782_v38 = vld [vmem:[#allocation73_spill] sm:$0xff] }
  0xc4   : > { %vm22780_vm2 = vmmov %vm22773_vm4 }
  0xc5   : > { %13450 = vmatmul.mubr.msk.f32.gmra.mrb[28].mxu0 %vm22764_vm3, %v1744_v52  ;;  %vm22777_vm3 = vnez %v22776_v58  ;;  %vm22787_vm12 = vmmov %vm22780_vm2  ;;  %v22789_v58 = vld [vmem:[#allocation76_spill] sm:$0xff] }
  0xc6   : > { %13452 = vmatprep.mubr.msk.f32.mxu0 %vm22769_vm7, %v1745_v37  ;;  %v2171_v52 = vsel %vm22777_vm3, %v22775_v5, 0.0  ;;  %v11881_v37 = vld [vmem:[%s21227_s1 + $0x14] sm:$0xf]  ;;  %vm22779_vm7 = vmmov %vm22773_vm4  ;;  %v22790_v5 = vld [vmem:[#allocation71_spill] sm:$0xff] }
  0xc7   : > { %vm22788_vm15 = vmmov %vm22780_vm2  ;;  %vm22791_vm3 = vnez %v22790_v5  ;;  %v22803_v5 = vld [vmem:[#allocation81_spill] sm:$0xff] }
  0xc9   : > { %13453 = vmatmul.mubr.msk.f32.gmra.mrb[30].mxu0 %vm22773_vm4, %v1746_v26  ;;  %v22783_v26 = vld [vmem:[#allocation68_spill] sm:$0xff] }
  0xca   : > { %13457 = vmatprep.mubr.msk.f32.mxu0 %vm22774_vm13, %v2169_v17  ;;  %vm22784_vm4 = vnez %v22783_v26  ;;  %vm22785_vm13 = vmmov %vm22781_vm14 }
  0xcb   : > { %v2173_v17 = vsel %vm22784_vm4, %v22782_v38, 0.0  ;;  %v22797_v38 = vld [vmem:[#allocation78_spill] sm:$0xff]  ;;  %vm22799_vm4 = vmmov %vm22780_vm2 }
  0xcd   : > { %13458 = vmatmul.mubr.msk.f32.vlgmr.msra.gmra.mrb[0].mxu0 %vm22779_vm7, %v22778_v62  ;;  %v2175_v62 = vsel %vm22791_vm3, %v22789_v58, 0.0  ;;  %vm22793_vm7 = vmmov %vm22780_vm2  ;;  %v22806_v58 = vld [vmem:[#allocation85_spill] sm:$0xff] }
  0xce   : > { %13460 = vmatprep.mubr.msk.f32.mxu0 %vm22780_vm2, %v2171_v52  ;;  %13506 = vmatpush3.msk.msra.mxu0 %vm22781_vm14, %v16393_v12  ;;  %v22794_v12 = vld [vmem:[#allocation79_spill] sm:$0xff]  ;;  %v22795_v52 = vld [vmem:[#allocation74_spill] sm:$0xff]  ;;  %vm22805_vm3 = vmmov %vm22780_vm2 }
  0xcf   : > { %13555 = vmatprep.subr.msk.mxu0 %vm22785_vm13, %v11881_v37  ;;  %vm22796_vm14 = vnez %v22795_v52  ;;  %vm22798_vm13 = vmmov %vm22780_vm2  ;;  %v22809_v52 = vld [vmem:[#allocation84_spill] sm:$0xff] }
  0xd0   : > { %v2177_v26 = vsel %vm22796_vm14, %v22794_v12, 0.0  ;;  %vm22811_vm14 = vmmov %vm22805_vm3  ;;  %v22812_v12 = vld [vmem:[#allocation88_spill] sm:$0xff] }
  0xd1   : > { %13461 = vmatmul.mubr.msk.f32.gmra.mrb[2].mxu0 %vm22787_vm12, %v22786_v57  ;;  %v22800_v57 = vld [vmem:[#allocation82_spill] sm:$0xff] }
  0xd2   : > { %13463 = vmatprep.mubr.msk.f32.mxu0 %vm22788_vm15, %v2173_v17  ;;  %v22801_v17 = vld [vmem:[#allocation77_spill] sm:$0xff]  ;;  %vm22804_vm15 = vmmov %vm22780_vm2 }
  0xd3   : > { %vm22802_vm12 = vnez %v22801_v17  ;;  %v22815_v17 = vld [vmem:[#allocation87_spill] sm:$0xff] }
  0xd4   : > { %v2179_v36 = vsel %vm22802_vm12, %v22800_v57, 0.0  ;;  %vm22817_vm12 = vmmov %vm22805_vm3  ;;  %v22818_v57 = vld [vmem:[#allocation46_spill] sm:$0xff] }
  0xd5   : > { %13464 = vmatmul.mubr.msk.f32.gmra.mrb[4].mxu0 %vm22780_vm2, %v22792_v15 }
  0xd6   : > { %13466 = vmatprep.mubr.msk.f32.mxu0 %vm22793_vm7, %v2175_v62  ;;  %v22807_v62 = vld [vmem:[#allocation80_spill] sm:$0xff]  ;;  %vm22810_vm7 = vmmov %vm22805_vm3 }
  0xd7   : > { %vm22808_vm2 = vnez %v22807_v62  ;;  %v22821_v62 = vld [vmem:[#allocation90_spill] sm:$0xff] }
  0xd8   : > { %v2181_v15 = vsel %vm22808_vm2, %v22806_v58, 0.0  ;;  %vm22823_vm2 = vmmov %vm22810_vm7  ;;  %v22824_v58 = vld [vmem:[#allocation52_spill] sm:$0xff] }
  0xd9   : > { %13467 = vmatmul.mubr.msk.f32.gmra.mrb[6].mxu0 %vm22798_vm13, %v22797_v38  ;;  %vm22816_vm13 = vmmov %vm22805_vm3 }
  0xda   : > { %13469 = vmatprep.mubr.msk.f32.mxu0 %vm22799_vm4, %v2177_v26  ;;  %v22813_v26 = vld [vmem:[#allocation83_spill] sm:$0xff] }
  0xdb   : > { %vm22814_vm4 = vnez %v22813_v26  ;;  %v22827_v26 = vld [vmem:[#allocation91_spill] sm:$0xff] }
  0xdc   : > { %v2183_v38 = vsel %vm22814_vm4, %v22812_v12, 0.0  ;;  %vm22829_vm4 = vmmov %vm22823_vm2  ;;  %v22830_v12 = vld [vmem:[#allocation95_spill] sm:$0xff] }
  0xdd   : > { %13470 = vmatmul.mubr.msk.f32.gmra.mrb[8].mxu0 %vm22804_vm15, %v22803_v5  ;;  %vm22822_vm15 = vmmov %vm22810_vm7 }
  0xde   : > { %13472 = vmatprep.mubr.msk.f32.mxu0 %vm22805_vm3, %v2179_v36  ;;  %v22819_v36 = vld [vmem:[#allocation86_spill] sm:$0xff] }
  0xdf   : > { %vm22820_vm3 = vnez %v22819_v36  ;;  %v22833_v36 = vld [vmem:[#allocation94_spill] sm:$0xff] }
  0xe0   : > { %v2185_v5 = vsel %vm22820_vm3, %v22818_v57, 0.0  ;;  %vm22835_vm3 = vmmov %vm22823_vm2  ;;  %v22836_v57 = vld [vmem:[#allocation102_spill] sm:$0xff] }
  0xe1   : > { %13473 = vmatmul.mubr.msk.f32.gmra.mrb[10].mxu0 %vm22810_vm7, %v22809_v52  ;;  %vm22828_vm7 = vmmov %vm22823_vm2 }
  0xe2   : > { %13475 = vmatprep.mubr.msk.f32.mxu0 %vm22811_vm14, %v2181_v15  ;;  %v22825_v15 = vld [vmem:[#allocation89_spill] sm:$0xff] }
  0xe3   : > { %vm22826_vm14 = vnez %v22825_v15  ;;  %v22839_v15 = vld [vmem:[#allocation99_spill] sm:$0xff] }
  0xe4   : > { %v2187_v52 = vsel %vm22826_vm14, %v22824_v58, 0.0  ;;  %v22843_v58 = vld [vmem:[#allocation96_spill] sm:$0xff] }
  0xe5   : > { %13476 = vmatmul.mubr.msk.f32.gmra.mrb[12].mxu0 %vm22816_vm13, %v22815_v17  ;;  %vm22834_vm13 = vmmov %vm22823_vm2 }
  0xe6   : > { %13478 = vmatprep.mubr.msk.f32.mxu0 %vm22817_vm12, %v2183_v38  ;;  %v22831_v38 = vld [vmem:[#allocation49_spill] sm:$0xff] }
  0xe7   : > { %vm22832_vm12 = vnez %v22831_v38 }
  0xe8   : > { %v2189_v17 = vsel %vm22832_vm12, %v22830_v12, 0.0  ;;  %v22845_v12 = vld [vmem:[#allocation106_spill] sm:$0xff]  ;;  %vm22846_vm12 = vmmov %vm22835_vm3 }
  0xe9   : > { %13479 = vmatmul.mubr.msk.f32.gmra.mrb[14].mxu0 %vm22822_vm15, %v22821_v62  ;;  %vm22840_vm15 = vmmov %vm22835_vm3 }
  0xea   : > { %13481 = vmatprep.mubr.msk.f32.mxu0 %vm22823_vm2, %v2185_v5  ;;  %v22837_v5 = vld [vmem:[#allocation93_spill] sm:$0xff] }
  0xeb   : > { %vm22838_vm2 = vnez %v22837_v5 }
  0xec   : > { %v2191_v62 = vsel %vm22838_vm2, %v22836_v57, 0.0  ;;  %v22851_v57 = vld [vmem:[#allocation112_spill] sm:$0xff] }
  0xed   : > { %13482 = vmatmul.mubr.msk.f32.gmra.mrb[16].mxu0 %vm22828_vm7, %v22827_v26  ;;  %vm22841_vm7 = vmmov %vm22835_vm3 }
  0xee   : > { %13484 = vmatprep.mubr.msk.f32.mxu0 %vm22829_vm4, %v2187_v52  ;;  %v22842_v52 = vld [vmem:[#allocation109_spill] sm:$0xff]  ;;  %vm22844_vm4 = vnez %v22843_v58  ;;  %vm22852_vm2 = vmmov %vm22841_vm7 }
  0xef   : > { %v2193_v38 = vsel %vm22844_vm4, %v22842_v52, 0.0  ;;  %v22857_v52 = vld [vmem:[#allocation118_spill] sm:$0xff]  ;;  %vm22858_vm4 = vmmov %vm22852_vm2 }
  0xf1   : > { %13485 = vmatmul.mubr.msk.f32.gmra.mrb[18].mxu0 %vm22834_vm13, %v22833_v36  ;;  %vm22847_vm13 = vmmov %vm22835_vm3  ;;  %v22849_v36 = vld [vmem:[#allocation104_spill] sm:$0xff] }
  0xf2   : > { %13487 = vmatprep.mubr.msk.f32.mxu0 %vm22835_vm3, %v2189_v17  ;;  %v22848_v17 = vld [vmem:[#allocation115_spill] sm:$0xff]  ;;  %vm22850_vm3 = vnez %v22849_v36 }
  0xf3   : > { %v2195_v5 = vsel %vm22850_vm3, %v22848_v17, 0.0  ;;  %vm22863_vm3 = vmmov %vm22852_vm2 }
  0xf5   : > { %13488 = vmatmul.mubr.msk.f32.gmra.mrb[20].mxu0 %vm22840_vm15, %v22839_v15  ;;  %vm22853_vm15 = vmmov %vm22852_vm2  ;;  %v22855_v15 = vld [vmem:[#allocation111_spill] sm:$0xff] }
  0xf6   : > { %13490 = vmatprep.mubr.msk.f32.mxu0 %vm22841_vm7, %v2191_v62  ;;  %v22854_v62 = vld [vmem:[#allocation120_spill] sm:$0xff]  ;;  %vm22856_vm7 = vnez %v22855_v15  ;;  %v16919_v15 = vld [vmem:[%s15311_s26] sm:$0xff] }
  0xf7   : > { %v2197_v58 = vsel %vm22856_vm7, %v22854_v62, 0.0  ;;  %22866 = vst [vmem:[#allocation91_spill] sm:$0xff] %v16919_v15 }
  0xf9   : > { %13491 = vmatmul.mubr.msk.f32.gmra.mrb[22].mxu0 %vm22846_vm12, %v22845_v12  ;;  %vm22859_vm12 = vmmov %vm22852_vm2  ;;  %v22861_v12 = vld [vmem:[#allocation117_spill] sm:$0xff] }
  0xfa   : > { %13493 = vmatprep.mubr.msk.f32.mxu0 %vm22847_vm13, %v2193_v38  ;;  %v22860_v38 = vld [vmem:[#allocation64_spill] sm:$0xff]  ;;  %vm22862_vm13 = vnez %v22861_v12  ;;  %v16927_v12 = vld [vmem:[%s15311_s26 + $0x8] sm:$0xff] }
  0xfb   : > { %v2199_v36 = vsel %vm22862_vm13, %v22860_v38, 0.0  ;;  %22868 = vst [vmem:[#allocation115_spill] sm:$0xff] %v16927_v12 }
  0xfd   : > { %13494 = vmatmul.mubr.msk.f32.gmra.mrb[24].mxu0 %vm22852_vm2, %v22851_v57 }
  0xfe   : > { %13496 = vmatprep.mubr.msk.f32.mxu0 %vm22853_vm15, %v2195_v5  ;;  %v22864_v5 = vld [vmem:[#allocation66_spill] sm:$0xff]  ;;  %vm22865_vm15 = vmmov %vm22852_vm2 }
 0x101   : > { %13497 = vmatmul.mubr.msk.f32.gmra.mrb[26].mxu0 %vm22858_vm4, %v22857_v52  ;;  %vm22867_vm4 = vmmov %vm22852_vm2 }
 0x102   : > { %13499 = vmatprep.mubr.msk.f32.mxu0 %vm22859_vm12, %v2197_v58  ;;  %v11915_v58 = vld [vmem:[%s21227_s1 + $0x18] sm:$0xf]  ;;  %vm22871_vm12 = vmmov %vm22852_vm2 }
 0x105   : > { %13500 = vmatmul.mubr.msk.f32.gmra.mrb[28].mxu0 %vm22863_vm3, %v16312_v33  ;;  %vm22869_vm3 = vmmov %vm22852_vm2 }
 0x106   : > { %13502 = vmatprep.mubr.msk.f32.mxu0 %vm22852_vm2, %v2199_v36  ;;  %v16932_v36 = vld [vmem:[%s15311_s26 + $0x10] sm:$0xff]  ;;  %vm22872_vm2 = vcmask 1043456  }
 0x107   : > { %22870 = vst [vmem:[#allocation112_spill] sm:$0xff] %v16932_v36 }
 0x109   : > { %13503 = vmatmul.mubr.msk.f32.gmra.mrb[30].mxu0 %vm22865_vm15, %v22864_v5  ;;  %vm22873_vm15 = vmmov %vm22872_vm2  ;;  %v16944_v5 = vld [vmem:[%s15311_s26 + $0x20] sm:$0xff] }
 0x10a   : > { %13507 = vmatprep.mubr.msk.f32.mxu0 %vm22867_vm4, %v16919_v15  ;;  %v16939_v15 = vld [vmem:[%s15311_s26 + $0x18] sm:$0xff]  ;;  %vm22875_vm4 = vmmov %vm22869_vm3  ;;  %22876 = vst [vmem:[#allocation118_spill] sm:$0xff] %v16944_v5 }
 0x10b   : > { %22874 = vst [vmem:[#allocation120_spill] sm:$0xff] %v16939_v15 }
 0x10d   : > { %13508 = vmatmul.mubr.msk.f32.vlgmr.msra.gmra.mrb[0].mxu0 %vm22869_vm3, %v16927_v12  ;;  %v16949_v12 = vld [vmem:[%s15311_s26 + $0x28] sm:$0xff] }
 0x10e   : > { %13510 = vmatprep.mubr.msk.f32.mxu0 %vm22871_vm12, %v16932_v36  ;;  %13556 = vmatpush3.msk.msra.mxu0 %vm22872_vm2, %v11881_v37  ;;  %22877 = vst [vmem:[#allocation64_spill] sm:$0xff] %v16949_v12  ;;  %vm22878_vm12 = vmmov %vm22869_vm3  ;;  %v16954_v37 = vld [vmem:[%s15311_s26 + $0x30] sm:$0xff]  ;;  %v16959_v36 = vld [vmem:[%s15311_s26 + $0x38] sm:$0xff] }
 0x10f   : > { %13605 = vmatprep.subr.msk.mxu0 %vm22873_vm15, %v11915_v58  ;;  %22879 = vst [vmem:[#allocation154_spill] sm:$0xff] %v16954_v37  ;;  %vm22880_vm2 = vmmov %vm22869_vm3 }
 0x110   : > { %22881 = vst [vmem:[#allocation155_spill] sm:$0xff] %v16959_v36  ;;  %vm22882_vm15 = vmmov %vm22880_vm2 }
 0x111   : > { %13511 = vmatmul.mubr.msk.f32.gmra.mrb[2].mxu0 %vm22875_vm4, %v16939_v15  ;;  %v16964_v15 = vld [vmem:[%s15311_s26 + $0x40] sm:$0xff]  ;;  %vm22884_vm4 = vmmov %vm22880_vm2 }
 0x112   : > { %13513 = vmatprep.mubr.msk.f32.mxu0 %vm22869_vm3, %v16944_v5  ;;  %22883 = vst [vmem:[#allocation156_spill] sm:$0xff] %v16964_v15  ;;  %v16969_v5 = vld [vmem:[%s15311_s26 + $0x48] sm:$0xff]  ;;  %vm22885_vm3 = vmmov %vm22880_vm2 }
 0x113   : > { %vm22891_vm13 = vmmov %vm22880_vm2 }
 0x114   : > { %vm22893_vm7 = vmmov %vm22880_vm2 }
 0x115   : > { %13514 = vmatmul.mubr.msk.f32.gmra.mrb[4].mxu0 %vm22878_vm12, %v16949_v12  ;;  %v16974_v12 = vld [vmem:[%s15311_s26 + $0x50] sm:$0xff]  ;;  %vm22886_vm12 = vmmov %vm22880_vm2 }
 0x116   : > { %13516 = vmatprep.mubr.msk.f32.mxu0 %vm22880_vm2, %v16954_v37  ;;  %v16979_v37 = vld [vmem:[%s15311_s26 + $0x58] sm:$0xff] }
 0x119   : > { %13517 = vmatmul.mubr.msk.f32.gmra.mrb[6].mxu0 %vm22882_vm15, %v16959_v36  ;;  %v16984_v36 = vld [vmem:[%s15311_s26 + $0x60] sm:$0xff]  ;;  %vm22887_vm15 = vmmov %vm22880_vm2 }
 0x11a   : > { %13519 = vmatprep.mubr.msk.f32.mxu0 %vm22884_vm4, %v16964_v15  ;;  %v16989_v15 = vld [vmem:[%s15311_s26 + $0x68] sm:$0xff]  ;;  %vm22888_vm4 = vmmov %vm22880_vm2 }
 0x11d   : > { %13520 = vmatmul.mubr.msk.f32.gmra.mrb[8].mxu0 %vm22885_vm3, %v16969_v5  ;;  %vm22889_vm3 = vmmov %vm22880_vm2 }
 0x11e   : > { %13522 = vmatprep.mubr.msk.f32.mxu0 %vm22886_vm12, %v16974_v12  ;;  %vm22890_vm12 = vmmov %vm22880_vm2 }
 0x121   : > { %13523 = vmatmul.mubr.msk.f32.gmra.mrb[10].mxu0 %vm22880_vm2, %v16979_v37 }
 0x122   : > { %13525 = vmatprep.mubr.msk.f32.mxu0 %vm22887_vm15, %v16984_v36  ;;  %vm22892_vm15 = vmmov %vm22880_vm2 }
 0x125   : > { %13526 = vmatmul.mubr.msk.f32.gmra.mrb[12].mxu0 %vm22888_vm4, %v16989_v15  ;;  %vm22894_vm4 = vmmov %vm22880_vm2 }
 0x126   : > { %13528 = vmatprep.mubr.msk.f32.mxu0 %vm22889_vm3, %v15589_v31  ;;  %vm22895_vm3 = vmmov %vm22880_vm2 }
 0x129   : > { %13529 = vmatmul.mubr.msk.f32.gmra.mrb[14].mxu0 %vm22890_vm12, %v15610_v16  ;;  %vm22896_vm12 = vmmov %vm22880_vm2  ;;  %v17026_v16 = vld [vmem:[%s15311_s26 + $0xf0] sm:$0xff] }
 0x12a   : > { %13531 = vmatprep.mubr.msk.f32.mxu0 %vm22891_vm13, %v15623_v19  ;;  %vm22897_vm13 = vmmov %vm22880_vm2  ;;  %v17031_v19 = vld [vmem:[%s15311_s26 + $0xf8] sm:$0xff] }
 0x12d   : > { %13532 = vmatmul.mubr.msk.f32.gmra.mrb[16].mxu0 %vm22880_vm2, %v22471_v34  ;;  %v2986_v34 = vsel %vm16384_vm0, %v16442_v55, 0.0 }
 0x12e   : > { %13534 = vmatprep.mubr.msk.f32.mxu0 %vm22892_vm15, %v22476_v42  ;;  %vm22898_vm15 = vmmov %vm22880_vm2  ;;  %v2984_v42 = vsel %vm16354_vm1, %v16410_v23, 0.0 }
 0x12f   : > { %vm22914_vm1 = vmmov %vm22880_vm2 }
 0x130   : > { %vm22920_vm0 = vmmov %vm22914_vm1 }
 0x131   : > { %13535 = vmatmul.mubr.msk.f32.gmra.mrb[18].mxu0 %vm22893_vm7, %v22487_v4  ;;  %vm22899_vm7 = vmmov %vm22880_vm2 }
 0x132   : > { %13537 = vmatprep.mubr.msk.f32.mxu0 %vm22894_vm4, %v22689_v50  ;;  %vm22900_vm4 = vmmov %vm22880_vm2 }
 0x135   : > { %13538 = vmatmul.mubr.msk.f32.gmra.mrb[20].mxu0 %vm22895_vm3, %v22695_v60  ;;  %vm22901_vm3 = vmmov %vm22880_vm2 }
 0x136   : > { %13540 = vmatprep.mubr.msk.f32.mxu0 %vm22896_vm12, %v22705_v46  ;;  %vm22902_vm12 = vmmov %vm22880_vm2  ;;  %v22924_v46 = vld [vmem:[#allocation135_spill] sm:$0xff] }
 0x139   : > { %13541 = vmatmul.mubr.msk.f32.gmra.mrb[22].mxu0 %vm22897_vm13, %v22711_v32  ;;  %vm22903_vm13 = vmmov %vm22880_vm2  ;;  %v2994_v32 = vsel %vm16513_vm8, %v16562_v28, 0.0  ;;  %v23092_v28 = vmov 0 }
 0x13a   : > { %13543 = vmatprep.mubr.msk.f32.mxu0 %vm22880_vm2, %v22721_v10  ;;  %vm22937_vm8 = vmmov %vm22920_vm0 }
 0x13d   : > { %13544 = vmatmul.mubr.msk.f32.gmra.mrb[24].mxu0 %vm22898_vm15, %v22727_v47  ;;  %vm22904_vm15 = vnez %v22589_v8 }
 0x13e   : > { %13546 = vmatprep.mubr.msk.f32.mxu0 %vm22899_vm7, %v16165_v11  ;;  %v2982_v31 = vsel %vm22904_vm15, %v16373_v35, 0.0  ;;  %vm22905_vm7 = vmmov %vm22880_vm2 }
 0x141   : > { %13547 = vmatmul.mubr.msk.f32.gmra.mrb[26].mxu0 %vm22900_vm4, %v22740_v18  ;;  %vm22906_vm4 = vmmov %vm22880_vm2 }
 0x142   : > { %13549 = vmatprep.mubr.msk.f32.mxu0 %vm22901_vm3, %v16215_v44  ;;  %vm22907_vm3 = vmmov %vm22880_vm2 }
 0x145   : > { %13550 = vmatmul.mubr.msk.f32.gmra.mrb[28].mxu0 %vm22902_vm12, %v15702_v53  ;;  %v17043_v53 = vld [vmem:[%s21227_s1 + $0x1c] sm:$0xf]  ;;  %vm22908_vm12 = vcmask 1043456  }
 0x146   : > { %13552 = vmatprep.mubr.msk.f32.mxu0 %vm22903_vm13, %v17026_v16  ;;  %vm22909_vm13 = vmmov %vm22908_vm12 }
 0x149   : > { %13553 = vmatmul.mubr.msk.f32.gmra.mrb[30].mxu0 %vm22880_vm2, %v17031_v19 }
 0x14a   : > { %13557 = vmatprep.mubr.msk.f32.mxu0 %vm22905_vm7, %v16352_v6  ;;  %vm22910_vm7 = vmmov %vm22880_vm2  ;;  %v22938_v6 = vld [vmem:[#allocation59_spill] sm:$0xff] }
 0x14d   : > { %13558 = vmatmul.mubr.msk.f32.vlgmr.msra.gmra.mrb[0].mxu0 %vm22906_vm4, %v2982_v31  ;;  %vm22911_vm4 = vmmov %vm22880_vm2  ;;  %v22927_v31 = vld [vmem:[#allocation140_spill] sm:$0xff] }
 0x14e   : > { %13560 = vmatprep.mubr.msk.f32.mxu0 %vm22907_vm3, %v16382_v63  ;;  %13606 = vmatpush3.msk.msra.mxu0 %vm22908_vm12, %v11915_v58  ;;  %vm22912_vm3 = vmmov %vm22880_vm2  ;;  %vm22913_vm12 = vnez %v22614_v29  ;;  %v23154_v29 = vmov 0 }
 0x14f   : > { %13655 = vmatprep.subr.msk.mxu0 %vm22909_vm13, %v17043_v53  ;;  %v2988_v4 = vsel %vm22913_vm12, %v16472_v1, 0.0  ;;  %vm22915_vm13 = vmmov %vm22914_vm1  ;;  %vm23025_vm12 = vcmask 31744  }
 0x151   : > { %13561 = vmatmul.mubr.msk.f32.gmra.mrb[2].mxu0 %vm22880_vm2, %v2984_v42  ;;  %vm22916_vm2 = vnez %v22622_v45  ;;  %v22928_v42 = vld [vmem:[#allocation142_spill] sm:$0xff] }
 0x152   : > { %13563 = vmatprep.mubr.msk.f32.mxu0 %vm22910_vm7, %v16421_v48  ;;  %v2990_v60 = vsel %vm22916_vm2, %v16502_v54, 0.0  ;;  %vm22917_vm7 = vmmov %vm22914_vm1 }
 0x153   : > { %vm22926_vm2 = vmmov %vm22920_vm0 }
 0x155   : > { %13564 = vmatmul.mubr.msk.f32.gmra.mrb[4].mxu0 %vm22911_vm4, %v2986_v34  ;;  %vm22918_vm4 = vmmov %vm22914_vm1  ;;  %v22929_v34 = vld [vmem:[#allocation138_spill] sm:$0xff] }
 0x156   : > { %13566 = vmatprep.mubr.msk.f32.mxu0 %vm22912_vm3, %v16451_v39  ;;  %vm22919_vm3 = vnez %v22632_v43  ;;  %v23106_v43 = vmov 0 }
 0x157   : > { %v2992_v50 = vsel %vm22919_vm3, %v16532_v41, 0.0  ;;  %vm22931_vm3 = vmmov %vm22920_vm0  ;;  %v23122_v41 = vmov 0 }
 0x159   : > { %13567 = vmatmul.mubr.msk.f32.gmra.mrb[6].mxu0 %vm22914_vm1, %v2988_v4  ;;  %vm22921_vm1 = vmmov %vm22920_vm0 }
 0x15a   : > { %13569 = vmatprep.mubr.msk.f32.mxu0 %vm22915_vm13, %v16481_v49  ;;  %vm22922_vm13 = vmmov %vm22920_vm0 }
 0x15d   : > { %13570 = vmatmul.mubr.msk.f32.gmra.mrb[8].mxu0 %vm22917_vm7, %v2990_v60  ;;  %vm22923_vm7 = vmmov %vm22920_vm0  ;;  %v22932_v60 = vld [vmem:[#allocation55_spill] sm:$0xff] }
 0x15e   : > { %13572 = vmatprep.mubr.msk.f32.mxu0 %vm22918_vm4, %v16511_v59  ;;  %vm22925_vm4 = vnez %v22924_v46  ;;  %v23138_v59 = vmov 0 }
 0x15f   : > { %v2996_v58 = vsel %vm22925_vm4, %v16592_v56, 0.0 }
 0x161   : > { %13573 = vmatmul.mubr.msk.f32.gmra.mrb[10].mxu0 %vm22920_vm0, %v2992_v50  ;;  %v22934_v50 = vld [vmem:[#allocation57_spill] sm:$0xff] }
 0x162   : > { %13575 = vmatprep.mubr.msk.f32.mxu0 %vm22921_vm1, %v16541_v27  ;;  %vm22930_vm1 = vnez %v22929_v34  ;;  %v3004_v34 = vsel %vm16663_vm10, %v16712_v0, 0.0  ;;  %v22999_v0 = vld [vmem:[#allocation76_spill] sm:$0xff] }
 0x163   : > { %v2998_v4 = vsel %vm22930_vm1, %v22928_v42, 0.0  ;;  %vm23009_vm1 = vcmask 31744  }
 0x165   : > { %13576 = vmatmul.mubr.msk.f32.gmra.mrb[12].mxu0 %vm22922_vm13, %v2994_v32  ;;  %vm22933_vm13 = vmmov %vm22920_vm0  ;;  %v22935_v32 = vld [vmem:[#allocation141_spill] sm:$0xff] }
 0x166   : > { %13578 = vmatprep.mubr.msk.f32.mxu0 %vm22923_vm7, %v16571_v7  ;;  %vm22936_vm7 = vnez %v22935_v32 }
 0x167   : > { %v3000_v35 = vsel %vm22936_vm7, %v22934_v50, 0.0 }
 0x169   : > { %13579 = vmatmul.mubr.msk.f32.gmra.mrb[14].mxu0 %vm22926_vm2, %v2996_v58  ;;  %vm22939_vm2 = vmmov %vm22920_vm0  ;;  %v22940_v58 = vld [vmem:[#allocation143_spill] sm:$0xff] }
 0x16a   : > { %13581 = vmatprep.mubr.msk.f32.mxu0 %vm22920_vm0, %v22927_v31  ;;  %vm22941_vm0 = vnez %v22940_v58  ;;  %vm22942_vm4 = vmmov %vm22939_vm2  ;;  %v23003_v58 = vmov 0  ;;  %v23060_v31 = vmov 0 }
 0x16b   : > { %v3002_v46 = vsel %vm22941_vm0, %v16682_v40, 0.0 }
 0x16d   : > { %13582 = vmatmul.mubr.msk.f32.gmra.mrb[16].mxu0 %vm22931_vm3, %v2998_v4  ;;  %vm22943_vm3 = vmmov %vm22939_vm2  ;;  %v22952_v4 = vmov 0 }
 0x16e   : > { %13584 = vmatprep.mubr.msk.f32.mxu0 %vm22933_vm13, %v22932_v60  ;;  %vm22945_vm13 = vmmov %vm22939_vm2  ;;  %v23044_v60 = vmov 0 }
 0x16f   : > { %vm22949_vm7 = vmmov %vm22943_vm3 }
 0x171   : > { %13585 = vmatmul.mubr.msk.f32.gmra.mrb[18].mxu0 %vm22937_vm8, %v3000_v35  ;;  %vm22946_vm8 = vmmov %vm22939_vm2  ;;  %v22947_v35 = vld [vmem:[#allocation145_spill] sm:$0xff] }
 0x172   : > { %13587 = vmatprep.mubr.msk.f32.mxu0 %vm22939_vm2, %v22938_v6  ;;  %vm22948_vm2 = vnez %v22947_v35  ;;  %v23028_v6 = vmov 0 }
 0x173   : > { %v3006_v32 = vsel %vm22948_vm2, %v16742_v24, 0.0  ;;  %v22969_v24 = vmov 0 }
 0x175   : > { %13588 = vmatmul.mubr.msk.f32.gmra.mrb[20].mxu0 %vm22942_vm4, %v3002_v46  ;;  %vm22950_vm4 = vmmov %vm22943_vm3  ;;  %v3008_v46 = vsel %vm16723_vm6, %v16772_v20, 0.0  ;;  %v22976_v20 = vld [vmem:[#allocation6_spill] sm:$0xff] }
 0x176   : > { %13590 = vmatprep.mubr.msk.f32.mxu0 %vm22943_vm3, %v16691_v61 }
 0x179   : > { %13591 = vmatmul.mubr.msk.f32.gmra.mrb[22].mxu0 %vm22945_vm13, %v3004_v34  ;;  %v22951_v34 = vshra.s32 %v15293_v3, 4 }
 0x17a   : > { %13593 = vmatprep.mubr.msk.f32.mxu0 %vm22946_vm8, %v16721_v2  ;;  %vm22955_vm8 = vmmov %vm22943_vm3 }
 0x17b   : > { %vm17129_vm13 = vcmp.lt.s32.totalorder %v22951_v34, 15  ;;  %v22960_v34 = vmov 0 }
 0x17c   : > { %v22953_v4 = vsel %vm17129_vm13, 4294967295, %v22952_v4 }
 0x17d   : > { %13594 = vmatmul.mubr.msk.f32.gmra.mrb[24].mxu0 %vm22949_vm7, %v3006_v32  ;;  %22954 = vst [vmem:[#allocation157_spill] sm:$0xff] %v22953_v4  ;;  %v3010_v32 = vsel %vm16753_vm11, %v16801_v51, 0.0  ;;  %vm21722_vm7 = vmand %vm17129_vm13, %vm22772_vm9  ;;  %v22967_v51 = vld [vmem:[#allocation3_spill] sm:$0xff]  ;;  %vm22975_vm11 = vcmask 31744   ;;  %vm22998_vm9 = vcmask 1043456  }
 0x17e   : > { %13596 = vmatprep.mubr.msk.f32.mxu0 %vm22950_vm4, %v16751_v13  ;;  %vm22957_vm4 = vmmov %vm22943_vm3  ;;  %v22968_v13 = vshra.s32 %v22967_v51, 4  ;;  %v22977_v51 = vshra.s32 %v22976_v20, 4  ;;  %v22989_v20 = vld [vmem:[#allocation68_spill] sm:$0xff] }
 0x17f   : > { %vm22964_vm6 = vmmov %vm22957_vm4 }
 0x180   : > { %vm22982_vm2 = vmmov %vm22975_vm11 }
 0x181   : > { %13597 = vmatmul.mubr.msk.f32.gmra.mrb[26].mxu0 %vm22943_vm3, %v3008_v46  ;;  %v22958_v46 = vld [vmem:[#allocation4_spill] sm:$0xff] }
 0x182   : > { %13599 = vmatprep.mubr.msk.f32.mxu0 %vm22955_vm8, %v16780_v21  ;;  %v22959_v3 = vshra.s32 %v22958_v46, 4  ;;  %v22965_v21 = vld [vmem:[#allocation122_spill] sm:$0xff]  ;;  %vm17156_vm8 = vcmp.lt.s32.totalorder %v22968_v13, 15  ;;  %v22973_v46 = vld [vmem:[#allocation65_spill] sm:$0xff]  ;;  %v22978_v13 = vmov 0 }
 0x183   : > { %v3012_v25 = vsel %vm16782_vm5, %v22965_v21, 0.0  ;;  %v22970_v24 = vsel %vm17156_vm8, 4294967295, %v22969_v24  ;;  %vm17173_vm5 = vcmp.lt.s32.totalorder %v22977_v51, 15  ;;  %v22981_v21 = vld [vmem:[#allocation72_spill] sm:$0xff]  ;;  %v22986_v51 = vmov 0 }
 0x184   : > { %vm17145_vm3 = vcmp.lt.s32.totalorder %v22959_v3, 15  ;;  %22971 = vst [vmem:[#allocation159_spill] sm:$0xff] %v22970_v24  ;;  %v22979_v13 = vsel %vm17173_vm5, 4294967295, %v22978_v13 }
 0x185   : > { %13600 = vmatmul.mubr.msk.f32.gmra.mrb[28].mxu0 %vm22957_vm4, %v3010_v32  ;;  %v22961_v34 = vsel %vm17145_vm3, 4294967295, %v22960_v34  ;;  %v22972_v32 = vld [vmem:[#allocation70_spill] sm:$0xff]  ;;  %vm22974_vm4 = vnez %v22973_v46 }
 0x186   : > { %22962 = vst [vmem:[#allocation158_spill] sm:$0xff] %v22961_v34  ;;  %13602 = vmatprep.mubr.msk.f32.mxu0 %vm22964_vm6, %v22963_v22  ;;  %v3499_v3 = vsel %vm21722_vm7, %v22972_v32, 0.0  ;;  %vm21724_vm6 = vmand %vm17145_vm3, %vm22974_vm4  ;;  %v3500_v22 = vsel %vm17156_vm8, %v22981_v21, 0.0  ;;  %v22983_v32 = vld [vmem:[#allocation73_spill] sm:$0xff]  ;;  %vm22990_vm7 = vnez %v22989_v20  ;;  %v17200_v21 = vld [vmem:[%s21227_s1 + $0x20] sm:$0xf] }
 0x187   : > { %22980 = vst [vmem:[#allocation70_spill] sm:$0xff] %v22979_v13  ;;  %v3501_v35 = vsel %vm21724_vm6, %v22983_v32, 0.0  ;;  %vm22996_vm4 = vmmov %vm22982_vm2  ;;  %v23017_v20 = vld [vmem:[#allocation79_spill] sm:$0xff]  ;;  %v18032_v34 = vld [vmem:[%s21228_s2] ss:$0 sm:$0xff] }
 0x189   : > { %13603 = vmatmul.mubr.msk.f32.gmra.mrb[30].mxu0 %vm22975_vm11, %v3012_v25  ;;  %v22984_v25 = vld [vmem:[#allocation5_spill] sm:$0xff] }
 0x18a   : > { %13607 = vmatprep.mubr.msk.f32.mxu0 %vm22982_vm2, %v3499_v3  ;;  %v22985_v2 = vshra.s32 %v22984_v25, 4  ;;  %v22991_v3 = vld [vmem:[#allocation8_spill] sm:$0xff]  ;;  %v22993_v25 = vmov 0 }
 0x18b   : > { %v22992_v32 = vshra.s32 %v22991_v3, 4 }
 0x18c   : > { %vm17189_vm11 = vcmp.lt.s32.totalorder %v22985_v2, 15  ;;  %v22997_v2 = vld [vmem:[#allocation75_spill] sm:$0xff] }
 0x18d   : > { %v22987_v51 = vsel %vm17189_vm11, 4294967295, %v22986_v51  ;;  %13608 = vmatmul.mubr.msk.f32.vlgmr.msra.gmra.mrb[0].mxu0 %vm22982_vm2, %v3500_v22  ;;  %vm17205_vm6 = vcmp.lt.s32.totalorder %v22992_v32, 15  ;;  %v3502_v46 = vsel %vm17189_vm11, %v22997_v2, 0.0  ;;  %vm23000_vm2 = vmand %vm17173_vm5, %vm22990_vm7  ;;  %v23001_v32 = vld [vmem:[#allocation7_spill] sm:$0xff] }
 0x18e   : > { %22988 = vst [vmem:[#allocation72_spill] sm:$0xff] %v22987_v51  ;;  %v22994_v25 = vsel %vm17205_vm6, 4294967295, %v22993_v25  ;;  %13610 = vmatprep.mubr.msk.f32.mxu0 %vm22996_vm4, %v3501_v35  ;;  %13656 = vmatpush3.msk.msra.mxu0 %vm22998_vm9, %v17043_v53  ;;  %v3503_v22 = vsel %vm23000_vm2, %v22999_v0, 0.0  ;;  %v23002_v3 = vshra.s32 %v23001_v32, 4  ;;  %vm23006_vm4 = vmmov %vm22998_vm9  ;;  %v23007_v35 = vld [vmem:[#allocation71_spill] sm:$0xff]  ;;  %v23010_v53 = vld [vmem:[#allocation17_spill] sm:$0xff] }
 0x18f   : > { %22995 = vst [vmem:[#allocation73_spill] sm:$0xff] %v22994_v25  ;;  %13705 = vmatprep.subr.msk.mxu0 %vm23006_vm4, %v17200_v21  ;;  %vm23008_vm0 = vnez %v23007_v35  ;;  %v23011_v2 = vshra.s32 %v23010_v53, 4  ;;  %v23012_v0 = vmov 0  ;;  %vm23015_vm2 = vmmov %vm23009_vm1  ;;  %v23020_v53 = vmov 0 }
 0x190   : > { %vm17223_vm10 = vcmp.lt.s32.totalorder %v23002_v3, 15  ;;  %vm21734_vm9 = vmand %vm17205_vm6, %vm23008_vm0  ;;  %v23016_v3 = vld [vmem:[#allocation78_spill] sm:$0xff]  ;;  %vm23041_vm6 = vcmask 31744  }
 0x191   : > { %v23004_v58 = vsel %vm17223_vm10, 4294967295, %v23003_v58  ;;  %13611 = vmatmul.mubr.msk.f32.gmra.mrb[2].mxu0 %vm23009_vm1, %v3502_v46  ;;  %vm17236_vm7 = vcmp.lt.s32.totalorder %v23011_v2, 15  ;;  %v3504_v32 = vsel %vm17223_vm10, %v23016_v3, 0.0  ;;  %v3505_v61 = vsel %vm21734_vm9, %v23017_v20, 0.0  ;;  %v23018_v46 = vld [vmem:[#allocation14_spill] sm:$0xff]  ;;  %vm23031_vm9 = vmmov %vm23025_vm12  ;;  %v23032_v20 = vld [vmem:[#allocation81_spill] sm:$0xff] }
 0x192   : > { %23005 = vst [vmem:[#allocation75_spill] sm:$0xff] %v23004_v58  ;;  %v23013_v0 = vsel %vm17236_vm7, 4294967295, %v23012_v0  ;;  %13613 = vmatprep.mubr.msk.f32.mxu0 %vm23015_vm2, %v3503_v22  ;;  %v23019_v40 = vshra.s32 %v23018_v46, 4  ;;  %v23023_v2 = vld [vmem:[#allocation74_spill] sm:$0xff]  ;;  %v23026_v22 = vld [vmem:[#allocation21_spill] sm:$0xff] }
 0x193   : > { %23014 = vst [vmem:[#allocation76_spill] sm:$0xff] %v23013_v0  ;;  %vm23024_vm4 = vnez %v23023_v2  ;;  %v23027_v3 = vshra.s32 %v23026_v22, 4  ;;  %v23033_v46 = vld [vmem:[#allocation82_spill] sm:$0xff]  ;;  %v23036_v22 = vmov 0 }
 0x194   : > { %vm17252_vm1 = vcmp.lt.s32.totalorder %v23019_v40, 15  ;;  %vm21741_vm2 = vmand %vm17236_vm7, %vm23024_vm4  ;;  %vm23057_vm7 = vcmask 31744  }
 0x195   : > { %v23021_v53 = vsel %vm17252_vm1, 4294967295, %v23020_v53  ;;  %13614 = vmatmul.mubr.msk.f32.gmra.mrb[4].mxu0 %vm23025_vm12, %v3504_v32  ;;  %vm17263_vm15 = vcmp.lt.s32.totalorder %v23027_v3, 15  ;;  %v3506_v40 = vsel %vm17252_vm1, %v23032_v20, 0.0  ;;  %v3507_v35 = vsel %vm21741_vm2, %v23033_v46, 0.0  ;;  %v23034_v32 = vld [vmem:[#allocation19_spill] sm:$0xff]  ;;  %v23039_v3 = vld [vmem:[#allocation77_spill] sm:$0xff]  ;;  %vm23047_vm2 = vmmov %vm23041_vm6 }
 0x196   : > { %23022 = vst [vmem:[#allocation17_spill] sm:$0xff] %v23021_v53  ;;  %v23029_v6 = vsel %vm17263_vm15, 4294967295, %v23028_v6  ;;  %13616 = vmatprep.mubr.msk.f32.mxu0 %vm23031_vm9, %v3505_v61  ;;  %v23035_v50 = vshra.s32 %v23034_v32, 4  ;;  %vm23040_vm0 = vnez %v23039_v3  ;;  %v23042_v61 = vld [vmem:[#allocation25_spill] sm:$0xff]  ;;  %v23048_v46 = vld [vmem:[#allocation84_spill] sm:$0xff] }
 0x197   : > { %23030 = vst [vmem:[#allocation78_spill] sm:$0xff] %v23029_v6  ;;  %vm21748_vm9 = vmand %vm17263_vm15, %vm23040_vm0  ;;  %v23043_v20 = vshra.s32 %v23042_v61, 4  ;;  %v23049_v32 = vld [vmem:[#allocation85_spill] sm:$0xff]  ;;  %v23052_v61 = vmov 0  ;;  %vm23073_vm15 = vcmask 31744  }
 0x198   : > { %vm17279_vm12 = vcmp.lt.s32.totalorder %v23035_v50, 15  ;;  %v3509_v2 = vsel %vm21748_vm9, %v23049_v32, 0.0  ;;  %vm23063_vm9 = vmmov %vm23057_vm7  ;;  %v23064_v32 = vld [vmem:[#allocation87_spill] sm:$0xff] }
 0x199   : > { %v23037_v22 = vsel %vm17279_vm12, 4294967295, %v23036_v22  ;;  %13617 = vmatmul.mubr.msk.f32.gmra.mrb[6].mxu0 %vm23041_vm6, %v3506_v40  ;;  %vm17290_vm1 = vcmp.lt.s32.totalorder %v23043_v20, 15  ;;  %v3508_v50 = vsel %vm17279_vm12, %v23048_v46, 0.0  ;;  %v23050_v40 = vld [vmem:[#allocation23_spill] sm:$0xff]  ;;  %v23055_v20 = vld [vmem:[#allocation80_spill] sm:$0xff] }
 0x19a   : > { %23038 = vst [vmem:[#allocation79_spill] sm:$0xff] %v23037_v22  ;;  %v23045_v60 = vsel %vm17290_vm1, 4294967295, %v23044_v60  ;;  %13619 = vmatprep.mubr.msk.f32.mxu0 %vm23047_vm2, %v3507_v35  ;;  %v23051_v42 = vshra.s32 %v23050_v40, 4  ;;  %vm23056_vm4 = vnez %v23055_v20  ;;  %v23058_v35 = vld [vmem:[#allocation29_spill] sm:$0xff]  ;;  %v23065_v40 = vld [vmem:[#allocation88_spill] sm:$0xff] }
 0x19b   : > { %23046 = vst [vmem:[#allocation21_spill] sm:$0xff] %v23045_v60  ;;  %vm21758_vm2 = vmand %vm17290_vm1, %vm23056_vm4  ;;  %v23059_v46 = vshra.s32 %v23058_v35, 4  ;;  %v23068_v35 = vmov 0  ;;  %vm23089_vm1 = vcmask 31744  }
 0x19c   : > { %vm17306_vm6 = vcmp.lt.s32.totalorder %v23051_v42, 15  ;;  %v3511_v3 = vsel %vm21758_vm2, %v23065_v40, 0.0  ;;  %vm23079_vm2 = vmmov %vm23073_vm15  ;;  %v23080_v40 = vld [vmem:[#allocation90_spill] sm:$0xff] }
 0x19d   : > { %v23053_v61 = vsel %vm17306_vm6, 4294967295, %v23052_v61  ;;  %13620 = vmatmul.mubr.msk.f32.gmra.mrb[8].mxu0 %vm23057_vm7, %v3508_v50  ;;  %vm17317_vm12 = vcmp.lt.s32.totalorder %v23059_v46, 15  ;;  %v3510_v42 = vsel %vm17306_vm6, %v23064_v32, 0.0  ;;  %v23066_v50 = vld [vmem:[#allocation27_spill] sm:$0xff] }
 0x19e   : > { %23054 = vst [vmem:[#allocation81_spill] sm:$0xff] %v23053_v61  ;;  %v23061_v31 = vsel %vm17317_vm12, 4294967295, %v23060_v31  ;;  %13622 = vmatprep.mubr.msk.f32.mxu0 %vm23063_vm9, %v3509_v2  ;;  %v23067_v56 = vshra.s32 %v23066_v50, 4  ;;  %v23071_v46 = vld [vmem:[#allocation83_spill] sm:$0xff]  ;;  %v23074_v2 = vld [vmem:[#allocation33_spill] sm:$0xff]  ;;  %v23081_v50 = vld [vmem:[#allocation46_spill] sm:$0xff] }
 0x19f   : > { %23062 = vst [vmem:[#allocation82_spill] sm:$0xff] %v23061_v31  ;;  %vm23072_vm0 = vnez %v23071_v46  ;;  %v23075_v32 = vshra.s32 %v23074_v2, 4  ;;  %v23084_v2 = vmov 0 }
 0x1a0   : > { %vm17333_vm7 = vcmp.lt.s32.totalorder %v23067_v56, 15  ;;  %vm21767_vm9 = vmand %vm17317_vm12, %vm23072_vm0  ;;  %vm23103_vm0 = vcmask 31744  }
 0x1a1   : > { %v23069_v35 = vsel %vm17333_vm7, 4294967295, %v23068_v35  ;;  %13623 = vmatmul.mubr.msk.f32.gmra.mrb[10].mxu0 %vm23073_vm15, %v3510_v42  ;;  %vm17344_vm6 = vcmp.lt.s32.totalorder %v23075_v32, 15  ;;  %v3512_v56 = vsel %vm17333_vm7, %v23080_v40, 0.0  ;;  %v3513_v20 = vsel %vm21767_vm9, %v23081_v50, 0.0  ;;  %v23082_v42 = vld [vmem:[#allocation31_spill] sm:$0xff]  ;;  %v23087_v32 = vld [vmem:[#allocation86_spill] sm:$0xff]  ;;  %vm23095_vm9 = vmmov %vm23089_vm1 }
 0x1a2   : > { %23070 = vst [vmem:[#allocation19_spill] sm:$0xff] %v23069_v35  ;;  %v23077_v30 = vsel %vm17344_vm6, 4294967295, %v23076_v30  ;;  %13625 = vmatprep.mubr.msk.f32.mxu0 %vm23079_vm2, %v3511_v3  ;;  %v23083_v7 = vshra.s32 %v23082_v42, 4  ;;  %vm23088_vm4 = vnez %v23087_v32  ;;  %v23090_v3 = vld [vmem:[#allocation37_spill] sm:$0xff]  ;;  %v23096_v50 = vld [vmem:[#allocation52_spill] sm:$0xff] }
 0x1a3   : > { %23078 = vst [vmem:[#allocation25_spill] sm:$0xff] %v23077_v30  ;;  %vm21774_vm2 = vmand %vm17344_vm6, %vm23088_vm4  ;;  %v23091_v40 = vshra.s32 %v23090_v3, 4  ;;  %v23099_v3 = vmov 0  ;;  %vm23119_vm6 = vcmask 31744  }
 0x1a4   : > { %vm17360_vm15 = vcmp.lt.s32.totalorder %v23083_v7, 15  ;;  %v3515_v42 = vsel %vm21774_vm2, %v23096_v50, 0.0  ;;  %vm23109_vm2 = vmmov %vm23103_vm0  ;;  %v23110_v50 = vld [vmem:[#allocation94_spill] sm:$0xff] }
 0x1a5   : > { %v23085_v2 = vsel %vm17360_vm15, 4294967295, %v23084_v2  ;;  %13626 = vmatmul.mubr.msk.f32.gmra.mrb[12].mxu0 %vm23089_vm1, %v3512_v56  ;;  %vm17371_vm7 = vcmp.lt.s32.totalorder %v23091_v40, 15  ;;  %v3514_v7 = vsel %vm17360_vm15, %v22827_v26, 0.0  ;;  %v23097_v56 = vld [vmem:[#allocation35_spill] sm:$0xff]  ;;  %v23104_v26 = vld [vmem:[#allocation41_spill] sm:$0xff] }
 0x1a6   : > { %23086 = vst [vmem:[#allocation84_spill] sm:$0xff] %v23085_v2  ;;  %v23093_v28 = vsel %vm17371_vm7, 4294967295, %v23092_v28  ;;  %13628 = vmatprep.mubr.msk.f32.mxu0 %vm23095_vm9, %v3513_v20  ;;  %v23098_v46 = vshra.s32 %v23097_v56, 4  ;;  %vm21783_vm9 = vmand %vm17371_vm7, %vm22826_vm14  ;;  %v23105_v20 = vshra.s32 %v23104_v26, 4  ;;  %v23111_v56 = vld [vmem:[#allocation95_spill] sm:$0xff]  ;;  %v23114_v26 = vmov 0 }
 0x1a7   : > { %23094 = vst [vmem:[#allocation85_spill] sm:$0xff] %v23093_v28  ;;  %v3517_v32 = vsel %vm21783_vm9, %v23111_v56, 0.0  ;;  %vm23125_vm9 = vmmov %vm23119_vm6  ;;  %v23126_v56 = vld [vmem:[#allocation99_spill] sm:$0xff]  ;;  %vm23135_vm7 = vcmask 31744  }
 0x1a8   : > { %vm17387_vm1 = vcmp.lt.s32.totalorder %v23098_v46, 15  ;;  %vm17398_vm15 = vcmp.lt.s32.totalorder %v23105_v20, 15  ;;  %v23117_v20 = vld [vmem:[#allocation49_spill] sm:$0xff] }
 0x1a9   : > { %v23100_v3 = vsel %vm17387_vm1, 4294967295, %v23099_v3  ;;  %13629 = vmatmul.mubr.msk.f32.gmra.mrb[14].mxu0 %vm23103_vm0, %v3514_v7  ;;  %v23107_v43 = vsel %vm17398_vm15, 4294967295, %v23106_v43  ;;  %v3516_v46 = vsel %vm17387_vm1, %v23110_v50, 0.0  ;;  %v23112_v7 = vld [vmem:[#allocation39_spill] sm:$0xff]  ;;  %vm23118_vm4 = vnez %v23117_v20 }
 0x1aa   : > { %23101 = vst [vmem:[#allocation23_spill] sm:$0xff] %v23100_v3  ;;  %23108 = vst [vmem:[#allocation29_spill] sm:$0xff] %v23107_v43  ;;  %13631 = vmatprep.mubr.msk.f32.mxu0 %vm23109_vm2, %v3515_v42  ;;  %v23113_v27 = vshra.s32 %v23112_v7, 4  ;;  %v23120_v42 = vld [vmem:[#allocation45_spill] sm:$0xff]  ;;  %v23127_v7 = vld [vmem:[#allocation102_spill] sm:$0xff] }
 0x1ab   : > { %vm21793_vm2 = vmand %vm17398_vm15, %vm23118_vm4  ;;  %v23121_v50 = vshra.s32 %v23120_v42, 4  ;;  %v23130_v42 = vmov 0  ;;  %vm23151_vm15 = vcmask 31744  }
 0x1ac   : > { %vm17414_vm0 = vcmp.lt.s32.totalorder %v23113_v27, 15  ;;  %v3519_v40 = vsel %vm21793_vm2, %v23127_v7, 0.0  ;;  %vm23141_vm2 = vmmov %vm23135_vm7  ;;  %v23142_v7 = vld [vmem:[#allocation106_spill] sm:$0xff] }
 0x1ad   : > { %v23115_v26 = vsel %vm17414_vm0, 4294967295, %v23114_v26  ;;  %13632 = vmatmul.mubr.msk.f32.gmra.mrb[16].mxu0 %vm23119_vm6, %v3516_v46  ;;  %vm17425_vm1 = vcmp.lt.s32.totalorder %v23121_v50, 15  ;;  %v3518_v27 = vsel %vm17414_vm0, %v23126_v56, 0.0  ;;  %v23128_v46 = vld [vmem:[#allocation43_spill] sm:$0xff]  ;;  %v23133_v50 = vld [vmem:[#allocation93_spill] sm:$0xff] }
 0x1ae   : > { %23116 = vst [vmem:[#allocation87_spill] sm:$0xff] %v23115_v26  ;;  %v23123_v41 = vsel %vm17425_vm1, 4294967295, %v23122_v41  ;;  %13634 = vmatprep.mubr.msk.f32.mxu0 %vm23125_vm9, %v3517_v32  ;;  %v23129_v45 = vshra.s32 %v23128_v46, 4  ;;  %vm23134_vm14 = vnez %v23133_v50  ;;  %v23136_v32 = vld [vmem:[#allocation51_spill] sm:$0xff]  ;;  %v23143_v46 = vld [vmem:[#allocation109_spill] sm:$0xff]  ;;  %v23168_v50 = vmov 0 }
 0x1af   : > { %23124 = vst [vmem:[#allocation88_spill] sm:$0xff] %v23123_v41  ;;  %vm21803_vm9 = vmand %vm17425_vm1, %vm23134_vm14  ;;  %v23137_v56 = vshra.s32 %v23136_v32, 4  ;;  %v23146_v32 = vmov 0  ;;  %vm23165_vm1 = vcmask 31744  }
 0x1b0   : > { %vm17441_vm6 = vcmp.lt.s32.totalorder %v23129_v45, 15  ;;  %v3521_v20 = vsel %vm21803_vm9, %v23143_v46, 0.0  ;;  %vm23157_vm9 = vmmov %vm23151_vm15 }
 0x1b1   : > { %v23131_v42 = vsel %vm17441_vm6, 4294967295, %v23130_v42  ;;  %13635 = vmatmul.mubr.msk.f32.gmra.mrb[18].mxu0 %vm23135_vm7, %v3518_v27  ;;  %vm17452_vm0 = vcmp.lt.s32.totalorder %v23137_v56, 15  ;;  %v3520_v45 = vsel %vm17441_vm6, %v23142_v7, 0.0  ;;  %v23144_v27 = vld [vmem:[#allocation48_spill] sm:$0xff] }
 0x1b2   : > { %23132 = vst [vmem:[#allocation27_spill] sm:$0xff] %v23131_v42  ;;  %v23139_v59 = vsel %vm17452_vm0, 4294967295, %v23138_v59  ;;  %13637 = vmatprep.mubr.msk.f32.mxu0 %vm23141_vm2, %v3519_v40  ;;  %v23145_v54 = vshra.s32 %v23144_v27, 4  ;;  %v23149_v56 = vld [vmem:[#allocation96_spill] sm:$0xff] }
 0x1b3   : > { %23140 = vst [vmem:[#allocation33_spill] sm:$0xff] %v23139_v59  ;;  %vm23150_vm4 = vnez %v23149_v56  ;;  %v23152_v40 = vld [vmem:[#allocation92_spill] sm:$0xff]  ;;  %v23182_v56 = vmov 0 }
 0x1b4   : > { %vm17468_vm7 = vcmp.lt.s32.totalorder %v23145_v54, 15  ;;  %vm21810_vm2 = vmand %vm17452_vm0, %vm23150_vm4  ;;  %v23153_v7 = vshra.s32 %v23152_v40, 4  ;;  %v23160_v40 = vmov 0  ;;  %vm23179_vm0 = vcmask 31744  }
 0x1b5   : > { %v23147_v32 = vsel %vm17468_vm7, 4294967295, %v23146_v32  ;;  %13638 = vmatmul.mubr.msk.f32.gmra.mrb[20].mxu0 %vm23151_vm15, %v3520_v45  ;;  %v3522_v54 = vsel %vm17468_vm7, %v22851_v57, 0.0  ;;  %v3523_v46 = vsel %vm21810_vm2, %v22848_v17, 0.0  ;;  %v23158_v45 = vld [vmem:[#allocation54_spill] sm:$0xff]  ;;  %vm23171_vm2 = vmmov %vm23165_vm1 }
 0x1b6   : > { %23148 = vst [vmem:[#allocation90_spill] sm:$0xff] %v23147_v32  ;;  %vm17479_vm6 = vcmp.lt.s32.totalorder %v23153_v7, 15  ;;  %13640 = vmatprep.mubr.msk.f32.mxu0 %vm23157_vm9, %v3521_v20  ;;  %v23159_v27 = vshra.s32 %v23158_v45, 4  ;;  %v23163_v7 = vld [vmem:[#allocation104_spill] sm:$0xff]  ;;  %v23166_v57 = vld [vmem:[#allocation98_spill] sm:$0xff] }
 0x1b7   : > { %v23155_v29 = vsel %vm17479_vm6, 4294967295, %v23154_v29  ;;  %vm23164_vm14 = vnez %v23163_v7  ;;  %v23167_v20 = vshra.s32 %v23166_v57, 4  ;;  %v23174_v57 = vmov 0 }
 0x1b8   : > { %23156 = vst [vmem:[#allocation46_spill] sm:$0xff] %v23155_v29  ;;  %vm17495_vm15 = vcmp.lt.s32.totalorder %v23159_v27, 15  ;;  %vm21817_vm9 = vmand %vm17479_vm6, %vm23164_vm14 }
 0x1b9   : > { %v23161_v40 = vsel %vm17495_vm15, 4294967295, %v23160_v40  ;;  %13641 = vmatmul.mubr.msk.f32.gmra.mrb[22].mxu0 %vm23165_vm1, %v3522_v54  ;;  %vm17506_vm7 = vcmp.lt.s32.totalorder %v23167_v20, 15  ;;  %v3524_v17 = vsel %vm17495_vm15, %v22857_v52, 0.0  ;;  %v3525_v45 = vsel %vm21817_vm9, %v22854_v62, 0.0  ;;  %v23172_v54 = vld [vmem:[#allocation101_spill] sm:$0xff]  ;;  %v23177_v20 = vld [vmem:[#allocation111_spill] sm:$0xff]  ;;  %vm23189_vm6 = vmmov %vm23179_vm0 }
 0x1ba   : > { %23162 = vst [vmem:[#allocation31_spill] sm:$0xff] %v23161_v40  ;;  %v23169_v50 = vsel %vm17506_vm7, 4294967295, %v23168_v50  ;;  %13643 = vmatprep.mubr.msk.f32.mxu0 %vm23171_vm2, %v3523_v46  ;;  %v23173_v27 = vshra.s32 %v23172_v54, 4  ;;  %vm23178_vm4 = vnez %v23177_v20  ;;  %v23180_v52 = vld [vmem:[#allocation105_spill] sm:$0xff]  ;;  %v23185_v62 = vld [vmem:[#allocation103_spill] sm:$0xff] }
 0x1bb   : > { %23170 = vst [vmem:[#allocation37_spill] sm:$0xff] %v23169_v50  ;;  %vm21825_vm2 = vmand %vm17506_vm7, %vm23178_vm4  ;;  %v23181_v46 = vshra.s32 %v23180_v52, 4  ;;  %vm23186_vm9 = vnez %v23185_v62  ;;  %v23190_v52 = vld [vmem:[#allocation108_spill] sm:$0xff]  ;;  %v23206_v20 = vld [vmem:[#allocation67_spill] sm:$0xff] }
 0x1bc   : > { %vm17522_vm1 = vcmp.lt.s32.totalorder %v23173_v27, 15  ;;  %v864_v54 = vsel %vm23186_vm9, %v22721_v10, 0.0  ;;  %v23187_v27 = vld [vmem:[#allocation113_spill] sm:$0xff]  ;;  %v3527_v10 = vsel %vm21825_vm2, %v22860_v38, 0.0  ;;  %v23201_v38 = vld [vmem:[#allocation119_spill] sm:$0xff] }
 0x1bd   : > { %v23175_v57 = vsel %vm17522_vm1, 4294967295, %v23174_v57  ;;  %13644 = vmatmul.mubr.msk.f32.gmra.mrb[24].mxu0 %vm23179_vm0, %v3524_v17  ;;  %vm17533_vm15 = vcmp.lt.s32.totalorder %v23181_v46, 15  ;;  %vm23188_vm14 = vnez %v23187_v27  ;;  %v3526_v17 = vsel %vm17522_vm1, %v16312_v33, 0.0  ;;  %13346 = vmatprep.mubr.msk.f32.mxu1 %vm23179_vm0, %v864_v54  ;;  %v23199_v33 = vld [vmem:[#allocation110_spill] sm:$0xff] }
 0x1be   : > { %23176 = vst [vmem:[#allocation52_spill] sm:$0xff] %v23175_v57  ;;  %v23183_v56 = vsel %vm17533_vm15, 4294967295, %v23182_v56  ;;  %v865_v7 = vsel %vm23188_vm14, %v22727_v47, 0.0  ;;  %13646 = vmatprep.mubr.msk.f32.mxu0 %vm23189_vm6, %v3525_v45  ;;  %v23191_v46 = vshra.s32 %v23190_v52, 4  ;;  %v23192_v47 = vmov 0  ;;  %vm23195_vm6 = vmmov %vm23179_vm0  ;;  %v23196_v45 = vld [vmem:[#allocation117_spill] sm:$0xff] }
 0x1bf   : > { %23184 = vst [vmem:[#allocation35_spill] sm:$0xff] %v23183_v56  ;;  %13347 = vmatmul.mubr.msk.f32.vlgmr.msra.gmra.mrb[0].mxu1 %vm23195_vm6, %v865_v7  ;;  %vm23197_vm14 = vnez %v23196_v45  ;;  %vm23198_vm1 = vmmov %vm23195_vm6  ;;  %vm23200_vm4 = vnez %v23199_v33  ;;  %vm23202_vm2 = vnez %v23201_v38  ;;  %v23209_v38 = vmov 0  ;;  %v23226_v45 = vld [vmem:[#allocation118_spill] sm:$0xff] }
 0x1c0   : > { %vm17556_vm9 = vcmp.lt.s32.totalorder %v23191_v46, 15  ;;  %vm21830_vm0 = vmand %vm17533_vm15, %vm23197_vm14  ;;  %v866_v54 = vsel %vm23200_vm4, %v16165_v11, 0.0  ;;  %v867_v52 = vsel %vm23202_vm2, %v22740_v18, 0.0  ;;  %v23204_v46 = vld [vmem:[#allocation66_spill] sm:$0xff]  ;;  %v23214_v18 = vld [vmem:[#allocation116_spill] sm:$0xff] }
 0x1c1   : > { %v23193_v47 = vsel %vm17556_vm9, 4294967295, %v23192_v47  ;;  %13647 = vmatmul.mubr.msk.f32.gmra.mrb[26].mxu0 %vm23198_vm1, %v3526_v17  ;;  %vm23203_vm7 = vmmov %vm23198_vm1  ;;  %v3528_v7 = vsel %vm17556_vm9, %v23204_v46, 0.0  ;;  %v3529_v17 = vsel %vm21830_vm0, %v23206_v20, 0.0  ;;  %v23207_v11 = vld [vmem:[#allocation114_spill] sm:$0xff]  ;;  %v23216_v46 = vld [vmem:[#allocation9_spill] sm:$0xff] }
 0x1c2   : > { %23194 = vst [vmem:[#allocation41_spill] sm:$0xff] %v23193_v47  ;;  %13649 = vmatprep.mubr.msk.f32.mxu0 %vm23203_vm7, %v3527_v10  ;;  %vm23205_vm6 = vmmov %vm23198_vm1  ;;  %v23208_v33 = vshra.s32 %v23207_v11, 4  ;;  %vm23217_vm14 = vnez %v23216_v46 }
 0x1c3   : > { %13349 = vmatprep.mubr.msk.f32.mxu1 %vm23205_vm6, %v866_v54  ;;  %vm23212_vm7 = vmmov %vm23205_vm6  ;;  %v17595_v54 = vld [vmem:[%s15311_s26 + $0xe8] sm:$0xff] }
 0x1c4   : > { %vm17585_vm1 = vcmp.lt.s32.totalorder %v23208_v33, 15  ;;  %13350 = vmatmul.mubr.msk.f32.gmra.mrb[2].mxu1 %vm23212_vm7, %v867_v52  ;;  %vm23213_vm2 = vmmov %vm23205_vm6  ;;  %vm23215_vm6 = vnez %v23214_v18  ;;  %v869_v20 = vsel %vm23217_vm14, %v17595_v54, 0.0  ;;  %v23219_v33 = vld [vmem:[#allocation69_spill] sm:$0xff]  ;;  %v23221_v52 = vld [vmem:[#allocation112_spill] sm:$0xff]  ;;  %vm23237_vm14 = vnez %v23021_v53 }
 0x1c5   : > { %v23210_v38 = vsel %vm17585_vm1, 4294967295, %v23209_v38  ;;  %13650 = vmatmul.mubr.msk.f32.gmra.mrb[28].mxu0 %vm23213_vm2, %v3528_v7  ;;  %v868_v10 = vsel %vm23215_vm6, %v16215_v44, 0.0  ;;  %vm23218_vm0 = vmmov %vm23213_vm2  ;;  %v3530_v11 = vsel %vm17585_vm1, %v23219_v33, 0.0  ;;  %v3953_v7 = vsel %vm17129_vm13, %v23221_v52, 0.0  ;;  %v23225_v44 = vld [vmem:[#allocation120_spill] sm:$0xff] }
 0x1c6   : > { %23211 = vst [vmem:[#allocation94_spill] sm:$0xff] %v23210_v38  ;;  %13652 = vmatprep.mubr.msk.f32.mxu0 %vm23218_vm0, %v3529_v17  ;;  %vm23220_vm4 = vmmov %vm23218_vm0  ;;  %v3954_v17 = vsel %vm17156_vm8, %v23225_v44, 0.0  ;;  %v3955_v33 = vsel %vm17145_vm3, %v23226_v45, 0.0  ;;  %v23233_v45 = vld [vmem:[#allocation155_spill] sm:$0xff]  ;;  %v23234_v44 = vld [vmem:[#allocation156_spill] sm:$0xff] }
 0x1c7   : > { %13352 = vmatprep.mubr.msk.f32.mxu1 %vm23220_vm4, %v868_v10  ;;  %vm23222_vm2 = vmmov %vm23218_vm0  ;;  %v23228_v10 = vld [vmem:[#allocation64_spill] sm:$0xff] }
 0x1c8   : > { %13353 = vmatmul.mubr.msk.f32.gmra.mrb[4].mxu1 %vm23222_vm2, %v869_v20  ;;  %vm23223_vm7 = vmmov %vm23218_vm0  ;;  %v3956_v20 = vsel %vm17189_vm11, %v23228_v10, 0.0  ;;  %vm23229_vm2 = vcmask 1043456  }
 0x1c9   : > { %13653 = vmatmul.mubr.msk.f32.gmra.mrb[30].mxu0 %vm23223_vm7, %v3530_v11  ;;  %vm23224_vm6 = vmmov %vm23218_vm0  ;;  %v23230_v11 = vld [vmem:[#allocation154_spill] sm:$0xff] }
 0x1ca   : > { %13657 = vmatprep.mubr.msk.f32.mxu0 %vm23224_vm6, %v3953_v7  ;;  %vm23227_vm4 = vmmov %vm23218_vm0  ;;  %v3957_v52 = vsel %vm17173_vm5, %v23230_v11, 0.0  ;;  %v3958_v7 = vsel %vm17223_vm10, %v23233_v45, 0.0 }
 0x1cb   : > { %vm23231_vm6 = vmmov %vm23218_vm0 }
 0x1cc   : > { %vm23232_vm7 = vmmov %vm23218_vm0 }
 0x1cd   : > { %13658 = vmatmul.mubr.msk.f32.vlgmr.msra.gmra.mrb[0].mxu0 %vm23218_vm0, %v3954_v17  ;;  %vm23235_vm0 = vnez %v22994_v25 }
 0x1ce   : > { %13660 = vmatprep.mubr.msk.f32.mxu0 %vm23227_vm4, %v3955_v33  ;;  %13706 = vmatpush3.msk.msra.mxu0 %vm23229_vm2, %v17200_v21  ;;  %v3959_v17 = vsel %vm23235_vm0, %v23234_v44, 0.0  ;;  %vm23236_vm2 = vmmov %vm23227_vm4  ;;  %v3960_v21 = vsel %vm23237_vm14, %v16969_v5, 0.0  ;;  %vm23241_vm0 = vnez %v23037_v22  ;;  %v15191_v5 = vld [vmem:[%s15311_s26 + $0x70] sm:$0xff] }
 0x1cf   : > { %vm23240_vm10 = vmmov %vm23236_vm2  ;;  %v3962_v10 = vsel %vm23241_vm0, %v16979_v37, 0.0  ;;  %v15195_v44 = vld [vmem:[%s15311_s26 + $0x90] sm:$0xff] }
 0x1d0   : > { %vm23243_vm14 = vmmov %vm23236_vm2 }
 0x1d1   : > { %13661 = vmatmul.mubr.msk.f32.gmra.mrb[2].mxu0 %vm23231_vm6, %v3956_v20  ;;  %vm23238_vm6 = vnez %v23013_v0  ;;  %vm23247_vm0 = vmmov %vm23236_vm2 }
 0x1d2   : > { %13663 = vmatprep.mubr.msk.f32.mxu0 %vm23232_vm7, %v3957_v52  ;;  %v3961_v33 = vsel %vm23238_vm6, %v16974_v12, 0.0  ;;  %vm23239_vm7 = vmmov %vm23236_vm2  ;;  %vm23244_vm6 = vnez %v23053_v61  ;;  %v15193_v52 = vld [vmem:[%s15311_s26 + $0x80] sm:$0xff] }
 0x1d3   : > { %v3964_v12 = vsel %vm23244_vm6, %v16989_v15, 0.0  ;;  %v3967_v45 = vsel %vm17317_vm12, %v15193_v52, 0.0  ;;  %v15194_v15 = vld [vmem:[%s15311_s26 + $0x88] sm:$0xff] }
 0x1d5   : > { %13664 = vmatmul.mubr.msk.f32.gmra.mrb[4].mxu0 %vm23227_vm4, %v3958_v7  ;;  %vm23242_vm4 = vnez %v23029_v6 }
 0x1d6   : > { %13666 = vmatprep.mubr.msk.f32.mxu0 %vm23236_vm2, %v3959_v17  ;;  %v3963_v20 = vsel %vm23242_vm4, %v16984_v36, 0.0  ;;  %v15192_v36 = vld [vmem:[%s15311_s26 + $0x78] sm:$0xff]  ;;  %vm23248_vm4 = vnez %v23069_v35 }
 0x1d7   : > { %v3966_v37 = vsel %vm23248_vm4, %v15192_v36, 0.0 }
 0x1d9   : > { %13667 = vmatmul.mubr.msk.f32.gmra.mrb[6].mxu0 %vm23239_vm7, %v3960_v21  ;;  %vm23246_vm7 = vmmov %vm23236_vm2  ;;  %v15196_v21 = vld [vmem:[%s15311_s26 + $0x98] sm:$0xff] }
 0x1da   : > { %13669 = vmatprep.mubr.msk.f32.mxu0 %vm23240_vm10, %v3961_v33  ;;  %vm23245_vm10 = vnez %v23045_v60 }
 0x1db   : > { %v3965_v11 = vsel %vm23245_vm10, %v15191_v5, 0.0 }
 0x1dd   : > { %13670 = vmatmul.mubr.msk.f32.gmra.mrb[8].mxu0 %vm23236_vm2, %v3962_v10  ;;  %vm23250_vm2 = vmmov %vm23247_vm0  ;;  %v15197_v10 = vld [vmem:[%s15311_s26 + $0xa0] sm:$0xff] }
 0x1de   : > { %13672 = vmatprep.mubr.msk.f32.mxu0 %vm23243_vm14, %v3963_v20  ;;  %vm23249_vm14 = vmmov %vm23247_vm0 }
 0x1df   : > { %vm23253_vm4 = vmmov %vm23250_vm2 }
 0x1e0   : > { %vm23254_vm10 = vmmov %vm23250_vm2 }
 0x1e1   : > { %13673 = vmatmul.mubr.msk.f32.gmra.mrb[10].mxu0 %vm23246_vm7, %v3964_v12  ;;  %vm23251_vm7 = vnez %v23085_v2  ;;  %vm23258_vm12 = vmmov %vm23253_vm4  ;;  %v15198_v12 = vld [vmem:[%s15311_s26 + $0xa8] sm:$0xff] }
 0x1e2   : > { %13675 = vmatprep.mubr.msk.f32.mxu0 %vm23247_vm0, %v3965_v11  ;;  %v3968_v7 = vsel %vm23251_vm7, %v15194_v15, 0.0  ;;  %vm23252_vm0 = vnez %v23077_v30  ;;  %vm23257_vm7 = vmmov %vm23253_vm4  ;;  %v15199_v11 = vld [vmem:[%s15311_s26 + $0xb0] sm:$0xff] }
 0x1e3   : > { %v3969_v17 = vsel %vm23252_vm0, %v15195_v44, 0.0  ;;  %vm23262_vm0 = vmmov %vm23257_vm7 }
 0x1e4   : > { %vm23269_vm6 = vmmov %vm23262_vm0 }
 0x1e5   : > { %13676 = vmatmul.mubr.msk.f32.gmra.mrb[12].mxu0 %vm23249_vm14, %v3966_v37  ;;  %vm23255_vm14 = vnez %v23100_v3  ;;  %v15200_v37 = vld [vmem:[%s15311_s26 + $0xb8] sm:$0xff] }
 0x1e6   : > { %13678 = vmatprep.mubr.msk.f32.mxu0 %vm23250_vm2, %v3967_v45  ;;  %v3970_v33 = vsel %vm23255_vm14, %v15196_v21, 0.0  ;;  %vm23256_vm2 = vnez %v23093_v28  ;;  %vm23261_vm14 = vmmov %vm23257_vm7  ;;  %v15201_v45 = vld [vmem:[%s15311_s26 + $0xc0] sm:$0xff] }
 0x1e7   : > { %v3971_v20 = vsel %vm23256_vm2, %v15197_v10, 0.0  ;;  %vm23265_vm2 = vmmov %vm23262_vm0 }
 0x1e9   : > { %13679 = vmatmul.mubr.msk.f32.gmra.mrb[14].mxu0 %vm23253_vm4, %v3968_v7  ;;  %vm23259_vm4 = vnez %v23115_v26  ;;  %v15202_v7 = vld [vmem:[%s15311_s26 + $0xc8] sm:$0xff] }
 0x1ea   : > { %13681 = vmatprep.mubr.msk.f32.mxu0 %vm23254_vm10, %v3969_v17  ;;  %v3972_v5 = vsel %vm23259_vm4, %v15198_v12, 0.0  ;;  %vm23260_vm10 = vnez %v23107_v43  ;;  %vm23266_vm4 = vmmov %vm23262_vm0  ;;  %v15203_v17 = vld [vmem:[%s15311_s26 + $0xd0] sm:$0xff] }
 0x1eb   : > { %v3973_v36 = vsel %vm23260_vm10, %v15199_v11, 0.0  ;;  %vm23267_vm10 = vnez %v23147_v32 }
 0x1ec   : > { %v3976_v44 = vsel %vm23267_vm10, %v15202_v7, 0.0  ;;  %vm23274_vm10 = vnez %v23175_v57  ;;  %v23296_v7 = vld [vmem:[#allocation130_spill] sm:$0xff] }
 0x1ed   : > { %13682 = vmatmul.mubr.msk.f32.gmra.mrb[16].mxu0 %vm23257_vm7, %v3970_v33  ;;  %vm23263_vm7 = vnez %v23131_v42  ;;  %v15204_v33 = vld [vmem:[%s15311_s26 + $0xd8] sm:$0xff] }
 0x1ee   : > { %13684 = vmatprep.mubr.msk.f32.mxu0 %vm23258_vm12, %v3971_v20  ;;  %v3974_v52 = vsel %vm23263_vm7, %v15200_v37, 0.0  ;;  %vm23264_vm12 = vnez %v23123_v41  ;;  %vm23270_vm7 = vnez %v23161_v40  ;;  %v15205_v20 = vld [vmem:[%s15311_s26 + $0xe0] sm:$0xff]  ;;  %v23278_v37 = vld [vmem:[#allocation91_spill] sm:$0xff] }
 0x1ef   : > { %v3975_v15 = vsel %vm23264_vm12, %v15201_v45, 0.0  ;;  %v3978_v10 = vsel %vm23270_vm7, %v15204_v33, 0.0  ;;  %vm23273_vm12 = vmmov %vm23262_vm0 }
 0x1f1   : > { %13685 = vmatmul.mubr.msk.f32.gmra.mrb[18].mxu0 %vm23261_vm14, %v3972_v5  ;;  %vm23268_vm14 = vnez %v23139_v59  ;;  %v3980_v5 = vsel %vm23274_vm10, %v17595_v54, 0.0  ;;  %v23280_v54 = vld [vmem:[#allocation115_spill] sm:$0xff] }
 0x1f2   : > { %13687 = vmatprep.mubr.msk.f32.mxu0 %vm23262_vm0, %v3973_v36  ;;  %v3977_v21 = vsel %vm23268_vm14, %v15203_v17, 0.0  ;;  %v3982_v36 = vsel %vm17556_vm9, %v17031_v19, 0.0  ;;  %v4439_v19 = vsel %vm17129_vm13, %v16382_v63, 0.0  ;;  %v23299_v17 = vld [vmem:[#allocation128_spill] sm:$0xff] }
 0x1f5   : > { %13688 = vmatmul.mubr.msk.f32.gmra.mrb[20].mxu0 %vm23265_vm2, %v3974_v52  ;;  %vm23271_vm2 = vnez %v23155_v29  ;;  %v3983_v52 = vsel %vm17533_vm15, %v23278_v37, 0.0 }
 0x1f6   : > { %13690 = vmatprep.mubr.msk.f32.mxu0 %vm23266_vm4, %v3975_v15  ;;  %v3979_v12 = vsel %vm23271_vm2, %v15205_v20, 0.0  ;;  %vm23272_vm4 = vmmov %vm23262_vm0  ;;  %v4441_v15 = vsel %vm17145_vm3, %v16421_v48, 0.0 }
 0x1f7   : > { %vm23277_vm14 = vmmov %vm23272_vm4 }
 0x1f8   : > { %vm23282_vm9 = vmmov %vm23272_vm4 }
 0x1f9   : > { %13691 = vmatmul.mubr.msk.f32.gmra.mrb[22].mxu0 %vm23262_vm0, %v3976_v44  ;;  %vm23275_vm0 = vnez %v23169_v50  ;;  %v23297_v44 = vld [vmem:[#allocation131_spill] sm:$0xff] }
 0x1fa   : > { %13693 = vmatprep.mubr.msk.f32.mxu0 %vm23269_vm6, %v3977_v21  ;;  %v3981_v11 = vsel %vm23275_vm0, %v17026_v16, 0.0  ;;  %vm23276_vm6 = vmmov %vm23272_vm4  ;;  %v3984_v16 = vsel %vm17585_vm1, %v23280_v54, 0.0  ;;  %v23303_v21 = vld [vmem:[#allocation133_spill] sm:$0xff]  ;;  %v23319_v54 = vld [vmem:[#allocation139_spill] sm:$0xff] }
 0x1fb   : > { %vm23285_vm1 = vmmov %vm23282_vm9 }
 0x1fd   : > { %13694 = vmatmul.mubr.msk.f32.gmra.mrb[24].mxu0 %vm23272_vm4, %v3978_v10  ;;  %v23304_v10 = vld [vmem:[#allocation134_spill] sm:$0xff] }
 0x1fe   : > { %13696 = vmatprep.mubr.msk.f32.mxu0 %vm23273_vm12, %v3979_v12  ;;  %vm23279_vm12 = vmmov %vm23272_vm4  ;;  %v23306_v12 = vld [vmem:[#allocation129_spill] sm:$0xff] }
 0x201   : > { %13697 = vmatmul.mubr.msk.f32.gmra.mrb[26].mxu0 %vm23276_vm6, %v3980_v5  ;;  %vm23281_vm6 = vnez %v22589_v8  ;;  %v23311_v5 = vld [vmem:[#allocation136_spill] sm:$0xff]  ;;  %v23426_v8 = vld [vmem:[#allocation47_spill] sm:$0xff] }
 0x202   : > { %13699 = vmatprep.mubr.msk.f32.mxu0 %vm23277_vm14, %v3981_v11  ;;  %vm21842_vm14 = vmand %vm17156_vm8, %vm23281_vm6 }
 0x203   : > { %v4440_v45 = vsel %vm21842_vm14, %v16410_v23, 0.0  ;;  %v4443_v23 = vsel %vm17173_vm5, %v16451_v39, 0.0  ;;  %vm23288_vm14 = vnez %v23004_v58  ;;  %vm23289_vm8 = vmmov %vm23285_vm1  ;;  %v23291_v39 = vld [vmem:[#allocation127_spill] sm:$0xff]  ;;  %vm23293_vm5 = vnez %v23021_v53 }
 0x205   : > { %13700 = vmatmul.mubr.msk.f32.gmra.mrb[28].mxu0 %vm23279_vm12, %v3982_v36  ;;  %vm23283_vm12 = vmmov %vm23272_vm4  ;;  %v23312_v36 = vld [vmem:[#allocation137_spill] sm:$0xff] }
 0x206   : > { %13702 = vmatprep.mubr.msk.f32.mxu0 %vm23272_vm4, %v3983_v52  ;;  %vm23284_vm4 = vnez %v22597_v9  ;;  %v23314_v52 = vld [vmem:[#allocation132_spill] sm:$0xff] }
 0x207   : > { %vm21847_vm13 = vmand %vm17189_vm11, %vm23284_vm4 }
 0x208   : > { %v4442_v63 = vsel %vm21847_vm13, %v16442_v55, 0.0  ;;  %vm23292_vm13 = vnez %v23291_v39  ;;  %vm23294_vm4 = vmmov %vm23285_vm1 }
 0x209   : > { %13703 = vmatmul.mubr.msk.f32.gmra.mrb[30].mxu0 %vm23282_vm9, %v3984_v16  ;;  %vm23286_vm9 = vmmov %vm23285_vm1 }
 0x20a   : > { %13707 = vmatprep.mubr.msk.f32.mxu0 %vm23283_vm12, %v4439_v19  ;;  %vm23287_vm12 = vnez %v22604_v14  ;;  %vm21856_vm11 = vmand %vm23293_vm5, %vm23292_vm13  ;;  %v23320_v19 = vld [vmem:[#allocation140_spill] sm:$0xff]  ;;  %v23422_v14 = vld [vmem:[#allocation42_spill] sm:$0xff] }
 0x20b   : > { %vm21853_vm3 = vmand %vm23288_vm14, %vm23287_vm12 }
 0x20c   : > { %v4444_v48 = vsel %vm21853_vm3, %v16472_v1, 0.0  ;;  %v4446_v1 = vsel %vm21856_vm11, %v23296_v7, 0.0  ;;  %vm23300_vm3 = vnez %v23299_v17  ;;  %vm23302_vm12 = vmmov %vm23294_vm4  ;;  %vm23307_vm11 = vnez %v23306_v12  ;;  %v23329_v7 = vld [vmem:[#allocation138_spill] sm:$0xff] }
 0x20d   : > { %13708 = vmatmul.mubr.msk.f32.vlgmr.msra.gmra.mrb[0].mxu0 %vm23285_vm1, %v4440_v45  ;;  %vm23309_vm13 = vmmov %vm23294_vm4  ;;  %v23418_v17 = vld [vmem:[#allocation38_spill] sm:$0xff] }
 0x20e   : > { %13710 = vmatprep.mubr.msk.f32.mxu0 %vm23286_vm9, %v4441_v15  ;;  %vm23290_vm9 = vnez %v22994_v25  ;;  %v23322_v15 = vld [vmem:[#allocation135_spill] sm:$0xff] }
 0x20f   : > { %v4445_v55 = vsel %vm23290_vm9, %v16481_v49, 0.0  ;;  %vm23301_vm9 = vnez %v23037_v22 }
 0x210   : > { %vm21859_vm14 = vmand %vm23301_vm9, %vm23300_vm3 }
 0x211   : > { %13711 = vmatmul.mubr.msk.f32.gmra.mrb[2].mxu0 %vm23289_vm8, %v4442_v63  ;;  %vm23295_vm8 = vmmov %vm23285_vm1  ;;  %v4448_v33 = vsel %vm21859_vm14, %v23303_v21, 0.0  ;;  %vm23315_vm14 = vnez %v23314_v52  ;;  %v23326_v63 = vld [vmem:[#allocation142_spill] sm:$0xff] }
 0x212   : > { %13713 = vmatprep.mubr.msk.f32.mxu0 %vm23285_vm1, %v4443_v23  ;;  %vm23298_vm1 = vnez %v23013_v0  ;;  %v23414_v52 = vld [vmem:[#allocation34_spill] sm:$0xff] }
 0x213   : > { %v4447_v49 = vsel %vm23298_vm1, %v23297_v44, 0.0  ;;  %vm23308_vm1 = vnez %v23053_v61 }
 0x214   : > { %vm21862_vm5 = vmand %vm23308_vm1, %vm23307_vm11 }
 0x215   : > { %13714 = vmatmul.mubr.msk.f32.gmra.mrb[4].mxu0 %vm23294_vm4, %v4444_v48  ;;  %v4450_v11 = vsel %vm21862_vm5, %v23311_v5, 0.0  ;;  %vm23323_vm5 = vnez %v23322_v15  ;;  %v23327_v48 = vld [vmem:[#allocation55_spill] sm:$0xff]  ;;  %v23343_v5 = vld [vmem:[#allocation97_spill] sm:$0xff] }
 0x216   : > { %13716 = vmatprep.mubr.msk.f32.mxu0 %vm23295_vm8, %v4445_v55  ;;  %vm23305_vm8 = vnez %v23029_v6 }
 0x217   : > { %v4449_v20 = vsel %vm23305_vm8, %v23304_v10, 0.0  ;;  %vm23316_vm8 = vnez %v23069_v35  ;;  %v23342_v10 = vld [vmem:[#allocation62_spill] sm:$0xff] }
 0x218   : > { %vm21865_vm9 = vmand %vm23316_vm8, %vm23315_vm14 }
 0x219   : > { %13717 = vmatmul.mubr.msk.f32.gmra.mrb[6].mxu0 %vm23302_vm12, %v4446_v1  ;;  %vm23310_vm12 = vmmov %vm23294_vm4  ;;  %v4452_v16 = vsel %vm21865_vm9, %v23319_v54, 0.0  ;;  %vm23330_vm9 = vnez %v23329_v7  ;;  %v23334_v1 = vld [vmem:[#allocation57_spill] sm:$0xff]  ;;  %v23410_v7 = vld [vmem:[#allocation30_spill] sm:$0xff] }
 0x21a   : > { %13719 = vmatprep.mubr.msk.f32.mxu0 %vm23294_vm4, %v4447_v49  ;;  %vm23313_vm4 = vnez %v23045_v60  ;;  %vm23317_vm3 = vmmov %vm23310_vm12  ;;  %v23335_v49 = vld [vmem:[#allocation59_spill] sm:$0xff] }
 0x21b   : > { %v4451_v37 = vsel %vm23313_vm4, %v23312_v36, 0.0  ;;  %vm23324_vm4 = vnez %v23085_v2  ;;  %vm23325_vm11 = vmmov %vm23317_vm3  ;;  %v23345_v36 = vld [vmem:[#allocation143_spill] sm:$0xff] }
 0x21c   : > { %vm21868_vm1 = vmand %vm23324_vm4, %vm23323_vm5 }
 0x21d   : > { %13720 = vmatmul.mubr.msk.f32.gmra.mrb[8].mxu0 %vm23309_vm13, %v4448_v33  ;;  %vm23318_vm13 = vmmov %vm23317_vm3  ;;  %v4454_v23 = vsel %vm21868_vm1, %v23326_v63, 0.0  ;;  %v23337_v33 = vld [vmem:[#allocation141_spill] sm:$0xff]  ;;  %v23357_v63 = vld [vmem:[#allocation107_spill] sm:$0xff] }
 0x21e   : > { %13722 = vmatprep.mubr.msk.f32.mxu0 %vm23310_vm12, %v4449_v20  ;;  %vm23321_vm12 = vnez %v23061_v31  ;;  %vm23332_vm14 = vmmov %vm23317_vm3  ;;  %vm23338_vm1 = vnez %v23337_v33 }
 0x21f   : > { %v4453_v45 = vsel %vm23321_vm12, %v23320_v19, 0.0  ;;  %vm23331_vm12 = vnez %v23100_v3 }
 0x220   : > { %vm21871_vm8 = vmand %vm23331_vm12, %vm23330_vm9 }
 0x221   : > { %13723 = vmatmul.mubr.msk.f32.gmra.mrb[10].mxu0 %vm23317_vm3, %v4450_v11  ;;  %v4456_v44 = vsel %vm21871_vm8, %v23334_v1, 0.0  ;;  %vm23346_vm8 = vnez %v23345_v36  ;;  %v23360_v1 = vld [vmem:[#allocation145_spill] sm:$0xff]  ;;  %v23406_v36 = vld [vmem:[#allocation26_spill] sm:$0xff] }
 0x222   : > { %13725 = vmatprep.mubr.msk.f32.mxu0 %vm23318_vm13, %v4451_v37  ;;  %vm23328_vm13 = vnez %v23077_v30  ;;  %v23349_v37 = vld [vmem:[#allocation100_spill] sm:$0xff] }
 0x223   : > { %v4455_v55 = vsel %vm23328_vm13, %v23327_v48, 0.0  ;;  %vm23339_vm13 = vnez %v23115_v26  ;;  %v23358_v48 = vld [vmem:[#allocation148_spill] sm:$0xff] }
 0x224   : > { %vm21874_vm4 = vmand %vm23339_vm13, %vm23338_vm1 }
 0x225   : > { %13726 = vmatmul.mubr.msk.f32.gmra.mrb[12].mxu0 %vm23325_vm11, %v4452_v16  ;;  %vm23333_vm11 = vmmov %vm23317_vm3  ;;  %v4458_v20 = vsel %vm21874_vm4, %v23342_v10, 0.0  ;;  %v23350_v16 = vld [vmem:[#allocation146_spill] sm:$0xff] }
 0x226   : > { %13728 = vmatprep.mubr.msk.f32.mxu0 %vm23317_vm3, %v4453_v45  ;;  %vm23336_vm3 = vnez %v23093_v28  ;;  %vm23340_vm5 = vmmov %vm23333_vm11  ;;  %v23352_v45 = vld [vmem:[#allocation144_spill] sm:$0xff] }
 0x227   : > { %v4457_v21 = vsel %vm23336_vm3, %v23335_v49, 0.0  ;;  %vm23347_vm3 = vnez %v23131_v42  ;;  %vm23348_vm9 = vmmov %vm23340_vm5  ;;  %vm23353_vm4 = vnez %v23352_v45 }
 0x228   : > { %vm21877_vm12 = vmand %vm23347_vm3, %vm23346_vm8  ;;  %vm23415_vm8 = vnez %v23414_v52 }
 0x229   : > { %13729 = vmatmul.mubr.msk.f32.gmra.mrb[14].mxu0 %vm23332_vm14, %v4454_v23  ;;  %vm23341_vm14 = vmmov %vm23340_vm5  ;;  %v4460_v54 = vsel %vm21877_vm12, %v23349_v37, 0.0  ;;  %vm23361_vm12 = vnez %v23360_v1  ;;  %v23370_v37 = vld [vmem:[#allocation11_spill] sm:$0xff]  ;;  %v23402_v1 = vld [vmem:[#allocation22_spill] sm:$0xff] }
 0x22a   : > { %13731 = vmatprep.mubr.msk.f32.mxu0 %vm23333_vm11, %v4455_v55  ;;  %vm23344_vm11 = vnez %v23107_v43  ;;  %vm23355_vm1 = vmmov %vm23340_vm5 }
 0x22b   : > { %v4459_v11 = vsel %vm23344_vm11, %v23343_v5, 0.0  ;;  %vm23354_vm11 = vnez %v23147_v32  ;;  %vm23362_vm3 = vmmov %vm23355_vm1  ;;  %v23369_v5 = vld [vmem:[#allocation153_spill] sm:$0xff] }
 0x22c   : > { %vm21879_vm13 = vmand %vm23354_vm11, %vm23353_vm4  ;;  %vm23403_vm11 = vnez %v23402_v1 }
 0x22d   : > { %13732 = vmatmul.mubr.msk.f32.gmra.mrb[16].mxu0 %vm23340_vm5, %v4456_v44  ;;  %v4462_v23 = vsel %vm21879_vm13, %v23357_v63, 0.0  ;;  %v23363_v44 = vld [vmem:[#allocation150_spill] sm:$0xff] }
 0x22e   : > { %13734 = vmatprep.mubr.msk.f32.mxu0 %vm23341_vm14, %v4457_v21  ;;  %vm23351_vm14 = vnez %v23123_v41  ;;  %v23364_v21 = vld [vmem:[#allocation151_spill] sm:$0xff] }
 0x22f   : > { %v4461_v19 = vsel %vm23351_vm14, %v23350_v16, 0.0  ;;  %vm21880_vm14 = vmand %vm23270_vm7, %vm23361_vm12  ;;  %v4465_v10 = vsel %vm23271_vm2, %v23364_v21, 0.0  ;;  %v23371_v16 = vld [vmem:[#allocation149_spill] sm:$0xff]  ;;  %vm23411_vm12 = vnez %v23410_v7 }
 0x230   : > { %v4464_v49 = vsel %vm21880_vm14, %v23363_v44, 0.0  ;;  %vm23373_vm14 = vnez %v23193_v47  ;;  %v23383_v44 = vld [vmem:[#allocation125_spill] sm:$0xff] }
 0x231   : > { %13735 = vmatmul.mubr.msk.f32.gmra.mrb[18].mxu0 %vm23348_vm9, %v4458_v20  ;;  %vm23356_vm9 = vmmov %vm23355_vm1  ;;  %v23365_v20 = vld [vmem:[#allocation147_spill] sm:$0xff] }
 0x232   : > { %13737 = vmatprep.mubr.msk.f32.mxu0 %vm23340_vm5, %v4459_v11  ;;  %vm23359_vm5 = vnez %v23139_v59 }
 0x233   : > { %v4463_v55 = vsel %vm23359_vm5, %v23358_v48, 0.0  ;;  %vm23367_vm5 = vmmov %vm23355_vm1 }
 0x235   : > { %13738 = vmatmul.mubr.msk.f32.gmra.mrb[20].mxu0 %vm23355_vm1, %v4460_v54  ;;  %v4467_v54 = vsel %vm23275_vm0, %v23370_v37, 0.0 }
 0x236   : > { %13740 = vmatprep.mubr.msk.f32.mxu0 %vm23356_vm9, %v4461_v19  ;;  %vm23366_vm9 = vnez %v23365_v20  ;;  %v23376_v19 = vld [vmem:[#allocation122_spill] sm:$0xff] }
 0x237   : > { %vm21883_vm13 = vmand %vm23274_vm10, %vm23366_vm9 }
 0x238   : > { %v4466_v11 = vsel %vm21883_vm13, %v23369_v5, 0.0  ;;  %vm23380_vm13 = vnez %v23210_v38 }
 0x239   : > { %13741 = vmatmul.mubr.msk.f32.gmra.mrb[22].mxu0 %vm23362_vm3, %v4462_v23  ;;  %vm23368_vm3 = vmmov %vm23355_vm1  ;;  %v23377_v23 = vld [vmem:[#allocation123_spill] sm:$0xff] }
 0x23a   : > { %13743 = vmatprep.mubr.msk.f32.mxu0 %vm23355_vm1, %v4463_v55  ;;  %vm23372_vm1 = vnez %v23371_v16  ;;  %vm23374_vm7 = vmmov %vm23368_vm3  ;;  %v4469_v48 = vsel %vm17533_vm15, %v23377_v23, 0.0  ;;  %v23378_v55 = vld [vmem:[#allocation152_spill] sm:$0xff] }
 0x23b   : > { %vm21953_vm2 = vmand %vm23373_vm14, %vm23372_vm1  ;;  %vm23407_vm1 = vnez %v23406_v36 }
 0x23c   : > { %v4468_v63 = vsel %vm21953_vm2, %v23376_v19, 0.0  ;;  %v12018_v19 = vld [vmem:[%s21229_s3 + $0x8] sm:$0xff] }
 0x23d   : > { %13744 = vmatmul.mubr.msk.f32.gmra.mrb[24].mxu0 %vm23367_vm5, %v4464_v49  ;;  %vm23375_vm5 = vmmov %vm23368_vm3  ;;  %13755 = vmatprep.subr.mxu1 %v12018_v19 }
 0x23e   : > { %13746 = vmatprep.mubr.msk.f32.mxu0 %vm23368_vm3, %v4465_v10  ;;  %vm23379_vm3 = vnez %v23378_v55  ;;  %vm23381_vm10 = vmmov %vm23375_vm5  ;;  %13756 = vmatpush3.msra.mxu1 %v12018_v19 }
 0x23f   : > { %vm21952_vm0 = vmand %vm23380_vm13, %vm23379_vm3 }
 0x240   : > { %v4470_v49 = vsel %vm21952_vm0, %v23383_v44, 0.0 }
 0x241   : > { %13747 = vmatmul.mubr.msk.f32.gmra.mrb[26].mxu0 %vm23374_vm7, %v4466_v11  ;;  %vm23382_vm7 = vmmov %vm23375_vm5 }
 0x242   : > { %13749 = vmatprep.mubr.msk.f32.mxu0 %vm23375_vm5, %v4467_v54 }
 0x245   : > { %13750 = vmatmul.mubr.msk.f32.gmra.mrb[28].mxu0 %vm23381_vm10, %v4468_v63  ;;  %v4996_v63 = vld [vmem:[%s21229_s3] sm:$0xff]  ;;  %vm22130_vm10 = vcmask 64512  }
 0x246   : > { %13752 = vmatprep.mubr.msk.f32.mxu0 %vm23382_vm7, %v4469_v48  ;;  %13805 = vmatprep.subr.mxu1 %v4996_v63 }
 0x249   : > { %13753 = vmatmul.mubr.msk.f32.gmra.mrb[30].mxu0 %vm23375_vm5, %v4470_v49 }
 0x292   : > { %v13348_v21 = vpop.f32.mrb[0].mxu1 }
 0x293   : > { %v1169_v10 = vpop.f32.mrb[1].mxu1 }
 0x297   : > { %v13351_v5 = vpop.f32.mrb[2].mxu1 }
 0x298   : > { %v1179_v11 = vpop.f32.mrb[3].mxu1 }
 0x29b   : > { %v13354_v37 = vpop.f32.mrb[4].mxu1 }
 0x29c   : > { %v1189_v54 = vpop.f32.mrb[5].mxu1 }
 0x2e0   : > { %v13709_v23 = vpop.f32.mrb[0].mxu0 }
 0x2e1   : > { %v4638_v48 = vpop.f32.mrb[1].mxu0 }
 0x2e4   : > { %v13712_v44 = vpop.f32.mrb[2].mxu0 }
 0x2e5   : > { %v4648_v49 = vpop.f32.mrb[3].mxu0 }
 0x2e8   : > { %v13715_v38 = vpop.f32.mrb[4].mxu0 }
 0x2e9   : > { %v4658_v56 = vpop.f32.mrb[5].mxu0 }
 0x2ec   : > { %v17983_v47 = vpop.f32.mrb[6].mxu0 }
 0x2ed   : > { %v4668_v50 = vpop.f32.mrb[7].mxu0 }
 0x2f0   : > { %v17985_v57 = vpop.f32.mrb[8].mxu0 }
 0x2f1   : > { %v17987_v29 = vpop.f32.mrb[9].mxu0 }
 0x2f4   : > { %v17989_v40 = vpop.f32.mrb[10].mxu0 }
 0x2f5   : > { %v17991_v19 = vpop.f32.mrb[11].mxu0 }
 0x2f8   : > { %v17993_v59 = vpop.f32.mrb[12].mxu0 }
 0x2f9   : > { %v17995_v32 = vpop.f32.mrb[13].mxu0 }
 0x2fc   : > { %v17997_v41 = vpop.f32.mrb[14].mxu0 }
 0x2fd   : > { %v17999_v42 = vpop.f32.mrb[15].mxu0 }
 0x300   : > { %v18001_v43 = vpop.f32.mrb[16].mxu0 }
 0x301   : > { %v18003_v26 = vpop.f32.mrb[17].mxu0 }
 0x304   : > { %v18005_v28 = vpop.f32.mrb[18].mxu0 }
 0x305   : > { %v18007_v3 = vpop.f32.mrb[19].mxu0 }
 0x308   : > { %v18009_v30 = vpop.f32.mrb[20].mxu0 }
 0x309   : > { %v18011_v2 = vpop.f32.mrb[21].mxu0 }
 0x30c   : > { %v18013_v31 = vpop.f32.mrb[22].mxu0 }
 0x30d   : > { %v18015_v35 = vpop.f32.mrb[23].mxu0 }
 0x310   : > { %v18017_v60 = vpop.f32.mrb[24].mxu0 }
 0x311   : > { %v18019_v61 = vpop.f32.mrb[25].mxu0 }
 0x314   : > { %v13748_v6 = vpop.f32.mrb[26].mxu0 }
 0x315   : > { %v18021_v22 = vadd.f32 %v13748_v6, %v13348_v21  ;;  %v4768_v0 = vpop.f32.mrb[27].mxu0  ;;  %v4836_v6 = vadd.f32 %v18032_v34, %v4638_v48  ;;  %v18058_v48 = vld [vmem:[%s21229_s3 + $0x10] sm:$0xff] }
 0x316   : > { %v18023_v53 = vadd.f32 %v4768_v0, %v1169_v10 }
 0x318   : > { %v13751_v25 = vpop.f32.mrb[28].mxu0 }
 0x319   : > { %v18025_v58 = vadd.f32 %v13751_v25, %v13351_v5  ;;  %v4778_v13 = vpop.f32.mrb[29].mxu0  ;;  %v4837_v25 = vadd.f32 %v13709_v23, %v18032_v34 }
 0x31a   : > { %v18027_v51 = vadd.f32 %v4778_v13, %v1179_v11  ;;  %v18040_v13 = vmax.f32 %v4836_v6, 0.0  ;;  %v4838_v11 = vadd.f32 %v18032_v34, %v4648_v49  ;;  %v4840_v6 = vadd.f32 %v18032_v34, %v4658_v56 }
 0x31c   : > { %v13754_v24 = vpop.f32.mrb[30].mxu0  ;;  %23385 = vst [vmem:[#allocation39_spill] sm:$0xff] %v18040_v13  ;;  %v18060_v49 = vmax.f32 %v4838_v11, 0.0  ;;  %v18075_v56 = vmax.f32 %v4840_v6, 0.0 }
 0x31d   : > { %v14530_v4 = vadd.f32 %v13754_v24, %v13354_v37  ;;  %v4788_v55 = vpop.f32.mrb[31].mxu0  ;;  %v23387_v24 = vld [vmem:[#allocation10_spill] sm:$0xff] }
 0x31e   : > { %v14531_v21 = vadd.f32 %v4788_v55, %v1189_v54  ;;  %vm23388_vm7 = vnez %v23387_v24  ;;  %v18048_v55 = vmax.f32 %v4837_v25, 0.0  ;;  %v23390_v54 = vld [vmem:[#allocation12_spill] sm:$0xff]  ;;  %v23394_v25 = vld [vmem:[#allocation15_spill] sm:$0xff] }
 0x31f   : > { %v4867_v0 = vadd.f32 %v14530_v4, %v18032_v34  ;;  %v4839_v4 = vadd.f32 %v13712_v44, %v18032_v34  ;;  %vm23391_vm5 = vnez %v23390_v54  ;;  %vm23395_vm2 = vnez %v23394_v25 }
 0x320   : > { %v4866_v10 = vadd.f32 %v14531_v21, %v18032_v34  ;;  %23389 = vst [vmem:[#allocation99_spill] sm:$0xff] %v18048_v55  ;;  %v23392_v21 = vld [vmem:[#allocation13_spill] sm:$0xff]  ;;  %v5000_v11 = vsel %vm23395_vm2, %v18048_v55, 0.0 }
 0x321   : > { %v18038_v5 = vmax.f32 %v4867_v0, 0.0  ;;  %vm23393_vm0 = vnez %v23392_v21  ;;  %v18069_v0 = vmax.f32 %v4839_v4, 0.0  ;;  %v23608_v21 = vld [vmem:[#allocation124_spill] sm:$0xff] }
 0x322   : > { %v18043_v16 = vmax.f32 %v4866_v10, 0.0  ;;  %v4999_v44 = vsel %vm23393_vm0, %v18040_v13, 0.0  ;;  %v4841_v10 = vadd.f32 %v13715_v38, %v18032_v34  ;;  %v4843_v38 = vadd.f32 %v17983_v47, %v18032_v34 }
 0x323   : > { %23384 = vst [vmem:[#allocation95_spill] sm:$0xff] %v18038_v5  ;;  %v4998_v23 = vsel %vm23391_vm5, %v18038_v5, 0.0  ;;  %v4845_v47 = vadd.f32 %v17985_v57, %v18032_v34  ;;  %v4847_v57 = vadd.f32 %v17989_v40, %v18032_v34  ;;  %v4849_v40 = vadd.f32 %v17993_v59, %v18032_v34 }
 0x324   : > { %23386 = vst [vmem:[#allocation45_spill] sm:$0xff] %v18043_v16  ;;  %v4997_v37 = vsel %vm23388_vm7, %v18043_v16, 0.0  ;;  %v18083_v4 = vmax.f32 %v4841_v10, 0.0  ;;  %v18099_v10 = vmax.f32 %v4843_v38, 0.0  ;;  %v4851_v59 = vadd.f32 %v17997_v41, %v18032_v34 }
 0x325   : > { %13757 = vmatprep.mubr.msk.f32.mxu1 %vm22130_vm10, %v4997_v37  ;;  %v4842_v37 = vadd.f32 %v18032_v34, %v4668_v50  ;;  %v4844_v50 = vadd.f32 %v18032_v34, %v17987_v29  ;;  %v4846_v29 = vadd.f32 %v18032_v34, %v17991_v19  ;;  %v18115_v38 = vmax.f32 %v4845_v47, 0.0 }
 0x326   : > { %13758 = vmatmul.mubr.msk.f32.vlgmr.msra.gmra.mrb[6].mxu1 %vm22130_vm10, %v4998_v23  ;;  %v23396_v23 = vld [vmem:[#allocation16_spill] sm:$0xff]  ;;  %v4848_v19 = vadd.f32 %v18032_v34, %v17995_v32  ;;  %v18131_v47 = vmax.f32 %v4847_v57, 0.0  ;;  %v4850_v32 = vadd.f32 %v18032_v34, %v17999_v42  ;;  %v18147_v57 = vmax.f32 %v4849_v40, 0.0 }
 0x327   : > { %13760 = vmatprep.mubr.msk.f32.mxu1 %vm22130_vm10, %v4999_v44  ;;  %13806 = vmatpush3.msra.mxu1 %v4996_v63  ;;  %vm23397_vm13 = vnez %v23396_v23  ;;  %v23398_v44 = vld [vmem:[#allocation18_spill] sm:$0xff]  ;;  %v18090_v20 = vmax.f32 %v4842_v37, 0.0  ;;  %v5004_v37 = vsel %vm23403_vm11, %v18083_v4, 0.0  ;;  %v18106_v45 = vmax.f32 %v4844_v50, 0.0 }
 0x328   : > { %13855 = vmatprep.subr.mxu1 %v18058_v48  ;;  %v5001_v63 = vsel %vm23397_vm13, %v18060_v49, 0.0  ;;  %vm23399_vm15 = vnez %v23398_v44  ;;  %v5006_v50 = vsel %vm23407_vm1, %v18099_v10, 0.0  ;;  %v18122_v33 = vmax.f32 %v4846_v29, 0.0 }
 0x329   : > { %v5002_v6 = vsel %vm23399_vm15, %v18069_v0, 0.0  ;;  %v5008_v29 = vsel %vm23411_vm12, %v18115_v38, 0.0  ;;  %v18138_v15 = vmax.f32 %v4848_v19, 0.0  ;;  %v5010_v19 = vsel %vm23415_vm8, %v18131_v47, 0.0 }
 0x32a   : > { %13761 = vmatmul.mubr.msk.f32.gmra.mrb[8].mxu1 %vm22130_vm10, %v5000_v11  ;;  %v23400_v11 = vld [vmem:[#allocation20_spill] sm:$0xff]  ;;  %v18154_v12 = vmax.f32 %v4850_v32, 0.0  ;;  %v4852_v42 = vadd.f32 %v18032_v34, %v18003_v26  ;;  %v18163_v40 = vmax.f32 %v4851_v59, 0.0  ;;  %v4853_v41 = vadd.f32 %v18001_v43, %v18032_v34 }
 0x32b   : > { %13763 = vmatprep.mubr.msk.f32.mxu1 %vm22130_vm10, %v5001_v63  ;;  %vm23401_vm14 = vnez %v23400_v11  ;;  %vm23419_vm8 = vnez %v23418_v17  ;;  %v4854_v26 = vadd.f32 %v18032_v34, %v18007_v3  ;;  %v4855_v43 = vadd.f32 %v18005_v28, %v18032_v34 }
 0x32c   : > { %v5003_v63 = vsel %vm23401_vm14, %v18075_v56, 0.0  ;;  %v5012_v32 = vsel %vm23419_vm8, %v18147_v57, 0.0  ;;  %v18170_v39 = vmax.f32 %v4852_v42, 0.0  ;;  %v18179_v59 = vmax.f32 %v4853_v41, 0.0 }
 0x32d   : > { %vm23423_vm8 = vnez %v23422_v14  ;;  %v18186_v9 = vmax.f32 %v4854_v26, 0.0  ;;  %v4856_v3 = vadd.f32 %v18032_v34, %v18011_v2  ;;  %v18195_v41 = vmax.f32 %v4855_v43, 0.0 }
 0x32e   : > { %13764 = vmatmul.mubr.msk.f32.gmra.mrb[10].mxu1 %vm22130_vm10, %v5002_v6  ;;  %v23404_v6 = vld [vmem:[#allocation24_spill] sm:$0xff]  ;;  %v5014_v42 = vsel %vm23423_vm8, %v18163_v40, 0.0  ;;  %v4857_v28 = vadd.f32 %v18009_v30, %v18032_v34  ;;  %vm23427_vm8 = vnez %v23426_v8  ;;  %v4858_v2 = vadd.f32 %v18032_v34, %v18015_v35  ;;  %v23430_v8 = vld [vmem:[#allocation53_spill] sm:$0xff] }
 0x32f   : > { %13766 = vmatprep.mubr.msk.f32.mxu1 %vm22130_vm10, %v5003_v63  ;;  %vm23405_vm3 = vnez %v23404_v6  ;;  %v5016_v26 = vsel %vm23427_vm8, %v18179_v59, 0.0  ;;  %v18202_v14 = vmax.f32 %v4856_v3, 0.0  ;;  %v4859_v30 = vadd.f32 %v18013_v31, %v18032_v34 }
 0x330   : > { %v5005_v63 = vsel %vm23405_vm3, %v18090_v20, 0.0  ;;  %v18211_v43 = vmax.f32 %v4857_v28, 0.0  ;;  %vm23431_vm8 = vnez %v23430_v8  ;;  %v4860_v35 = vadd.f32 %v18032_v34, %v18019_v61  ;;  %v23434_v8 = vld [vmem:[#allocation58_spill] sm:$0xff] }
 0x331   : > { %v5018_v3 = vsel %vm23431_vm8, %v18195_v41, 0.0  ;;  %v18227_v28 = vmax.f32 %v4859_v30, 0.0  ;;  %v4861_v31 = vadd.f32 %v18017_v60, %v18032_v34  ;;  %vm23435_vm8 = vnez %v23434_v8  ;;  %v23438_v8 = vld [vmem:[#allocation63_spill] sm:$0xff] }
 0x332   : > { %13767 = vmatmul.mubr.msk.f32.gmra.mrb[12].mxu1 %vm22130_vm10, %v5004_v37  ;;  %v23408_v37 = vld [vmem:[#allocation28_spill] sm:$0xff]  ;;  %v4862_v61 = vadd.f32 %v18023_v53, %v18032_v34  ;;  %v4863_v60 = vadd.f32 %v18021_v22, %v18032_v34 }
 0x333   : > { %13769 = vmatprep.mubr.msk.f32.mxu1 %vm22130_vm10, %v5005_v63  ;;  %vm23409_vm9 = vnez %v23408_v37  ;;  %v18243_v30 = vmax.f32 %v4861_v31, 0.0 }
 0x334   : > { %v5007_v63 = vsel %vm23409_vm9, %v18106_v45, 0.0  ;;  %v18261_v22 = vmax.f32 %v4863_v60, 0.0  ;;  %v23448_v60 = vld [vmem:[#allocation119_spill] sm:$0xff] }
 0x336   : > { %13770 = vmatmul.mubr.msk.f32.gmra.mrb[14].mxu1 %vm22130_vm10, %v5006_v50  ;;  %v23412_v50 = vld [vmem:[#allocation32_spill] sm:$0xff]  ;;  %23442 = vst [vmem:[#allocation43_spill] sm:$0xff] %v18261_v22 }
 0x337   : > { %13772 = vmatprep.mubr.msk.f32.mxu1 %vm22130_vm10, %v5007_v63  ;;  %vm23413_vm4 = vnez %v23412_v50 }
 0x338   : > { %v5009_v63 = vsel %vm23413_vm4, %v18122_v33, 0.0 }
 0x33a   : > { %13773 = vmatmul.mubr.msk.f32.gmra.mrb[16].mxu1 %vm22130_vm10, %v5008_v29  ;;  %v23416_v29 = vld [vmem:[#allocation36_spill] sm:$0xff] }
 0x33b   : > { %13775 = vmatprep.mubr.msk.f32.mxu1 %vm22130_vm10, %v5009_v63  ;;  %vm23417_vm6 = vnez %v23416_v29 }
 0x33c   : > { %v5011_v63 = vsel %vm23417_vm6, %v18138_v15, 0.0 }
 0x33e   : > { %13776 = vmatmul.mubr.msk.f32.gmra.mrb[18].mxu1 %vm22130_vm10, %v5010_v19  ;;  %v23420_v19 = vld [vmem:[#allocation40_spill] sm:$0xff] }
 0x33f   : > { %13778 = vmatprep.mubr.msk.f32.mxu1 %vm22130_vm10, %v5011_v63  ;;  %vm23421_vm6 = vnez %v23420_v19 }
 0x340   : > { %v5013_v63 = vsel %vm23421_vm6, %v18154_v12, 0.0 }
 0x342   : > { %13779 = vmatmul.mubr.msk.f32.gmra.mrb[20].mxu1 %vm22130_vm10, %v5012_v32  ;;  %v23424_v32 = vld [vmem:[#allocation44_spill] sm:$0xff] }
 0x343   : > { %13781 = vmatprep.mubr.msk.f32.mxu1 %vm22130_vm10, %v5013_v63  ;;  %vm23425_vm6 = vnez %v23424_v32  ;;  %v18218_v32 = vmax.f32 %v4858_v2, 0.0  ;;  %v5020_v2 = vsel %vm23435_vm8, %v18211_v43, 0.0  ;;  %vm23439_vm8 = vnez %v23438_v8 }
 0x344   : > { %v5015_v63 = vsel %vm23425_vm6, %v18170_v39, 0.0  ;;  %v5022_v53 = vsel %vm23439_vm8, %v18227_v28, 0.0  ;;  %vm23444_vm8 = vnez %v23187_v27 }
 0x346   : > { %13782 = vmatmul.mubr.msk.f32.gmra.mrb[22].mxu1 %vm22130_vm10, %v5014_v42  ;;  %v23428_v42 = vld [vmem:[#allocation50_spill] sm:$0xff] }
 0x347   : > { %13784 = vmatprep.mubr.msk.f32.mxu1 %vm22130_vm10, %v5015_v63  ;;  %vm23429_vm6 = vnez %v23428_v42  ;;  %v18234_v42 = vmax.f32 %v4860_v35, 0.0  ;;  %v4865_v35 = vadd.f32 %v18025_v58, %v18032_v34 }
 0x348   : > { %v5017_v63 = vsel %vm23429_vm6, %v18186_v9, 0.0 }
 0x349   : > { %v18263_v58 = vmax.f32 %v4865_v35, 0.0 }
 0x34a   : > { %13785 = vmatmul.mubr.msk.f32.gmra.mrb[24].mxu1 %vm22130_vm10, %v5016_v26  ;;  %v23432_v26 = vld [vmem:[#allocation56_spill] sm:$0xff] }
 0x34b   : > { %13787 = vmatprep.mubr.msk.f32.mxu1 %vm22130_vm10, %v5017_v63  ;;  %vm23433_vm6 = vnez %v23432_v26  ;;  %v18252_v26 = vmax.f32 %v4862_v61, 0.0  ;;  %23443 = vst [vmem:[#allocation51_spill] sm:$0xff] %v18263_v58  ;;  %v5024_v61 = vsel %vm23444_vm8, %v18243_v30, 0.0  ;;  %vm23450_vm8 = vnez %v23214_v18  ;;  %v23455_v18 = vld [vmem:[#allocation61_spill] sm:$0xff] }
 0x34c   : > { %v5019_v63 = vsel %vm23433_vm6, %v18202_v14, 0.0 }
 0x34d   : > { %23440 = vst [vmem:[#allocation102_spill] sm:$0xff] %v18252_v26 }
 0x34e   : > { %13788 = vmatmul.mubr.msk.f32.gmra.mrb[26].mxu1 %vm22130_vm10, %v5018_v3  ;;  %v23436_v3 = vld [vmem:[#allocation60_spill] sm:$0xff] }
 0x34f   : > { %13790 = vmatprep.mubr.msk.f32.mxu1 %vm22130_vm10, %v5019_v63  ;;  %vm23437_vm6 = vnez %v23436_v3 }
 0x350   : > { %v5021_v63 = vsel %vm23437_vm6, %v18218_v32, 0.0  ;;  %vm23441_vm6 = vnez %v23185_v62 }
 0x351   : > { %v5023_v31 = vsel %vm23441_vm6, %v18234_v42, 0.0  ;;  %vm23449_vm6 = vnez %v23448_v60 }
 0x352   : > { %13791 = vmatmul.mubr.msk.f32.gmra.mrb[28].mxu1 %vm22130_vm10, %v5020_v2  ;;  %v4864_v2 = vadd.f32 %v18027_v51, %v18032_v34  ;;  %v23446_v34 = vld [vmem:[#allocation110_spill] sm:$0xff]  ;;  %v5026_v35 = vsel %vm23449_vm6, %v18261_v22, 0.0  ;;  %vm23454_vm6 = vnez %v23216_v46 }
 0x353   : > { %13793 = vmatprep.mubr.msk.f32.mxu1 %vm22130_vm10, %v5021_v63  ;;  %vm23447_vm4 = vnez %v23446_v34  ;;  %v5028_v60 = vsel %vm23454_vm6, %v18263_v58, 0.0 }
 0x354   : > { %v18268_v63 = vmax.f32 %v4864_v2, 0.0  ;;  %v5025_v51 = vsel %vm23447_vm4, %v18252_v26, 0.0 }
 0x356   : > { %13794 = vmatmul.mubr.msk.f32.gmra.mrb[30].mxu1 %vm22130_vm10, %v5022_v53  ;;  %23445 = vst [vmem:[#allocation106_spill] sm:$0xff] %v18268_v63  ;;  %v4930_v53 = vrot.slane %v18043_v16, 7  ;;  %v5027_v2 = vsel %vm23450_vm8, %v18268_v63, 0.0  ;;  %vm23456_vm8 = vnez %v23455_v18 }
 0x357   : > { %13796 = vmatprep.mubr.msk.f32.mxu1 %vm22130_vm10, %v5023_v31  ;;  %v21988_v31 = vrot.slane %v18263_v58, 7  ;;  %vm23457_vm12 = vmand %vm23388_vm7, %vm23456_vm8 }
 0x35a   : > { %13797 = vmatmul.mubr.msk.f32.gmra.mrb[32].mxu1 %vm22130_vm10, %v5024_v61  ;;  %v4931_v61 = vrot.slane %v18038_v5, 7 }
 0x35b   : > { %13799 = vmatprep.mubr.msk.f32.mxu1 %vm22130_vm10, %v5025_v51  ;;  %v23451_v51 = vld [vmem:[#allocation2_spill] sm:$0xff] }
 0x35c   : > { %vm23452_vm4 = vcmp.lt.s32.totalorder %v23451_v51, 1 }
 0x35d   : > { %v18290_v16 = vsel %vm23452_vm4, %v21988_v31, %v4930_v53  ;;  %vm23458_vm9 = vmmov %vm23452_vm4  ;;  %v4901_v31 = vrot.slane %v18048_v55, 7 }
 0x35e   : > { %13800 = vmatmul.mubr.msk.f32.gmra.mrb[34].mxu1 %vm22130_vm10, %v5026_v35  ;;  %23453 = vst [vmem:[#allocation109_spill] sm:$0xff] %v18290_v16  ;;  %v4900_v35 = vrot.slane %v18040_v13, 7  ;;  %v18305_v5 = vsel %vm23458_vm9, %v4930_v53, %v4931_v61  ;;  %v23461_v53 = vld [vmem:[#allocation65_spill] sm:$0xff]  ;;  %vm23465_vm8 = vmmov %vm23452_vm4 }
 0x35f   : > { %13802 = vmatprep.mubr.msk.f32.mxu1 %vm22130_vm10, %v5027_v2  ;;  %v4964_v2 = vsel %vm23457_vm12, %v18290_v16, 0.0  ;;  %23459 = vst [vmem:[#allocation48_spill] sm:$0xff] %v18305_v5  ;;  %v4965_v18 = vsel %vm23391_vm5, %v18305_v5, 0.0  ;;  %v18320_v16 = vld [vmem:[%s21229_s3 + $0x18] sm:$0xff]  ;;  %vm23462_vm12 = vnez %v23461_v53  ;;  %v4903_v5 = vrot.slane %v18069_v0, 7 }
 0x360   : > { %v18311_v46 = vsel %vm23452_vm4, %v4931_v61, %v4900_v35  ;;  %vm23463_vm9 = vmand %vm23393_vm0, %vm23462_vm12 }
 0x361   : > { %23460 = vst [vmem:[#allocation92_spill] sm:$0xff] %v18311_v46  ;;  %v4966_v61 = vsel %vm23463_vm9, %v18311_v46, 0.0  ;;  %vm23471_vm12 = vmmov %vm23465_vm8  ;;  %v23522_v46 = vld [vmem:[#allocation42_spill] sm:$0xff] }
 0x362   : > { %13803 = vmatmul.mubr.msk.f32.gmra.mrb[36].mxu1 %vm22130_vm10, %v5028_v60  ;;  %v4902_v60 = vrot.slane %v18060_v49, 7 }
 0x363   : > { %13807 = vmatprep.mubr.msk.f32.mxu1 %vm22130_vm10, %v4964_v2  ;;  %v18331_v2 = vsel %vm23452_vm4, %v4900_v35, %v4901_v31  ;;  %v23467_v35 = vld [vmem:[#allocation68_spill] sm:$0xff] }
 0x364   : > { %23464 = vst [vmem:[#allocation54_spill] sm:$0xff] %v18331_v2  ;;  %v18337_v54 = vsel %vm23465_vm8, %v4901_v31, %v4902_v60  ;;  %v4967_v53 = vsel %vm23395_vm2, %v18331_v2, 0.0  ;;  %vm23468_vm9 = vnez %v23467_v35 }
 0x365   : > { %23466 = vst [vmem:[#allocation98_spill] sm:$0xff] %v18337_v54  ;;  %vm23469_vm4 = vmand %vm23397_vm13, %vm23468_vm9 }
 0x366   : > { %13808 = vmatmul.mubr.msk.f32.vlgmr.msra.gmra.mrb[6].mxu1 %vm22130_vm10, %v4965_v18  ;;  %v4904_v18 = vrot.slane %v18075_v56, 7  ;;  %v4968_v31 = vsel %vm23469_vm4, %v18337_v54, 0.0  ;;  %vm23476_vm9 = vmmov %vm23471_vm12 }
 0x367   : > { %13810 = vmatprep.mubr.msk.f32.mxu1 %vm22130_vm10, %v4966_v61  ;;  %13856 = vmatpush3.msra.mxu1 %v18058_v48  ;;  %v18354_v61 = vsel %vm23465_vm8, %v4902_v60, %v4903_v5  ;;  %v4905_v48 = vrot.slane %v18083_v4, 7  ;;  %v23473_v60 = vld [vmem:[#allocation71_spill] sm:$0xff] }
 0x368   : > { %13905 = vmatprep.subr.mxu1 %v18320_v16  ;;  %23470 = vst [vmem:[#allocation101_spill] sm:$0xff] %v18354_v61  ;;  %v18360_v2 = vsel %vm23471_vm12, %v4903_v5, %v4904_v18  ;;  %v4969_v35 = vsel %vm23399_vm15, %v18354_v61, 0.0  ;;  %vm23474_vm4 = vnez %v23473_v60  ;;  %v4907_v5 = vrot.slane %v18099_v10, 7  ;;  %vm23478_vm12 = vmmov %vm23476_vm9 }
 0x369   : > { %23472 = vst [vmem:[#allocation105_spill] sm:$0xff] %v18360_v2  ;;  %vm23475_vm8 = vmand %vm23401_vm14, %vm23474_vm4 }
 0x36a   : > { %13811 = vmatmul.mubr.msk.f32.gmra.mrb[8].mxu1 %vm22130_vm10, %v4967_v53  ;;  %v4906_v53 = vrot.slane %v18090_v20, 7  ;;  %v4970_v54 = vsel %vm23475_vm8, %v18360_v2, 0.0  ;;  %vm23483_vm4 = vmmov %vm23478_vm12 }
 0x36b   : > { %13813 = vmatprep.mubr.msk.f32.mxu1 %vm22130_vm10, %v4968_v31  ;;  %v18375_v31 = vsel %vm23476_vm9, %v4904_v18, %v4905_v48  ;;  %v23480_v18 = vld [vmem:[#allocation74_spill] sm:$0xff] }
 0x36c   : > { %23477 = vst [vmem:[#allocation103_spill] sm:$0xff] %v18375_v31  ;;  %v18381_v61 = vsel %vm23478_vm12, %v4905_v48, %v4906_v53  ;;  %v4971_v60 = vsel %vm23403_vm11, %v18375_v31, 0.0  ;;  %vm23481_vm9 = vnez %v23480_v18  ;;  %v4909_v48 = vrot.slane %v18115_v38, 7  ;;  %vm23485_vm12 = vmmov %vm23483_vm4 }
 0x36d   : > { %23479 = vst [vmem:[#allocation108_spill] sm:$0xff] %v18381_v61  ;;  %vm23482_vm8 = vmand %vm23405_vm3, %vm23481_vm9 }
 0x36e   : > { %13814 = vmatmul.mubr.msk.f32.gmra.mrb[10].mxu1 %vm22130_vm10, %v4969_v35  ;;  %v4908_v35 = vrot.slane %v18106_v45, 7  ;;  %v4972_v2 = vsel %vm23482_vm8, %v18381_v61, 0.0  ;;  %vm23491_vm3 = vmmov %vm23485_vm12 }
 0x36f   : > { %13816 = vmatprep.mubr.msk.f32.mxu1 %vm22130_vm10, %v4970_v54  ;;  %v18396_v54 = vsel %vm23483_vm4, %v4906_v53, %v4907_v5  ;;  %vm23487_vm4 = vnez %v23408_v37  ;;  %v23488_v53 = vld [vmem:[#allocation77_spill] sm:$0xff] }
 0x370   : > { %23484 = vst [vmem:[#allocation66_spill] sm:$0xff] %v18396_v54  ;;  %v18402_v31 = vsel %vm23485_vm12, %v4907_v5, %v4908_v35  ;;  %v4973_v18 = vsel %vm23407_vm1, %v18396_v54, 0.0  ;;  %vm23489_vm8 = vnez %v23488_v53  ;;  %v4911_v5 = vrot.slane %v18131_v47, 7  ;;  %vm23493_vm12 = vmmov %vm23491_vm3 }
 0x371   : > { %23486 = vst [vmem:[#allocation67_spill] sm:$0xff] %v18402_v31  ;;  %vm23490_vm9 = vmand %vm23487_vm4, %vm23489_vm8  ;;  %vm23495_vm1 = vnez %v23410_v7 }
 0x372   : > { %13817 = vmatmul.mubr.msk.f32.gmra.mrb[12].mxu1 %vm22130_vm10, %v4971_v60  ;;  %v4910_v60 = vrot.slane %v18122_v33, 7  ;;  %v4974_v61 = vsel %vm23490_vm9, %v18402_v31, 0.0  ;;  %vm23500_vm4 = vmmov %vm23493_vm12 }
 0x373   : > { %13819 = vmatprep.mubr.msk.f32.mxu1 %vm22130_vm10, %v4972_v2  ;;  %v18417_v2 = vsel %vm23491_vm3, %v4908_v35, %v4909_v48  ;;  %vm23496_vm3 = vnez %v23412_v50  ;;  %v23497_v35 = vld [vmem:[#allocation80_spill] sm:$0xff] }
 0x374   : > { %23492 = vst [vmem:[#allocation114_spill] sm:$0xff] %v18417_v2  ;;  %v18423_v54 = vsel %vm23493_vm12, %v4909_v48, %v4910_v60  ;;  %v4975_v53 = vsel %vm23495_vm1, %v18417_v2, 0.0  ;;  %vm23498_vm9 = vnez %v23497_v35  ;;  %v4913_v48 = vrot.slane %v18147_v57, 7  ;;  %vm23502_vm12 = vmmov %vm23500_vm4 }
 0x375   : > { %23494 = vst [vmem:[#allocation69_spill] sm:$0xff] %v18423_v54  ;;  %vm23499_vm8 = vmand %vm23496_vm3, %vm23498_vm9  ;;  %vm23504_vm1 = vnez %v23414_v52 }
 0x376   : > { %13820 = vmatmul.mubr.msk.f32.gmra.mrb[14].mxu1 %vm22130_vm10, %v4973_v18  ;;  %v4912_v18 = vrot.slane %v18138_v15, 7  ;;  %v4976_v31 = vsel %vm23499_vm8, %v18423_v54, 0.0  ;;  %vm23509_vm3 = vmmov %vm23502_vm12 }
 0x377   : > { %13822 = vmatprep.mubr.msk.f32.mxu1 %vm22130_vm10, %v4974_v61  ;;  %v18438_v61 = vsel %vm23500_vm4, %v4910_v60, %v4911_v5  ;;  %vm23505_vm4 = vnez %v23416_v29  ;;  %v23506_v60 = vld [vmem:[#allocation83_spill] sm:$0xff] }
 0x378   : > { %23501 = vst [vmem:[#allocation112_spill] sm:$0xff] %v18438_v61  ;;  %v18444_v2 = vsel %vm23502_vm12, %v4911_v5, %v4912_v18  ;;  %v4977_v35 = vsel %vm23504_vm1, %v18438_v61, 0.0  ;;  %vm23507_vm8 = vnez %v23506_v60  ;;  %v4915_v5 = vrot.slane %v18163_v40, 7  ;;  %vm23511_vm12 = vmmov %vm23509_vm3 }
 0x379   : > { %23503 = vst [vmem:[#allocation120_spill] sm:$0xff] %v18444_v2  ;;  %vm23508_vm9 = vmand %vm23505_vm4, %vm23507_vm8  ;;  %vm23513_vm1 = vnez %v23418_v17 }
 0x37a   : > { %13823 = vmatmul.mubr.msk.f32.gmra.mrb[16].mxu1 %vm22130_vm10, %v4975_v53  ;;  %v4914_v53 = vrot.slane %v18154_v12, 7  ;;  %v4978_v54 = vsel %vm23508_vm9, %v18444_v2, 0.0  ;;  %vm23518_vm4 = vmmov %vm23511_vm12 }
 0x37b   : > { %13825 = vmatprep.mubr.msk.f32.mxu1 %vm22130_vm10, %v4976_v31  ;;  %v18459_v31 = vsel %vm23509_vm3, %v4912_v18, %v4913_v48  ;;  %vm23514_vm3 = vnez %v23420_v19  ;;  %v23515_v18 = vld [vmem:[#allocation86_spill] sm:$0xff] }
 0x37c   : > { %23510 = vst [vmem:[#allocation118_spill] sm:$0xff] %v18459_v31  ;;  %v18465_v61 = vsel %vm23511_vm12, %v4913_v48, %v4914_v53  ;;  %v4979_v60 = vsel %vm23513_vm1, %v18459_v31, 0.0  ;;  %vm23516_vm9 = vnez %v23515_v18  ;;  %v4917_v48 = vrot.slane %v18179_v59, 7  ;;  %vm23520_vm12 = vmmov %vm23518_vm4 }
 0x37d   : > { %23512 = vst [vmem:[#allocation64_spill] sm:$0xff] %v18465_v61  ;;  %vm23517_vm8 = vmand %vm23514_vm3, %vm23516_vm9  ;;  %vm23523_vm1 = vnez %v23522_v46 }
 0x37e   : > { %13826 = vmatmul.mubr.msk.f32.gmra.mrb[18].mxu1 %vm22130_vm10, %v4977_v35  ;;  %v4916_v35 = vrot.slane %v18170_v39, 7  ;;  %v4980_v2 = vsel %vm23517_vm8, %v18465_v61, 0.0  ;;  %v23524_v61 = vld [vmem:[#allocation44_spill] sm:$0xff]  ;;  %vm23529_vm3 = vmmov %vm23520_vm12 }
 0x37f   : > { %13828 = vmatprep.mubr.msk.f32.mxu1 %vm22130_vm10, %v4978_v54  ;;  %v18480_v54 = vsel %vm23518_vm4, %v4914_v53, %v4915_v5  ;;  %vm23525_vm4 = vnez %v23524_v61  ;;  %v23526_v53 = vld [vmem:[#allocation89_spill] sm:$0xff]  ;;  %v23533_v61 = vld [vmem:[#allocation47_spill] sm:$0xff] }
 0x380   : > { %23519 = vst [vmem:[#allocation154_spill] sm:$0xff] %v18480_v54  ;;  %v18486_v31 = vsel %vm23520_vm12, %v4915_v5, %v4916_v35  ;;  %v4981_v18 = vsel %vm23523_vm1, %v18480_v54, 0.0  ;;  %vm23527_vm8 = vnez %v23526_v53  ;;  %v4919_v5 = vrot.slane %v18195_v41, 7  ;;  %vm23531_vm12 = vmmov %vm23529_vm3 }
 0x381   : > { %23521 = vst [vmem:[#allocation155_spill] sm:$0xff] %v18486_v31  ;;  %vm23528_vm9 = vmand %vm23525_vm4, %vm23527_vm8  ;;  %vm23534_vm1 = vnez %v23533_v61 }
 0x382   : > { %13829 = vmatmul.mubr.msk.f32.gmra.mrb[20].mxu1 %vm22130_vm10, %v4979_v60  ;;  %v4918_v60 = vrot.slane %v18186_v9, 7  ;;  %v4982_v19 = vsel %vm23528_vm9, %v18486_v31, 0.0  ;;  %v23535_v31 = vld [vmem:[#allocation50_spill] sm:$0xff]  ;;  %vm23540_vm4 = vmmov %vm23531_vm12 }
 0x383   : > { %13831 = vmatprep.mubr.msk.f32.mxu1 %vm22130_vm10, %v4980_v2  ;;  %v18501_v2 = vsel %vm23529_vm3, %v4916_v35, %v4917_v48  ;;  %vm23536_vm3 = vnez %v23535_v31  ;;  %v23537_v35 = vld [vmem:[#allocation49_spill] sm:$0xff] }
 0x384   : > { %23530 = vst [vmem:[#allocation156_spill] sm:$0xff] %v18501_v2  ;;  %v18507_v54 = vsel %vm23531_vm12, %v4917_v48, %v4918_v60  ;;  %v4983_v53 = vsel %vm23534_vm1, %v18501_v2, 0.0  ;;  %vm23538_vm9 = vnez %v23537_v35  ;;  %v4921_v48 = vrot.slane %v18211_v43, 7  ;;  %vm23542_vm12 = vmmov %vm23540_vm4  ;;  %v23544_v31 = vld [vmem:[#allocation53_spill] sm:$0xff] }
 0x385   : > { %23532 = vst [vmem:[#allocation91_spill] sm:$0xff] %v18507_v54  ;;  %vm23539_vm8 = vmand %vm23536_vm3, %vm23538_vm9  ;;  %vm23545_vm1 = vnez %v23544_v31 }
 0x386   : > { %13832 = vmatmul.mubr.msk.f32.gmra.mrb[22].mxu1 %vm22130_vm10, %v4981_v18  ;;  %v4920_v18 = vrot.slane %v18202_v14, 7  ;;  %v4984_v46 = vsel %vm23539_vm8, %v18507_v54, 0.0  ;;  %v23546_v54 = vld [vmem:[#allocation56_spill] sm:$0xff]  ;;  %vm23551_vm3 = vmmov %vm23542_vm12 }
 0x387   : > { %13834 = vmatprep.mubr.msk.f32.mxu1 %vm22130_vm10, %v4982_v19  ;;  %v18522_v19 = vsel %vm23540_vm4, %v4918_v60, %v4919_v5  ;;  %vm23547_vm4 = vnez %v23546_v54  ;;  %v23548_v60 = vld [vmem:[#allocation93_spill] sm:$0xff]  ;;  %v23555_v54 = vld [vmem:[#allocation58_spill] sm:$0xff] }
 0x388   : > { %23541 = vst [vmem:[#allocation115_spill] sm:$0xff] %v18522_v19  ;;  %v18528_v2 = vsel %vm23542_vm12, %v4919_v5, %v4920_v18  ;;  %v4985_v35 = vsel %vm23545_vm1, %v18522_v19, 0.0  ;;  %vm23549_vm8 = vnez %v23548_v60  ;;  %v4923_v5 = vrot.slane %v18227_v28, 7  ;;  %vm23553_vm12 = vmmov %vm23551_vm3 }
 0x389   : > { %23543 = vst [vmem:[#allocation130_spill] sm:$0xff] %v18528_v2  ;;  %vm23550_vm9 = vmand %vm23547_vm4, %vm23549_vm8  ;;  %vm23556_vm1 = vnez %v23555_v54 }
 0x38a   : > { %13835 = vmatmul.mubr.msk.f32.gmra.mrb[24].mxu1 %vm22130_vm10, %v4983_v53  ;;  %v4922_v53 = vrot.slane %v18218_v32, 7  ;;  %v4986_v61 = vsel %vm23550_vm9, %v18528_v2, 0.0  ;;  %vm23561_vm4 = vmmov %vm23553_vm12 }
 0x38b   : > { %13837 = vmatprep.mubr.msk.f32.mxu1 %vm22130_vm10, %v4984_v46  ;;  %v18543_v46 = vsel %vm23551_vm3, %v4920_v18, %v4921_v48  ;;  %vm23557_vm3 = vnez %v23436_v3  ;;  %v23558_v18 = vld [vmem:[#allocation96_spill] sm:$0xff] }
 0x38c   : > { %23552 = vst [vmem:[#allocation131_spill] sm:$0xff] %v18543_v46  ;;  %v18549_v19 = vsel %vm23553_vm12, %v4921_v48, %v4922_v53  ;;  %v4987_v60 = vsel %vm23556_vm1, %v18543_v46, 0.0  ;;  %vm23559_vm9 = vnez %v23558_v18  ;;  %v4925_v48 = vrot.slane %v18243_v30, 7  ;;  %vm23563_vm12 = vmmov %vm23561_vm4 }
 0x38d   : > { %23554 = vst [vmem:[#allocation133_spill] sm:$0xff] %v18549_v19  ;;  %vm23560_vm8 = vmand %vm23557_vm3, %vm23559_vm9  ;;  %vm23565_vm1 = vnez %v23438_v8 }
 0x38e   : > { %13838 = vmatmul.mubr.msk.f32.gmra.mrb[26].mxu1 %vm22130_vm10, %v4985_v35  ;;  %v4924_v35 = vrot.slane %v18234_v42, 7  ;;  %v4988_v2 = vsel %vm23560_vm8, %v18549_v19, 0.0  ;;  %vm23570_vm3 = vmmov %vm23563_vm12 }
 0x38f   : > { %13840 = vmatprep.mubr.msk.f32.mxu1 %vm22130_vm10, %v4986_v61  ;;  %v18564_v61 = vsel %vm23561_vm4, %v4922_v53, %v4923_v5  ;;  %vm23566_vm4 = vnez %v23185_v62  ;;  %v23567_v53 = vld [vmem:[#allocation104_spill] sm:$0xff] }
 0x390   : > { %23562 = vst [vmem:[#allocation134_spill] sm:$0xff] %v18564_v61  ;;  %v18570_v46 = vsel %vm23563_vm12, %v4923_v5, %v4924_v35  ;;  %v4989_v18 = vsel %vm23565_vm1, %v18564_v61, 0.0  ;;  %vm23568_vm8 = vnez %v23567_v53  ;;  %v4927_v5 = vrot.slane %v18261_v22, 7  ;;  %vm23572_vm12 = vmmov %vm23570_vm3 }
 0x391   : > { %23564 = vst [vmem:[#allocation136_spill] sm:$0xff] %v18570_v46  ;;  %vm23569_vm9 = vmand %vm23566_vm4, %vm23568_vm8  ;;  %vm23574_vm1 = vnez %v23187_v27 }
 0x392   : > { %13841 = vmatmul.mubr.msk.f32.gmra.mrb[28].mxu1 %vm22130_vm10, %v4987_v60  ;;  %v4926_v60 = vrot.slane %v18252_v26, 7  ;;  %v4990_v19 = vsel %vm23569_vm9, %v18570_v46, 0.0  ;;  %vm23579_vm4 = vmmov %vm23572_vm12 }
 0x393   : > { %13843 = vmatprep.mubr.msk.f32.mxu1 %vm22130_vm10, %v4988_v2  ;;  %v18585_v2 = vsel %vm23570_vm3, %v4924_v35, %v4925_v48  ;;  %vm23575_vm3 = vnez %v23446_v34  ;;  %v23576_v35 = vld [vmem:[#allocation111_spill] sm:$0xff] }
 0x394   : > { %23571 = vst [vmem:[#allocation137_spill] sm:$0xff] %v18585_v2  ;;  %v18591_v61 = vsel %vm23572_vm12, %v4925_v48, %v4926_v60  ;;  %v4991_v53 = vsel %vm23574_vm1, %v18585_v2, 0.0  ;;  %vm23577_vm9 = vnez %v23576_v35  ;;  %vm23581_vm12 = vmmov %vm23579_vm4  ;;  %v23583_v2 = vld [vmem:[#allocation45_spill] sm:$0xff]  ;;  %v23585_v34 = vld [vmem:[#allocation119_spill] sm:$0xff] }
 0x395   : > { %23573 = vst [vmem:[#allocation139_spill] sm:$0xff] %v18591_v61  ;;  %vm23578_vm8 = vmand %vm23575_vm3, %vm23577_vm9  ;;  %vm23586_vm1 = vnez %v23585_v34 }
 0x396   : > { %13844 = vmatmul.mubr.msk.f32.gmra.mrb[30].mxu1 %vm22130_vm10, %v4989_v18  ;;  %v4928_v18 = vrot.slane %v18268_v63, 7  ;;  %v4992_v46 = vsel %vm23578_vm8, %v18591_v61, 0.0  ;;  %v23587_v61 = vld [vmem:[#allocation116_spill] sm:$0xff] }
 0x397   : > { %13846 = vmatprep.mubr.msk.f32.mxu1 %vm22130_vm10, %v4990_v19  ;;  %v18606_v19 = vsel %vm23579_vm4, %v4926_v60, %v4927_v5  ;;  %vm23588_vm4 = vnez %v23587_v61  ;;  %v23589_v60 = vld [vmem:[#allocation117_spill] sm:$0xff] }
 0x398   : > { %23580 = vst [vmem:[#allocation140_spill] sm:$0xff] %v18606_v19  ;;  %v18611_v48 = vsel %vm23581_vm12, %v4927_v5, %v4928_v18  ;;  %v4993_v35 = vsel %vm23586_vm1, %v18606_v19, 0.0  ;;  %vm23590_vm8 = vnez %v23589_v60  ;;  %v23592_v5 = vrot.slane %v18263_v58, 7 }
 0x399   : > { %23582 = vst [vmem:[#allocation142_spill] sm:$0xff] %v18611_v48  ;;  %vm23591_vm9 = vmand %vm23588_vm4, %vm23590_vm8  ;;  %v23593_v19 = vrot.slane %v23583_v2, 1  ;;  %vm23594_vm1 = vcmp.lt.s32.totalorder %v23451_v51, 7  ;;  %v5675_v60 = vrot.slane %v18048_v55, 1  ;;  %v5677_v55 = vrot.slane %v18069_v0, 1 }
 0x39a   : > { %13847 = vmatmul.mubr.msk.f32.gmra.mrb[32].mxu1 %vm22130_vm10, %v4991_v53  ;;  %v23584_v53 = vld [vmem:[#allocation95_spill] sm:$0xff]  ;;  %v18629_v27 = vsel %vm23581_vm12, %v4928_v18, %v23592_v5  ;;  %v5676_v5 = vrot.slane %v18060_v49, 1 }
 0x39b   : > { %13849 = vmatprep.mubr.msk.f32.mxu1 %vm22130_vm10, %v4992_v46  ;;  %v5705_v63 = vrot.slane %v23584_v53, 1  ;;  %v4994_v46 = vsel %vm23591_vm9, %v18611_v48, 0.0  ;;  %v5674_v53 = vrot.slane %v18040_v13, 1  ;;  %v4995_v61 = vsel %vm23454_vm6, %v18629_v27, 0.0  ;;  %vm23597_vm9 = vmmov %vm23594_vm1  ;;  %v23601_v13 = vld [vmem:[#allocation121_spill] sm:$0xff]  ;;  %v23736_v48 = vld [vmem:[#allocation98_spill] sm:$0xff] }
 0x39c   : > { %vm23602_vm12 = vnez %v23601_v13  ;;  %v23892_v13 = vld [vmem:[#allocation82_spill] sm:$0xff] }
 0x39e   : > { %13850 = vmatmul.mubr.msk.f32.gmra.mrb[34].mxu1 %vm22130_vm10, %v4993_v35  ;;  %v18637_v35 = vsel %vm23594_vm1, %v23593_v19, %v5705_v63  ;;  %v18655_v19 = vsel %vm23594_vm1, %v5674_v53, %v5675_v60 }
 0x39f   : > { %13852 = vmatprep.mubr.msk.f32.mxu1 %vm22130_vm10, %v4994_v46  ;;  %23595 = vst [vmem:[#allocation55_spill] sm:$0xff] %v18637_v35  ;;  %v5738_v18 = vsel %vm23388_vm7, %v18637_v35, 0.0  ;;  %v18649_v46 = vsel %vm23597_vm9, %v5705_v63, %v5674_v53  ;;  %23599 = vst [vmem:[#allocation59_spill] sm:$0xff] %v18655_v19  ;;  %v18667_v63 = vld [vmem:[%s21229_s3 + $0x20] sm:$0xff]  ;;  %v5740_v53 = vsel %vm23393_vm0, %v18655_v19, 0.0  ;;  %v5679_v35 = vrot.slane %v18083_v4, 1 }
 0x3a0   : > { %23598 = vst [vmem:[#allocation57_spill] sm:$0xff] %v18649_v46  ;;  %vm23603_vm7 = vmand %vm23391_vm5, %vm23602_vm12  ;;  %vm23609_vm0 = vnez %v23608_v21 }
 0x3a1   : > { %v5739_v24 = vsel %vm23603_vm7, %v18649_v46, 0.0  ;;  %vm23604_vm9 = vmmov %vm23594_vm1 }
 0x3a2   : > { %13853 = vmatmul.mubr.msk.f32.gmra.mrb[36].mxu1 %vm22130_vm10, %v4995_v61  ;;  %v5678_v61 = vrot.slane %v18075_v56, 1  ;;  %vm23606_vm5 = vmmov %vm23594_vm1 }
 0x3a3   : > { %13857 = vmatprep.mubr.msk.f32.mxu1 %vm22130_vm10, %v5738_v18  ;;  %v18675_v18 = vsel %vm23604_vm9, %v5675_v60, %v5676_v5  ;;  %v18681_v46 = vsel %vm23606_vm5, %v5676_v5, %v5677_v55  ;;  %vm23610_vm1 = vmand %vm23395_vm2, %vm23609_vm0 }
 0x3a4   : > { %23605 = vst [vmem:[#allocation62_spill] sm:$0xff] %v18675_v18  ;;  %23607 = vst [vmem:[#allocation97_spill] sm:$0xff] %v18681_v46  ;;  %v5741_v60 = vsel %vm23610_vm1, %v18675_v18, 0.0  ;;  %v5742_v5 = vsel %vm23397_vm13, %v18681_v46, 0.0 }
 0x3a5   : > { %vm23611_vm7 = vmmov %vm23606_vm5 }
 0x3a6   : > { %13858 = vmatmul.mubr.msk.f32.vlgmr.msra.gmra.mrb[6].mxu1 %vm22130_vm10, %v5739_v24  ;;  %v18698_v24 = vsel %vm23611_vm7, %v5677_v55, %v5678_v61  ;;  %vm23613_vm9 = vmmov %vm23606_vm5  ;;  %vm23624_vm7 = vnez %v23404_v6 }
 0x3a7   : > { %13860 = vmatprep.mubr.msk.f32.mxu1 %vm22130_vm10, %v5740_v53  ;;  %13906 = vmatpush3.msra.mxu1 %v18320_v16  ;;  %23612 = vst [vmem:[#allocation100_spill] sm:$0xff] %v18698_v24  ;;  %v5680_v16 = vrot.slane %v18090_v20, 1  ;;  %v18704_v25 = vsel %vm23613_vm9, %v5678_v61, %v5679_v35  ;;  %v5681_v53 = vrot.slane %v18099_v10, 1  ;;  %v5682_v61 = vrot.slane %v18106_v45, 1  ;;  %vm23619_vm1 = vmmov %vm23606_vm5 }
 0x3a8   : > { %13955 = vmatprep.subr.mxu1 %v18667_v63  ;;  %23614 = vst [vmem:[#allocation146_spill] sm:$0xff] %v18704_v25  ;;  %v5744_v55 = vsel %vm23401_vm14, %v18704_v25, 0.0  ;;  %vm23625_vm9 = vmmov %vm23619_vm1 }
 0x3a9   : > { %v18725_v44 = vsel %vm23619_vm1, %v5680_v16, %v5681_v53 }
 0x3aa   : > { %13861 = vmatmul.mubr.msk.f32.gmra.mrb[8].mxu1 %vm22130_vm10, %v5741_v60  ;;  %v23615_v60 = vld [vmem:[#allocation126_spill] sm:$0xff]  ;;  %23620 = vst [vmem:[#allocation148_spill] sm:$0xff] %v18725_v44 }
 0x3ab   : > { %13863 = vmatprep.mubr.msk.f32.mxu1 %vm22130_vm10, %v5742_v5  ;;  %vm23616_vm2 = vnez %v23615_v60  ;;  %v18719_v5 = vsel %vm23606_vm5, %v5679_v35, %v5680_v16  ;;  %v5683_v60 = vrot.slane %v18115_v38, 1  ;;  %v5746_v35 = vsel %vm23624_vm7, %v18725_v44, 0.0  ;;  %vm23634_vm7 = vmmov %vm23625_vm9 }
 0x3ac   : > { %vm23617_vm13 = vmand %vm23399_vm15, %vm23616_vm2  ;;  %23618 = vst [vmem:[#allocation107_spill] sm:$0xff] %v18719_v5  ;;  %v5684_v16 = vrot.slane %v18122_v33, 1 }
 0x3ad   : > { %v5743_v23 = vsel %vm23617_vm13, %v18698_v24, 0.0  ;;  %vm23627_vm13 = vmmov %vm23619_vm1 }
 0x3ae   : > { %13864 = vmatmul.mubr.msk.f32.gmra.mrb[10].mxu1 %vm22130_vm10, %v5743_v23  ;;  %v23621_v23 = vld [vmem:[#allocation127_spill] sm:$0xff]  ;;  %v18746_v1 = vsel %vm23627_vm13, %v5682_v61, %v5683_v60  ;;  %vm23638_vm13 = vnez %v23410_v7 }
 0x3af   : > { %13866 = vmatprep.mubr.msk.f32.mxu1 %vm22130_vm10, %v5744_v55  ;;  %vm23622_vm15 = vnez %v23621_v23  ;;  %v18740_v55 = vsel %vm23625_vm9, %v5681_v53, %v5682_v61  ;;  %23628 = vst [vmem:[#allocation151_spill] sm:$0xff] %v18746_v1  ;;  %v5685_v23 = vrot.slane %v18131_v47, 1  ;;  %v5686_v61 = vrot.slane %v18138_v15, 1  ;;  %vm23636_vm9 = vmmov %vm23634_vm7 }
 0x3b0   : > { %vm23623_vm14 = vmand %vm23403_vm11, %vm23622_vm15  ;;  %23626 = vst [vmem:[#allocation150_spill] sm:$0xff] %v18740_v55  ;;  %vm23629_vm11 = vnez %v23406_v36 }
 0x3b1   : > { %v5745_v11 = vsel %vm23623_vm14, %v18719_v5, 0.0  ;;  %vm23633_vm14 = vnez %v23408_v37  ;;  %v18767_v36 = vsel %vm23636_vm9, %v5684_v16, %v5685_v23  ;;  %vm23644_vm9 = vmmov %vm23634_vm7 }
 0x3b2   : > { %13867 = vmatmul.mubr.msk.f32.gmra.mrb[12].mxu1 %vm22130_vm10, %v5745_v11  ;;  %v23630_v11 = vld [vmem:[#allocation128_spill] sm:$0xff]  ;;  %v5748_v53 = vsel %vm23633_vm14, %v18746_v1, 0.0  ;;  %23637 = vst [vmem:[#allocation11_spill] sm:$0xff] %v18767_v36  ;;  %vm23642_vm14 = vnez %v23412_v50 }
 0x3b3   : > { %13869 = vmatprep.mubr.msk.f32.mxu1 %vm22130_vm10, %v5746_v35  ;;  %vm23631_vm5 = vnez %v23630_v11  ;;  %v18761_v35 = vsel %vm23634_vm7, %v5683_v60, %v5684_v16  ;;  %v5687_v11 = vrot.slane %v18147_v57, 1  ;;  %v5750_v60 = vsel %vm23642_vm14, %v18767_v36, 0.0 }
 0x3b4   : > { %vm23632_vm1 = vmand %vm23629_vm11, %vm23631_vm5  ;;  %23635 = vst [vmem:[#allocation153_spill] sm:$0xff] %v18761_v35  ;;  %v5688_v16 = vrot.slane %v18154_v12, 1  ;;  %v6876_v21 = vsel %vm23631_vm5, %v18761_v35, 0.0 }
 0x3b5   : > { %v5747_v6 = vsel %vm23632_vm1, %v18740_v55, 0.0  ;;  %v18788_v7 = vsel %vm23644_vm9, %v5686_v61, %v5687_v11 }
 0x3b6   : > { %13870 = vmatmul.mubr.msk.f32.gmra.mrb[14].mxu1 %vm22130_vm10, %v5747_v6  ;;  %v23639_v6 = vld [vmem:[#allocation129_spill] sm:$0xff]  ;;  %23645 = vst [vmem:[#allocation123_spill] sm:$0xff] %v18788_v7 }
 0x3b7   : > { %13872 = vmatprep.mubr.msk.f32.mxu1 %vm22130_vm10, %v5748_v53  ;;  %vm23640_vm11 = vnez %v23639_v6  ;;  %v18782_v53 = vsel %vm23634_vm7, %v5685_v23, %v5686_v61  ;;  %v5689_v6 = vrot.slane %v18163_v40, 1  ;;  %vm23650_vm7 = vnez %v23416_v29 }
 0x3b8   : > { %vm23641_vm1 = vmand %vm23638_vm13, %vm23640_vm11  ;;  %23643 = vst [vmem:[#allocation122_spill] sm:$0xff] %v18782_v53  ;;  %vm23646_vm13 = vnez %v23414_v52  ;;  %v5752_v23 = vsel %vm23650_vm7, %v18788_v7, 0.0  ;;  %v5690_v61 = vrot.slane %v18170_v39, 1 }
 0x3b9   : > { %v5749_v37 = vsel %vm23641_vm1, %v18761_v35, 0.0  ;;  %vm23651_vm11 = vmmov %vm23644_vm9  ;;  %v18809_v52 = vsel %vm23644_vm9, %v5688_v16, %v5689_v6 }
 0x3ba   : > { %13873 = vmatmul.mubr.msk.f32.gmra.mrb[16].mxu1 %vm22130_vm10, %v5749_v37  ;;  %v23647_v37 = vld [vmem:[#allocation132_spill] sm:$0xff]  ;;  %23653 = vst [vmem:[#allocation10_spill] sm:$0xff] %v18809_v52 }
 0x3bb   : > { %13875 = vmatprep.mubr.msk.f32.mxu1 %vm22130_vm10, %v5750_v60  ;;  %vm23648_vm1 = vnez %v23647_v37  ;;  %v18803_v60 = vsel %vm23651_vm11, %v5687_v11, %v5688_v16  ;;  %v5691_v37 = vrot.slane %v18179_v59, 1  ;;  %v23658_v11 = vld [vmem:[#allocation40_spill] sm:$0xff]  ;;  %v5692_v16 = vrot.slane %v18186_v9, 1 }
 0x3bc   : > { %vm23649_vm14 = vmand %vm23646_vm13, %vm23648_vm1  ;;  %23652 = vst [vmem:[#allocation125_spill] sm:$0xff] %v18803_v60  ;;  %vm23654_vm13 = vnez %v23418_v17  ;;  %vm23659_vm11 = vnez %v23658_v11 }
 0x3bd   : > { %v5751_v50 = vsel %vm23649_vm14, %v18782_v53, 0.0  ;;  %v5754_v7 = vsel %vm23659_vm11, %v18809_v52, 0.0  ;;  %vm23660_vm1 = vmmov %vm23644_vm9 }
 0x3be   : > { %13876 = vmatmul.mubr.msk.f32.gmra.mrb[18].mxu1 %vm22130_vm10, %v5751_v50  ;;  %v23655_v50 = vld [vmem:[#allocation135_spill] sm:$0xff]  ;;  %vm23662_vm9 = vmmov %vm23660_vm1 }
 0x3bf   : > { %13878 = vmatprep.mubr.msk.f32.mxu1 %vm22130_vm10, %v5752_v23  ;;  %vm23656_vm14 = vnez %v23655_v50  ;;  %v18824_v23 = vsel %vm23660_vm1, %v5689_v6, %v5690_v61  ;;  %v18830_v17 = vsel %vm23662_vm9, %v5690_v61, %v5691_v37  ;;  %v5693_v50 = vrot.slane %v18195_v41, 1  ;;  %v23669_v6 = vld [vmem:[#allocation44_spill] sm:$0xff] }
 0x3c0   : > { %vm23657_vm7 = vmand %vm23654_vm13, %vm23656_vm14  ;;  %23661 = vst [vmem:[#allocation13_spill] sm:$0xff] %v18824_v23  ;;  %vm23670_vm1 = vnez %v23669_v6  ;;  %v5694_v61 = vrot.slane %v18202_v14, 1 }
 0x3c1   : > { %v5753_v29 = vsel %vm23657_vm7, %v18803_v60, 0.0  ;;  %23663 = vst [vmem:[#allocation15_spill] sm:$0xff] %v18830_v17  ;;  %v23666_v60 = vld [vmem:[#allocation138_spill] sm:$0xff]  ;;  %v5756_v52 = vsel %vm23670_vm1, %v18830_v17, 0.0  ;;  %vm23671_vm14 = vmmov %vm23662_vm9 }
 0x3c2   : > { %13879 = vmatmul.mubr.msk.f32.gmra.mrb[20].mxu1 %vm22130_vm10, %v5753_v29  ;;  %v23664_v29 = vld [vmem:[#allocation42_spill] sm:$0xff]  ;;  %vm23667_vm7 = vnez %v23666_v60  ;;  %v5695_v60 = vrot.slane %v18211_v43, 1 }
 0x3c3   : > { %13881 = vmatprep.mubr.msk.f32.mxu1 %vm22130_vm10, %v5754_v7  ;;  %vm23665_vm13 = vnez %v23664_v29  ;;  %v18845_v7 = vsel %vm23671_vm14, %v5691_v37, %v5692_v16  ;;  %v18851_v29 = vsel %vm23662_vm9, %v5692_v16, %v5693_v50  ;;  %v23679_v37 = vld [vmem:[#allocation50_spill] sm:$0xff]  ;;  %v5696_v16 = vrot.slane %v18218_v32, 1 }
 0x3c4   : > { %vm23668_vm11 = vmand %vm23665_vm13, %vm23667_vm7  ;;  %23672 = vst [vmem:[#allocation16_spill] sm:$0xff] %v18845_v7  ;;  %vm23680_vm14 = vnez %v23679_v37 }
 0x3c5   : > { %v5755_v11 = vsel %vm23668_vm11, %v18824_v23, 0.0  ;;  %23673 = vst [vmem:[#allocation18_spill] sm:$0xff] %v18851_v29  ;;  %v23676_v23 = vld [vmem:[#allocation141_spill] sm:$0xff]  ;;  %v5758_v17 = vsel %vm23680_vm14, %v18851_v29, 0.0  ;;  %vm23681_vm7 = vmmov %vm23662_vm9 }
 0x3c6   : > { %13882 = vmatmul.mubr.msk.f32.gmra.mrb[22].mxu1 %vm22130_vm10, %v5755_v11  ;;  %v23674_v11 = vld [vmem:[#allocation47_spill] sm:$0xff]  ;;  %vm23677_vm11 = vnez %v23676_v23  ;;  %vm23683_vm9 = vmmov %vm23681_vm7  ;;  %v5697_v23 = vrot.slane %v18227_v28, 1 }
 0x3c7   : > { %13884 = vmatprep.mubr.msk.f32.mxu1 %vm22130_vm10, %v5756_v52  ;;  %vm23675_vm13 = vnez %v23674_v11  ;;  %v18866_v52 = vsel %vm23681_vm7, %v5693_v50, %v5694_v61  ;;  %v18872_v11 = vsel %vm23683_vm9, %v5694_v61, %v5695_v60  ;;  %v23689_v50 = vld [vmem:[#allocation56_spill] sm:$0xff]  ;;  %v5698_v61 = vrot.slane %v18234_v42, 1 }
 0x3c8   : > { %vm23678_vm1 = vmand %vm23675_vm13, %vm23677_vm11  ;;  %23682 = vst [vmem:[#allocation20_spill] sm:$0xff] %v18866_v52  ;;  %vm23685_vm13 = vnez %v23544_v31  ;;  %vm23690_vm7 = vnez %v23689_v50  ;;  %v18893_v31 = vsel %vm23683_vm9, %v5696_v16, %v5697_v23 }
 0x3c9   : > { %v5757_v6 = vsel %vm23678_vm1, %v18845_v7, 0.0  ;;  %23684 = vst [vmem:[#allocation22_spill] sm:$0xff] %v18872_v11  ;;  %v5760_v29 = vsel %vm23690_vm7, %v18872_v11, 0.0  ;;  %vm23691_vm11 = vmmov %vm23683_vm9 }
 0x3ca   : > { %13885 = vmatmul.mubr.msk.f32.gmra.mrb[24].mxu1 %vm22130_vm10, %v5757_v6  ;;  %v23686_v6 = vld [vmem:[#allocation143_spill] sm:$0xff]  ;;  %23693 = vst [vmem:[#allocation26_spill] sm:$0xff] %v18893_v31 }
 0x3cb   : > { %13887 = vmatprep.mubr.msk.f32.mxu1 %vm22130_vm10, %v5758_v17  ;;  %vm23687_vm1 = vnez %v23686_v6  ;;  %v18887_v17 = vsel %vm23691_vm11, %v5695_v60, %v5696_v16  ;;  %v5699_v6 = vrot.slane %v18243_v30, 1  ;;  %vm23698_vm11 = vnez %v23436_v3 }
 0x3cc   : > { %vm23688_vm14 = vmand %vm23685_vm13, %vm23687_vm1  ;;  %23692 = vst [vmem:[#allocation24_spill] sm:$0xff] %v18887_v17  ;;  %vm23694_vm13 = vnez %v23555_v54  ;;  %v5762_v60 = vsel %vm23698_vm11, %v18893_v31, 0.0  ;;  %v5700_v16 = vrot.slane %v18252_v26, 1 }
 0x3cd   : > { %v5759_v37 = vsel %vm23688_vm14, %v18866_v52, 0.0  ;;  %vm23699_vm1 = vmmov %vm23683_vm9 }
 0x3ce   : > { %13888 = vmatmul.mubr.msk.f32.gmra.mrb[26].mxu1 %vm22130_vm10, %v5759_v37  ;;  %v23695_v37 = vld [vmem:[#allocation144_spill] sm:$0xff]  ;;  %vm23701_vm9 = vmmov %vm23699_vm1 }
 0x3cf   : > { %13890 = vmatprep.mubr.msk.f32.mxu1 %vm22130_vm10, %v5760_v29  ;;  %vm23696_vm14 = vnez %v23695_v37  ;;  %v18908_v29 = vsel %vm23699_vm1, %v5697_v23, %v5698_v61  ;;  %v18914_v54 = vsel %vm23701_vm9, %v5698_v61, %v5699_v6  ;;  %v5701_v37 = vrot.slane %v18261_v22, 1  ;;  %v23710_v61 = vld [vmem:[#allocation106_spill] sm:$0xff] }
 0x3d0   : > { %vm23697_vm7 = vmand %vm23694_vm13, %vm23696_vm14  ;;  %23700 = vst [vmem:[#allocation28_spill] sm:$0xff] %v18908_v29  ;;  %vm23703_vm13 = vnez %v23438_v8  ;;  %vm23707_vm1 = vnez %v23185_v62  ;;  %v5702_v31 = vrot.slane %v23710_v61, 1 }
 0x3d1   : > { %v5761_v50 = vsel %vm23697_vm7, %v18887_v17, 0.0  ;;  %23702 = vst [vmem:[#allocation30_spill] sm:$0xff] %v18914_v54  ;;  %v5764_v23 = vsel %vm23707_vm1, %v18914_v54, 0.0  ;;  %vm23708_vm14 = vmmov %vm23701_vm9  ;;  %v18935_v8 = vsel %vm23701_vm9, %v5700_v16, %v5701_v37 }
 0x3d2   : > { %13891 = vmatmul.mubr.msk.f32.gmra.mrb[28].mxu1 %vm22130_vm10, %v5761_v50  ;;  %v23704_v50 = vld [vmem:[#allocation145_spill] sm:$0xff]  ;;  %23711 = vst [vmem:[#allocation34_spill] sm:$0xff] %v18935_v8  ;;  %v5766_v54 = vsel %vm23575_vm3, %v18935_v8, 0.0  ;;  %vm23727_vm3 = vmmov %vm23701_vm9 }
 0x3d3   : > { %13893 = vmatprep.mubr.msk.f32.mxu1 %vm22130_vm10, %v5762_v60  ;;  %vm23705_vm7 = vnez %v23704_v50  ;;  %v18929_v60 = vsel %vm23708_vm14, %v5699_v6, %v5700_v16  ;;  %v5703_v50 = vrot.slane %v18263_v58, 1  ;;  %vm23718_vm14 = vmmov %vm23701_vm9  ;;  %v23733_v6 = vld [vmem:[#allocation61_spill] sm:$0xff] }
 0x3d4   : > { %vm23706_vm11 = vmand %vm23703_vm13, %vm23705_vm7  ;;  %23709 = vst [vmem:[#allocation32_spill] sm:$0xff] %v18929_v60 }
 0x3d5   : > { %v5763_v3 = vsel %vm23706_vm11, %v18908_v29, 0.0  ;;  %v23714_v29 = vld [vmem:[#allocation147_spill] sm:$0xff]  ;;  %v18955_v16 = vsel %vm23701_vm9, %v5702_v31, %v5703_v50 }
 0x3d6   : > { %13894 = vmatmul.mubr.msk.f32.gmra.mrb[30].mxu1 %vm22130_vm10, %v5763_v3  ;;  %v23712_v3 = vld [vmem:[#allocation113_spill] sm:$0xff]  ;;  %vm23715_vm11 = vnez %v23714_v29  ;;  %23720 = vst [vmem:[#allocation38_spill] sm:$0xff] %v18955_v16  ;;  %v23726_v29 = vrot.slane %v23583_v2, 1 }
 0x3d7   : > { %13896 = vmatprep.mubr.msk.f32.mxu1 %vm22130_vm10, %v5764_v23  ;;  %vm23713_vm13 = vnez %v23712_v3  ;;  %v18950_v23 = vsel %vm23718_vm14, %v5701_v37, %v5702_v31  ;;  %v23722_v3 = vld [vmem:[#allocation149_spill] sm:$0xff]  ;;  %v5768_v37 = vsel %vm23588_vm4, %v18955_v16, 0.0  ;;  %vm23734_vm4 = vnez %v23733_v6 }
 0x3d8   : > { %vm23716_vm1 = vmand %vm23713_vm13, %vm23715_vm11  ;;  %23719 = vst [vmem:[#allocation36_spill] sm:$0xff] %v18950_v23  ;;  %vm23721_vm13 = vnez %v23585_v34  ;;  %v23729_v34 = vld [vmem:[#allocation152_spill] sm:$0xff] }
 0x3d9   : > { %v5765_v62 = vsel %vm23716_vm1, %v18929_v60, 0.0  ;;  %vm23723_vm1 = vnez %v23722_v3  ;;  %vm23730_vm14 = vnez %v23729_v34  ;;  %v23743_v34 = vld [vmem:[#allocation103_spill] sm:$0xff] }
 0x3da   : > { %13897 = vmatmul.mubr.msk.f32.gmra.mrb[32].mxu1 %vm22130_vm10, %v5765_v62  ;;  %vm23724_vm11 = vmand %vm23721_vm13, %vm23723_vm1 }
 0x3db   : > { %13899 = vmatprep.mubr.msk.f32.mxu1 %vm22130_vm10, %v5766_v54  ;;  %v5767_v62 = vsel %vm23724_vm11, %v18950_v23, 0.0  ;;  %v18971_v54 = vsel %vm23727_vm3, %v5703_v50, %v23726_v29  ;;  %vm23731_vm11 = vmand %vm23454_vm6, %vm23730_vm14  ;;  %v12182_v29 = vld [vmem:[%s21229_s3 + $0x28] sm:$0xff]  ;;  %v23735_v50 = vld [vmem:[#allocation54_spill] sm:$0xff] }
 0x3dc   : > { %23728 = vst [vmem:[#allocation60_spill] sm:$0xff] %v18971_v54  ;;  %v5769_v31 = vsel %vm23731_vm11, %v18971_v54, 0.0 }
 0x3de   : > { %13900 = vmatmul.mubr.msk.f32.gmra.mrb[34].mxu1 %vm22130_vm10, %v5767_v62  ;;  %v23732_v62 = vld [vmem:[#allocation92_spill] sm:$0xff] }
 0x3df   : > { %13902 = vmatprep.mubr.msk.f32.mxu1 %vm22130_vm10, %v5768_v37  ;;  %v6125_v3 = vsel %vm23734_vm4, %v23732_v62, 0.0  ;;  %v23737_v37 = vld [vmem:[#allocation65_spill] sm:$0xff]  ;;  %v23741_v62 = vld [vmem:[#allocation68_spill] sm:$0xff] }
 0x3e0   : > { %vm23738_vm9 = vnez %v23737_v37  ;;  %vm23742_vm6 = vnez %v23741_v62  ;;  %v23745_v37 = vld [vmem:[#allocation71_spill] sm:$0xff]  ;;  %v23751_v62 = vld [vmem:[#allocation114_spill] sm:$0xff] }
 0x3e1   : > { %v6127_v51 = vsel %vm23738_vm9, %v23736_v48, 0.0  ;;  %vm23746_vm13 = vnez %v23745_v37  ;;  %v23755_v37 = vld [vmem:[#allocation112_spill] sm:$0xff] }
 0x3e2   : > { %13903 = vmatmul.mubr.msk.f32.gmra.mrb[36].mxu1 %vm22130_vm10, %v5769_v31  ;;  %v23739_v31 = vld [vmem:[#allocation101_spill] sm:$0xff] }
 0x3e3   : > { %13907 = vmatprep.mubr.msk.f32.mxu1 %vm22130_vm10, %v6125_v3  ;;  %v23740_v3 = vld [vmem:[#allocation105_spill] sm:$0xff] }
 0x3e4   : > { %v6129_v6 = vsel %vm23742_vm6, %v23740_v3, 0.0 }
 0x3e6   : > { %13908 = vmatmul.mubr.msk.f32.vlgmr.msra.gmra.mrb[6].mxu1 %vm22130_vm10, %v23735_v50  ;;  %v23744_v50 = vld [vmem:[#allocation108_spill] sm:$0xff] }
 0x3e7   : > { %13910 = vmatprep.mubr.msk.f32.mxu1 %vm22130_vm10, %v6127_v51  ;;  %13956 = vmatpush3.msra.mxu1 %v18667_v63  ;;  %v6131_v48 = vsel %vm23746_vm13, %v23744_v50, 0.0  ;;  %v23747_v51 = vld [vmem:[#allocation66_spill] sm:$0xff]  ;;  %v23748_v63 = vld [vmem:[#allocation67_spill] sm:$0xff] }
 0x3e8   : > { %14005 = vmatprep.subr.mxu1 %v12182_v29 }
 0x3ea   : > { %13911 = vmatmul.mubr.msk.f32.gmra.mrb[8].mxu1 %vm22130_vm10, %v23739_v31  ;;  %v23749_v31 = vld [vmem:[#allocation74_spill] sm:$0xff] }
 0x3eb   : > { %13913 = vmatprep.mubr.msk.f32.mxu1 %vm22130_vm10, %v6129_v6  ;;  %vm23750_vm3 = vnez %v23749_v31  ;;  %v23752_v6 = vld [vmem:[#allocation69_spill] sm:$0xff]  ;;  %v23759_v31 = vld [vmem:[#allocation118_spill] sm:$0xff] }
 0x3ec   : > { %v6133_v54 = vsel %vm23750_vm3, %v23748_v63, 0.0 }
 0x3ee   : > { %13914 = vmatmul.mubr.msk.f32.gmra.mrb[10].mxu1 %vm22130_vm10, %v23743_v34  ;;  %v23753_v34 = vld [vmem:[#allocation77_spill] sm:$0xff] }
 0x3ef   : > { %13916 = vmatprep.mubr.msk.f32.mxu1 %vm22130_vm10, %v6131_v48  ;;  %vm23754_vm11 = vnez %v23753_v34  ;;  %v23756_v48 = vld [vmem:[#allocation120_spill] sm:$0xff]  ;;  %v23763_v34 = vld [vmem:[#allocation154_spill] sm:$0xff] }
 0x3f0   : > { %v6135_v3 = vsel %vm23754_vm11, %v23752_v6, 0.0 }
 0x3f2   : > { %13917 = vmatmul.mubr.msk.f32.gmra.mrb[12].mxu1 %vm22130_vm10, %v23747_v51  ;;  %v23757_v51 = vld [vmem:[#allocation80_spill] sm:$0xff] }
 0x3f3   : > { %13919 = vmatprep.mubr.msk.f32.mxu1 %vm22130_vm10, %v6133_v54  ;;  %vm23758_vm13 = vnez %v23757_v51  ;;  %v23760_v54 = vld [vmem:[#allocation64_spill] sm:$0xff] }
 0x3f4   : > { %v6137_v50 = vsel %vm23758_vm13, %v23756_v48, 0.0  ;;  %v23767_v51 = vld [vmem:[#allocation156_spill] sm:$0xff] }
 0x3f6   : > { %13920 = vmatmul.mubr.msk.f32.gmra.mrb[14].mxu1 %vm22130_vm10, %v23751_v62  ;;  %v23761_v62 = vld [vmem:[#allocation83_spill] sm:$0xff] }
 0x3f7   : > { %13922 = vmatprep.mubr.msk.f32.mxu1 %vm22130_vm10, %v6135_v3  ;;  %vm23762_vm3 = vnez %v23761_v62  ;;  %v23764_v3 = vld [vmem:[#allocation155_spill] sm:$0xff] }
 0x3f8   : > { %v6139_v63 = vsel %vm23762_vm3, %v23760_v54, 0.0  ;;  %v23771_v62 = vld [vmem:[#allocation115_spill] sm:$0xff] }
 0x3fa   : > { %13923 = vmatmul.mubr.msk.f32.gmra.mrb[16].mxu1 %vm22130_vm10, %v23755_v37  ;;  %v23765_v37 = vld [vmem:[#allocation86_spill] sm:$0xff] }
 0x3fb   : > { %13925 = vmatprep.mubr.msk.f32.mxu1 %vm22130_vm10, %v6137_v50  ;;  %vm23766_vm11 = vnez %v23765_v37  ;;  %v23768_v50 = vld [vmem:[#allocation91_spill] sm:$0xff] }
 0x3fc   : > { %v6141_v6 = vsel %vm23766_vm11, %v23764_v3, 0.0  ;;  %v23775_v37 = vld [vmem:[#allocation131_spill] sm:$0xff] }
 0x3fe   : > { %13926 = vmatmul.mubr.msk.f32.gmra.mrb[18].mxu1 %vm22130_vm10, %v23759_v31  ;;  %v23769_v31 = vld [vmem:[#allocation89_spill] sm:$0xff] }
 0x3ff   : > { %13928 = vmatprep.mubr.msk.f32.mxu1 %vm22130_vm10, %v6139_v63  ;;  %vm23770_vm13 = vnez %v23769_v31  ;;  %v23772_v63 = vld [vmem:[#allocation130_spill] sm:$0xff] }
 0x400   : > { %v6143_v48 = vsel %vm23770_vm13, %v23768_v50, 0.0  ;;  %v23779_v31 = vld [vmem:[#allocation134_spill] sm:$0xff] }
 0x402   : > { %13929 = vmatmul.mubr.msk.f32.gmra.mrb[20].mxu1 %vm22130_vm10, %v23763_v34  ;;  %v23773_v34 = vld [vmem:[#allocation49_spill] sm:$0xff] }
 0x403   : > { %13931 = vmatprep.mubr.msk.f32.mxu1 %vm22130_vm10, %v6141_v6  ;;  %vm23774_vm3 = vnez %v23773_v34  ;;  %v23776_v6 = vld [vmem:[#allocation133_spill] sm:$0xff] }
 0x404   : > { %v6145_v54 = vsel %vm23774_vm3, %v23772_v63, 0.0  ;;  %v23783_v34 = vld [vmem:[#allocation137_spill] sm:$0xff] }
 0x406   : > { %13932 = vmatmul.mubr.msk.f32.gmra.mrb[22].mxu1 %vm22130_vm10, %v23767_v51  ;;  %v23777_v51 = vld [vmem:[#allocation93_spill] sm:$0xff] }
 0x407   : > { %13934 = vmatprep.mubr.msk.f32.mxu1 %vm22130_vm10, %v6143_v48  ;;  %vm23778_vm11 = vnez %v23777_v51  ;;  %v23780_v48 = vld [vmem:[#allocation136_spill] sm:$0xff] }
 0x408   : > { %v6147_v3 = vsel %vm23778_vm11, %v23776_v6, 0.0  ;;  %v23787_v51 = vld [vmem:[#allocation140_spill] sm:$0xff] }
 0x40a   : > { %13935 = vmatmul.mubr.msk.f32.gmra.mrb[24].mxu1 %vm22130_vm10, %v23771_v62  ;;  %v23781_v62 = vld [vmem:[#allocation96_spill] sm:$0xff] }
 0x40b   : > { %13937 = vmatprep.mubr.msk.f32.mxu1 %vm22130_vm10, %v6145_v54  ;;  %vm23782_vm13 = vnez %v23781_v62  ;;  %v23784_v54 = vld [vmem:[#allocation139_spill] sm:$0xff] }
 0x40c   : > { %v6149_v50 = vsel %vm23782_vm13, %v23780_v48, 0.0 }
 0x40e   : > { %13938 = vmatmul.mubr.msk.f32.gmra.mrb[26].mxu1 %vm22130_vm10, %v23775_v37  ;;  %v23785_v37 = vld [vmem:[#allocation104_spill] sm:$0xff] }
 0x40f   : > { %13940 = vmatprep.mubr.msk.f32.mxu1 %vm22130_vm10, %v6147_v3  ;;  %vm23786_vm3 = vnez %v23785_v37  ;;  %v23788_v3 = vld [vmem:[#allocation142_spill] sm:$0xff]  ;;  %v23793_v37 = vld [vmem:[#allocation48_spill] sm:$0xff] }
 0x410   : > { %v6151_v63 = vsel %vm23786_vm3, %v23784_v54, 0.0 }
 0x412   : > { %13941 = vmatmul.mubr.msk.f32.gmra.mrb[28].mxu1 %vm22130_vm10, %v23779_v31  ;;  %v23789_v31 = vld [vmem:[#allocation111_spill] sm:$0xff] }
 0x413   : > { %13943 = vmatprep.mubr.msk.f32.mxu1 %vm22130_vm10, %v6149_v50  ;;  %vm23790_vm11 = vnez %v23789_v31  ;;  %v23791_v50 = vld [vmem:[#allocation109_spill] sm:$0xff]  ;;  %v12215_v31 = vld [vmem:[%s21229_s3 + $0x30] sm:$0xff] }
 0x414   : > { %v6153_v6 = vsel %vm23790_vm11, %v23788_v3, 0.0 }
 0x416   : > { %13944 = vmatmul.mubr.msk.f32.gmra.mrb[30].mxu1 %vm22130_vm10, %v23783_v34  ;;  %v6155_v34 = vsel %vm23590_vm8, %v23791_v50, 0.0 }
 0x417   : > { %13946 = vmatprep.mubr.msk.f32.mxu1 %vm22130_vm10, %v6151_v63  ;;  %v23794_v63 = vld [vmem:[#allocation39_spill] sm:$0xff] }
 0x41a   : > { %13947 = vmatmul.mubr.msk.f32.gmra.mrb[32].mxu1 %vm22130_vm10, %v23787_v51 }
 0x41b   : > { %13949 = vmatprep.mubr.msk.f32.mxu1 %vm22130_vm10, %v6153_v6  ;;  %v23795_v6 = vld [vmem:[#allocation99_spill] sm:$0xff] }
 0x41e   : > { %13950 = vmatmul.mubr.msk.f32.gmra.mrb[34].mxu1 %vm22130_vm10, %v18629_v27 }
 0x41f   : > { %13952 = vmatprep.mubr.msk.f32.mxu1 %vm22130_vm10, %v6155_v34  ;;  %v23796_v34 = vld [vmem:[#allocation95_spill] sm:$0xff] }
 0x422   : > { %13953 = vmatmul.mubr.msk.f32.gmra.mrb[36].mxu1 %vm22130_vm10, %v23793_v37 }
 0x423   : > { %13957 = vmatprep.mubr.msk.f32.mxu1 %vm22130_vm10, %v23794_v63  ;;  %v6870_v63 = vsel %vm23609_vm0, %v18698_v24, 0.0  ;;  %v23898_v24 = vld [vmem:[#allocation84_spill] sm:$0xff] }
 0x426   : > { %13958 = vmatmul.mubr.msk.f32.vlgmr.msra.gmra.mrb[6].mxu1 %vm22130_vm10, %v23795_v6  ;;  %v12248_v6 = vld [vmem:[%s21229_s3 + $0x38] sm:$0xff] }
 0x427   : > { %13960 = vmatprep.mubr.msk.f32.mxu1 %vm22130_vm10, %v18060_v49  ;;  %14006 = vmatpush3.msra.mxu1 %v12182_v29  ;;  %v6868_v29 = vsel %vm23602_vm12, %v18675_v18, 0.0 }
 0x428   : > { %14055 = vmatprep.subr.mxu1 %v12215_v31 }
 0x42a   : > { %13961 = vmatmul.mubr.msk.f32.gmra.mrb[8].mxu1 %vm22130_vm10, %v18069_v0 }
 0x42b   : > { %13963 = vmatprep.mubr.msk.f32.mxu1 %vm22130_vm10, %v18075_v56 }
 0x42e   : > { %13964 = vmatmul.mubr.msk.f32.gmra.mrb[10].mxu1 %vm22130_vm10, %v18083_v4 }
 0x42f   : > { %13966 = vmatprep.mubr.msk.f32.mxu1 %vm22130_vm10, %v18090_v20 }
 0x432   : > { %13967 = vmatmul.mubr.msk.f32.gmra.mrb[12].mxu1 %vm22130_vm10, %v18099_v10 }
 0x433   : > { %13969 = vmatprep.mubr.msk.f32.mxu1 %vm22130_vm10, %v18106_v45 }
 0x436   : > { %13970 = vmatmul.mubr.msk.f32.gmra.mrb[14].mxu1 %vm22130_vm10, %v18115_v38 }
 0x437   : > { %13972 = vmatprep.mubr.msk.f32.mxu1 %vm22130_vm10, %v18122_v33 }
 0x43a   : > { %13973 = vmatmul.mubr.msk.f32.gmra.mrb[16].mxu1 %vm22130_vm10, %v18131_v47 }
 0x43b   : > { %13975 = vmatprep.mubr.msk.f32.mxu1 %vm22130_vm10, %v18138_v15 }
 0x43e   : > { %13976 = vmatmul.mubr.msk.f32.gmra.mrb[18].mxu1 %vm22130_vm10, %v18147_v57 }
 0x43f   : > { %13978 = vmatprep.mubr.msk.f32.mxu1 %vm22130_vm10, %v18154_v12 }
 0x442   : > { %13979 = vmatmul.mubr.msk.f32.gmra.mrb[20].mxu1 %vm22130_vm10, %v18163_v40 }
 0x443   : > { %13981 = vmatprep.mubr.msk.f32.mxu1 %vm22130_vm10, %v18170_v39 }
 0x446   : > { %13982 = vmatmul.mubr.msk.f32.gmra.mrb[22].mxu1 %vm22130_vm10, %v18179_v59 }
 0x447   : > { %13984 = vmatprep.mubr.msk.f32.mxu1 %vm22130_vm10, %v18186_v9 }
 0x44a   : > { %13985 = vmatmul.mubr.msk.f32.gmra.mrb[24].mxu1 %vm22130_vm10, %v18195_v41 }
 0x44b   : > { %13987 = vmatprep.mubr.msk.f32.mxu1 %vm22130_vm10, %v18202_v14 }
 0x44e   : > { %13988 = vmatmul.mubr.msk.f32.gmra.mrb[26].mxu1 %vm22130_vm10, %v18211_v43 }
 0x44f   : > { %13990 = vmatprep.mubr.msk.f32.mxu1 %vm22130_vm10, %v18218_v32 }
 0x452   : > { %13991 = vmatmul.mubr.msk.f32.gmra.mrb[28].mxu1 %vm22130_vm10, %v18227_v28 }
 0x453   : > { %13993 = vmatprep.mubr.msk.f32.mxu1 %vm22130_vm10, %v18234_v42 }
 0x456   : > { %13994 = vmatmul.mubr.msk.f32.gmra.mrb[30].mxu1 %vm22130_vm10, %v18243_v30 }
 0x457   : > { %13996 = vmatprep.mubr.msk.f32.mxu1 %vm22130_vm10, %v18252_v26  ;;  %v23933_v26 = vld [vmem:[#allocation90_spill] sm:$0xff] }
 0x45a   : > { %13997 = vmatmul.mubr.msk.f32.gmra.mrb[32].mxu1 %vm22130_vm10, %v18261_v22  ;;  %v23925_v22 = vld [vmem:[#allocation27_spill] sm:$0xff] }
 0x45b   : > { %13999 = vmatprep.mubr.msk.f32.mxu1 %vm22130_vm10, %v23710_v61  ;;  %v23919_v61 = vld [vmem:[#allocation29_spill] sm:$0xff] }
 0x45e   : > { %14000 = vmatmul.mubr.msk.f32.gmra.mrb[34].mxu1 %vm22130_vm10, %v18263_v58  ;;  %v23916_v58 = vld [vmem:[#allocation87_spill] sm:$0xff] }
 0x45f   : > { %14002 = vmatprep.mubr.msk.f32.mxu1 %vm22130_vm10, %v23583_v2  ;;  %v23910_v2 = vld [vmem:[#allocation85_spill] sm:$0xff] }
 0x462   : > { %14003 = vmatmul.mubr.msk.f32.gmra.mrb[36].mxu1 %vm22130_vm10, %v23796_v34  ;;  %v23907_v34 = vld [vmem:[#allocation23_spill] sm:$0xff] }
 0x463   : > { %14007 = vmatprep.mubr.msk.f32.mxu1 %vm22130_vm10, %v18655_v19  ;;  %v6872_v19 = vsel %vm23616_vm2, %v18719_v5, 0.0  ;;  %v23883_v5 = vld [vmem:[#allocation21_spill] sm:$0xff] }
 0x466   : > { %14008 = vmatmul.mubr.msk.f32.vlgmr.msra.gmra.mrb[6].mxu1 %vm22130_vm10, %v6868_v29  ;;  %v6874_v29 = vsel %vm23622_vm15, %v18740_v55, 0.0 }
 0x467   : > { %14010 = vmatprep.mubr.msk.f32.mxu1 %vm22130_vm10, %v18681_v46  ;;  %14056 = vmatpush3.msra.mxu1 %v12215_v31  ;;  %v23802_v31 = vld [vmem:[#allocation123_spill] sm:$0xff]  ;;  %v23901_v46 = vld [vmem:[#allocation25_spill] sm:$0xff] }
 0x468   : > { %14105 = vmatprep.subr.mxu1 %v12248_v6 }
 0x46a   : > { %14011 = vmatmul.mubr.msk.f32.gmra.mrb[8].mxu1 %vm22130_vm10, %v6870_v63  ;;  %v23806_v63 = vld [vmem:[#allocation10_spill] sm:$0xff] }
 0x46b   : > { %14013 = vmatprep.mubr.msk.f32.mxu1 %vm22130_vm10, %v18704_v25  ;;  %v23889_v25 = vld [vmem:[#allocation19_spill] sm:$0xff] }
 0x46e   : > { %14014 = vmatmul.mubr.msk.f32.gmra.mrb[10].mxu1 %vm22130_vm10, %v6872_v19  ;;  %v23800_v19 = vld [vmem:[#allocation129_spill] sm:$0xff] }
 0x46f   : > { %14016 = vmatprep.mubr.msk.f32.mxu1 %vm22130_vm10, %v18725_v44  ;;  %vm23801_vm2 = vnez %v23800_v19  ;;  %v23810_v19 = vld [vmem:[#allocation15_spill] sm:$0xff]  ;;  %v23880_v44 = vld [vmem:[#allocation81_spill] sm:$0xff] }
 0x470   : > { %v6878_v18 = vsel %vm23801_vm2, %v18782_v53, 0.0  ;;  %v23874_v53 = vld [vmem:[#allocation78_spill] sm:$0xff] }
 0x472   : > { %14017 = vmatmul.mubr.msk.f32.gmra.mrb[12].mxu1 %vm22130_vm10, %v6874_v29  ;;  %v23803_v29 = vld [vmem:[#allocation125_spill] sm:$0xff] }
 0x473   : > { %14019 = vmatprep.mubr.msk.f32.mxu1 %vm22130_vm10, %v18746_v1  ;;  %v23804_v1 = vld [vmem:[#allocation132_spill] sm:$0xff] }
 0x474   : > { %vm23805_vm15 = vnez %v23804_v1  ;;  %v23813_v1 = vld [vmem:[#allocation18_spill] sm:$0xff] }
 0x475   : > { %v6880_v55 = vsel %vm23805_vm15, %v23803_v29, 0.0  ;;  %v23871_v29 = vld [vmem:[#allocation79_spill] sm:$0xff] }
 0x476   : > { %14020 = vmatmul.mubr.msk.f32.gmra.mrb[14].mxu1 %vm22130_vm10, %v6876_v21  ;;  %v23807_v21 = vld [vmem:[#allocation13_spill] sm:$0xff] }
 0x477   : > { %14022 = vmatprep.mubr.msk.f32.mxu1 %vm22130_vm10, %v18767_v36  ;;  %v23808_v36 = vld [vmem:[#allocation135_spill] sm:$0xff] }
 0x478   : > { %vm23809_vm5 = vnez %v23808_v36 }
 0x479   : > { %v6882_v35 = vsel %vm23809_vm5, %v23807_v21, 0.0  ;;  %v23865_v21 = vld [vmem:[#allocation76_spill] sm:$0xff] }
 0x47a   : > { %14023 = vmatmul.mubr.msk.f32.gmra.mrb[16].mxu1 %vm22130_vm10, %v6878_v18  ;;  %v23811_v18 = vld [vmem:[#allocation138_spill] sm:$0xff] }
 0x47b   : > { %14025 = vmatprep.mubr.msk.f32.mxu1 %vm22130_vm10, %v23802_v31  ;;  %vm23812_vm2 = vnez %v23811_v18  ;;  %v23818_v18 = vld [vmem:[#allocation26_spill] sm:$0xff] }
 0x47c   : > { %v6884_v31 = vsel %vm23812_vm2, %v18845_v7, 0.0 }
 0x47e   : > { %14026 = vmatmul.mubr.msk.f32.gmra.mrb[18].mxu1 %vm22130_vm10, %v6880_v55  ;;  %v23814_v55 = vld [vmem:[#allocation141_spill] sm:$0xff] }
 0x47f   : > { %14028 = vmatprep.mubr.msk.f32.mxu1 %vm22130_vm10, %v23806_v63  ;;  %vm23815_vm15 = vnez %v23814_v55  ;;  %v23822_v55 = vld [vmem:[#allocation30_spill] sm:$0xff] }
 0x480   : > { %v6886_v63 = vsel %vm23815_vm15, %v18866_v52, 0.0  ;;  %v23856_v52 = vld [vmem:[#allocation73_spill] sm:$0xff] }
 0x482   : > { %14029 = vmatmul.mubr.msk.f32.gmra.mrb[20].mxu1 %vm22130_vm10, %v6882_v35  ;;  %v23816_v35 = vld [vmem:[#allocation143_spill] sm:$0xff] }
 0x483   : > { %14031 = vmatprep.mubr.msk.f32.mxu1 %vm22130_vm10, %v23810_v19  ;;  %vm23817_vm5 = vnez %v23816_v35  ;;  %v23862_v19 = vld [vmem:[#allocation17_spill] sm:$0xff] }
 0x484   : > { %v6888_v36 = vsel %vm23817_vm5, %v18887_v17, 0.0  ;;  %v23855_v17 = vld [vmem:[#allocation67_spill] sm:$0xff] }
 0x486   : > { %14032 = vmatmul.mubr.msk.f32.gmra.mrb[22].mxu1 %vm22130_vm10, %v6884_v31  ;;  %v23819_v31 = vld [vmem:[#allocation28_spill] sm:$0xff] }
 0x487   : > { %14034 = vmatprep.mubr.msk.f32.mxu1 %vm22130_vm10, %v23813_v1  ;;  %v23820_v1 = vld [vmem:[#allocation144_spill] sm:$0xff] }
 0x488   : > { %vm23821_vm2 = vnez %v23820_v1  ;;  %v23836_v1 = vld [vmem:[#allocation101_spill] sm:$0xff] }
 0x489   : > { %v6890_v7 = vsel %vm23821_vm2, %v23819_v31, 0.0  ;;  %v23847_v31 = vld [vmem:[#allocation108_spill] sm:$0xff] }
 0x48a   : > { %14035 = vmatmul.mubr.msk.f32.gmra.mrb[24].mxu1 %vm22130_vm10, %v6886_v63  ;;  %v23828_v63 = vld [vmem:[#allocation55_spill] sm:$0xff] }
 0x48b   : > { %14037 = vmatprep.mubr.msk.f32.mxu1 %vm22130_vm10, %v18872_v11  ;;  %v6892_v11 = vsel %vm23705_vm7, %v18929_v60, 0.0 }
 0x48e   : > { %14038 = vmatmul.mubr.msk.f32.gmra.mrb[26].mxu1 %vm22130_vm10, %v6888_v36  ;;  %v23824_v36 = vld [vmem:[#allocation147_spill] sm:$0xff] }
 0x48f   : > { %14040 = vmatprep.mubr.msk.f32.mxu1 %vm22130_vm10, %v23818_v18  ;;  %vm23825_vm5 = vnez %v23824_v36  ;;  %v23831_v36 = vld [vmem:[#allocation98_spill] sm:$0xff] }
 0x490   : > { %v6894_v35 = vsel %vm23825_vm5, %v18950_v23, 0.0  ;;  %v23861_v18 = vld [vmem:[#allocation114_spill] sm:$0xff] }
 0x492   : > { %14041 = vmatmul.mubr.msk.f32.gmra.mrb[28].mxu1 %vm22130_vm10, %v6890_v7  ;;  %v23826_v7 = vld [vmem:[#allocation60_spill] sm:$0xff] }
 0x493   : > { %14043 = vmatprep.mubr.msk.f32.mxu1 %vm22130_vm10, %v23822_v55  ;;  %v6896_v55 = vsel %vm23723_vm1, %v23826_v7, 0.0 }
 0x496   : > { %14044 = vmatmul.mubr.msk.f32.gmra.mrb[30].mxu1 %vm22130_vm10, %v6892_v11  ;;  %v23829_v11 = vld [vmem:[#allocation57_spill] sm:$0xff] }
 0x497   : > { %14046 = vmatprep.mubr.msk.f32.mxu1 %vm22130_vm10, %v18935_v8  ;;  %v6898_v60 = vsel %vm23730_vm14, %v23829_v11, 0.0  ;;  %v19260_v8 = vld [vmem:[%s21229_s3 + $0x40] sm:$0xff] }
 0x498   : > { %v23840_v11 = vld [vmem:[#allocation158_spill] sm:$0xff] }
 0x499   : > { %vm23841_vm14 = vnez %v23840_v11  ;;  %v24004_v11 = vld [vmem:[#allocation126_spill] sm:$0xff] }
 0x49a   : > { %14047 = vmatmul.mubr.msk.f32.gmra.mrb[32].mxu1 %vm22130_vm10, %v6894_v35  ;;  %v23832_v35 = vld [vmem:[#allocation157_spill] sm:$0xff] }
 0x49b   : > { %14049 = vmatprep.mubr.msk.f32.mxu1 %vm22130_vm10, %v18955_v16  ;;  %vm23833_vm5 = vnez %v23832_v35  ;;  %v23997_v35 = vld [vmem:[#allocation124_spill] sm:$0xff] }
 0x49c   : > { %vm23835_vm7 = vmand %vm23833_vm5, %vm23734_vm4 }
 0x49d   : > { %v7254_v16 = vsel %vm23835_vm7, %v23831_v36, 0.0  ;;  %vm23843_vm4 = vmand %vm23841_vm14, %vm23738_vm9 }
 0x49e   : > { %14050 = vmatmul.mubr.msk.f32.gmra.mrb[34].mxu1 %vm22130_vm10, %v6896_v55  ;;  %v23837_v55 = vld [vmem:[#allocation159_spill] sm:$0xff] }
 0x49f   : > { %14052 = vmatprep.mubr.msk.f32.mxu1 %vm22130_vm10, %v23828_v63  ;;  %vm23838_vm1 = vnez %v23837_v55  ;;  %v24000_v55 = vld [vmem:[#allocation148_spill] sm:$0xff] }
 0x4a0   : > { %v7255_v7 = vsel %vm23838_vm1, %v23836_v1, 0.0  ;;  %v23844_v1 = vld [vmem:[#allocation103_spill] sm:$0xff]  ;;  %v7642_v62 = vsel %vm23838_vm1, %v18069_v0, 0.0 }
 0x4a2   : > { %14053 = vmatmul.mubr.msk.f32.gmra.mrb[36].mxu1 %vm22130_vm10, %v6898_v60  ;;  %v23839_v60 = vld [vmem:[#allocation105_spill] sm:$0xff] }
 0x4a3   : > { %14057 = vmatprep.mubr.msk.f32.mxu1 %vm22130_vm10, %v7254_v16  ;;  %v7256_v23 = vsel %vm23843_vm4, %v23839_v60, 0.0  ;;  %v23845_v16 = vld [vmem:[#allocation72_spill] sm:$0xff]  ;;  %v23852_v60 = vld [vmem:[#allocation66_spill] sm:$0xff]  ;;  %vm23857_vm4 = vnez %v23856_v52 }
 0x4a4   : > { %vm23846_vm7 = vnez %v23845_v16 }
 0x4a5   : > { %v7257_v36 = vsel %vm23846_vm7, %v23844_v1, 0.0  ;;  %v23858_v1 = vld [vmem:[#allocation71_spill] sm:$0xff] }
 0x4a6   : > { %14058 = vmatmul.mubr.msk.f32.vlgmr.msra.gmra.mrb[6].mxu1 %vm22130_vm10, %v7255_v7  ;;  %v23848_v7 = vld [vmem:[#allocation70_spill] sm:$0xff]  ;;  %vm23859_vm0 = vnez %v23858_v1  ;;  %v23870_v1 = vld [vmem:[#allocation112_spill] sm:$0xff] }
 0x4a7   : > { %14060 = vmatprep.mubr.msk.f32.mxu1 %vm22130_vm10, %v7256_v23  ;;  %14106 = vmatpush3.msra.mxu1 %v12248_v6  ;;  %vm23849_vm2 = vnez %v23848_v7  ;;  %v23853_v23 = vld [vmem:[#allocation75_spill] sm:$0xff]  ;;  %vm23860_vm12 = vmand %vm23857_vm4, %vm23859_vm0  ;;  %vm23875_vm0 = vnez %v23874_v53 }
 0x4a8   : > { %14155 = vmatprep.subr.mxu1 %v19260_v8  ;;  %vm23851_vm15 = vmand %vm23849_vm2, %vm23742_vm6  ;;  %vm23854_vm9 = vnez %v23853_v23  ;;  %vm23866_vm6 = vnez %v23865_v21 }
 0x4a9   : > { %v7258_v63 = vsel %vm23851_vm15, %v23847_v31, 0.0  ;;  %v7259_v6 = vsel %vm23854_vm9, %v23852_v60, 0.0  ;;  %vm23863_vm15 = vnez %v23862_v19  ;;  %v23867_v60 = vld [vmem:[#allocation74_spill] sm:$0xff] }
 0x4aa   : > { %14061 = vmatmul.mubr.msk.f32.gmra.mrb[8].mxu1 %vm22130_vm10, %v7257_v36  ;;  %v7260_v36 = vsel %vm23860_vm12, %v23855_v17, 0.0  ;;  %v7261_v31 = vsel %vm23863_vm15, %v23861_v18, 0.0  ;;  %vm23868_vm9 = vnez %v23867_v60  ;;  %vm23872_vm12 = vnez %v23871_v29  ;;  %v23876_v18 = vld [vmem:[#allocation77_spill] sm:$0xff]  ;;  %v23879_v60 = vld [vmem:[#allocation118_spill] sm:$0xff] }
 0x4ab   : > { %14063 = vmatprep.mubr.msk.f32.mxu1 %vm22130_vm10, %v7258_v63  ;;  %v23864_v63 = vld [vmem:[#allocation69_spill] sm:$0xff]  ;;  %vm23869_vm2 = vmand %vm23866_vm6, %vm23868_vm9  ;;  %v7263_v17 = vsel %vm23872_vm12, %v23870_v1, 0.0  ;;  %vm23877_vm15 = vnez %v23876_v18  ;;  %vm23884_vm9 = vnez %v23883_v5  ;;  %v23885_v1 = vld [vmem:[#allocation80_spill] sm:$0xff] }
 0x4ac   : > { %vm23878_vm4 = vmand %vm23875_vm0, %vm23877_vm15  ;;  %vm23886_vm12 = vnez %v23885_v1  ;;  %v23888_v18 = vld [vmem:[#allocation154_spill] sm:$0xff]  ;;  %vm23893_vm15 = vnez %v23892_v13  ;;  %v23897_v1 = vld [vmem:[#allocation156_spill] sm:$0xff] }
 0x4ad   : > { %vm23887_vm6 = vmand %vm23884_vm9, %vm23886_vm12  ;;  %vm23902_vm12 = vnez %v23901_v46 }
 0x4ae   : > { %14064 = vmatmul.mubr.msk.f32.gmra.mrb[10].mxu1 %vm22130_vm10, %v7259_v6  ;;  %v7262_v6 = vsel %vm23869_vm2, %v23864_v63, 0.0  ;;  %vm23881_vm2 = vnez %v23880_v44 }
 0x4af   : > { %14066 = vmatprep.mubr.msk.f32.mxu1 %vm22130_vm10, %v7260_v36  ;;  %v23873_v36 = vld [vmem:[#allocation120_spill] sm:$0xff]  ;;  %v7265_v63 = vsel %vm23881_vm2, %v23879_v60, 0.0  ;;  %v23894_v60 = vld [vmem:[#allocation83_spill] sm:$0xff] }
 0x4b0   : > { %vm23895_vm2 = vnez %v23894_v60  ;;  %v23906_v60 = vld [vmem:[#allocation115_spill] sm:$0xff] }
 0x4b1   : > { %vm23896_vm0 = vmand %vm23893_vm15, %vm23895_vm2  ;;  %vm23911_vm2 = vnez %v23910_v2 }
 0x4b2   : > { %14067 = vmatmul.mubr.msk.f32.gmra.mrb[12].mxu1 %vm22130_vm10, %v7261_v31  ;;  %v7264_v31 = vsel %vm23878_vm4, %v23873_v36, 0.0  ;;  %vm23890_vm4 = vnez %v23889_v25 }
 0x4b3   : > { %14069 = vmatprep.mubr.msk.f32.mxu1 %vm22130_vm10, %v7262_v6  ;;  %v23882_v6 = vld [vmem:[#allocation64_spill] sm:$0xff]  ;;  %v7267_v36 = vsel %vm23890_vm4, %v23888_v18, 0.0  ;;  %v23903_v18 = vld [vmem:[#allocation86_spill] sm:$0xff] }
 0x4b4   : > { %vm23904_vm4 = vnez %v23903_v18  ;;  %v23915_v18 = vld [vmem:[#allocation131_spill] sm:$0xff] }
 0x4b5   : > { %vm23905_vm9 = vmand %vm23902_vm12, %vm23904_vm4  ;;  %vm23920_vm4 = vnez %v23919_v61  ;;  %v24063_v61 = vld [vmem:[#allocation144_spill] sm:$0xff] }
 0x4b6   : > { %14070 = vmatmul.mubr.msk.f32.gmra.mrb[14].mxu1 %vm22130_vm10, %v7263_v17  ;;  %v7266_v17 = vsel %vm23887_vm6, %v23882_v6, 0.0  ;;  %vm23899_vm6 = vnez %v23898_v24 }
 0x4b7   : > { %14072 = vmatprep.mubr.msk.f32.mxu1 %vm22130_vm10, %v7264_v31  ;;  %v23891_v31 = vld [vmem:[#allocation155_spill] sm:$0xff]  ;;  %v7269_v6 = vsel %vm23899_vm6, %v23897_v1, 0.0  ;;  %v23912_v1 = vld [vmem:[#allocation89_spill] sm:$0xff] }
 0x4b8   : > { %vm23913_vm6 = vnez %v23912_v1  ;;  %v23924_v1 = vld [vmem:[#allocation134_spill] sm:$0xff] }
 0x4b9   : > { %vm23914_vm15 = vmand %vm23911_vm2, %vm23913_vm6 }
 0x4ba   : > { %14073 = vmatmul.mubr.msk.f32.gmra.mrb[16].mxu1 %vm22130_vm10, %v7265_v63  ;;  %v7268_v63 = vsel %vm23896_vm0, %v23891_v31, 0.0  ;;  %vm23908_vm0 = vnez %v23907_v34 }
 0x4bb   : > { %14075 = vmatprep.mubr.msk.f32.mxu1 %vm22130_vm10, %v7266_v17  ;;  %v23900_v17 = vld [vmem:[#allocation91_spill] sm:$0xff]  ;;  %v7271_v31 = vsel %vm23908_vm0, %v23906_v60, 0.0  ;;  %v23921_v60 = vld [vmem:[#allocation49_spill] sm:$0xff] }
 0x4bc   : > { %vm23922_vm0 = vnez %v23921_v60  ;;  %v23932_v60 = vld [vmem:[#allocation137_spill] sm:$0xff] }
 0x4bd   : > { %vm23923_vm12 = vmand %vm23920_vm4, %vm23922_vm0 }
 0x4be   : > { %14076 = vmatmul.mubr.msk.f32.gmra.mrb[18].mxu1 %vm22130_vm10, %v7267_v36  ;;  %v7270_v36 = vsel %vm23905_vm9, %v23900_v17, 0.0  ;;  %vm23917_vm9 = vnez %v23916_v58 }
 0x4bf   : > { %14078 = vmatprep.mubr.msk.f32.mxu1 %vm22130_vm10, %v7268_v63  ;;  %v23909_v63 = vld [vmem:[#allocation130_spill] sm:$0xff]  ;;  %v7273_v17 = vsel %vm23917_vm9, %v23915_v18, 0.0  ;;  %v23929_v18 = vld [vmem:[#allocation93_spill] sm:$0xff] }
 0x4c0   : > { %vm23930_vm9 = vnez %v23929_v18  ;;  %v23939_v18 = vld [vmem:[#allocation31_spill] sm:$0xff] }
 0x4c2   : > { %14079 = vmatmul.mubr.msk.f32.gmra.mrb[20].mxu1 %vm22130_vm10, %v7269_v6  ;;  %v7272_v6 = vsel %vm23914_vm15, %v23909_v63, 0.0  ;;  %vm23926_vm15 = vnez %v23925_v22 }
 0x4c3   : > { %14081 = vmatprep.mubr.msk.f32.mxu1 %vm22130_vm10, %v7270_v36  ;;  %v23918_v36 = vld [vmem:[#allocation133_spill] sm:$0xff]  ;;  %v7275_v63 = vsel %vm23926_vm15, %v23924_v1, 0.0  ;;  %v23945_v1 = vld [vmem:[#allocation52_spill] sm:$0xff] }
 0x4c6   : > { %14082 = vmatmul.mubr.msk.f32.gmra.mrb[22].mxu1 %vm22130_vm10, %v7271_v31  ;;  %v7274_v31 = vsel %vm23923_vm12, %v23918_v36, 0.0  ;;  %vm23934_vm12 = vnez %v23933_v26 }
 0x4c7   : > { %14084 = vmatprep.mubr.msk.f32.mxu1 %vm22130_vm10, %v7272_v6  ;;  %v23927_v6 = vld [vmem:[#allocation88_spill] sm:$0xff]  ;;  %v7277_v36 = vsel %vm23934_vm12, %v23932_v60, 0.0  ;;  %v23951_v60 = vld [vmem:[#allocation41_spill] sm:$0xff] }
 0x4c8   : > { %vm23928_vm6 = vnez %v23927_v6  ;;  %v24068_v6 = vld [vmem:[#allocation145_spill] sm:$0xff] }
 0x4c9   : > { %vm23931_vm2 = vmand %vm23928_vm6, %vm23930_vm9 }
 0x4ca   : > { %14085 = vmatmul.mubr.msk.f32.gmra.mrb[24].mxu1 %vm22130_vm10, %v7273_v17  ;;  %v7276_v17 = vsel %vm23931_vm2, %v23780_v48, 0.0  ;;  %vm23940_vm2 = vnez %v23939_v18 }
 0x4cb   : > { %14087 = vmatprep.mubr.msk.f32.mxu1 %vm22130_vm10, %v7274_v31  ;;  %v23935_v31 = vld [vmem:[#allocation33_spill] sm:$0xff]  ;;  %v7279_v48 = vsel %vm23940_vm2, %v23787_v51, 0.0  ;;  %v23958_v51 = vld [vmem:[#allocation94_spill] sm:$0xff] }
 0x4cc   : > { %vm23936_vm0 = vnez %v23935_v31  ;;  %v24073_v31 = vld [vmem:[#allocation147_spill] sm:$0xff] }
 0x4cd   : > { %vm23938_vm15 = vmand %vm23936_vm0, %vm23782_vm13  ;;  %vm23946_vm13 = vnez %v23945_v1  ;;  %v23954_v1 = vld [vmem:[#allocation35_spill] sm:$0xff] }
 0x4ce   : > { %14088 = vmatmul.mubr.msk.f32.gmra.mrb[26].mxu1 %vm22130_vm10, %v7275_v63  ;;  %v7278_v63 = vsel %vm23938_vm15, %v23784_v54, 0.0  ;;  %v7281_v54 = vsel %vm23946_vm13, %v18629_v27, 0.0 }
 0x4cf   : > { %14090 = vmatprep.mubr.msk.f32.mxu1 %vm22130_vm10, %v7276_v17  ;;  %v23941_v17 = vld [vmem:[#allocation46_spill] sm:$0xff] }
 0x4d0   : > { %vm23942_vm9 = vnez %v23941_v17  ;;  %v24080_v17 = vld [vmem:[#allocation149_spill] sm:$0xff] }
 0x4d1   : > { %vm23944_vm12 = vmand %vm23942_vm9, %vm23786_vm3  ;;  %vm23952_vm3 = vnez %v23951_v60 }
 0x4d2   : > { %14091 = vmatmul.mubr.msk.f32.gmra.mrb[28].mxu1 %vm22130_vm10, %v7277_v36  ;;  %v7280_v36 = vsel %vm23944_vm12, %v23788_v3, 0.0  ;;  %v7283_v3 = vsel %vm23952_vm3, %v23793_v37, 0.0  ;;  %vm23955_vm12 = vnez %v23954_v1  ;;  %v7641_v37 = vsel %vm23833_vm5, %v18060_v49, 0.0 }
 0x4d3   : > { %14093 = vmatprep.mubr.msk.f32.mxu1 %vm22130_vm10, %v7278_v63  ;;  %v23947_v63 = vld [vmem:[#allocation37_spill] sm:$0xff]  ;;  %vm23956_vm13 = vmand %vm23955_vm12, %vm23590_vm8  ;;  %v7644_v49 = vsel %vm23846_vm7, %v18083_v4, 0.0  ;;  %vm23960_vm8 = vnez %v23848_v7  ;;  %vm23963_vm7 = vnez %v23862_v19 }
 0x4d4   : > { %vm23948_vm15 = vnez %v23947_v63  ;;  %v7645_v0 = vsel %vm23960_vm8, %v18090_v20, 0.0  ;;  %v7648_v4 = vsel %vm23963_vm7, %v18115_v38, 0.0  ;;  %vm23964_vm8 = vnez %v23865_v21 }
 0x4d5   : > { %vm23950_vm2 = vmand %vm23948_vm15, %vm23790_vm11  ;;  %vm23959_vm11 = vnez %v23958_v51  ;;  %v7649_v20 = vsel %vm23964_vm8, %v18122_v33, 0.0  ;;  %vm23967_vm7 = vnez %v23880_v44  ;;  %vm23968_vm8 = vnez %v23883_v5 }
 0x4d6   : > { %14094 = vmatmul.mubr.msk.f32.gmra.mrb[30].mxu1 %vm22130_vm10, %v7279_v48  ;;  %v7282_v48 = vsel %vm23950_vm2, %v23791_v50, 0.0  ;;  %vm23961_vm2 = vnez %v23853_v23  ;;  %v7652_v38 = vsel %vm23967_vm7, %v18147_v57, 0.0  ;;  %v7653_v33 = vsel %vm23968_vm8, %v18154_v12, 0.0 }
 0x4d7   : > { %14096 = vmatprep.mubr.msk.f32.mxu1 %vm22130_vm10, %v7280_v36  ;;  %v23953_v36 = vld [vmem:[#allocation92_spill] sm:$0xff]  ;;  %vm23971_vm7 = vnez %v23898_v24  ;;  %vm23972_vm8 = vnez %v23901_v46  ;;  %v24051_v46 = vld [vmem:[#allocation141_spill] sm:$0xff] }
 0x4d8   : > { %v7284_v27 = vsel %vm23956_vm13, %v23953_v36, 0.0  ;;  %vm23962_vm13 = vnez %v23856_v52  ;;  %v7656_v57 = vsel %vm23971_vm7, %v18179_v59, 0.0  ;;  %v7657_v12 = vsel %vm23972_vm8, %v18186_v9, 0.0 }
 0x4d9   : > { %vm23975_vm7 = vnez %v23916_v58  ;;  %v7661_v9 = vsel %vm23920_vm4, %v18218_v32, 0.0  ;;  %v23978_v32 = vld [vmem:[#allocation102_spill] sm:$0xff] }
 0x4da   : > { %14097 = vmatmul.mubr.msk.f32.gmra.mrb[32].mxu1 %vm22130_vm10, %v7281_v54  ;;  %v23957_v54 = vld [vmem:[#allocation54_spill] sm:$0xff]  ;;  %v7660_v59 = vsel %vm23975_vm7, %v18211_v43, 0.0  ;;  %vm23977_vm7 = vnez %v23933_v26 }
 0x4db   : > { %14099 = vmatprep.mubr.msk.f32.mxu1 %vm22130_vm10, %v7282_v48  ;;  %v7285_v50 = vsel %vm23959_vm11, %v23957_v54, 0.0  ;;  %v7643_v48 = vsel %vm23841_vm14, %v18075_v56, 0.0  ;;  %v7646_v56 = vsel %vm23961_vm2, %v18099_v10, 0.0  ;;  %vm23965_vm2 = vnez %v23871_v29  ;;  %v23983_v54 = vld [vmem:[#allocation52_spill] sm:$0xff] }
 0x4dc   : > { %v7650_v10 = vsel %vm23965_vm2, %v18131_v47, 0.0  ;;  %vm23969_vm2 = vnez %v23889_v25  ;;  %v7664_v43 = vsel %vm23977_vm7, %v18243_v30, 0.0  ;;  %v23982_v30 = vld [vmem:[#allocation51_spill] sm:$0xff]  ;;  %vm23984_vm7 = vnez %v23983_v54 }
 0x4dd   : > { %v7654_v47 = vsel %vm23969_vm2, %v18163_v40, 0.0  ;;  %vm23973_vm2 = vnez %v23907_v34  ;;  %v24083_v54 = vld [vmem:[#allocation59_spill] sm:$0xff] }
 0x4de   : > { %14100 = vmatmul.mubr.msk.f32.gmra.mrb[34].mxu1 %vm22130_vm10, %v7283_v3  ;;  %v7658_v40 = vsel %vm23973_vm2, %v18195_v41, 0.0  ;;  %vm23976_vm2 = vnez %v23925_v22  ;;  %v7665_v3 = vsel %vm23936_vm0, %v23978_v32, 0.0  ;;  %v24016_v32 = vld [vmem:[#allocation122_spill] sm:$0xff] }
 0x4df   : > { %14102 = vmatprep.mubr.msk.f32.mxu1 %vm22130_vm10, %v7284_v27  ;;  %v7662_v41 = vsel %vm23976_vm2, %v18227_v28, 0.0  ;;  %v23979_v28 = vld [vmem:[#allocation43_spill] sm:$0xff]  ;;  %vm23980_vm2 = vnez %v23939_v18 }
 0x4e0   : > { %v7666_v36 = vsel %vm23980_vm2, %v23979_v28, 0.0  ;;  %v24076_v18 = vld [vmem:[#allocation55_spill] sm:$0xff] }
 0x4e2   : > { %14103 = vmatmul.mubr.msk.f32.gmra.mrb[36].mxu1 %vm22130_vm10, %v7285_v50  ;;  %v7668_v50 = vsel %vm23984_vm7, %v23982_v30, 0.0  ;;  %v24030_v30 = vld [vmem:[#allocation13_spill] sm:$0xff] }
 0x4e3   : > { %14107 = vmatprep.mubr.msk.f32.mxu1 %vm22130_vm10, %v7641_v37  ;;  %v23985_v37 = vld [vmem:[#allocation45_spill] sm:$0xff] }
 0x4e6   : > { %14108 = vmatmul.mubr.msk.f32.vlgmr.msra.gmra.mrb[6].mxu1 %vm22130_vm10, %v7642_v62  ;;  %v7669_v62 = vsel %vm23948_vm15, %v23985_v37, 0.0 }
 0x4e7   : > { %14110 = vmatprep.mubr.msk.f32.mxu1 %vm22130_vm10, %v7643_v48  ;;  %14156 = vmatpush3.msra.mxu1 %v19260_v8  ;;  %v7647_v8 = vsel %vm23962_vm13, %v18106_v45, 0.0  ;;  %vm23966_vm13 = vnez %v23874_v53  ;;  %v23986_v48 = vld [vmem:[#allocation95_spill] sm:$0xff] }
 0x4e8   : > { %v7651_v45 = vsel %vm23966_vm13, %v18138_v15, 0.0  ;;  %vm23970_vm13 = vnez %v23892_v13 }
 0x4e9   : > { %v7655_v15 = vsel %vm23970_vm13, %v18170_v39, 0.0  ;;  %vm23974_vm13 = vnez %v23910_v2  ;;  %v24057_v2 = vld [vmem:[#allocation143_spill] sm:$0xff] }
 0x4ea   : > { %14111 = vmatmul.mubr.msk.f32.gmra.mrb[8].mxu1 %vm22130_vm10, %v7644_v49  ;;  %v7659_v39 = vsel %vm23974_vm13, %v18202_v14, 0.0  ;;  %v7663_v14 = vsel %vm23928_vm6, %v18234_v42, 0.0  ;;  %v23981_v42 = vld [vmem:[#allocation106_spill] sm:$0xff]  ;;  %v7670_v49 = vsel %vm23952_vm3, %v23986_v48, 0.0 }
 0x4eb   : > { %14113 = vmatprep.mubr.msk.f32.mxu1 %vm22130_vm10, %v7645_v0  ;;  %v7667_v27 = vsel %vm23942_vm9, %v23981_v42, 0.0  ;;  %v23987_v0 = vld [vmem:[#allocation39_spill] sm:$0xff] }
 0x4ee   : > { %14114 = vmatmul.mubr.msk.f32.gmra.mrb[10].mxu1 %vm22130_vm10, %v7646_v56  ;;  %v7671_v56 = vsel %vm23955_vm12, %v23987_v0, 0.0  ;;  %v24043_v0 = vld [vmem:[#allocation20_spill] sm:$0xff] }
 0x4ef   : > { %14116 = vmatprep.mubr.msk.f32.mxu1 %vm22130_vm10, %v7647_v8  ;;  %v23988_v8 = vld [vmem:[#allocation99_spill] sm:$0xff] }
 0x4f2   : > { %14117 = vmatmul.mubr.msk.f32.gmra.mrb[12].mxu1 %vm22130_vm10, %v7648_v4  ;;  %v7672_v4 = vsel %vm23959_vm11, %v23988_v8, 0.0  ;;  %vm23998_vm11 = vnez %v23997_v35  ;;  %v24067_v35 = vld [vmem:[#allocation36_spill] sm:$0xff] }
 0x4f3   : > { %14119 = vmatprep.mubr.msk.f32.mxu1 %vm22130_vm10, %v7649_v20  ;;  %v23989_v20 = vld [vmem:[#allocation97_spill] sm:$0xff] }
 0x4f6   : > { %14120 = vmatmul.mubr.msk.f32.gmra.mrb[14].mxu1 %vm22130_vm10, %v7650_v10  ;;  %v8028_v10 = vsel %vm23833_vm5, %v23989_v20, 0.0  ;;  %vm23996_vm5 = vnez %v23845_v16  ;;  %v24007_v16 = vld [vmem:[#allocation151_spill] sm:$0xff] }
 0x4f7   : > { %14122 = vmatprep.mubr.msk.f32.mxu1 %vm22130_vm10, %v7651_v45  ;;  %v23990_v45 = vld [vmem:[#allocation100_spill] sm:$0xff]  ;;  %vm23999_vm15 = vmand %vm23996_vm5, %vm23998_vm11  ;;  %vm24010_vm11 = vnez %v23862_v19  ;;  %v24021_v19 = vld [vmem:[#allocation123_spill] sm:$0xff] }
 0x4fa   : > { %14123 = vmatmul.mubr.msk.f32.gmra.mrb[16].mxu1 %vm22130_vm10, %v7652_v38  ;;  %v23991_v38 = vld [vmem:[#allocation121_spill] sm:$0xff] }
 0x4fb   : > { %14125 = vmatprep.mubr.msk.f32.mxu1 %vm22130_vm10, %v7653_v33  ;;  %vm23992_vm3 = vnez %v23991_v38 }
 0x4fc   : > { %vm23993_vm12 = vmand %vm23838_vm1, %vm23992_vm3  ;;  %vm24001_vm1 = vnez %v23848_v7  ;;  %vm24005_vm3 = vnez %v24004_v11  ;;  %v24011_v7 = vld [vmem:[#allocation127_spill] sm:$0xff] }
 0x4fd   : > { %v8029_v33 = vsel %vm23993_vm12, %v23990_v45, 0.0  ;;  %vm24012_vm5 = vnez %v24011_v7  ;;  %v24055_v45 = vld [vmem:[#allocation28_spill] sm:$0xff] }
 0x4fe   : > { %14126 = vmatmul.mubr.msk.f32.gmra.mrb[18].mxu1 %vm22130_vm10, %v7654_v47  ;;  %v23994_v47 = vld [vmem:[#allocation146_spill] sm:$0xff] }
 0x4ff   : > { %14128 = vmatprep.mubr.msk.f32.mxu1 %vm22130_vm10, %v7655_v15  ;;  %v8030_v15 = vsel %vm23841_vm14, %v23994_v47, 0.0  ;;  %vm24003_vm14 = vnez %v23853_v23  ;;  %v24014_v23 = vld [vmem:[#allocation11_spill] sm:$0xff]  ;;  %v24061_v47 = vld [vmem:[#allocation32_spill] sm:$0xff] }
 0x500   : > { %vm24006_vm12 = vmand %vm24003_vm14, %vm24005_vm3  ;;  %vm24015_vm14 = vnez %v23865_v21  ;;  %vm24017_vm3 = vnez %v23871_v29  ;;  %v24025_v21 = vld [vmem:[#allocation129_spill] sm:$0xff]  ;;  %v24028_v29 = vld [vmem:[#allocation10_spill] sm:$0xff] }
 0x502   : > { %14129 = vmatmul.mubr.msk.f32.gmra.mrb[20].mxu1 %vm22130_vm10, %v7656_v57  ;;  %v23995_v57 = vld [vmem:[#allocation107_spill] sm:$0xff] }
 0x503   : > { %14131 = vmatprep.mubr.msk.f32.mxu1 %vm22130_vm10, %v7657_v12  ;;  %v8031_v12 = vsel %vm23999_vm15, %v23995_v57, 0.0  ;;  %vm24008_vm15 = vnez %v23856_v52  ;;  %v24018_v52 = vld [vmem:[#allocation128_spill] sm:$0xff] }
 0x506   : > { %14132 = vmatmul.mubr.msk.f32.gmra.mrb[22].mxu1 %vm22130_vm10, %v7658_v40  ;;  %v8032_v40 = vsel %vm24001_vm1, %v24000_v55, 0.0  ;;  %vm24013_vm1 = vmand %vm24010_vm11, %vm24012_vm5  ;;  %vm24022_vm11 = vnez %v23874_v53  ;;  %vm24024_vm5 = vnez %v23880_v44  ;;  %v24032_v53 = vld [vmem:[#allocation132_spill] sm:$0xff]  ;;  %v24035_v44 = vld [vmem:[#allocation15_spill] sm:$0xff] }
 0x507   : > { %14134 = vmatprep.mubr.msk.f32.mxu1 %vm22130_vm10, %v7659_v39  ;;  %v24002_v39 = vld [vmem:[#allocation150_spill] sm:$0xff]  ;;  %v8038_v28 = vsel %vm24022_vm11, %v24021_v19, 0.0 }
 0x50a   : > { %14135 = vmatmul.mubr.msk.f32.gmra.mrb[24].mxu1 %vm22130_vm10, %v7660_v59  ;;  %v8033_v59 = vsel %vm24006_vm12, %v24002_v39, 0.0  ;;  %vm24019_vm12 = vnez %v24018_v52 }
 0x50b   : > { %14137 = vmatprep.mubr.msk.f32.mxu1 %vm22130_vm10, %v7661_v9  ;;  %v8034_v9 = vsel %vm24008_vm15, %v24007_v16, 0.0  ;;  %vm24020_vm15 = vmand %vm24017_vm3, %vm24019_vm12  ;;  %vm24029_vm3 = vnez %v23883_v5  ;;  %vm24031_vm12 = vnez %v23889_v25  ;;  %v24039_v5 = vld [vmem:[#allocation135_spill] sm:$0xff]  ;;  %v24042_v25 = vld [vmem:[#allocation18_spill] sm:$0xff] }
 0x50e   : > { %14138 = vmatmul.mubr.msk.f32.gmra.mrb[26].mxu1 %vm22130_vm10, %v7662_v41  ;;  %v24009_v41 = vld [vmem:[#allocation153_spill] sm:$0xff] }
 0x50f   : > { %14140 = vmatprep.mubr.msk.f32.mxu1 %vm22130_vm10, %v7663_v14  ;;  %v8035_v14 = vsel %vm24013_vm1, %v24009_v41, 0.0  ;;  %vm24026_vm1 = vnez %v24025_v21  ;;  %v24085_v41 = vld [vmem:[#allocation62_spill] sm:$0xff] }
 0x512   : > { %14141 = vmatmul.mubr.msk.f32.gmra.mrb[28].mxu1 %vm22130_vm10, %v7664_v43  ;;  %v8036_v43 = vsel %vm24015_vm14, %v24014_v23, 0.0  ;;  %vm24027_vm14 = vmand %vm24024_vm5, %vm24026_vm1  ;;  %vm24036_vm5 = vnez %v23892_v13  ;;  %vm24038_vm1 = vnez %v23898_v24  ;;  %v24045_v13 = vld [vmem:[#allocation138_spill] sm:$0xff] }
 0x513   : > { %14143 = vmatprep.mubr.msk.f32.mxu1 %vm22130_vm10, %v7665_v3  ;;  %v8037_v3 = vsel %vm24020_vm15, %v24016_v32, 0.0  ;;  %vm24033_vm15 = vnez %v24032_v53  ;;  %v8042_v37 = vsel %vm24036_vm5, %v24035_v44, 0.0  ;;  %v24048_v24 = vld [vmem:[#allocation22_spill] sm:$0xff]  ;;  %vm24052_vm5 = vnez %v24051_v46 }
 0x514   : > { %vm24034_vm11 = vmand %vm24031_vm12, %vm24033_vm15  ;;  %vm24044_vm12 = vnez %v23907_v34  ;;  %vm24046_vm15 = vnez %v24045_v13  ;;  %v8046_v8 = vsel %vm23974_vm13, %v24048_v24, 0.0  ;;  %v24054_v34 = vld [vmem:[#allocation26_spill] sm:$0xff]  ;;  %vm24056_vm13 = vnez %v23925_v22 }
 0x515   : > { %v24066_v22 = vld [vmem:[#allocation34_spill] sm:$0xff] }
 0x516   : > { %14144 = vmatmul.mubr.msk.f32.gmra.mrb[30].mxu1 %vm22130_vm10, %v7666_v36  ;;  %v24023_v36 = vld [vmem:[#allocation125_spill] sm:$0xff]  ;;  %v8052_v57 = vsel %vm23936_vm0, %v24066_v22, 0.0  ;;  %vm24074_vm0 = vnez %v24073_v31 }
 0x517   : > { %14146 = vmatprep.mubr.msk.f32.mxu1 %vm22130_vm10, %v7667_v27  ;;  %v8039_v42 = vsel %vm24027_vm14, %v24023_v36, 0.0  ;;  %v8040_v27 = vsel %vm24029_vm3, %v24028_v29, 0.0  ;;  %vm24040_vm14 = vnez %v24039_v5 }
 0x518   : > { %vm24041_vm3 = vmand %vm24038_vm1, %vm24040_vm14  ;;  %vm24058_vm14 = vnez %v24057_v2 }
 0x51a   : > { %14147 = vmatmul.mubr.msk.f32.gmra.mrb[32].mxu1 %vm22130_vm10, %v7668_v50  ;;  %v8041_v50 = vsel %vm24034_vm11, %v24030_v30, 0.0  ;;  %vm24047_vm11 = vmand %vm24044_vm12, %vm24046_vm15  ;;  %vm24064_vm12 = vnez %v24063_v61 }
 0x51b   : > { %14149 = vmatprep.mubr.msk.f32.mxu1 %vm22130_vm10, %v7669_v62  ;;  %v24037_v62 = vld [vmem:[#allocation16_spill] sm:$0xff] }
 0x51c   : > { %v8043_v48 = vsel %vm24041_vm3, %v24037_v62, 0.0  ;;  %vm24059_vm3 = vmand %vm24056_vm13, %vm24058_vm14  ;;  %vm24086_vm13 = vnez %v23958_v51  ;;  %v19743_v51 = vld [vmem:[%s21230_s4] ss:$0 sm:$0xff] }
 0x51d   : > { %v8049_v38 = vsel %vm24059_vm3, %v24055_v45, 0.0 }
 0x51e   : > { %14150 = vmatmul.mubr.msk.f32.gmra.mrb[34].mxu1 %vm22130_vm10, %v7670_v49  ;;  %v8044_v49 = vsel %vm23972_vm8, %v24042_v25, 0.0  ;;  %vm24050_vm8 = vnez %v23916_v58  ;;  %v24060_v58 = vld [vmem:[#allocation30_spill] sm:$0xff] }
 0x51f   : > { %14152 = vmatprep.mubr.msk.f32.mxu1 %vm22130_vm10, %v7671_v56  ;;  %v8045_v56 = vsel %vm24047_vm11, %v24043_v0, 0.0  ;;  %vm24053_vm1 = vmand %vm24050_vm8, %vm24052_vm5  ;;  %vm24081_vm5 = vnez %v24080_v17 }
 0x520   : > { %vm24075_vm8 = vmand %vm23984_vm7, %vm24074_vm0  ;;  %vm24084_vm7 = vnez %v23954_v1  ;;  %v12315_v1 = vld [vmem:[%s21232_s6 + $0x8] sm:$0xff] }
 0x521   : > { %14205 = vmatprep.subr.mxu1 %v12315_v1 }
 0x522   : > { %14153 = vmatmul.mubr.msk.f32.gmra.mrb[36].mxu1 %vm22130_vm10, %v7672_v4  ;;  %v24049_v4 = vld [vmem:[#allocation24_spill] sm:$0xff] }
 0x523   : > { %14157 = vmatprep.mubr.msk.f32.mxu1 %vm22130_vm10, %v8028_v10  ;;  %v8047_v20 = vsel %vm24053_vm1, %v24049_v4, 0.0  ;;  %v8048_v10 = vsel %vm23920_vm4, %v24054_v34, 0.0  ;;  %vm24062_vm4 = vnez %v23933_v26  ;;  %v24071_v26 = vld [vmem:[#allocation38_spill] sm:$0xff] }
 0x524   : > { %vm24065_vm15 = vmand %vm24062_vm4, %vm24064_vm12  ;;  %v8054_v55 = vsel %vm23942_vm9, %v24071_v26, 0.0  ;;  %vm24079_vm9 = vnez %v23951_v60  ;;  %v8519_v60 = vld [vmem:[%s21231_s5 + $0x8] sm:$0xff] }
 0x525   : > { %vm24082_vm1 = vmand %vm24079_vm9, %vm24081_vm5  ;;  %8598 = vmatprep.mubr.f32.mxu0 %v8519_v60 }
 0x526   : > { %14158 = vmatmul.mubr.msk.f32.vlgmr.msra.gmra.mrb[6].mxu1 %vm22130_vm10, %v8029_v33  ;;  %v8050_v33 = vsel %vm23928_vm6, %v24060_v58, 0.0  ;;  %vm24069_vm6 = vnez %v24068_v6 }
 0x527   : > { %14160 = vmatprep.mubr.msk.f32.mxu1 %vm22130_vm10, %v8030_v15  ;;  %v8051_v15 = vsel %vm24065_vm15, %v24061_v47, 0.0  ;;  %vm24070_vm11 = vmand %vm23980_vm2, %vm24069_vm6  ;;  %vm24077_vm2 = vnez %v23947_v63  ;;  %v24087_v63 = vld [vmem:[#allocation152_spill] sm:$0xff]  ;;  %14206 = vmatpush3.msra.mxu1 %v12315_v1 }
 0x528   : > { %v8056_v11 = vsel %vm24077_vm2, %v24076_v18, 0.0  ;;  %vm24088_vm14 = vnez %v24087_v63 }
 0x529   : > { %vm24089_vm3 = vmand %vm24086_vm13, %vm24088_vm14 }
 0x52a   : > { %14161 = vmatmul.mubr.msk.f32.gmra.mrb[8].mxu1 %vm22130_vm10, %v8031_v12  ;;  %v8053_v12 = vsel %vm24070_vm11, %v24067_v35, 0.0  ;;  %v8059_v7 = vsel %vm24089_vm3, %v24085_v41, 0.0 }
 0x52b   : > { %14163 = vmatprep.mubr.msk.f32.mxu1 %vm22130_vm10, %v8032_v40  ;;  %v24072_v40 = vld [vmem:[#allocation60_spill] sm:$0xff] }
 0x52c   : > { %v8055_v39 = vsel %vm24075_vm8, %v24072_v40, 0.0 }
 0x52e   : > { %14164 = vmatmul.mubr.msk.f32.gmra.mrb[10].mxu1 %vm22130_vm10, %v8033_v59  ;;  %v24078_v59 = vld [vmem:[#allocation57_spill] sm:$0xff] }
 0x52f   : > { %14166 = vmatprep.mubr.msk.f32.mxu1 %vm22130_vm10, %v8034_v9  ;;  %v8057_v16 = vsel %vm24082_vm1, %v24078_v59, 0.0  ;;  %v8058_v9 = vsel %vm24084_vm7, %v24083_v54, 0.0 }
 0x532   : > { %14167 = vmatmul.mubr.msk.f32.gmra.mrb[12].mxu1 %vm22130_vm10, %v8035_v14 }
 0x533   : > { %14169 = vmatprep.mubr.msk.f32.mxu1 %vm22130_vm10, %v8036_v43 }
 0x536   : > { %14170 = vmatmul.mubr.msk.f32.gmra.mrb[14].mxu1 %vm22130_vm10, %v8037_v3 }
 0x537   : > { %14172 = vmatprep.mubr.msk.f32.mxu1 %vm22130_vm10, %v8038_v28 }
 0x53a   : > { %14173 = vmatmul.mubr.msk.f32.gmra.mrb[16].mxu1 %vm22130_vm10, %v8039_v42 }
 0x53b   : > { %14175 = vmatprep.mubr.msk.f32.mxu1 %vm22130_vm10, %v8040_v27 }
 0x53e   : > { %14176 = vmatmul.mubr.msk.f32.gmra.mrb[18].mxu1 %vm22130_vm10, %v8041_v50 }
 0x53f   : > { %14178 = vmatprep.mubr.msk.f32.mxu1 %vm22130_vm10, %v8042_v37 }
 0x542   : > { %14179 = vmatmul.mubr.msk.f32.gmra.mrb[20].mxu1 %vm22130_vm10, %v8043_v48 }
 0x543   : > { %14181 = vmatprep.mubr.msk.f32.mxu1 %vm22130_vm10, %v8044_v49 }
 0x546   : > { %14182 = vmatmul.mubr.msk.f32.gmra.mrb[22].mxu1 %vm22130_vm10, %v8045_v56 }
 0x547   : > { %14184 = vmatprep.mubr.msk.f32.mxu1 %vm22130_vm10, %v8046_v8 }
 0x54a   : > { %14185 = vmatmul.mubr.msk.f32.gmra.mrb[24].mxu1 %vm22130_vm10, %v8047_v20 }
 0x54b   : > { %14187 = vmatprep.mubr.msk.f32.mxu1 %vm22130_vm10, %v8048_v10 }
 0x54e   : > { %14188 = vmatmul.mubr.msk.f32.gmra.mrb[26].mxu1 %vm22130_vm10, %v8049_v38 }
 0x54f   : > { %14190 = vmatprep.mubr.msk.f32.mxu1 %vm22130_vm10, %v8050_v33 }
 0x552   : > { %14191 = vmatmul.mubr.msk.f32.gmra.mrb[28].mxu1 %vm22130_vm10, %v8051_v15 }
 0x553   : > { %14193 = vmatprep.mubr.msk.f32.mxu1 %vm22130_vm10, %v8052_v57 }
 0x556   : > { %14194 = vmatmul.mubr.msk.f32.gmra.mrb[30].mxu1 %vm22130_vm10, %v8053_v12 }
 0x557   : > { %14196 = vmatprep.mubr.msk.f32.mxu1 %vm22130_vm10, %v8054_v55 }
 0x55a   : > { %14197 = vmatmul.mubr.msk.f32.gmra.mrb[32].mxu1 %vm22130_vm10, %v8055_v39 }
 0x55b   : > { %14199 = vmatprep.mubr.msk.f32.mxu1 %vm22130_vm10, %v8056_v11 }
 0x55e   : > { %14200 = vmatmul.mubr.msk.f32.gmra.mrb[34].mxu1 %vm22130_vm10, %v8057_v16 }
 0x55f   : > { %14202 = vmatprep.mubr.msk.f32.mxu1 %vm22130_vm10, %v8058_v9 }
 0x562   : > { %14203 = vmatmul.mubr.msk.f32.gmra.mrb[36].mxu1 %vm22130_vm10, %v8059_v7 }
 0x5f9   : > { %v14159_v14 = vpop.f32.mrb[6].mxu1 }
 0x5fa   : > { %v8423_v23 = vadd.f32 %v14159_v14, %v19743_v51  ;;  %v8224_v43 = vpop.f32.mrb[7].mxu1 }
 0x5fb   : > { %v8422_v32 = vadd.f32 %v19743_v51, %v8224_v43 }
 0x5fc   : > { %v8455_v52 = vmax.f32 %v8423_v23, 0.0 }
 0x5fd   : > { %v8454_v3 = vmax.f32 %v8422_v32, 0.0  ;;  %v14162_v19 = vpop.f32.mrb[8].mxu1 }
 0x5fe   : > { %v19747_v28 = vmax.f32 %v8455_v52, 0.0  ;;  %v8425_v36 = vadd.f32 %v14162_v19, %v19743_v51  ;;  %v8234_v21 = vpop.f32.mrb[9].mxu1 }
 0x5ff   : > { %v19750_v42 = vmax.f32 %v8454_v3, 0.0  ;;  %v8424_v29 = vadd.f32 %v19743_v51, %v8234_v21 }
 0x600   : > { %v8457_v27 = vmax.f32 %v8425_v36, 0.0 }
 0x601   : > { %v14478_v30 = vpack.c.bf16 %v19747_v28, %v19750_v42  ;;  %v8456_v53 = vmax.f32 %v8424_v29, 0.0  ;;  %v14165_v50 = vpop.f32.mrb[10].mxu1 }
 0x602   : > { %v19755_v44 = vmax.f32 %v8457_v27, 0.0  ;;  %v8427_v37 = vadd.f32 %v14165_v50, %v19743_v51  ;;  %v8244_v62 = vpop.f32.mrb[11].mxu1 }
 0x603   : > { %v19758_v5 = vmax.f32 %v8456_v53, 0.0  ;;  %v8426_v48 = vadd.f32 %v19743_v51, %v8244_v62 }
 0x604   : > { %v8459_v25 = vmax.f32 %v8427_v37, 0.0 }
 0x605   : > { %v14482_v49 = vpack.c.bf16 %v19755_v44, %v19758_v5  ;;  %v8458_v0 = vmax.f32 %v8426_v48, 0.0  ;;  %v14168_v13 = vpop.f32.mrb[12].mxu1 }
 0x606   : > { %v19763_v56 = vmax.f32 %v8459_v25, 0.0  ;;  %v8429_v24 = vadd.f32 %v14168_v13, %v19743_v51  ;;  %v8254_v8 = vpop.f32.mrb[13].mxu1 }
 0x607   : > { %v19766_v4 = vmax.f32 %v8458_v0, 0.0  ;;  %v8428_v46 = vadd.f32 %v19743_v51, %v8254_v8 }
 0x608   : > { %v8461_v20 = vmax.f32 %v8429_v24, 0.0 }
 0x609   : > { %v14486_v34 = vpack.c.bf16 %v19763_v56, %v19766_v4  ;;  %v8460_v10 = vmax.f32 %v8428_v46, 0.0  ;;  %v14171_v45 = vpop.f32.mrb[14].mxu1 }
 0x60a   : > { %v19771_v2 = vmax.f32 %v8461_v20, 0.0  ;;  %v8431_v38 = vadd.f32 %v14171_v45, %v19743_v51  ;;  %v8264_v58 = vpop.f32.mrb[15].mxu1 }
 0x60b   : > { %v19774_v33 = vmax.f32 %v8460_v10, 0.0  ;;  %v8430_v47 = vadd.f32 %v19743_v51, %v8264_v58 }
 0x60c   : > { %v8463_v61 = vmax.f32 %v8431_v38, 0.0 }
 0x60d   : > { %v14490_v15 = vpack.c.bf16 %v19771_v2, %v19774_v33  ;;  %v8462_v22 = vmax.f32 %v8430_v47, 0.0  ;;  %v14174_v57 = vpop.f32.mrb[16].mxu1 }
 0x60e   : > { %v19779_v35 = vmax.f32 %v8463_v61, 0.0  ;;  %v8433_v6 = vadd.f32 %v14174_v57, %v19743_v51  ;;  %v8274_v12 = vpop.f32.mrb[17].mxu1 }
 0x60f   : > { %v19782_v26 = vmax.f32 %v8462_v22, 0.0  ;;  %v8432_v55 = vadd.f32 %v19743_v51, %v8274_v12 }
 0x610   : > { %v8465_v40 = vmax.f32 %v8433_v6, 0.0 }
 0x611   : > { %v14494_v31 = vpack.c.bf16 %v19779_v35, %v19782_v26  ;;  %v8464_v39 = vmax.f32 %v8432_v55, 0.0  ;;  %v14177_v18 = vpop.f32.mrb[18].mxu1 }
 0x612   : > { %v19787_v11 = vmax.f32 %v8465_v40, 0.0  ;;  %v8435_v59 = vadd.f32 %v14177_v18, %v19743_v51  ;;  %v8284_v17 = vpop.f32.mrb[19].mxu1 }
 0x613   : > { %v19790_v16 = vmax.f32 %v8464_v39, 0.0  ;;  %v8434_v54 = vadd.f32 %v19743_v51, %v8284_v17 }
 0x614   : > { %v8467_v9 = vmax.f32 %v8435_v59, 0.0 }
 0x615   : > { %v14498_v41 = vpack.c.bf16 %v19787_v11, %v19790_v16  ;;  %v8466_v63 = vmax.f32 %v8434_v54, 0.0  ;;  %v14180_v7 = vpop.f32.mrb[20].mxu1  ;;  %v8521_v11 = vld [vmem:[%s21231_s5 + $0x18] sm:$0xff]  ;;  %v8520_v16 = vld [vmem:[%s21231_s5 + $0x10] sm:$0xff] }
 0x616   : > { %v19795_v60 = vmax.f32 %v8467_v9, 0.0  ;;  %v8437_v1 = vadd.f32 %v14180_v7, %v19743_v51  ;;  %v8294_v14 = vpop.f32.mrb[21].mxu1 }
 0x617   : > { %v19798_v23 = vmax.f32 %v8466_v63, 0.0  ;;  %v8436_v43 = vadd.f32 %v19743_v51, %v8294_v14 }
 0x618   : > { %v8469_v32 = vmax.f32 %v8437_v1, 0.0 }
 0x619   : > { %v14502_v52 = vpack.c.bf16 %v19795_v60, %v19798_v23  ;;  %v8468_v3 = vmax.f32 %v8436_v43, 0.0  ;;  %v14183_v19 = vpop.f32.mrb[22].mxu1  ;;  %v8522_v60 = vld [vmem:[%s21231_s5 + $0x20] sm:$0xff]  ;;  %v8525_v23 = vld [vmem:[%s21231_s5 + $0x38] sm:$0xff] }
 0x61a   : > { %v19803_v36 = vmax.f32 %v8469_v32, 0.0  ;;  %v8439_v21 = vadd.f32 %v14183_v19, %v19743_v51  ;;  %v8304_v29 = vpop.f32.mrb[23].mxu1 }
 0x61b   : > { %v19806_v27 = vmax.f32 %v8468_v3, 0.0  ;;  %v8438_v53 = vadd.f32 %v19743_v51, %v8304_v29 }
 0x61c   : > { %v8471_v50 = vmax.f32 %v8439_v21, 0.0 }
 0x61d   : > { %v14506_v37 = vpack.c.bf16 %v19803_v36, %v19806_v27  ;;  %v8470_v62 = vmax.f32 %v8438_v53, 0.0  ;;  %v14186_v48 = vpop.f32.mrb[24].mxu1  ;;  %v8527_v36 = vld [vmem:[%s21231_s5 + $0x48] sm:$0xff]  ;;  %v8526_v27 = vld [vmem:[%s21231_s5 + $0x40] sm:$0xff] }
 0x61e   : > { %v8503_v25 = vmax.f32 %v8471_v50, 0.0  ;;  %v8441_v0 = vadd.f32 %v14186_v48, %v19743_v51  ;;  %v8314_v13 = vpop.f32.mrb[25].mxu1 }
 0x61f   : > { %v8502_v24 = vmax.f32 %v8470_v62, 0.0  ;;  %v8440_v8 = vadd.f32 %v19743_v51, %v8314_v13 }
 0x620   : > { %v8473_v46 = vmax.f32 %v8441_v0, 0.0 }
 0x621   : > { %v14476_v20 = vpack.c.bf16 %v8503_v25, %v8502_v24  ;;  %v8472_v10 = vmax.f32 %v8440_v8, 0.0  ;;  %v14189_v45 = vpop.f32.mrb[26].mxu1 }
 0x622   : > { %v8505_v38 = vmax.f32 %v8473_v46, 0.0  ;;  %v8443_v58 = vadd.f32 %v14189_v45, %v19743_v51  ;;  %v8324_v47 = vpop.f32.mrb[27].mxu1 }
 0x623   : > { %v8504_v61 = vmax.f32 %v8472_v10, 0.0  ;;  %v8442_v22 = vadd.f32 %v19743_v51, %v8324_v47  ;;  %14477 = vmatprep.subr.bf16.mxu0 %v14476_v20  ;;  %v8528_v47 = vld [vmem:[%s21231_s5 + $0x50] sm:$0xff] }
 0x624   : > { %v8475_v57 = vmax.f32 %v8443_v58, 0.0  ;;  %14479 = vmatpush3.bf16.msra.mxu0 %v14478_v30 }
 0x625   : > { %v14480_v6 = vpack.c.bf16 %v8505_v38, %v8504_v61  ;;  %v8474_v12 = vmax.f32 %v8442_v22, 0.0  ;;  %v14192_v55 = vpop.f32.mrb[28].mxu1  ;;  %v8531_v61 = vld [vmem:[%s21231_s5 + $0x68] sm:$0xff]  ;;  %v8530_v22 = vld [vmem:[%s21231_s5 + $0x60] sm:$0xff] }
 0x626   : > { %v8507_v40 = vmax.f32 %v8475_v57, 0.0  ;;  %v8445_v39 = vadd.f32 %v14192_v55, %v19743_v51  ;;  %v8334_v18 = vpop.f32.mrb[29].mxu1  ;;  %v8533_v57 = vld [vmem:[%s21231_s5 + $0x78] sm:$0xff] }
 0x627   : > { %v8506_v59 = vmax.f32 %v8474_v12, 0.0  ;;  %v8444_v17 = vadd.f32 %v19743_v51, %v8334_v18  ;;  %14481 = vmatprep.subr.bf16.mxu0 %v14480_v6  ;;  %v8532_v6 = vld [vmem:[%s21231_s5 + $0x70] sm:$0xff]  ;;  %v8719_v12 = vld [vmem:[%s21232_s6] sm:$0xff] }
 0x628   : > { %v8477_v54 = vmax.f32 %v8445_v39, 0.0  ;;  %14483 = vmatpush3.bf16.msra.mxu0 %v14482_v49  ;;  %14219 = vmatprep.subr.mxu1 %v8719_v12 }
 0x629   : > { %v14484_v9 = vpack.c.bf16 %v8507_v40, %v8506_v59  ;;  %v8476_v63 = vmax.f32 %v8444_v17, 0.0  ;;  %v14195_v28 = vpop.f32.mrb[30].mxu1 }
 0x62a   : > { %v8509_v42 = vmax.f32 %v8477_v54, 0.0  ;;  %v8447_v30 = vadd.f32 %v14195_v28, %v19743_v51  ;;  %v8344_v7 = vpop.f32.mrb[31].mxu1 }
 0x62b   : > { %v8508_v1 = vmax.f32 %v8476_v63, 0.0  ;;  %v8446_v14 = vadd.f32 %v19743_v51, %v8344_v7  ;;  %14485 = vmatprep.subr.bf16.mxu0 %v14484_v9 }
 0x62c   : > { %v8479_v43 = vmax.f32 %v8447_v30, 0.0  ;;  %14487 = vmatpush3.bf16.msra.mxu0 %v14486_v34 }
 0x62d   : > { %v14488_v32 = vpack.c.bf16 %v8509_v42, %v8508_v1  ;;  %v8478_v3 = vmax.f32 %v8446_v14, 0.0  ;;  %v14198_v44 = vpop.f32.mrb[32].mxu1 }
 0x62e   : > { %v8511_v5 = vmax.f32 %v8479_v43, 0.0  ;;  %v8449_v49 = vadd.f32 %v14198_v44, %v19743_v51  ;;  %v8354_v19 = vpop.f32.mrb[33].mxu1 }
 0x62f   : > { %v8510_v21 = vmax.f32 %v8478_v3, 0.0  ;;  %v8448_v29 = vadd.f32 %v19743_v51, %v8354_v19  ;;  %14489 = vmatprep.subr.bf16.mxu0 %v14488_v32  ;;  %v24090_v19 = vld [vmem:[#allocation3_spill] sm:$0xff] }
 0x630   : > { %v8481_v53 = vmax.f32 %v8449_v49, 0.0  ;;  %14491 = vmatpush3.bf16.msra.mxu0 %v14490_v15 }
 0x631   : > { %v14492_v50 = vpack.c.bf16 %v8511_v5, %v8510_v21  ;;  %v8480_v62 = vmax.f32 %v8448_v29, 0.0  ;;  %v14201_v56 = vpop.f32.mrb[34].mxu1  ;;  %v8640_v21 = vshra.s32 %v24090_v19, 3  ;;  %v24091_v29 = vld [vmem:[#allocation2_spill] sm:$0xff] }
 0x632   : > { %v8513_v4 = vmax.f32 %v8481_v53, 0.0  ;;  %v8451_v34 = vadd.f32 %v14201_v56, %v19743_v51  ;;  %v8364_v48 = vpop.f32.mrb[35].mxu1  ;;  %v8639_v53 = vshra.s32 %v24091_v29, 3  ;;  %vm24116_vm5 = vcmp.lt.s32.totalorder %v24091_v29, 1 }
 0x633   : > { %v8512_v25 = vmax.f32 %v8480_v62, 0.0  ;;  %v8450_v0 = vadd.f32 %v19743_v51, %v8364_v48  ;;  %14493 = vmatprep.subr.bf16.mxu0 %v14492_v50  ;;  %v24092_v50 = vld [vmem:[#allocation4_spill] sm:$0xff]  ;;  %vm19924_vm12 = vcmp.ge.s32.totalorder %v8640_v21, 1  ;;  %vm24121_vm14 = vmmov %vm24116_vm5 }
 0x634   : > { %v8483_v13 = vmax.f32 %v8451_v34, 0.0  ;;  %14495 = vmatpush3.bf16.msra.mxu0 %v14494_v31  ;;  %v22166_v62 = vshra.s32 %v24092_v50, 3  ;;  %vm19916_vm4 = vcmp.ge.s32.totalorder %v8639_v53, 1  ;;  %v24093_v34 = vmov 0 }
 0x635   : > { %v14496_v24 = vpack.c.bf16 %v8513_v4, %v8512_v25  ;;  %v8482_v8 = vmax.f32 %v8450_v0, 0.0  ;;  %v14204_v2 = vpop.f32.mrb[36].mxu1  ;;  %v24094_v34 = vsel %vm19916_vm4, 4294967295, %v24093_v34  ;;  %v24095_v25 = vmov 0  ;;  %v24097_v0 = vld [vmem:[#allocation5_spill] sm:$0xff] }
 0x636   : > { %v8515_v33 = vmax.f32 %v8483_v13, 0.0  ;;  %v8453_v15 = vadd.f32 %v14204_v2, %v19743_v51  ;;  %v8374_v46 = vpop.f32.mrb[37].mxu1  ;;  %v24096_v25 = vsel %vm19924_vm12, 4294967295, %v24095_v25  ;;  %v22162_v13 = vshra.s32 %v24097_v0, 3 }
 0x637   : > { %v8514_v20 = vmax.f32 %v8482_v8, 0.0  ;;  %v8452_v10 = vadd.f32 %v19743_v51, %v8374_v46  ;;  %14497 = vmatprep.subr.bf16.mxu0 %v14496_v24  ;;  %v8518_v51 = vld [vmem:[%s21231_s5] sm:$0xff]  ;;  %vm19931_vm15 = vcmp.ge.s32.totalorder %v22166_v62, 1  ;;  %v24098_v24 = vmov 0  ;;  %v12332_v46 = vld [vmem:[%s21232_s6 + $0x10] sm:$0xff] }
 0x638   : > { %v8485_v45 = vmax.f32 %v8453_v15, 0.0  ;;  %14499 = vmatpush3.bf16.msra.mxu0 %v14498_v41  ;;  %v8523_v41 = vld [vmem:[%s21231_s5 + $0x28] sm:$0xff]  ;;  %v24099_v24 = vsel %vm19931_vm15, 4294967295, %v24098_v24  ;;  %v24100_v8 = vld [vmem:[#allocation6_spill] sm:$0xff]  ;;  %vm19952_vm6 = vcmp.ge.s32.totalorder %v22162_v13, 1 }
 0x639   : > { %v14500_v38 = vpack.c.bf16 %v8515_v33, %v8514_v20  ;;  %v8484_v58 = vmax.f32 %v8452_v10, 0.0  ;;  %v22160_v2 = vshra.s32 %v24100_v8, 3  ;;  %v24101_v10 = vmov 0 }
 0x63a   : > { %v8517_v35 = vmax.f32 %v8485_v45, 0.0  ;;  %v24102_v10 = vsel %vm19952_vm6, 4294967295, %v24101_v10  ;;  %v24103_v45 = vld [vmem:[#allocation7_spill] sm:$0xff] }
 0x63b   : > { %v8516_v26 = vmax.f32 %v8484_v58, 0.0  ;;  %14501 = vmatprep.subr.bf16.mxu0 %v14500_v38  ;;  %v22157_v38 = vshra.s32 %v24103_v45, 3  ;;  %vm19960_vm11 = vcmp.ge.s32.totalorder %v22160_v2, 1  ;;  %v24104_v58 = vmov 0 }
 0x63c   : > { %14503 = vmatpush3.bf16.msra.mxu0 %v14502_v52  ;;  %v8524_v52 = vld [vmem:[%s21231_s5 + $0x30] sm:$0xff]  ;;  %v24105_v58 = vsel %vm19960_vm11, 4294967295, %v24104_v58 }
 0x63d   : > { %v14504_v31 = vpack.c.bf16 %v8517_v35, %v8516_v26  ;;  %v24106_v35 = vld [vmem:[#allocation8_spill] sm:$0xff]  ;;  %vm19974_vm0 = vcmp.ge.s32.totalorder %v22157_v38, 1 }
 0x63e   : > { %v22154_v26 = vshra.s32 %v24106_v35, 3 }
 0x63f   : > { %14505 = vmatprep.subr.bf16.mxu0 %v14504_v31 }
 0x640   : > { %14507 = vmatpush3.bf16.msra.mxu0 %v14506_v37  ;;  %v8529_v37 = vld [vmem:[%s21231_s5 + $0x58] sm:$0xff]  ;;  %vm19982_vm8 = vcmp.ge.s32.totalorder %v22154_v26, 1 }
 0x643   : > { %8599 = vmatmul.mubr.f32.vlgmr.msra.gmra.mrb[32].mxu0 %v8518_v51 }
 0x644   : > { %8603 = vmatprep.mubr.f32.mxu0 %v8521_v11  ;;  %v24107_v11 = vmov 0 }
 0x645   : > { %v24108_v11 = vsel %vm19974_vm0, 4294967295, %v24107_v11 }
 0x647   : > { %8604 = vmatmul.mubr.f32.gmra.mrb[34].mxu0 %v8520_v16  ;;  %v8647_v16 = vand.u32 7, %v24091_v29 }
 0x648   : > { %8608 = vmatprep.mubr.f32.mxu0 %v8523_v41  ;;  %v24109_v41 = vmov 0 }
 0x649   : > { %v24110_v41 = vsel %vm19982_vm8, 4294967295, %v24109_v41  ;;  %vm20006_vm9 = vcmp.ge.s32.totalorder %v8647_v16, 1 }
 0x64a   : > { %vm22129_vm1 = vmand %vm19916_vm4, %vm20006_vm9 }
 0x64b   : > { %8609 = vmatmul.mubr.f32.gmra.mrb[36].mxu0 %v8522_v60 }
 0x64c   : > { %8613 = vmatprep.mubr.f32.mxu0 %v8525_v23  ;;  %v24111_v23 = vld [vmem:[#allocation14_spill] sm:$0xff] }
 0x64f   : > { %8614 = vmatmul.mubr.f32.gmra.mrb[38].mxu0 %v8524_v52  ;;  %v22148_v52 = vshra.s32 %v24111_v23, 3 }
 0x650   : > { %8618 = vmatprep.mubr.f32.mxu0 %v8527_v36  ;;  %v8649_v36 = vand.u32 7, %v24092_v50 }
 0x651   : > { %vm20000_vm2 = vcmp.ge.s32.totalorder %v22148_v52, 1 }
 0x652   : > { %vm20024_vm7 = vcmp.ge.s32.totalorder %v8649_v36, 1 }
 0x653   : > { %8619 = vmatmul.mubr.f32.gmra.mrb[40].mxu0 %v8526_v27 }
 0x654   : > { %8623 = vmatprep.mubr.f32.mxu0 %v8529_v37 }
 0x657   : > { %8624 = vmatmul.mubr.f32.gmra.mrb[42].mxu0 %v8528_v47  ;;  %v8648_v47 = vand.u32 7, %v24090_v19 }
 0x658   : > { %8628 = vmatprep.mubr.f32.mxu0 %v8531_v61 }
 0x659   : > { %vm20034_vm13 = vcmp.ge.s32.totalorder %v8648_v47, 1 }
 0x65a   : > { %vm22133_vm3 = vmand %vm19924_vm12, %vm20034_vm13 }
 0x65b   : > { %8629 = vmatmul.mubr.f32.gmra.mrb[44].mxu0 %v8530_v22  ;;  %v24112_v22 = vmov 0 }
 0x65c   : > { %8633 = vmatprep.mubr.f32.mxu0 %v8533_v57  ;;  %v24113_v22 = vsel %vm20000_vm2, 4294967295, %v24112_v22  ;;  %v24114_v57 = vmov 0 }
 0x65d   : > { %v24115_v57 = vsel %vm20006_vm9, 4294967295, %v24114_v57  ;;  %vm24127_vm9 = vcmp.lt.s32.totalorder %v24091_v29, 1 }
 0x65f   : > { %8634 = vmatmul.mubr.f32.gmra.mrb[46].mxu0 %v8532_v6 }
 0x716   : > { %v13109_v55 = vpop.f32.mrb[32].mxu0 }
 0x717   : > { %v13110_v40 = vpop.f32.mrb[33].mxu0 }
 0x718   : > { %v19897_v39 = vadd.f32 %v13110_v40, %v13109_v55  ;;  %v8650_v55 = vand.u32 7, %v24097_v0 }
 0x71a   : > { %v13112_v18 = vpop.f32.mrb[34].mxu0  ;;  %v8737_v15 = vsel %vm19924_vm12, %v19897_v39, 0.0  ;;  %v8655_v40 = vrot.slane %v19897_v39, 7 }
 0x71b   : > { %v13113_v59 = vpop.f32.mrb[35].mxu0 }
 0x71c   : > { %v19899_v17 = vadd.f32 %v13113_v59, %v13112_v18  ;;  %v24117_v18 = vmov 0  ;;  %v8651_v59 = vand.u32 7, %v24100_v8 }
 0x71d   : > { %v24118_v18 = vsel %vm20024_vm7, 4294967295, %v24117_v18 }
 0x71e   : > { %v13115_v54 = vpop.f32.mrb[36].mxu0  ;;  %v8738_v20 = vsel %vm19931_vm15, %v19899_v17, 0.0 }
 0x71f   : > { %v13116_v9 = vpop.f32.mrb[37].mxu0 }
 0x720   : > { %v19901_v63 = vadd.f32 %v13116_v9, %v13115_v54  ;;  %v24119_v9 = vmov 0 }
 0x721   : > { %v24120_v9 = vsel %vm20034_vm13, 4294967295, %v24119_v9 }
 0x722   : > { %v13118_v28 = vpop.f32.mrb[38].mxu0  ;;  %v8739_v31 = vsel %vm19952_vm6, %v19901_v63, 0.0 }
 0x723   : > { %v13119_v42 = vpop.f32.mrb[39].mxu0 }
 0x724   : > { %v19903_v30 = vadd.f32 %v13119_v42, %v13118_v28 }
 0x726   : > { %v13121_v7 = vpop.f32.mrb[40].mxu0  ;;  %v8740_v51 = vsel %vm19960_vm11, %v19903_v30, 0.0  ;;  %v9007_v26 = vrot.slane %v19903_v30, 1 }
 0x727   : > { %v13122_v1 = vpop.f32.mrb[41].mxu0 }
 0x728   : > { %v19905_v14 = vadd.f32 %v13122_v1, %v13121_v7  ;;  %v8657_v7 = vrot.slane %v19901_v63, 7 }
 0x72a   : > { %v13124_v43 = vpop.f32.mrb[42].mxu0  ;;  %v8741_v27 = vsel %vm19974_vm0, %v19905_v14, 0.0  ;;  %v9008_v38 = vrot.slane %v19905_v14, 1 }
 0x72b   : > { %v13125_v32 = vpop.f32.mrb[43].mxu0 }
 0x72c   : > { %v19907_v3 = vadd.f32 %v13125_v32, %v13124_v43  ;;  %v24122_v43 = vmov 0  ;;  %v8658_v32 = vrot.slane %v19903_v30, 7 }
 0x72e   : > { %v13127_v44 = vpop.f32.mrb[44].mxu0  ;;  %v8742_v61 = vsel %vm19982_vm8, %v19907_v3, 0.0  ;;  %v9009_v13 = vrot.slane %v19907_v3, 1 }
 0x72f   : > { %v13128_v5 = vpop.f32.mrb[45].mxu0 }
 0x730   : > { %v19909_v49 = vadd.f32 %v13128_v5, %v13127_v44  ;;  %v8652_v44 = vand.u32 7, %v24103_v45  ;;  %v24124_v5 = vmov 0 }
 0x732   : > { %v13130_v56 = vpop.f32.mrb[46].mxu0  ;;  %v8661_v37 = vrot.slane %v19909_v49, 7  ;;  %v8743_v54 = vsel %vm20000_vm2, %v19909_v49, 0.0  ;;  %v9010_v62 = vrot.slane %v19909_v49, 1 }
 0x733   : > { %v13131_v4 = vpop.f32.mrb[47].mxu0 }
 0x734   : > { %v19920_v48 = vadd.f32 %v13131_v4, %v13130_v56  ;;  %v8653_v56 = vand.u32 7, %v24106_v35 }
 0x736   : > { %v8736_v33 = vsel %vm19916_vm4, %v19920_v48, 0.0  ;;  %v8662_v60 = vrot.slane %v19920_v48, 7 }
 0x737   : > { %14207 = vmatprep.mubr.msk.f32.mxu1 %vm22130_vm10, %v8736_v33  ;;  %v12341_v33 = vld [vmem:[%s21232_s6 + $0x18] sm:$0xff] }
 0x738   : > { %14208 = vmatmul.mubr.msk.f32.vlgmr.msra.gmra.mrb[38].mxu1 %vm22130_vm10, %v8737_v15  ;;  %v20013_v6 = vsel %vm24116_vm5, %v8661_v37, %v8662_v60  ;;  %v20047_v42 = vsel %vm24121_vm14, %v8662_v60, %v8655_v40  ;;  %vm20065_vm14 = vcmp.ge.s32.totalorder %v8650_v55, 1  ;;  %v24130_v60 = vmov 0 }
 0x739   : > { %14210 = vmatprep.mubr.msk.f32.mxu1 %vm22130_vm10, %v8738_v20  ;;  %14220 = vmatpush3.msra.mxu1 %v8719_v12  ;;  %v8656_v12 = vrot.slane %v19899_v17, 7  ;;  %v8711_v28 = vsel %vm22129_vm1, %v20013_v6, 0.0  ;;  %vm22136_vm1 = vmand %vm19931_vm15, %vm20024_vm7  ;;  %v24123_v43 = vsel %vm20065_vm14, 4294967295, %v24122_v43  ;;  %v8712_v4 = vsel %vm22133_vm3, %v20047_v42, 0.0 }
 0x73a   : > { %14233 = vmatprep.subr.mxu1 %v12332_v46  ;;  %vm22139_vm3 = vmand %vm19952_vm6, %vm20065_vm14  ;;  %vm24135_vm7 = vcmp.lt.s32.totalorder %v24091_v29, 1 }
 0x73b   : > { %v20057_v1 = vsel %vm24116_vm5, %v8655_v40, %v8656_v12  ;;  %vm24126_vm5 = vcmask 64512   ;;  %v20096_v20 = vsel %vm24127_vm9, %v8656_v12, %v8657_v7  ;;  %v8654_v40 = vand.u32 7, %v24111_v23 }
 0x73c   : > { %14211 = vmatmul.mubr.msk.f32.gmra.mrb[40].mxu1 %vm22130_vm10, %v8739_v31  ;;  %v8713_v15 = vsel %vm22136_vm1, %v20057_v1, 0.0  ;;  %v8659_v31 = vrot.slane %v19905_v14, 7  ;;  %vm24128_vm13 = vmmov %vm24126_vm5  ;;  %v8714_v12 = vsel %vm22139_vm3, %v20096_v20, 0.0 }
 0x73d   : > { %14213 = vmatprep.mubr.msk.f32.mxu1 %vm22130_vm10, %v8740_v51 }
 0x740   : > { %14214 = vmatmul.mubr.msk.f32.gmra.mrb[42].mxu1 %vm22130_vm10, %v8741_v27  ;;  %v8660_v27 = vrot.slane %v19907_v3, 7 }
 0x741   : > { %14216 = vmatprep.mubr.msk.f32.mxu1 %vm22130_vm10, %v8742_v61  ;;  %v24132_v61 = vmov 0 }
 0x744   : > { %14217 = vmatmul.mubr.msk.f32.gmra.mrb[44].mxu1 %vm22130_vm10, %v8743_v54  ;;  %v20141_v54 = vsel %vm24135_vm7, %v8658_v32, %v8659_v31 }
 0x745   : > { %14221 = vmatprep.mubr.msk.f32.mxu1 %vm22130_vm10, %v8711_v28  ;;  %vm20073_vm10 = vcmp.ge.s32.totalorder %v8651_v59, 1 }
 0x746   : > { %v24125_v5 = vsel %vm20073_vm10, 4294967295, %v24124_v5  ;;  %vm22142_vm1 = vmand %vm19960_vm11, %vm20073_vm10  ;;  %vm20156_vm10 = vcmp.ge.s32.totalorder %v8654_v40, 1 }
 0x748   : > { %14222 = vmatmul.mubr.msk.f32.vlgmr.msra.gmra.mrb[38].mxu1 %vm24126_vm5, %v8712_v4  ;;  %vm24129_vm5 = vmmov %vm24127_vm9  ;;  %vm20114_vm9 = vcmp.ge.s32.totalorder %v8652_v44, 1 }
 0x749   : > { %14224 = vmatprep.mubr.msk.f32.mxu1 %vm24128_vm13, %v8713_v15  ;;  %v20106_v51 = vsel %vm24129_vm5, %v8657_v7, %v8658_v32  ;;  %v24131_v60 = vsel %vm20114_vm9, 4294967295, %v24130_v60  ;;  %14234 = vmatpush3.msra.mxu1 %v12332_v46  ;;  %vm20121_vm13 = vcmp.ge.s32.totalorder %v8653_v56, 1  ;;  %vm24134_vm5 = vcmask 64512   ;;  %vm22145_vm3 = vmand %vm19974_vm0, %vm20114_vm9 }
 0x74a   : > { %v24133_v61 = vsel %vm20121_vm13, 4294967295, %v24132_v61  ;;  %14247 = vmatprep.subr.mxu1 %v12341_v33  ;;  %v8715_v46 = vsel %vm22142_vm1, %v20106_v51, 0.0  ;;  %vm24136_vm14 = vmmov %vm24134_vm5  ;;  %v24138_v7 = vmov 0  ;;  %v9011_v32 = vrot.slane %v19920_v48, 1 }
 0x74b   : > { %vm22149_vm1 = vmand %vm19982_vm8, %vm20121_vm13  ;;  %v24139_v7 = vsel %vm20156_vm10, 4294967295, %v24138_v7  ;;  %v8716_v4 = vsel %vm22145_vm3, %v20141_v54, 0.0  ;;  %v9004_v15 = vrot.slane %v19897_v39, 1  ;;  %vm20186_vm3 = vcmp.lt.s32.totalorder %v8647_v16, 7 }
 0x74c   : > { %14225 = vmatmul.mubr.msk.f32.gmra.mrb[40].mxu1 %vm24134_vm5, %v8714_v12  ;;  %vm24137_vm5 = vmmov %vm24135_vm7  ;;  %vm24144_vm13 = vcmp.lt.s32.totalorder %v24091_v29, 7  ;;  %v9006_v16 = vrot.slane %v19901_v63, 1  ;;  %vm24150_vm9 = vcmp.lt.s32.totalorder %v24091_v29, 7 }
 0x74d   : > { %14227 = vmatprep.mubr.msk.f32.mxu1 %vm24136_vm14, %v8715_v46  ;;  %v20150_v28 = vsel %vm24137_vm5, %v8659_v31, %v8660_v27  ;;  %v9005_v31 = vrot.slane %v19899_v17, 1  ;;  %vm24140_vm7 = vmmov %vm24136_vm14  ;;  %v20193_v52 = vsel %vm24144_vm13, %v9011_v32, %v9004_v15  ;;  %vm24149_vm13 = vcmask 64512  }
 0x74e   : > { %v8717_v12 = vsel %vm22149_vm1, %v20150_v28, 0.0  ;;  %vm24141_vm14 = vmmov %vm24137_vm5  ;;  %vm20201_vm1 = vcmp.lt.s32.totalorder %v8648_v47, 7 }
 0x74f   : > { %v20178_v46 = vsel %vm24141_vm14, %v8660_v27, %v8661_v37  ;;  %vm22155_vm5 = vmand %vm20000_vm2, %vm20156_vm10  ;;  %v24145_v37 = vmov 0  ;;  %v24147_v27 = vmov 0 }
 0x750   : > { %14228 = vmatmul.mubr.msk.f32.gmra.mrb[42].mxu1 %vm24140_vm7, %v8716_v4  ;;  %v24142_v4 = vmov 0  ;;  %vm22156_vm14 = vmand %vm19916_vm4, %vm20186_vm3  ;;  %v24146_v37 = vsel %vm20201_vm1, 4294967295, %v24145_v37  ;;  %vm24158_vm4 = vcmp.lt.s32.totalorder %v24091_v29, 7 }
 0x751   : > { %v24143_v4 = vsel %vm20186_vm3, 4294967295, %v24142_v4  ;;  %14230 = vmatprep.mubr.msk.f32.mxu1 %vm24140_vm7, %v8717_v12  ;;  %vm20208_vm7 = vcmp.lt.s32.totalorder %v8649_v36, 7  ;;  %v8718_v12 = vsel %vm22155_vm5, %v20178_v46, 0.0  ;;  %v9052_v47 = vsel %vm22156_vm14, %v20193_v52, 0.0  ;;  %vm22161_vm8 = vmand %vm19924_vm12, %vm20201_vm1 }
 0x752   : > { %v24148_v27 = vsel %vm20208_vm7, 4294967295, %v24147_v27  ;;  %v20227_v36 = vsel %vm24150_vm9, %v9004_v15, %v9005_v31  ;;  %vm24151_vm5 = vmmov %vm24149_vm13  ;;  %v24153_v15 = vmov 0  ;;  %v20274_v2 = vsel %vm24158_vm4, %v9006_v16, %v9007_v26 }
 0x753   : > { %vm22165_vm14 = vmand %vm19931_vm15, %vm20208_vm7  ;;  %vm24166_vm15 = vcmp.lt.s32.totalorder %v24091_v29, 7 }
 0x754   : > { %14231 = vmatmul.mubr.msk.f32.gmra.mrb[44].mxu1 %vm24149_vm13, %v8718_v12  ;;  %vm24152_vm13 = vmmov %vm24150_vm9  ;;  %vm20245_vm9 = vcmp.lt.s32.totalorder %v8650_v55, 7  ;;  %v12350_v55 = vld [vmem:[%s21232_s6 + $0x20] sm:$0xff] }
 0x755   : > { %14235 = vmatprep.mubr.msk.f32.mxu1 %vm24151_vm5, %v9052_v47  ;;  %v20237_v12 = vsel %vm24152_vm13, %v9005_v31, %v9006_v16  ;;  %v24154_v15 = vsel %vm20245_vm9, 4294967295, %v24153_v15  ;;  %vm20252_vm5 = vcmp.lt.s32.totalorder %v8651_v59, 7  ;;  %v24155_v47 = vmov 0 }
 0x756   : > { %v24156_v47 = vsel %vm20252_vm5, 4294967295, %v24155_v47  ;;  %v9053_v31 = vsel %vm22161_vm8, %v20227_v36, 0.0  ;;  %vm24157_vm13 = vcmask 64512   ;;  %v9054_v59 = vsel %vm22165_vm14, %v20237_v12, 0.0  ;;  %vm22173_vm8 = vmand %vm19952_vm6, %vm20245_vm9 }
 0x757   : > { %vm24159_vm12 = vmmov %vm24157_vm13  ;;  %v24161_v16 = vmov 0 }
 0x758   : > { %14236 = vmatmul.mubr.msk.f32.vlgmr.msra.gmra.mrb[38].mxu1 %vm24157_vm13, %v9053_v31  ;;  %vm24160_vm13 = vmmov %vm24158_vm4  ;;  %vm20292_vm4 = vcmp.lt.s32.totalorder %v8652_v44, 7 }
 0x759   : > { %14238 = vmatprep.mubr.msk.f32.mxu1 %vm24159_vm12, %v9054_v59  ;;  %v20284_v31 = vsel %vm24160_vm13, %v9007_v26, %v9008_v38  ;;  %vm22174_vm14 = vmand %vm19960_vm11, %vm20252_vm5  ;;  %v24162_v16 = vsel %vm20292_vm4, 4294967295, %v24161_v16  ;;  %14248 = vmatpush3.msra.mxu1 %v12341_v33  ;;  %vm20299_vm12 = vcmp.lt.s32.totalorder %v8653_v56, 7  ;;  %v24163_v59 = vmov 0 }
 0x75a   : > { %v24164_v59 = vsel %vm20299_vm12, 4294967295, %v24163_v59  ;;  %14261 = vmatprep.subr.mxu1 %v12350_v55  ;;  %v9055_v26 = vsel %vm22173_vm8, %v20274_v2, 0.0  ;;  %vm24165_vm13 = vcmask 64512   ;;  %v9056_v44 = vsel %vm22174_vm14, %v20284_v31, 0.0  ;;  %vm22175_vm7 = vmand %vm19974_vm0, %vm20292_vm4 }
 0x75b   : > { %v20318_v56 = vsel %vm24166_vm15, %v9008_v38, %v9009_v13  ;;  %vm24167_vm6 = vmmov %vm24165_vm13  ;;  %vm24169_vm8 = vnez %v24110_v41  ;;  %vm24181_vm11 = vnez %v24125_v5 }
 0x75c   : > { %14239 = vmatmul.mubr.msk.f32.gmra.mrb[40].mxu1 %vm24165_vm13, %v9055_v26  ;;  %vm24168_vm13 = vmmov %vm24166_vm15  ;;  %v9057_v38 = vsel %vm22175_vm7, %v20318_v56, 0.0  ;;  %vm20339_vm15 = vcmp.lt.s32.totalorder %v8654_v40, 7  ;;  %v24170_v26 = vmov 0 }
 0x75d   : > { %14241 = vmatprep.mubr.msk.f32.mxu1 %vm24167_vm6, %v9056_v44  ;;  %v20327_v33 = vsel %vm24168_vm13, %v9009_v13, %v9010_v62  ;;  %vm22178_vm14 = vmand %vm24169_vm8, %vm20299_vm12  ;;  %v24171_v26 = vsel %vm20339_vm15, 4294967295, %v24170_v26  ;;  %v20352_v44 = vsel %vm24168_vm13, %v9010_v62, %v9011_v32  ;;  %vm24174_vm13 = vnez %v24115_v57 }
 0x75e   : > { %v9058_v13 = vsel %vm22178_vm14, %v20327_v33, 0.0  ;;  %vm22180_vm7 = vmand %vm20000_vm2, %vm20339_vm15  ;;  %v9215_v62 = vsel %vm24174_vm13, %v20047_v42, 0.0  ;;  %vm24176_vm8 = vnez %v24120_v9 }
 0x75f   : > { %vm24172_vm0 = vmmov %vm24167_vm6  ;;  %v9059_v40 = vsel %vm22180_vm7, %v20352_v44, 0.0  ;;  %v9216_v32 = vsel %vm24176_vm8, %v20057_v1, 0.0  ;;  %vm24177_vm7 = vnez %v24118_v18 }
 0x760   : > { %14242 = vmatmul.mubr.msk.f32.gmra.mrb[42].mxu1 %vm24167_vm6, %v9057_v38  ;;  %vm24173_vm6 = vmmov %vm24172_vm0  ;;  %v12359_v38 = vld [vmem:[%s21232_s6 + $0x28] sm:$0xff] }
 0x761   : > { %14244 = vmatprep.mubr.msk.f32.mxu1 %vm24172_vm0, %v9058_v13  ;;  %vm24175_vm14 = vmmov %vm24172_vm0  ;;  %v9217_v13 = vsel %vm24177_vm7, %v20096_v20, 0.0 }
 0x762   : > { %vm24180_vm2 = vmmov %vm24172_vm0 }
 0x763   : > { %vm24182_vm8 = vmmov %vm24172_vm0 }
 0x764   : > { %14245 = vmatmul.mubr.msk.f32.gmra.mrb[44].mxu1 %vm24173_vm6, %v9059_v40  ;;  %vm24178_vm6 = vmmov %vm24172_vm0 }
 0x765   : > { %14249 = vmatprep.mubr.msk.f32.mxu1 %vm24175_vm14, %v9215_v62  ;;  %vm24179_vm14 = vnez %v24123_v43  ;;  %v9219_v62 = vsel %vm24181_vm11, %v20141_v54, 0.0  ;;  %vm24184_vm7 = vmmov %vm24180_vm2 }
 0x766   : > { %v9218_v40 = vsel %vm24179_vm14, %v20106_v51, 0.0  ;;  %vm24186_vm15 = vmmov %vm24180_vm2 }
 0x768   : > { %14250 = vmatmul.mubr.msk.f32.vlgmr.msra.gmra.mrb[38].mxu1 %vm24172_vm0, %v9216_v32  ;;  %vm24183_vm0 = vnez %v24131_v60 }
 0x769   : > { %14252 = vmatprep.mubr.msk.f32.mxu1 %vm24178_vm6, %v9217_v13  ;;  %14262 = vmatpush3.msra.mxu1 %v12350_v55  ;;  %v9220_v32 = vsel %vm24183_vm0, %v20150_v28, 0.0  ;;  %vm24185_vm6 = vnez %v24133_v61  ;;  %v9222_v13 = vsel %vm20156_vm10, %v20013_v6, 0.0  ;;  %vm24192_vm10 = vmmov %vm24180_vm2 }
 0x76a   : > { %14275 = vmatprep.subr.mxu1 %v12359_v38  ;;  %v9221_v55 = vsel %vm24185_vm6, %v20178_v46, 0.0  ;;  %vm24189_vm6 = vmmov %vm24180_vm2 }
 0x76b   : > { %vm24193_vm0 = vmmov %vm24180_vm2 }
 0x76c   : > { %14253 = vmatmul.mubr.msk.f32.gmra.mrb[40].mxu1 %vm24180_vm2, %v9218_v40  ;;  %v12368_v40 = vld [vmem:[%s21232_s6 + $0x30] sm:$0xff] }
 0x76d   : > { %14255 = vmatprep.mubr.msk.f32.mxu1 %vm24182_vm8, %v9219_v62  ;;  %vm24187_vm8 = vmmov %vm24180_vm2  ;;  %v9518_v62 = vsel %vm20201_vm1, %v20237_v12, 0.0 }
 0x770   : > { %14256 = vmatmul.mubr.msk.f32.gmra.mrb[42].mxu1 %vm24184_vm7, %v9220_v32  ;;  %vm24188_vm7 = vmmov %vm24180_vm2  ;;  %v12377_v32 = vld [vmem:[%s21232_s6 + $0x38] sm:$0xff] }
 0x771   : > { %14258 = vmatprep.mubr.msk.f32.mxu1 %vm24186_vm15, %v9221_v55  ;;  %vm24190_vm15 = vmmov %vm24180_vm2 }
 0x774   : > { %14259 = vmatmul.mubr.msk.f32.gmra.mrb[44].mxu1 %vm24180_vm2, %v9222_v13  ;;  %v9520_v13 = vsel %vm20245_vm9, %v20284_v31, 0.0 }
 0x775   : > { %14263 = vmatprep.mubr.msk.f32.mxu1 %vm24187_vm8, %v19897_v39  ;;  %vm24191_vm8 = vmmov %vm24180_vm2 }
 0x778   : > { %14264 = vmatmul.mubr.msk.f32.vlgmr.msra.gmra.mrb[38].mxu1 %vm24188_vm7, %v19899_v17  ;;  %vm24195_vm7 = vmmov %vm24193_vm0 }
 0x779   : > { %14266 = vmatprep.mubr.msk.f32.mxu1 %vm24189_vm6, %v19901_v63  ;;  %14276 = vmatpush3.msra.mxu1 %v12359_v38  ;;  %v9517_v38 = vsel %vm20186_vm3, %v20227_v36, 0.0  ;;  %vm24194_vm6 = vmmov %vm24193_vm0 }
 0x77a   : > { %14289 = vmatprep.subr.mxu1 %v12368_v40 }
 0x77c   : > { %14267 = vmatmul.mubr.msk.f32.gmra.mrb[40].mxu1 %vm24190_vm15, %v19903_v30  ;;  %vm24197_vm15 = vmmov %vm24193_vm0 }
 0x77d   : > { %14269 = vmatprep.mubr.msk.f32.mxu1 %vm24180_vm2, %v19905_v14  ;;  %vm24198_vm2 = vmmov %vm24193_vm0 }
 0x780   : > { %14270 = vmatmul.mubr.msk.f32.gmra.mrb[42].mxu1 %vm24191_vm8, %v19907_v3  ;;  %vm24199_vm8 = vmmov %vm24193_vm0 }
 0x781   : > { %14272 = vmatprep.mubr.msk.f32.mxu1 %vm24192_vm10, %v19909_v49  ;;  %vm24196_vm10 = vnez %v24148_v27 }
 0x782   : > { %v9519_v55 = vsel %vm24196_vm10, %v20274_v2, 0.0 }
 0x784   : > { %14273 = vmatmul.mubr.msk.f32.gmra.mrb[44].mxu1 %vm24193_vm0, %v19920_v48 }
 0x785   : > { %14277 = vmatprep.mubr.msk.f32.mxu1 %vm24194_vm6, %v9517_v38  ;;  %v9521_v38 = vsel %vm20252_vm5, %v20318_v56, 0.0  ;;  %vm20452_vm6 = vcmp.lt.s32.totalorder %v8639_v53, 7  ;;  %vm24212_vm5 = vnez %v24118_v18 }
 0x788   : > { %14278 = vmatmul.mubr.msk.f32.vlgmr.msra.gmra.mrb[38].mxu1 %vm24195_vm7, %v9518_v62  ;;  %v9522_v62 = vsel %vm20292_vm4, %v20327_v33, 0.0  ;;  %vm24202_vm7 = vmmov %vm24193_vm0 }
 0x789   : > { %14280 = vmatprep.mubr.msk.f32.mxu1 %vm24193_vm0, %v9519_v55  ;;  %14290 = vmatpush3.msra.mxu1 %v12368_v40  ;;  %v9523_v40 = vsel %vm20299_vm12, %v20352_v44, 0.0  ;;  %v24200_v55 = vmov 0  ;;  %vm22195_vm0 = vmand %vm20452_vm6, %vm24174_vm13  ;;  %vm24207_vm12 = vcmask 64512  }
 0x78a   : > { %14303 = vmatprep.subr.mxu1 %v12377_v32  ;;  %v24201_v55 = vsel %vm20452_vm6, 4294967295, %v24200_v55  ;;  %v9696_v19 = vsel %vm22195_vm0, %v20057_v1, 0.0 }
 0x78c   : > { %14281 = vmatmul.mubr.msk.f32.gmra.mrb[40].mxu1 %vm24197_vm15, %v9520_v13  ;;  %vm20463_vm15 = vcmp.lt.s32.totalorder %v8640_v21, 7  ;;  %v24203_v13 = vmov 0  ;;  %v24208_v21 = vshra.s32 %v24092_v50, 3  ;;  %v24213_v50 = vshra.s32 %v24097_v0, 3 }
 0x78d   : > { %14283 = vmatprep.mubr.msk.f32.mxu1 %vm24198_vm2, %v9521_v38  ;;  %v24204_v13 = vsel %vm20463_vm15, 4294967295, %v24203_v13  ;;  %vm24205_vm2 = vnez %v24171_v26  ;;  %v24209_v38 = vmov 0  ;;  %v24216_v0 = vshra.s32 %v24100_v8, 3 }
 0x78e   : > { %v9524_v53 = vsel %vm24205_vm2, %v20193_v52, 0.0  ;;  %vm20483_vm4 = vcmp.lt.s32.totalorder %v24208_v21, 7  ;;  %vm24211_vm2 = vmmov %vm24207_vm12  ;;  %vm20500_vm0 = vcmp.lt.s32.totalorder %v24213_v50, 7  ;;  %v24230_v21 = vmov 0 }
 0x78f   : > { %v24210_v38 = vsel %vm20483_vm4, 4294967295, %v24209_v38  ;;  %vm24219_vm13 = vmmov %vm24211_vm2  ;;  %v9861_v50 = vsel %vm20483_vm4, %v19903_v30, 0.0 }
 0x790   : > { %14284 = vmatmul.mubr.msk.f32.gmra.mrb[42].mxu1 %vm24199_vm8, %v9522_v62  ;;  %vm24206_vm8 = vnez %v24120_v9  ;;  %v24214_v62 = vmov 0  ;;  %vm24227_vm9 = vmmov %vm24219_vm13 }
 0x791   : > { %14286 = vmatprep.mubr.msk.f32.mxu1 %vm24202_vm7, %v9523_v40  ;;  %vm22196_vm7 = vmand %vm20463_vm15, %vm24206_vm8  ;;  %v24215_v62 = vsel %vm20500_vm0, 4294967295, %v24214_v62  ;;  %v12386_v40 = vld [vmem:[%s21232_s6 + $0x40] sm:$0xff]  ;;  %vm20520_vm8 = vcmp.lt.s32.totalorder %v24216_v0, 7 }
 0x792   : > { %v9697_v1 = vsel %vm22196_vm7, %v20096_v20, 0.0  ;;  %vm22201_vm7 = vmand %vm20500_vm0, %vm24179_vm14  ;;  %v24217_v20 = vmov 0 }
 0x793   : > { %v24218_v20 = vsel %vm20520_vm8, 4294967295, %v24217_v20  ;;  %v9699_v8 = vsel %vm22201_vm7, %v20141_v54, 0.0  ;;  %v24225_v54 = vmov 0 }
 0x794   : > { %14287 = vmatmul.mubr.msk.f32.gmra.mrb[44].mxu1 %vm24207_vm12, %v9524_v53  ;;  %vm22199_vm12 = vmand %vm20483_vm4, %vm24212_vm5  ;;  %vm24223_vm5 = vnez %v24131_v60 }
 0x795   : > { %14291 = vmatprep.mubr.msk.f32.mxu1 %vm24211_vm2, %v9696_v19  ;;  %v9698_v53 = vsel %vm22199_vm12, %v20106_v51, 0.0  ;;  %v24220_v51 = vshra.s32 %v24103_v45, 3  ;;  %v24221_v19 = vmov 0  ;;  %v24224_v45 = vshra.s32 %v24106_v35, 3 }
 0x796   : > { %v24229_v35 = vshra.s32 %v24111_v23, 3 }
 0x797   : > { %vm20537_vm12 = vcmp.lt.s32.totalorder %v24220_v51, 7  ;;  %vm20554_vm14 = vcmp.lt.s32.totalorder %v24224_v45, 7 }
 0x798   : > { %14292 = vmatmul.mubr.msk.f32.vlgmr.msra.gmra.mrb[38].mxu1 %vm24211_vm2, %v9697_v1  ;;  %vm22205_vm2 = vmand %vm20520_vm8, %vm24181_vm11  ;;  %v24222_v19 = vsel %vm20537_vm12, 4294967295, %v24221_v19  ;;  %v24226_v54 = vsel %vm20554_vm14, 4294967295, %v24225_v54  ;;  %v9865_v30 = vsel %vm20554_vm14, %v19920_v48, 0.0 }
 0x799   : > { %14294 = vmatprep.mubr.msk.f32.mxu1 %vm24219_vm13, %v9698_v53  ;;  %14304 = vmatpush3.msra.mxu1 %v12377_v32  ;;  %v9700_v32 = vsel %vm22205_vm2, %v20150_v28, 0.0  ;;  %vm22207_vm7 = vmand %vm20537_vm12, %vm24223_vm5  ;;  %vm20571_vm2 = vcmp.lt.s32.totalorder %v24229_v35, 7 }
 0x79a   : > { %14317 = vmatprep.subr.mxu1 %v12386_v40  ;;  %v9701_v28 = vsel %vm22207_vm7, %v20178_v46, 0.0  ;;  %v24231_v21 = vsel %vm20571_vm2, 4294967295, %v24230_v21  ;;  %vm24232_vm11 = vmmov %vm24227_vm9  ;;  %v9860_v46 = vsel %vm20463_vm15, %v19901_v63, 0.0  ;;  %v9864_v63 = vsel %vm20537_vm12, %v19909_v49, 0.0 }
 0x79b   : > { %vm24234_vm5 = vmmov %vm24232_vm11 }
 0x79c   : > { %14295 = vmatmul.mubr.msk.f32.gmra.mrb[40].mxu1 %vm24219_vm13, %v9699_v8  ;;  %vm24228_vm13 = vnez %v24133_v61 }
 0x79d   : > { %14297 = vmatprep.mubr.msk.f32.mxu1 %vm24227_vm9, %v9700_v32  ;;  %vm22209_vm10 = vmand %vm20554_vm14, %vm24228_vm13  ;;  %vm24233_vm9 = vnez %v24139_v7 }
 0x79e   : > { %v9702_v1 = vsel %vm22209_vm10, %v20013_v6, 0.0  ;;  %vm22211_vm7 = vmand %vm20571_vm2, %vm24233_vm9  ;;  %v9859_v6 = vsel %vm20452_vm6, %v19899_v17, 0.0  ;;  %v9863_v17 = vsel %vm20520_vm8, %v19907_v3, 0.0 }
 0x79f   : > { %v9703_v23 = vsel %vm22211_vm7, %v20047_v42, 0.0  ;;  %vm24236_vm10 = vmmov %vm24234_vm5  ;;  %v9862_v42 = vsel %vm20500_vm0, %v19905_v14, 0.0  ;;  %v9866_v14 = vsel %vm20571_vm2, %v19897_v39, 0.0  ;;  %vm24242_vm7 = vnez %v24148_v27 }
 0x7a0   : > { %14298 = vmatmul.mubr.msk.f32.gmra.mrb[42].mxu1 %vm24232_vm11, %v9701_v28  ;;  %vm24235_vm11 = vmmov %vm24234_vm5 }
 0x7a1   : > { %14300 = vmatprep.mubr.msk.f32.mxu1 %vm24234_vm5, %v9702_v1  ;;  %vm24237_vm9 = vmmov %vm24234_vm5 }
 0x7a2   : > { %vm22219_vm13 = vmand %vm20483_vm4, %vm24242_vm7 }
 0x7a3   : > { %v10032_v49 = vsel %vm22219_vm13, %v20284_v31, 0.0  ;;  %vm24247_vm4 = vmmov %vm24234_vm5 }
 0x7a4   : > { %14301 = vmatmul.mubr.msk.f32.gmra.mrb[44].mxu1 %vm24235_vm11, %v9703_v23  ;;  %vm24238_vm11 = vmmov %vm24234_vm5 }
 0x7a5   : > { %14305 = vmatprep.mubr.msk.f32.mxu1 %vm24236_vm10, %v9859_v6  ;;  %vm24239_vm10 = vmmov %vm24234_vm5 }
 0x7a8   : > { %14306 = vmatmul.mubr.msk.f32.vlgmr.msra.gmra.mrb[38].mxu1 %vm24234_vm5, %v9860_v46 }
 0x7a9   : > { %14308 = vmatprep.mubr.msk.f32.mxu1 %vm24237_vm9, %v9861_v50  ;;  %14318 = vmatpush3.msra.mxu1 %v12386_v40  ;;  %vm24240_vm9 = vmmov %vm24234_vm5 }
 0x7ac   : > { %14309 = vmatmul.mubr.msk.f32.gmra.mrb[40].mxu1 %vm24238_vm11, %v9862_v42  ;;  %vm22213_vm11 = vmand %vm20452_vm6, %vm20186_vm3  ;;  %vm24245_vm3 = vnez %v24156_v47 }
 0x7ad   : > { %14311 = vmatprep.mubr.msk.f32.mxu1 %vm24239_vm10, %v9863_v17  ;;  %vm22218_vm10 = vmand %vm20463_vm15, %vm20201_vm1  ;;  %v10030_v3 = vsel %vm22213_vm11, %v20237_v12, 0.0  ;;  %vm24248_vm15 = vnez %v24164_v59 }
 0x7ae   : > { %v10031_v39 = vsel %vm22218_vm10, %v20274_v2, 0.0  ;;  %vm24244_vm6 = vmmov %vm24234_vm5 }
 0x7af   : > { %vm22225_vm10 = vmand %vm20520_vm8, %vm24245_vm3 }
 0x7b0   : > { %14312 = vmatmul.mubr.msk.f32.gmra.mrb[42].mxu1 %vm24234_vm5, %v9864_v63  ;;  %v10034_v2 = vsel %vm22225_vm10, %v20327_v33, 0.0  ;;  %v10224_v33 = vld [vmem:[%s21234_s8] sm:$0xff] }
 0x7b1   : > { %14314 = vmatprep.mubr.msk.f32.mxu1 %vm24240_vm9, %v9865_v30  ;;  %vm24241_vm9 = vmmov %vm24234_vm5 }
 0x7b4   : > { %14315 = vmatmul.mubr.msk.f32.gmra.mrb[44].mxu1 %vm24234_vm5, %v9866_v14 }
 0x7b5   : > { %14319 = vmatprep.mubr.msk.f32.mxu1 %vm24241_vm9, %v10030_v3  ;;  %vm24243_vm9 = vnez %v24154_v15 }
 0x7b6   : > { %vm22224_vm11 = vmand %vm20500_vm0, %vm24243_vm9 }
 0x7b7   : > { %v10033_v48 = vsel %vm22224_vm11, %v20318_v56, 0.0  ;;  %vm22229_vm11 = vmand %vm20554_vm14, %vm24248_vm15  ;;  %vm24265_vm15 = vnez %v24113_v22  ;;  %v12440_v22 = vld [vmem:[%s21234_s8 + $0x28] sm:$0xff] }
 0x7b8   : > { %14320 = vmatmul.mubr.msk.f32.vlgmr.msra.gmra.mrb[38].mxu1 %vm24234_vm5, %v10031_v39  ;;  %v10036_v31 = vsel %vm22229_vm11, %v20193_v52, 0.0  ;;  %v12396_v52 = vld [vmem:[%s21234_s8 + $0x8] sm:$0xff]  ;;  %v12413_v39 = vld [vmem:[%s21234_s8 + $0x10] sm:$0xff] }
 0x7b9   : > { %14322 = vmatprep.mubr.msk.f32.mxu1 %vm24244_vm6, %v10032_v49  ;;  %vm24246_vm6 = vnez %v24162_v16  ;;  %14331 = vmatprep.subr.mxu0 %v12396_v52 }
 0x7ba   : > { %vm22230_vm13 = vmand %vm20537_vm12, %vm24246_vm6  ;;  %14332 = vmatpush3.msra.mxu0 %v12396_v52 }
 0x7bb   : > { %v10035_v12 = vsel %vm22230_vm13, %v20352_v44, 0.0  ;;  %14345 = vmatprep.subr.mxu0 %v10224_v33  ;;  %vm24255_vm13 = vnez %v24099_v24 }
 0x7bc   : > { %14323 = vmatmul.mubr.msk.f32.gmra.mrb[40].mxu1 %vm24234_vm5, %v10033_v48  ;;  %vm24249_vm5 = vmmov %vm24247_vm4 }
 0x7bd   : > { %14325 = vmatprep.mubr.msk.f32.mxu1 %vm24247_vm4, %v10034_v2  ;;  %vm24250_vm4 = vnez %v24171_v26  ;;  %vm24251_vm8 = vmmov %vm24249_vm5 }
 0x7be   : > { %vm22228_vm10 = vmand %vm20571_vm2, %vm24250_vm4  ;;  %vm24256_vm2 = vnez %v24102_v10  ;;  %vm24262_vm4 = vnez %v24110_v41 }
 0x7bf   : > { %v10037_v56 = vsel %vm22228_vm10, %v20227_v36, 0.0  ;;  %v12395_v36 = vld [vmem:[%s21233_s7] ss:$0 sm:$0xff]  ;;  %vm24253_vm10 = vnez %v24096_v25  ;;  %vm24254_vm11 = vmmov %vm24249_vm5 }
 0x7c0   : > { %14326 = vmatmul.mubr.msk.f32.gmra.mrb[42].mxu1 %vm24249_vm5, %v10035_v12  ;;  %vm24257_vm14 = vmmov %vm24249_vm5 }
 0x7c1   : > { %14328 = vmatprep.mubr.msk.f32.mxu1 %vm24251_vm8, %v10036_v31  ;;  %vm24252_vm8 = vnez %v24094_v34  ;;  %vm24259_vm12 = vmmov %vm24249_vm5 }
 0x7c2   : > { %vm24261_vm0 = vmmov %vm24259_vm12 }
 0x7c3   : > { %vm24266_vm6 = vmmov %vm24261_vm0 }
 0x7c4   : > { %14329 = vmatmul.mubr.msk.f32.gmra.mrb[44].mxu1 %vm24249_vm5, %v10037_v56 }
 0x88b   : > { %v14321_v44 = vpop.f32.mrb[38].mxu1 }
 0x88c   : > { %v10130_v40 = vpop.f32.mrb[39].mxu1  ;;  %v10185_v45 = vadd.f32 %v14321_v44, %v12395_v36 }
 0x88d   : > { %v10184_v32 = vadd.f32 %v12395_v36, %v10130_v40 }
 0x88e   : > { %v20725_v46 = vmax.f32 %v10185_v45, 0.0 }
 0x88f   : > { %v14324_v53 = vpop.f32.mrb[40].mxu1  ;;  %v20723_v23 = vmax.f32 %v10184_v32, 0.0 }
 0x890   : > { %v10140_v0 = vpop.f32.mrb[41].mxu1  ;;  %v10187_v50 = vadd.f32 %v14324_v53, %v12395_v36  ;;  %v10227_v2 = vsel %vm24255_vm13, %v20725_v46, 0.0 }
 0x891   : > { %v10186_v6 = vadd.f32 %v12395_v36, %v10140_v0  ;;  %v10226_v3 = vsel %vm24253_vm10, %v20723_v23, 0.0 }
 0x892   : > { %v20741_v49 = vmax.f32 %v10187_v50, 0.0 }
 0x893   : > { %v14327_v8 = vpop.f32.mrb[42].mxu1  ;;  %v20732_v30 = vmax.f32 %v10186_v6, 0.0 }
 0x894   : > { %v10150_v51 = vpop.f32.mrb[43].mxu1  ;;  %v10189_v48 = vadd.f32 %v14327_v8, %v12395_v36  ;;  %v10203_v6 = vrot.slane %v20741_v49, 7 }
 0x895   : > { %v10188_v14 = vadd.f32 %v12395_v36, %v10150_v51  ;;  %v10228_v56 = vsel %vm24256_vm2, %v20732_v30, 0.0  ;;  %v10201_v51 = vrot.slane %v20725_v46, 7 }
 0x896   : > { %v20755_v52 = vmax.f32 %v10189_v48, 0.0 }
 0x897   : > { %v14330_v28 = vpop.f32.mrb[44].mxu1  ;;  %v20750_v31 = vmax.f32 %v10188_v14, 0.0 }
 0x898   : > { %v10191_v35 = vadd.f32 %v14330_v28, %v12395_v36  ;;  %v10160_v1 = vpop.f32.mrb[45].mxu1  ;;  %v10231_v0 = vsel %vm24262_vm4, %v20755_v52, 0.0 }
 0x899   : > { %v10190_v17 = vadd.f32 %v12395_v36, %v10160_v1  ;;  %v10200_v36 = vrot.slane %v20723_v23, 7 }
 0x89a   : > { %v20727_v42 = vmax.f32 %v10191_v35, 0.0  ;;  %v10202_v35 = vrot.slane %v20732_v30, 7 }
 0x89b   : > { %v20747_v12 = vmax.f32 %v10190_v17, 0.0  ;;  %v12422_v17 = vld [vmem:[%s21234_s8 + $0x18] sm:$0xff] }
 0x89c   : > { %v10225_v63 = vsel %vm24252_vm8, %v20727_v42, 0.0 }
 0x89d   : > { %14333 = vmatprep.mubr.msk.f32.mxu0 %vm24249_vm5, %v10225_v63  ;;  %v10206_v40 = vrot.slane %v20747_v12, 7  ;;  %v10232_v32 = vsel %vm24265_vm15, %v20747_v12, 0.0 }
 0x89e   : > { %14334 = vmatmul.mubr.msk.f32.vlgmr.msra.gmra.mrb[48].mxu0 %vm24254_vm11, %v10226_v3  ;;  %vm24258_vm11 = vnez %v24105_v58  ;;  %v10204_v3 = vrot.slane %v20750_v31, 7 }
 0x89f   : > { %14336 = vmatprep.mubr.msk.f32.mxu0 %vm24249_vm5, %v10227_v2  ;;  %14346 = vmatpush3.msra.mxu0 %v10224_v33  ;;  %v10229_v44 = vsel %vm24258_vm11, %v20741_v49, 0.0  ;;  %v10207_v33 = vrot.slane %v20727_v42, 7  ;;  %vm24260_vm5 = vnez %v24108_v11  ;;  %v10205_v2 = vrot.slane %v20755_v52, 7 }
 0x8a0   : > { %14359 = vmatprep.subr.mxu0 %v12413_v39  ;;  %v10230_v53 = vsel %vm24260_vm5, %v20750_v31, 0.0 }
 0x8a2   : > { %14337 = vmatmul.mubr.msk.f32.gmra.mrb[50].mxu0 %vm24257_vm14, %v10228_v56  ;;  %vm24263_vm14 = vmmov %vm24261_vm0 }
 0x8a3   : > { %14339 = vmatprep.mubr.msk.f32.mxu0 %vm24259_vm12, %v10229_v44  ;;  %vm24264_vm12 = vcmp.lt.s32.totalorder %v24091_v29, 1 }
 0x8a4   : > { %v20775_v8 = vsel %vm24264_vm12, %v10206_v40, %v10207_v33 }
 0x8a6   : > { %14340 = vmatmul.mubr.msk.f32.gmra.mrb[52].mxu0 %vm24261_vm0, %v10230_v53  ;;  %vm24267_vm0 = vnez %v24115_v57  ;;  %v10500_v53 = vrot.slane %v20727_v42, 1 }
 0x8a7   : > { %14342 = vmatprep.mubr.msk.f32.mxu0 %vm24263_vm14, %v10231_v0  ;;  %vm24268_vm3 = vmand %vm24252_vm8, %vm24267_vm0  ;;  %vm24277_vm0 = vcmp.lt.s32.totalorder %v24091_v29, 1 }
 0x8a8   : > { %v10216_v45 = vsel %vm24268_vm3, %v20775_v8, 0.0  ;;  %vm24269_vm14 = vmmov %vm24264_vm12  ;;  %v20817_v14 = vsel %vm24277_vm0, %v10201_v51, %v10202_v35 }
 0x8a9   : > { %v20790_v28 = vsel %vm24269_vm14, %v10207_v33, %v10200_v36  ;;  %vm24270_vm12 = vmmov %vm24266_vm6 }
 0x8aa   : > { %14343 = vmatmul.mubr.msk.f32.gmra.mrb[54].mxu0 %vm24266_vm6, %v10232_v32  ;;  %vm24271_vm9 = vmmov %vm24269_vm14  ;;  %vm24272_vm6 = vnez %v24120_v9 }
 0x8ab   : > { %14347 = vmatprep.mubr.msk.f32.mxu0 %vm24270_vm12, %v10216_v45  ;;  %v20796_v1 = vsel %vm24271_vm9, %v10200_v36, %v10201_v51  ;;  %vm24273_vm3 = vmand %vm24253_vm10, %vm24272_vm6  ;;  %vm24275_vm9 = vnez %v24118_v18  ;;  %v10493_v36 = vrot.slane %v20723_v23, 1  ;;  %v10494_v51 = vrot.slane %v20725_v46, 1 }
 0x8ac   : > { %v10217_v50 = vsel %vm24273_vm3, %v20790_v28, 0.0  ;;  %vm24274_vm14 = vmmov %vm24270_vm12 }
 0x8ad   : > { %vm24276_vm12 = vmand %vm24255_vm13, %vm24275_vm9  ;;  %vm24285_vm9 = vcmp.lt.s32.totalorder %v24091_v29, 1 }
 0x8ae   : > { %14348 = vmatmul.mubr.msk.f32.vlgmr.msra.gmra.mrb[48].mxu0 %vm24274_vm14, %v10217_v50  ;;  %v10218_v63 = vsel %vm24276_vm12, %v20796_v1, 0.0  ;;  %vm24278_vm3 = vmmov %vm24274_vm14  ;;  %vm24280_vm14 = vnez %v24123_v43 }
 0x8af   : > { %14350 = vmatprep.mubr.msk.f32.mxu0 %vm24278_vm3, %v10218_v63  ;;  %vm24279_vm6 = vmmov %vm24277_vm0  ;;  %14360 = vmatpush3.msra.mxu0 %v12413_v39  ;;  %v20841_v39 = vsel %vm24285_vm9, %v10203_v6, %v10204_v3 }
 0x8b0   : > { %v20823_v48 = vsel %vm24279_vm6, %v10202_v35, %v10203_v6  ;;  %14373 = vmatprep.subr.mxu0 %v12422_v17  ;;  %vm24281_vm12 = vmand %vm24256_vm2, %vm24280_vm14  ;;  %v10495_v6 = vrot.slane %v20732_v30, 1 }
 0x8b1   : > { %v10219_v56 = vsel %vm24281_vm12, %v20817_v14, 0.0  ;;  %vm24282_vm0 = vmmov %vm24278_vm3  ;;  %vm24283_vm3 = vnez %v24125_v5  ;;  %vm24288_vm12 = vnez %v24131_v60 }
 0x8b2   : > { %14351 = vmatmul.mubr.msk.f32.gmra.mrb[50].mxu0 %vm24282_vm0, %v10219_v56  ;;  %vm24284_vm6 = vmand %vm24258_vm11, %vm24283_vm3  ;;  %v10497_v56 = vrot.slane %v20750_v31, 1 }
 0x8b3   : > { %v10220_v44 = vsel %vm24284_vm6, %v20823_v48, 0.0  ;;  %vm24286_vm7 = vmmov %vm24282_vm0  ;;  %vm24293_vm6 = vcmp.lt.s32.totalorder %v24091_v29, 1 }
 0x8b4   : > { %14353 = vmatprep.mubr.msk.f32.mxu0 %vm24286_vm7, %v10220_v44  ;;  %vm24287_vm13 = vmmov %vm24285_vm9  ;;  %v20866_v45 = vsel %vm24293_vm6, %v10205_v2, %v10206_v40  ;;  %v12431_v44 = vld [vmem:[%s21234_s8 + $0x20] sm:$0xff] }
 0x8b5   : > { %v20846_v33 = vsel %vm24287_vm13, %v10204_v3, %v10205_v2  ;;  %vm24289_vm0 = vmand %vm24260_vm5, %vm24288_vm12  ;;  %v10496_v3 = vrot.slane %v20741_v49, 1 }
 0x8b6   : > { %v10221_v0 = vsel %vm24289_vm0, %v20841_v39, 0.0  ;;  %vm24290_vm9 = vmmov %vm24286_vm7  ;;  %vm24291_vm7 = vnez %v24133_v61  ;;  %vm24295_vm0 = vcmp.lt.s32.totalorder %v24091_v29, 7 }
 0x8b7   : > { %14354 = vmatmul.mubr.msk.f32.gmra.mrb[52].mxu0 %vm24290_vm9, %v10221_v0  ;;  %vm24292_vm13 = vmand %vm24262_vm4, %vm24291_vm7  ;;  %v20871_v35 = vsel %vm24295_vm0, %v10500_v53, %v10493_v36  ;;  %v20889_v63 = vsel %vm24295_vm0, %v10493_v36, %v10494_v51  ;;  %v10498_v36 = vrot.slane %v20755_v52, 1 }
 0x8b8   : > { %v10222_v32 = vsel %vm24292_vm13, %v20846_v33, 0.0  ;;  %vm24294_vm3 = vmmov %vm24290_vm9  ;;  %vm24296_vm9 = vnez %v24139_v7 }
 0x8b9   : > { %14356 = vmatprep.mubr.msk.f32.mxu0 %vm24294_vm3, %v10222_v32  ;;  %vm24297_vm12 = vmand %vm24265_vm15, %vm24296_vm9  ;;  %v10499_v32 = vrot.slane %v20747_v12, 1 }
 0x8ba   : > { %v10223_v50 = vsel %vm24297_vm12, %v20866_v45, 0.0  ;;  %vm24298_vm13 = vmmov %vm24294_vm3  ;;  %vm24299_vm3 = vnez %v24143_v4 }
 0x8bb   : > { %14357 = vmatmul.mubr.msk.f32.gmra.mrb[54].mxu0 %vm24298_vm13, %v10223_v50  ;;  %vm24300_vm6 = vmand %vm24252_vm8, %vm24299_vm3 }
 0x8bc   : > { %v10509_v40 = vsel %vm24300_vm6, %v20871_v35, 0.0  ;;  %vm24301_vm7 = vmmov %vm24298_vm13 }
 0x8bd   : > { %14361 = vmatprep.mubr.msk.f32.mxu0 %vm24301_vm7, %v10509_v40  ;;  %vm24302_vm9 = vmmov %vm24295_vm0 }
 0x8be   : > { %v20895_v2 = vsel %vm24302_vm9, %v10494_v51, %v10495_v6  ;;  %vm24303_vm8 = vmand %vm24253_vm10, %vm20201_vm1  ;;  %vm24306_vm9 = vnez %v24148_v27  ;;  %v20922_v51 = vsel %vm24295_vm0, %v10496_v3, %v10497_v56 }
 0x8bf   : > { %v10510_v34 = vsel %vm24303_vm8, %v20889_v63, 0.0  ;;  %vm24304_vm12 = vmmov %vm24301_vm7  ;;  %vm24305_vm7 = vnez %v24099_v24  ;;  %vm24310_vm8 = vnez %v24154_v15 }
 0x8c0   : > { %14362 = vmatmul.mubr.msk.f32.vlgmr.msra.gmra.mrb[48].mxu0 %vm24304_vm12, %v10510_v34  ;;  %vm24307_vm13 = vmand %vm24305_vm7, %vm24306_vm9 }
 0x8c1   : > { %v10511_v0 = vsel %vm24307_vm13, %v20895_v2, 0.0  ;;  %vm24308_vm6 = vmmov %vm24295_vm0  ;;  %14374 = vmatpush3.msra.mxu0 %v12422_v17  ;;  %vm24313_vm13 = vnez %v24156_v47 }
 0x8c2   : > { %v20916_v25 = vsel %vm24308_vm6, %v10495_v6, %v10496_v3  ;;  %vm24309_vm10 = vmmov %vm24304_vm12  ;;  %14387 = vmatprep.subr.mxu0 %v12431_v44  ;;  %v10659_v3 = vsel %vm24280_vm14, %v20823_v48, 0.0 }
 0x8c3   : > { %14364 = vmatprep.mubr.msk.f32.mxu0 %vm24309_vm10, %v10511_v0  ;;  %vm24311_vm12 = vmand %vm24256_vm2, %vm24310_vm8  ;;  %vm24318_vm2 = vnez %v24162_v16 }
 0x8c4   : > { %v10512_v24 = vsel %vm24311_vm12, %v20916_v25, 0.0  ;;  %vm24312_vm7 = vmmov %vm24309_vm10 }
 0x8c5   : > { %14365 = vmatmul.mubr.msk.f32.gmra.mrb[50].mxu0 %vm24312_vm7, %v10512_v24  ;;  %vm24314_vm6 = vmand %vm24258_vm11, %vm24313_vm13  ;;  %vm24321_vm11 = vnez %v24164_v59  ;;  %v10943_v24 = vsel %vm20201_vm1, %v20895_v2, 0.0 }
 0x8c6   : > { %v10513_v6 = vsel %vm24314_vm6, %v20922_v51, 0.0  ;;  %vm24315_vm10 = vmmov %vm24295_vm0 }
 0x8c7   : > { %v20940_v17 = vsel %vm24315_vm10, %v10497_v56, %v10498_v36  ;;  %vm24316_vm0 = vmmov %vm24312_vm7 }
 0x8c8   : > { %14367 = vmatprep.mubr.msk.f32.mxu0 %vm24316_vm0, %v10513_v6  ;;  %vm24317_vm9 = vmmov %vm24315_vm10  ;;  %v12458_v6 = vld [vmem:[%s21234_s8 + $0x38] sm:$0xff] }
 0x8c9   : > { %v20945_v10 = vsel %vm24317_vm9, %v10498_v36, %v10499_v32  ;;  %vm24319_vm12 = vmand %vm24260_vm5, %vm24318_vm2  ;;  %vm24325_vm5 = vnez %v24171_v26  ;;  %v12449_v36 = vld [vmem:[%s21234_s8 + $0x30] sm:$0xff] }
 0x8ca   : > { %v10514_v58 = vsel %vm24319_vm12, %v20940_v17, 0.0  ;;  %vm24320_vm7 = vmmov %vm24316_vm0 }
 0x8cb   : > { %14368 = vmatmul.mubr.msk.f32.gmra.mrb[52].mxu0 %vm24320_vm7, %v10514_v58  ;;  %vm24322_vm6 = vmand %vm24262_vm4, %vm24321_vm11 }
 0x8cc   : > { %v10515_v50 = vsel %vm24322_vm6, %v20945_v10, 0.0  ;;  %vm24323_vm10 = vmmov %vm24317_vm9  ;;  %vm24330_vm6 = vnez %v24120_v9 }
 0x8cd   : > { %v20962_v40 = vsel %vm24323_vm10, %v10499_v32, %v10500_v53  ;;  %vm24324_vm9 = vmmov %vm24316_vm0  ;;  %v10657_v29 = vsel %vm24330_vm6, %v20796_v1, 0.0  ;;  %v10942_v32 = vsel %vm24299_vm3, %v20889_v63, 0.0 }
 0x8ce   : > { %14370 = vmatprep.mubr.msk.f32.mxu0 %vm24324_vm9, %v10515_v50  ;;  %vm24326_vm0 = vmand %vm24265_vm15, %vm24325_vm5  ;;  %vm24332_vm15 = vnez %v24118_v18  ;;  %v10945_v50 = vsel %vm24310_vm8, %v20922_v51, 0.0  ;;  %vm24375_vm8 = vnez %v24131_v60 }
 0x8cf   : > { %v10516_v11 = vsel %vm24326_vm0, %v20962_v40, 0.0  ;;  %vm24327_vm12 = vmmov %vm24320_vm7  ;;  %vm24328_vm7 = vnez %v24115_v57  ;;  %v10658_v53 = vsel %vm24332_vm15, %v20817_v14, 0.0 }
 0x8d0   : > { %14371 = vmatmul.mubr.msk.f32.gmra.mrb[54].mxu0 %vm24327_vm12, %v10516_v11  ;;  %v10656_v41 = vsel %vm24328_vm7, %v20790_v28, 0.0  ;;  %vm24329_vm4 = vmmov %vm24324_vm9  ;;  %vm24335_vm12 = vnez %v24125_v5  ;;  %v10946_v11 = vsel %vm24313_vm13, %v20940_v17, 0.0 }
 0x8d1   : > { %14375 = vmatprep.mubr.msk.f32.mxu0 %vm24329_vm4, %v10656_v41  ;;  %vm24331_vm10 = vmmov %vm24329_vm4  ;;  %v10660_v56 = vsel %vm24335_vm12, %v20841_v39, 0.0  ;;  %v10947_v41 = vsel %vm24318_vm2, %v20945_v10, 0.0 }
 0x8d2   : > { %vm24333_vm9 = vmmov %vm24329_vm4 }
 0x8d3   : > { %vm24334_vm0 = vmmov %vm24329_vm4 }
 0x8d4   : > { %14376 = vmatmul.mubr.msk.f32.vlgmr.msra.gmra.mrb[48].mxu0 %vm24331_vm10, %v10657_v29  ;;  %vm24336_vm4 = vmmov %vm24334_vm0  ;;  %vm24337_vm10 = vnez %v24131_v60  ;;  %v10948_v29 = vsel %vm24321_vm11, %v20962_v40, 0.0 }
 0x8d5   : > { %14378 = vmatprep.mubr.msk.f32.mxu0 %vm24333_vm9, %v10658_v53  ;;  %14388 = vmatpush3.msra.mxu0 %v12431_v44  ;;  %v10661_v34 = vsel %vm24337_vm10, %v20846_v33, 0.0  ;;  %vm24338_vm15 = vmmov %vm24334_vm0  ;;  %vm24339_vm9 = vnez %v24133_v61 }
 0x8d6   : > { %14401 = vmatprep.subr.mxu0 %v12440_v22  ;;  %v10662_v44 = vsel %vm24339_vm9, %v20866_v45, 0.0  ;;  %vm24340_vm6 = vmmov %vm24334_vm0 }
 0x8d7   : > { %vm24342_vm14 = vmmov %vm24336_vm4 }
 0x8d8   : > { %14379 = vmatmul.mubr.msk.f32.gmra.mrb[50].mxu0 %vm24334_vm0, %v10659_v3  ;;  %vm24341_vm0 = vnez %v24139_v7  ;;  %vm24344_vm9 = vmmov %vm24336_vm4 }
 0x8d9   : > { %14381 = vmatprep.mubr.msk.f32.mxu0 %vm24336_vm4, %v10660_v56  ;;  %v10663_v0 = vsel %vm24341_vm0, %v20775_v8, 0.0  ;;  %vm24347_vm0 = vmmov %vm24336_vm4  ;;  %v12467_v56 = vld [vmem:[%s21234_s8 + $0x40] sm:$0xff] }
 0x8da   : > { %vm24348_vm10 = vmmov %vm24347_vm0 }
 0x8dc   : > { %14382 = vmatmul.mubr.msk.f32.gmra.mrb[52].mxu0 %vm24338_vm15, %v10661_v34  ;;  %vm24343_vm15 = vmmov %vm24336_vm4 }
 0x8dd   : > { %14384 = vmatprep.mubr.msk.f32.mxu0 %vm24340_vm6, %v10662_v44  ;;  %vm24345_vm6 = vmmov %vm24336_vm4 }
 0x8e0   : > { %14385 = vmatmul.mubr.msk.f32.gmra.mrb[54].mxu0 %vm24342_vm14, %v10663_v0  ;;  %vm24346_vm14 = vmmov %vm24336_vm4 }
 0x8e1   : > { %14389 = vmatprep.mubr.msk.f32.mxu0 %vm24336_vm4, %v20723_v23 }
 0x8e4   : > { %14390 = vmatmul.mubr.msk.f32.vlgmr.msra.gmra.mrb[48].mxu0 %vm24343_vm15, %v20725_v46  ;;  %vm24350_vm15 = vmmov %vm24347_vm0 }
 0x8e5   : > { %14392 = vmatprep.mubr.msk.f32.mxu0 %vm24344_vm9, %v20732_v30  ;;  %14402 = vmatpush3.msra.mxu0 %v12440_v22  ;;  %vm24349_vm9 = vmmov %vm24347_vm0  ;;  %v10949_v22 = vsel %vm24325_vm5, %v20871_v35, 0.0  ;;  %vm24364_vm5 = vnez %v24210_v38 }
 0x8e6   : > { %14415 = vmatprep.subr.mxu0 %v12449_v36 }
 0x8e8   : > { %14393 = vmatmul.mubr.msk.f32.gmra.mrb[50].mxu0 %vm24345_vm6, %v20741_v49  ;;  %vm24353_vm6 = vmmov %vm24336_vm4 }
 0x8e9   : > { %14395 = vmatprep.mubr.msk.f32.mxu0 %vm24346_vm14, %v20750_v31  ;;  %vm24354_vm14 = vmmov %vm24336_vm4 }
 0x8ec   : > { %14396 = vmatmul.mubr.msk.f32.gmra.mrb[52].mxu0 %vm24336_vm4, %v20755_v52 }
 0x8ed   : > { %14398 = vmatprep.mubr.msk.f32.mxu0 %vm24347_vm0, %v20747_v12  ;;  %vm24351_vm0 = vnez %v24148_v27 }
 0x8ee   : > { %v10944_v58 = vsel %vm24351_vm0, %v20916_v25, 0.0 }
 0x8f0   : > { %14399 = vmatmul.mubr.msk.f32.gmra.mrb[54].mxu0 %vm24348_vm10, %v20727_v42  ;;  %vm24352_vm10 = vmmov %vm24336_vm4 }
 0x8f1   : > { %14403 = vmatprep.mubr.msk.f32.mxu0 %vm24349_vm9, %v10942_v32  ;;  %vm24355_vm9 = vmmov %vm24336_vm4 }
 0x8f4   : > { %14404 = vmatmul.mubr.msk.f32.vlgmr.msra.gmra.mrb[48].mxu0 %vm24350_vm15, %v10943_v24  ;;  %vm24356_vm15 = vmmov %vm24336_vm4 }
 0x8f5   : > { %14406 = vmatprep.mubr.msk.f32.mxu0 %vm24352_vm10, %v10944_v58  ;;  %14416 = vmatpush3.msra.mxu0 %v12449_v36  ;;  %vm24357_vm10 = vnez %v24201_v55  ;;  %v11561_v55 = vld [vmem:[%s21236_s10] sm:$0xff] }
 0x8f6   : > { %14429 = vmatprep.subr.mxu0 %v12458_v6 }
 0x8f8   : > { %14407 = vmatmul.mubr.msk.f32.gmra.mrb[50].mxu0 %vm24353_vm6, %v10945_v50  ;;  %vm24358_vm6 = vmand %vm24357_vm10, %vm24328_vm7  ;;  %vm24365_vm7 = vnez %v24118_v18 }
 0x8f9   : > { %14409 = vmatprep.mubr.msk.f32.mxu0 %vm24354_vm14, %v10946_v11  ;;  %v11089_v53 = vsel %vm24358_vm6, %v20796_v1, 0.0  ;;  %vm24359_vm14 = vmmov %vm24336_vm4  ;;  %v11236_v1 = vsel %vm24357_vm10, %v20725_v46, 0.0 }
 0x8fa   : > { %vm24366_vm6 = vmand %vm24364_vm5, %vm24365_vm7 }
 0x8fb   : > { %v11091_v57 = vsel %vm24366_vm6, %v20823_v48, 0.0  ;;  %vm24370_vm13 = vmmov %vm24359_vm14 }
 0x8fc   : > { %14410 = vmatmul.mubr.msk.f32.gmra.mrb[52].mxu0 %vm24336_vm4, %v10947_v41  ;;  %vm24360_vm4 = vnez %v24204_v13  ;;  %vm24373_vm6 = vmmov %vm24370_vm13 }
 0x8fd   : > { %14412 = vmatprep.mubr.msk.f32.mxu0 %vm24355_vm9, %v10948_v29  ;;  %vm24361_vm9 = vnez %v24120_v9 }
 0x8fe   : > { %vm24362_vm11 = vmand %vm24360_vm4, %vm24361_vm9  ;;  %vm24368_vm9 = vnez %v24123_v43 }
 0x8ff   : > { %v11090_v3 = vsel %vm24362_vm11, %v20817_v14, 0.0  ;;  %vm24367_vm11 = vnez %v24215_v62 }
 0x900   : > { %14413 = vmatmul.mubr.msk.f32.gmra.mrb[54].mxu0 %vm24356_vm15, %v10949_v22  ;;  %vm24363_vm15 = vmmov %vm24359_vm14  ;;  %v11562_v22 = vld [vmem:[%s21236_s10 + $0x8] sm:$0xff] }
 0x901   : > { %14417 = vmatprep.mubr.msk.f32.mxu0 %vm24359_vm14, %v11089_v53  ;;  %vm24369_vm2 = vmand %vm24367_vm11, %vm24368_vm9 }
 0x902   : > { %v11092_v9 = vsel %vm24369_vm2, %v20841_v39, 0.0  ;;  %vm24377_vm9 = vmmov %vm24373_vm6  ;;  %vm24379_vm2 = vnez %v24133_v61  ;;  %v11237_v61 = vsel %vm24360_vm4, %v20732_v30, 0.0 }
 0x904   : > { %14418 = vmatmul.mubr.msk.f32.vlgmr.msra.gmra.mrb[48].mxu0 %vm24363_vm15, %v11090_v3  ;;  %vm24371_vm15 = vnez %v24218_v20 }
 0x905   : > { %14420 = vmatprep.mubr.msk.f32.mxu0 %vm24359_vm14, %v11091_v57  ;;  %14430 = vmatpush3.msra.mxu0 %v12458_v6  ;;  %vm24372_vm7 = vmand %vm24371_vm15, %vm24335_vm12  ;;  %vm24374_vm14 = vnez %v24222_v19  ;;  %v11240_v46 = vsel %vm24371_vm15, %v20755_v52, 0.0 }
 0x906   : > { %14443 = vmatprep.subr.mxu0 %v12467_v56  ;;  %v11093_v18 = vsel %vm24372_vm7, %v20846_v33, 0.0  ;;  %vm24376_vm0 = vmand %vm24374_vm14, %vm24375_vm8  ;;  %vm24382_vm7 = vnez %v24231_v21  ;;  %v11241_v30 = vsel %vm24374_vm14, %v20747_v12, 0.0 }
 0x907   : > { %v11094_v43 = vsel %vm24376_vm0, %v20866_v45, 0.0  ;;  %vm24381_vm12 = vmmov %vm24373_vm6 }
 0x908   : > { %14421 = vmatmul.mubr.msk.f32.gmra.mrb[50].mxu0 %vm24370_vm13, %v11092_v9  ;;  %vm24378_vm13 = vnez %v24226_v54  ;;  %vm24385_vm8 = vmmov %vm24377_vm9 }
 0x909   : > { %14423 = vmatprep.mubr.msk.f32.mxu0 %vm24373_vm6, %v11093_v18  ;;  %vm24380_vm1 = vmand %vm24378_vm13, %vm24379_vm2  ;;  %vm24383_vm6 = vnez %v24139_v7  ;;  %v11238_v7 = vsel %vm24364_vm5, %v20741_v49, 0.0  ;;  %v11242_v49 = vsel %vm24378_vm13, %v20727_v42, 0.0 }
 0x90a   : > { %v11095_v5 = vsel %vm24380_vm1, %v20775_v8, 0.0  ;;  %vm24384_vm3 = vmand %vm24382_vm7, %vm24383_vm6  ;;  %v11239_v8 = vsel %vm24367_vm11, %v20750_v31, 0.0  ;;  %v11243_v31 = vsel %vm24382_vm7, %v20723_v23, 0.0 }
 0x90b   : > { %v11096_v60 = vsel %vm24384_vm3, %v20790_v28, 0.0  ;;  %vm24386_vm0 = vmmov %vm24385_vm8 }
 0x90c   : > { %14424 = vmatmul.mubr.msk.f32.gmra.mrb[52].mxu0 %vm24377_vm9, %v11094_v43  ;;  %vm24387_vm1 = vmmov %vm24386_vm0 }
 0x90d   : > { %14426 = vmatprep.mubr.msk.f32.mxu0 %vm24381_vm12, %v11095_v5  ;;  %vm24388_vm9 = vmmov %vm24386_vm0 }
 0x90e   : > { %vm24389_vm3 = vmmov %vm24386_vm0 }
 0x90f   : > { %vm24390_vm2 = vmmov %vm24386_vm0 }
 0x910   : > { %14427 = vmatmul.mubr.msk.f32.gmra.mrb[54].mxu0 %vm24385_vm8, %v11096_v60  ;;  %vm24391_vm12 = vmmov %vm24386_vm0 }
 0x911   : > { %14431 = vmatprep.mubr.msk.f32.mxu0 %vm24386_vm0, %v11236_v1  ;;  %vm24392_vm6 = vmmov %vm24386_vm0 }
 0x912   : > { %vm24393_vm8 = vmmov %vm24386_vm0  ;;  %vm24394_vm0 = vnez %v24143_v4 }
 0x914   : > { %14432 = vmatmul.mubr.msk.f32.vlgmr.msra.gmra.mrb[48].mxu0 %vm24387_vm1, %v11237_v61  ;;  %vm24395_vm1 = vmand %vm24357_vm10, %vm24394_vm0  ;;  %vm24403_vm0 = vnez %v24154_v15 }
 0x915   : > { %14434 = vmatprep.mubr.msk.f32.mxu0 %vm24388_vm9, %v11238_v7  ;;  %14444 = vmatpush3.msra.mxu0 %v12467_v56  ;;  %v11383_v12 = vsel %vm24395_vm1, %v20895_v2, 0.0  ;;  %vm24396_vm9 = vmmov %vm24390_vm2 }
 0x916   : > { %vm24402_vm10 = vmmov %vm24396_vm9 }
 0x917   : > { %vm24404_vm1 = vmand %vm24367_vm11, %vm24403_vm0 }
 0x918   : > { %14435 = vmatmul.mubr.msk.f32.gmra.mrb[50].mxu0 %vm24389_vm3, %v11239_v8  ;;  %vm24397_vm3 = vnez %v24146_v37  ;;  %v11386_v37 = vsel %vm24404_vm1, %v20940_v17, 0.0  ;;  %vm11563_vm1 = vcmask 523264  }
 0x919   : > { %14437 = vmatprep.mubr.msk.f32.mxu0 %vm24390_vm2, %v11240_v46  ;;  %vm24398_vm2 = vmand %vm24360_vm4, %vm24397_vm3  ;;  %14473 = vmatprep.mubr.msk.f32.mxu1 %vm11563_vm1, %v11561_v55 }
 0x91a   : > { %v11384_v42 = vsel %vm24398_vm2, %v20916_v25, 0.0  ;;  %vm24405_vm4 = vmmov %vm24396_vm9  ;;  %vm24409_vm2 = vnez %v24162_v16 }
 0x91b   : > { %vm24411_vm11 = vmmov %vm24405_vm4 }
 0x91c   : > { %14438 = vmatmul.mubr.msk.f32.gmra.mrb[52].mxu0 %vm24391_vm12, %v11241_v30  ;;  %vm24399_vm12 = vmmov %vm24392_vm6 }
 0x91d   : > { %14440 = vmatprep.mubr.msk.f32.mxu0 %vm24392_vm6, %v11242_v49  ;;  %vm24400_vm6 = vnez %v24148_v27 }
 0x920   : > { %14441 = vmatmul.mubr.msk.f32.gmra.mrb[54].mxu0 %vm24393_vm8, %v11243_v31  ;;  %vm24401_vm8 = vmand %vm24364_vm5, %vm24400_vm6  ;;  %vm24412_vm6 = vnez %v24164_v59  ;;  %v12476_v59 = vld [vmem:[%s21235_s9] ss:$0 sm:$0xff] }
 0x921   : > { %14445 = vmatprep.mubr.msk.f32.mxu0 %vm24396_vm9, %v11383_v12  ;;  %v11385_v4 = vsel %vm24401_vm8, %v20922_v51, 0.0  ;;  %vm24406_vm9 = vnez %v24156_v47  ;;  %vm24408_vm5 = vmmov %vm24405_vm4 }
 0x922   : > { %vm24407_vm3 = vmand %vm24371_vm15, %vm24406_vm9 }
 0x923   : > { %v11387_v27 = vsel %vm24407_vm3, %v20945_v10, 0.0  ;;  %vm24413_vm8 = vmand %vm24378_vm13, %vm24412_vm6  ;;  %vm11645_vm13 = vcmask 130048  }
 0x924   : > { %14446 = vmatmul.mubr.msk.f32.vlgmr.msra.gmra.mrb[48].mxu0 %vm24399_vm12, %v11384_v42  ;;  %vm24410_vm12 = vmand %vm24374_vm14, %vm24409_vm2  ;;  %v11389_v47 = vsel %vm24413_vm8, %v20871_v35, 0.0 }
 0x925   : > { %14448 = vmatprep.mubr.msk.f32.mxu0 %vm24402_vm10, %v11385_v4  ;;  %v11388_v15 = vsel %vm24410_vm12, %v20962_v40, 0.0  ;;  %vm24414_vm15 = vmmov %vm24405_vm4  ;;  %vm24415_vm10 = vnez %v24171_v26 }
 0x926   : > { %vm24416_vm0 = vmand %vm24382_vm7, %vm24415_vm10 }
 0x927   : > { %v11390_v16 = vsel %vm24416_vm0, %v20889_v63, 0.0  ;;  %vm24417_vm14 = vmmov %vm24405_vm4 }
 0x928   : > { %14449 = vmatmul.mubr.msk.f32.gmra.mrb[50].mxu0 %vm24405_vm4, %v11386_v37 }
 0x929   : > { %14451 = vmatprep.mubr.msk.f32.mxu0 %vm24408_vm5, %v11387_v27 }
 0x92c   : > { %14452 = vmatmul.mubr.msk.f32.gmra.mrb[52].mxu0 %vm24411_vm11, %v11388_v15 }
 0x92d   : > { %14454 = vmatprep.mubr.msk.f32.mxu0 %vm24414_vm15, %v11389_v47 }
 0x930   : > { %14455 = vmatmul.mubr.msk.f32.gmra.mrb[54].mxu0 %vm24417_vm14, %v11390_v16 }
 0x9f7   : > { %v14447_v13 = vpop.f32.mrb[48].mxu0 }
 0x9f8   : > { %v11538_v38 = vadd.f32 %v14447_v13, %v12476_v59  ;;  %v11483_v62 = vpop.f32.mrb[49].mxu0 }
 0x9f9   : > { %v11537_v20 = vadd.f32 %v12476_v59, %v11483_v62 }
 0x9fa   : > { %v11546_v26 = vmax.f32 %v11538_v38, 0.0 }
 0x9fb   : > { %v11545_v19 = vmax.f32 %v11537_v20, 0.0  ;;  %v14450_v54 = vpop.f32.mrb[50].mxu0 }
 0x9fc   : > { %v11554_v21 = vmax.f32 %v11546_v26, 0.0  ;;  %v11540_v23 = vadd.f32 %v14450_v54, %v12476_v59  ;;  %v11493_v52 = vpop.f32.mrb[51].mxu0 }
 0x9fd   : > { %v11553_v28 = vmax.f32 %v11545_v19, 0.0  ;;  %v11539_v14 = vadd.f32 %v12476_v59, %v11493_v52 }
 0x9fe   : > { %v11548_v48 = vmax.f32 %v11540_v23, 0.0 }
 0x9ff   : > { %v14508_v39 = vpack.c.bf16 %v11554_v21, %v11553_v28  ;;  %v11547_v33 = vmax.f32 %v11539_v14, 0.0  ;;  %v14453_v45 = vpop.f32.mrb[52].mxu0 }
 0xa00   : > { %v11556_v35 = vmax.f32 %v11548_v48, 0.0  ;;  %v11542_v63 = vadd.f32 %v14453_v45, %v12476_v59  ;;  %v11503_v2 = vpop.f32.mrb[53].mxu0 }
 0xa01   : > { %v11555_v25 = vmax.f32 %v11547_v33, 0.0  ;;  %v11541_v51 = vadd.f32 %v12476_v59, %v11503_v2  ;;  %14509 = vmatprep.subr.bf16.mxu1 %v14508_v39 }
 0xa02   : > { %v11550_v17 = vmax.f32 %v11542_v63, 0.0  ;;  %14511 = vmatpush3.bf16.msra.mxu1 %v14508_v39 }
 0xa03   : > { %v14512_v10 = vpack.c.bf16 %v11556_v35, %v11555_v25  ;;  %v11549_v40 = vmax.f32 %v11541_v51, 0.0  ;;  %v14456_v34 = vpop.f32.mrb[54].mxu0 }
 0xa04   : > { %v11558_v44 = vmax.f32 %v11550_v17, 0.0  ;;  %v11544_v0 = vadd.f32 %v14456_v34, %v12476_v59  ;;  %v11513_v36 = vpop.f32.mrb[55].mxu0 }
 0xa05   : > { %v11557_v32 = vmax.f32 %v11549_v40, 0.0  ;;  %v11543_v24 = vadd.f32 %v12476_v59, %v11513_v36  ;;  %14513 = vmatprep.subr.bf16.mxu1 %v14512_v10 }
 0xa06   : > { %v11552_v6 = vmax.f32 %v11544_v0, 0.0  ;;  %14515 = vmatpush3.bf16.msra.mxu1 %v14512_v10 }
 0xa07   : > { %v14516_v58 = vpack.c.bf16 %v11558_v44, %v11557_v32  ;;  %v11551_v50 = vmax.f32 %v11543_v24, 0.0 }
 0xa08   : > { %v11560_v11 = vmax.f32 %v11552_v6, 0.0 }
 0xa09   : > { %v11559_v41 = vmax.f32 %v11551_v50, 0.0  ;;  %14517 = vmatprep.subr.bf16.mxu1 %v14516_v58 }
 0xa0a   : > { %14519 = vmatpush3.bf16.msra.mxu1 %v14516_v58 }
 0xa0b   : > { %v14520_v29 = vpack.c.bf16 %v11560_v11, %v11559_v41 }
 0xa0d   : > { %14521 = vmatprep.subr.bf16.mxu1 %v14520_v29 }
 0xa0e   : > { %14523 = vmatpush3.bf16.msra.mxu1 %v14520_v29 }
 0xa11   : > { %14474 = vmatmul.mubr.msk.f32.vlgmr.msra.gmra.mrb[46].mxu1 %vm11563_vm1, %v11562_v22 }
 0xae4   : > { %v14475_v53 = vpop.f32.mrb[46].mxu1 }
 0xae5   : > { %11647 = vst.msk [vmem:[%s386_s23 + $0x8] sm:$0xff] %vm11645_vm13, %v14475_v53  ;;  %v11636_v3 = vpop.f32.mrb[47].mxu1 }
 0xae6   : > { %11646 = vst.msk [vmem:[%s386_s23] sm:$0xff] %vm11645_vm13, %v11636_v3 }
 0xae7 PF: > { %s21_s17 = sadd.s32 1, %s15212_s17  }
 0xae8   : > { %p18_p4 = scmp.ge.s32.totalorder %s21_s17, 4  }
 0xaea   :  { %20 = sbr.rel (!%p18_p4) target bundleno = 1 (0x1), region = 126 }

</bundles_post_ra>
